<compile_context>
chip_gen: v7x
topology: tpu7x:2x2x1
jax: 0.10.0
libtpu: 0.0.40
codegen_flags: <defaults>
</compile_context>

<pallas_src>
import math

import jax
import jax.numpy as jnp
from jax.experimental import pallas as pl
from jax.experimental.pallas import tpu as pltpu


# ---------------------------------------------------------------------------
# Fused forward kernel builder
# ---------------------------------------------------------------------------
def _build_kernel(B, T, num_filters):
    BT = B * T

    def kernel(*refs):
        it = iter(refs)

        def take(n):
            return [next(it) for _ in range(n)]

        (x_ref,) = take(1)
        (mask_ref,) = take(1)
        att1 = take(2)
        tc1 = [take(2) for _ in range(num_filters)]
        att2 = take(2)
        tc2 = [take(2) for _ in range(num_filters)]
        att3 = take(2)
        dw_ref, db_ref = take(2)
        o1_ref, o2_ref, o3_ref = take(3)

        x = x_ref[...]                                   # (B*T, H) f32
        mb = mask_ref[...]                               # (B, T)   f32 bias
        # per-row "position within batch" index (hoisted; reused by every tap)
        t_idx = jax.lax.broadcasted_iota(jnp.int32, (BT, 1), 0) % T

        def matmul(x_f32, w_ref, b_ref):
            # Position-wise linear on the full (B*T, Cin) slab; bf16 MXU
            # operands, f32 accumulation, f32 bias add.
            return (jnp.dot(x_f32.astype(jnp.bfloat16), w_ref[...],
                            preferred_element_type=jnp.float32) + b_ref[...])

        def attention(x, w_ref, b_ref, key_size):
            # Fused [Q | K | V] projection in a single MXU matmul.
            qkv = matmul(x, w_ref, b_ref)
            q = qkv[:, :key_size]
            k = qkv[:, key_size:2 * key_size]
            v = qkv[:, 2 * key_size:]
            inv = 1.0 / math.sqrt(key_size)
            outs = []
            for b in range(B):                # static unroll; per-batch (T,T)
                qb = q[b * T:(b + 1) * T].astype(jnp.bfloat16)
                kb = k[b * T:(b + 1) * T].astype(jnp.bfloat16)
                vb = v[b * T:(b + 1) * T].astype(jnp.bfloat16)
                # scores = Q K^T (contract dim 1 of both; no explicit transpose)
                s = jax.lax.dot_general(qb, kb, (((1,), (1,)), ((), ())),
                                        preferred_element_type=jnp.float32)
                # torch: softmax((scores + mask_bias) / sqrt(key), dim=1) where
                # dim=1 is the *query* axis -> axis 0 of this per-batch slab.
                s = (s + mb[b:b + 1, :]) * inv
                smax = jnp.max(s, axis=0, keepdims=True)
                e = jnp.exp(s - smax)
                p = e / jnp.sum(e, axis=0, keepdims=True)
                outs.append(jnp.dot(p.astype(jnp.bfloat16), vb,
                                    preferred_element_type=jnp.float32))
            attn = jnp.concatenate(outs, axis=0)          # (B*T, value_size)
            return jnp.concatenate([x, attn], axis=-1)    # cat((input, out), dim=2)

        def shift_rows(x, off):
            # Zero-padded conv tap: y[b*T+t] = x[b*T+t+off] if 0 <= t+off < T else 0.
            # Static sublane shift + boundary mask; the mask also guards
            # against cross-batch contamination.
            if off == 0:
                return x
            pad = jnp.zeros((abs(off), x.shape[1]), x.dtype)
            if off > 0:
                y = jnp.concatenate([x[off:, :], pad], axis=0)
                valid = t_idx < (T - off)
            else:
                y = jnp.concatenate([pad, x[:off, :]], axis=0)
                valid = t_idx >= (-off)
            return jnp.where(valid, y, 0.0)

        def dense_block(x, dilation, w_ref, b_ref, cout):
            # Both dilated convs (tanh and sigmoid branch) fused into a single
            # (B*T, 3*Cin) @ (3*Cin, 2*Cout) matmul.  Taps ordered (-d, 0, +d).
            xs = jnp.concatenate(
                [shift_rows(x, -dilation), x, shift_rows(x, dilation)], axis=-1)
            y = matmul(xs, w_ref, b_ref)
            act = jnp.tanh(y[:, :cout]) * jax.nn.sigmoid(y[:, cout:])
            return jnp.concatenate([x, act], axis=-1)     # cat((input, act), dim=1)

        x = attention(x, *att1, key_size=192)
        o1_ref[...] = x                                   # encoder layer 1
        for i in range(num_filters):                      # TC1
            x = dense_block(x, 2 ** i, *tc1[i], cout=64)
        x = attention(x, *att2, key_size=384)
        o2_ref[...] = x                                   # encoder layer 2
        for i in range(num_filters):                      # TC2
            x = dense_block(x, 2 ** i, *tc2[i], cout=128)
        x = attention(x, *att3, key_size=768)
        o3_ref[...] = matmul(x, dw_ref, db_ref)           # final dense

    return kernel


# ---------------------------------------------------------------------------
# Parameter init (deterministic, synthetic).  Weights are stored bf16 in the
# layout the fused kernel consumes; biases stay f32.
# ---------------------------------------------------------------------------
def _lin_params(key, fan_in, fan_out):
    kw, kb = jax.random.split(key)
    w = (jax.random.normal(kw, (fan_in, fan_out), jnp.float32) * 0.02).astype(jnp.bfloat16)
    b = jax.random.normal(kb, (1, fan_out), jnp.float32) * 0.02
    return w, b


def _att_params(key, cin, key_size, value_size):
    # Fused [Q | K | V] projection.  A torch checkpoint maps in with
    #   W[:, :k]    = linear_query.weight.T,   W[:, k:2k] = linear_keys.weight.T,
    #   W[:, 2k:]   = linear_values.weight.T,
    #   bias        = concat([query.bias, keys.bias, values.bias]).
    return _lin_params(key, cin, 2 * key_size + value_size)


def _fused_conv_params(key, cin, cout):
    # Two torch Conv1d(cin, cout, 3, dilation=d, padding=d) fused into one weight:
    #   rows [k*cin:(k+1)*cin] = tap k (tap k reads x[t + (k-1)*d]),
    #   cols [:cout]           = tanh branch  (causalconv1),
    #   cols [cout:]           = sigmoid branch (causalconv2).
    # Checkpoint mapping: W[k*cin:(k+1)*cin, :cout] = conv1.weight[:, :, k].T and
    # bias = concat([conv1.bias, conv2.bias]).
    return _lin_params(key, 3 * cin, 2 * cout)


def init_snail_params(key, hidden_size, seq_length):
    num_filters = int(math.ceil(math.log(seq_length + 1, 2)))
    keys = iter(jax.random.split(key, 64))
    params = {}
    c = hidden_size
    params["att1"] = _att_params(next(keys), c, 192, 96)
    c += 96
    params["tc1"] = [_fused_conv_params(next(keys), c + i * 64, 64)
                     for i in range(num_filters)]
    c += num_filters * 64
    params["att2"] = _att_params(next(keys), c, 384, 192)
    c += 192
    params["tc2"] = [_fused_conv_params(next(keys), c + i * 128, 128)
                     for i in range(num_filters)]
    c += num_filters * 128
    params["att3"] = _att_params(next(keys), c, 768, 384)
    c += 384
    params["dense"] = _lin_params(next(keys), c, hidden_size)
    return params


# ---------------------------------------------------------------------------
# Full SnailEncoder forward: one pallas_call.
# ---------------------------------------------------------------------------
def snail_encoder_forward(params, x, attention_mask, seq_length):
    """Returns all_encoder_layers = [after att1, after att2, after dense]."""
    B, T, H = x.shape
    BT = B * T
    num_filters = int(math.ceil(math.log(seq_length + 1, 2)))
    c1 = H + 96                                   # width after attention1
    c2 = c1 + num_filters * 64 + 192              # width after attention2

    x2d = x.reshape(BT, H).astype(jnp.float32)
    # (1 - mask) * -1e6, precomputed once; added before the 1/sqrt(key) scale
    # exactly as in the torch reference.
    mask_bias = (1.0 - attention_mask.astype(jnp.float32)) * -1000000.0   # (B, T)

    flat = [x2d, mask_bias]
    flat += list(params["att1"])
    for blk in params["tc1"]:
        flat += list(blk)
    flat += list(params["att2"])
    for blk in params["tc2"]:
        flat += list(blk)
    flat += list(params["att3"])
    flat += list(params["dense"])

    o1, o2, o3 = pl.pallas_call(
        _build_kernel(B, T, num_filters),
        out_shape=(jax.ShapeDtypeStruct((BT, c1), jnp.float32),
                   jax.ShapeDtypeStruct((BT, c2), jnp.float32),
                   jax.ShapeDtypeStruct((BT, H), jnp.float32)),
        # No grid / no BlockSpecs: every operand is a whole array resident in
        # VMEM (total bf16 weights ~7.5 MB).  32 MiB scoped VMEM is safe on
        # v5e/v6e (128 MiB physical) and leaves headroom under v7x's 64 MiB.
        compiler_params=pltpu.CompilerParams(vmem_limit_bytes=32 * 1024 * 1024),
    )(*flat)
    return [o1.reshape(B, T, c1), o2.reshape(B, T, c2), o3.reshape(B, T, H)]


if __name__ == "__main__":
    hidden_size = 32
    seq_length = 7          # module's seq_length constructor arg
    T = seq_length + 1      # runtime sequence length
    B = 2

    key = jax.random.PRNGKey(0)
    kp, kx = jax.random.split(key)
    params = init_snail_params(kp, hidden_size, seq_length)
    x = jax.random.normal(kx, (B, T, hidden_size), jnp.float32)
    attention_mask = jnp.ones((B, T), jnp.float32).at[1, T - 2:].set(0.0)

    fwd = jax.jit(lambda p, xx, mm: snail_encoder_forward(p, xx, mm, seq_length))
    outs = fwd(params, x, attention_mask)
    for o in outs:
        jax.block_until_ready(o)

    num_filters = int(math.ceil(math.log(seq_length + 1, 2)))
    assert outs[0].shape == (B, T, hidden_size + 96)
    assert outs[1].shape == (B, T, hidden_size + 96 + num_filters * 64 + 192)
    assert outs[2].shape == (B, T, hidden_size)
    assert all(bool(jnp.all(jnp.isfinite(o))) for o in outs)
    print("KERNEL_OK")
</pallas_src>

<mosaic_0001>
module attributes {stable_mosaic.version = 11 : i64} {
  func.func @kernel(%arg0: memref<16x32xf32, #tpu.memory_space<vmem>>, %arg1: memref<2x8xf32, #tpu.memory_space<vmem>>, %arg2: memref<32x480xbf16, #tpu.memory_space<vmem>>, %arg3: memref<1x480xf32, #tpu.memory_space<vmem>>, %arg4: memref<384x128xbf16, #tpu.memory_space<vmem>>, %arg5: memref<1x128xf32, #tpu.memory_space<vmem>>, %arg6: memref<576x128xbf16, #tpu.memory_space<vmem>>, %arg7: memref<1x128xf32, #tpu.memory_space<vmem>>, %arg8: memref<768x128xbf16, #tpu.memory_space<vmem>>, %arg9: memref<1x128xf32, #tpu.memory_space<vmem>>, %arg10: memref<320x960xbf16, #tpu.memory_space<vmem>>, %arg11: memref<1x960xf32, #tpu.memory_space<vmem>>, %arg12: memref<1536x256xbf16, #tpu.memory_space<vmem>>, %arg13: memref<1x256xf32, #tpu.memory_space<vmem>>, %arg14: memref<1920x256xbf16, #tpu.memory_space<vmem>>, %arg15: memref<1x256xf32, #tpu.memory_space<vmem>>, %arg16: memref<2304x256xbf16, #tpu.memory_space<vmem>>, %arg17: memref<1x256xf32, #tpu.memory_space<vmem>>, %arg18: memref<896x1920xbf16, #tpu.memory_space<vmem>>, %arg19: memref<1x1920xf32, #tpu.memory_space<vmem>>, %arg20: memref<1280x32xbf16, #tpu.memory_space<vmem>>, %arg21: memref<1x32xf32, #tpu.memory_space<vmem>>, %arg22: memref<16x128xf32, #tpu.memory_space<vmem>>, %arg23: memref<16x512xf32, #tpu.memory_space<vmem>>, %arg24: memref<16x32xf32, #tpu.memory_space<vmem>>) attributes {dimension_semantics = [], scalar_prefetch = 0 : i64, scratch_operands = 0 : i64, tpu.core_type = #tpu.core_type<tc>} {
    %c0 = arith.constant 0 : index
    %c0_0 = arith.constant 0 : index
    %0 = vector.load %arg0[%c0, %c0_0] : memref<16x32xf32, #tpu.memory_space<vmem>>, vector<16x32xf32>
    %c0_1 = arith.constant 0 : index
    %c0_2 = arith.constant 0 : index
    %1 = vector.load %arg1[%c0_1, %c0_2] : memref<2x8xf32, #tpu.memory_space<vmem>>, vector<2x8xf32>
    %2 = tpu.iota {dimensions = array<i32: 0>} : vector<16x1xi32>
    %c8_i32 = arith.constant 8 : i32
    %c0_i32 = arith.constant 0 : i32
    %3 = arith.cmpi eq, %c8_i32, %c0_i32 : i32
    %c1_i32 = arith.constant 1 : i32
    %4 = arith.select %3, %c1_i32, %c8_i32 : i32
    %5 = vector.broadcast %4 : i32 to vector<16x1xi32>
    %6 = arith.remsi %2, %5 : vector<16x1xi32>
    %c0_i32_3 = arith.constant 0 : i32
    %7 = vector.broadcast %c0_i32_3 : i32 to vector<16x1xi32>
    %8 = arith.cmpi ne, %6, %7 : vector<16x1xi32>
    %c0_i32_4 = arith.constant 0 : i32
    %9 = vector.broadcast %c0_i32_4 : i32 to vector<16x1xi32>
    %10 = arith.cmpi slt, %6, %9 : vector<16x1xi32>
    %c0_i32_5 = arith.constant 0 : i32
    %11 = arith.cmpi slt, %4, %c0_i32_5 : i32
    %12 = vector.broadcast %11 : i1 to vector<16x1xi1>
    %13 = vector.broadcast %12 : vector<16x1xi1> to vector<16x1xi1>
    %14 = arith.xori %10, %13 : vector<16x1xi1>
    %15 = arith.andi %14, %8 : vector<16x1xi1>
    %16 = vector.broadcast %4 : i32 to vector<16x1xi32>
    %17 = arith.addi %6, %16 : vector<16x1xi32>
    %18 = arith.select %15, %17, %6 : vector<16x1xi1>, vector<16x1xi32>
    %19 = arith.truncf %0 : vector<16x32xf32> to vector<16x32xbf16>
    %c0_6 = arith.constant 0 : index
    %c0_7 = arith.constant 0 : index
    %20 = vector.load %arg2[%c0_6, %c0_7] : memref<32x480xbf16, #tpu.memory_space<vmem>>, vector<32x480xbf16>
    %cst = arith.constant dense<0.000000e+00> : vector<16x480xf32>
    %21 = tpu.matmul %19, %20, %cst {dimension_numbers = #tpu.dot_dimension_numbers<[1], [0], [0], [1], [0, 0, 1, 1], [], []>} : vector<16x32xbf16>, vector<32x480xbf16>, vector<16x480xf32> -> vector<16x480xf32>
    %c0_8 = arith.constant 0 : index
    %c0_9 = arith.constant 0 : index
    %22 = vector.load %arg3[%c0_8, %c0_9] : memref<1x480xf32, #tpu.memory_space<vmem>>, vector<1x480xf32>
    %23 = vector.broadcast %22 : vector<1x480xf32> to vector<16x480xf32>
    %24 = arith.addf %21, %23 : vector<16x480xf32>
    %25 = vector.extract_strided_slice %24 {offsets = [0, 0], sizes = [16, 192], strides = [1, 1]} : vector<16x480xf32> to vector<16x192xf32>
    %26 = vector.extract_strided_slice %24 {offsets = [0, 192], sizes = [16, 192], strides = [1, 1]} : vector<16x480xf32> to vector<16x192xf32>
    %27 = vector.extract_strided_slice %24 {offsets = [0, 384], sizes = [16, 96], strides = [1, 1]} : vector<16x480xf32> to vector<16x96xf32>
    %28 = vector.extract_strided_slice %25 {offsets = [0, 0], sizes = [8, 192], strides = [1, 1]} : vector<16x192xf32> to vector<8x192xf32>
    %29 = arith.truncf %28 : vector<8x192xf32> to vector<8x192xbf16>
    %30 = vector.extract_strided_slice %26 {offsets = [0, 0], sizes = [8, 192], strides = [1, 1]} : vector<16x192xf32> to vector<8x192xf32>
    %31 = arith.truncf %30 : vector<8x192xf32> to vector<8x192xbf16>
    %32 = vector.extract_strided_slice %27 {offsets = [0, 0], sizes = [8, 96], strides = [1, 1]} : vector<16x96xf32> to vector<8x96xf32>
    %33 = arith.truncf %32 : vector<8x96xf32> to vector<8x96xbf16>
    %cst_10 = arith.constant dense<0.000000e+00> : vector<8x8xf32>
    %34 = tpu.matmul %29, %31, %cst_10 {dimension_numbers = #tpu.dot_dimension_numbers<[1], [1], [0], [0], [0, 0, 1, 0], [], []>} : vector<8x192xbf16>, vector<8x192xbf16>, vector<8x8xf32> -> vector<8x8xf32>
    %35 = vector.extract_strided_slice %1 {offsets = [0, 0], sizes = [1, 8], strides = [1, 1]} : vector<2x8xf32> to vector<1x8xf32>
    %36 = vector.broadcast %35 : vector<1x8xf32> to vector<8x8xf32>
    %37 = arith.addf %34, %36 : vector<8x8xf32>
    %cst_11 = arith.constant 0.0721687824 : f32
    %38 = vector.broadcast %cst_11 : f32 to vector<8x8xf32>
    %39 = arith.mulf %37, %38 : vector<8x8xf32>
    %cst_12 = arith.constant dense<0xFF800000> : vector<8xf32>
    %40 = vector.multi_reduction <maximumf>, %39, %cst_12 [0] : vector<8x8xf32> to vector<8xf32>
    %41 = vector.shape_cast %40 : vector<8xf32> to vector<1x8xf32>
    %42 = vector.broadcast %41 : vector<1x8xf32> to vector<8x8xf32>
    %43 = arith.subf %39, %42 : vector<8x8xf32>
    %44 = math.exp %43 : vector<8x8xf32>
    %cst_13 = arith.constant dense<0.000000e+00> : vector<8xf32>
    %45 = vector.multi_reduction <add>, %44, %cst_13 [0] : vector<8x8xf32> to vector<8xf32>
    %46 = vector.shape_cast %45 : vector<8xf32> to vector<1x8xf32>
    %47 = vector.broadcast %46 : vector<1x8xf32> to vector<8x8xf32>
    %48 = arith.divf %44, %47 : vector<8x8xf32>
    %49 = arith.truncf %48 : vector<8x8xf32> to vector<8x8xbf16>
    %cst_14 = arith.constant dense<0.000000e+00> : vector<8x96xf32>
    %50 = tpu.matmul %49, %33, %cst_14 {dimension_numbers = #tpu.dot_dimension_numbers<[1], [0], [0], [1], [0, 0, 1, 1], [], []>} : vector<8x8xbf16>, vector<8x96xbf16>, vector<8x96xf32> -> vector<8x96xf32>
    %51 = vector.extract_strided_slice %25 {offsets = [8, 0], sizes = [8, 192], strides = [1, 1]} : vector<16x192xf32> to vector<8x192xf32>
    %52 = arith.truncf %51 : vector<8x192xf32> to vector<8x192xbf16>
    %53 = vector.extract_strided_slice %26 {offsets = [8, 0], sizes = [8, 192], strides = [1, 1]} : vector<16x192xf32> to vector<8x192xf32>
    %54 = arith.truncf %53 : vector<8x192xf32> to vector<8x192xbf16>
    %55 = vector.extract_strided_slice %27 {offsets = [8, 0], sizes = [8, 96], strides = [1, 1]} : vector<16x96xf32> to vector<8x96xf32>
    %56 = arith.truncf %55 : vector<8x96xf32> to vector<8x96xbf16>
    %cst_15 = arith.constant dense<0.000000e+00> : vector<8x8xf32>
    %57 = tpu.matmul %52, %54, %cst_15 {dimension_numbers = #tpu.dot_dimension_numbers<[1], [1], [0], [0], [0, 0, 1, 0], [], []>} : vector<8x192xbf16>, vector<8x192xbf16>, vector<8x8xf32> -> vector<8x8xf32>
    %58 = vector.extract_strided_slice %1 {offsets = [1, 0], sizes = [1, 8], strides = [1, 1]} : vector<2x8xf32> to vector<1x8xf32>
    %59 = vector.broadcast %58 : vector<1x8xf32> to vector<8x8xf32>
    %60 = arith.addf %57, %59 : vector<8x8xf32>
    %cst_16 = arith.constant 0.0721687824 : f32
    %61 = vector.broadcast %cst_16 : f32 to vector<8x8xf32>
    %62 = arith.mulf %60, %61 : vector<8x8xf32>
    %cst_17 = arith.constant dense<0xFF800000> : vector<8xf32>
    %63 = vector.multi_reduction <maximumf>, %62, %cst_17 [0] : vector<8x8xf32> to vector<8xf32>
    %64 = vector.shape_cast %63 : vector<8xf32> to vector<1x8xf32>
    %65 = vector.broadcast %64 : vector<1x8xf32> to vector<8x8xf32>
    %66 = arith.subf %62, %65 : vector<8x8xf32>
    %67 = math.exp %66 : vector<8x8xf32>
    %cst_18 = arith.constant dense<0.000000e+00> : vector<8xf32>
    %68 = vector.multi_reduction <add>, %67, %cst_18 [0] : vector<8x8xf32> to vector<8xf32>
    %69 = vector.shape_cast %68 : vector<8xf32> to vector<1x8xf32>
    %70 = vector.broadcast %69 : vector<1x8xf32> to vector<8x8xf32>
    %71 = arith.divf %67, %70 : vector<8x8xf32>
    %72 = arith.truncf %71 : vector<8x8xf32> to vector<8x8xbf16>
    %cst_19 = arith.constant dense<0.000000e+00> : vector<8x96xf32>
    %73 = tpu.matmul %72, %56, %cst_19 {dimension_numbers = #tpu.dot_dimension_numbers<[1], [0], [0], [1], [0, 0, 1, 1], [], []>} : vector<8x8xbf16>, vector<8x96xbf16>, vector<8x96xf32> -> vector<8x96xf32>
    %74 = tpu.concatenate %50, %73 in 0 : vector<8x96xf32>, vector<8x96xf32> -> vector<16x96xf32>
    %75 = tpu.concatenate %0, %74 in 1 : vector<16x32xf32>, vector<16x96xf32> -> vector<16x128xf32>
    %c0_20 = arith.constant 0 : index
    %c0_21 = arith.constant 0 : index
    %76 = vector.load %arg22[%c0_20, %c0_21] : memref<16x128xf32, #tpu.memory_space<vmem>>, vector<16x128xf32>
    tpu.vector_store %arg22[%c0_20, %c0_21], %75 {strides = array<i32>} : memref<16x128xf32, #tpu.memory_space<vmem>>, vector<16x128xf32>,
    %cst_22 = arith.constant 0.000000e+00 : f32
    %77 = vector.broadcast %cst_22 : f32 to vector<1x128xf32>
    %78 = vector.extract_strided_slice %75 {offsets = [0, 0], sizes = [15, 128], strides = [1, 1]} : vector<16x128xf32> to vector<15x128xf32>
    %79 = tpu.concatenate %77, %78 in 0 : vector<1x128xf32>, vector<15x128xf32> -> vector<16x128xf32>
    %c1_i32_23 = arith.constant 1 : i32
    %80 = vector.broadcast %c1_i32_23 : i32 to vector<16x1xi32>
    %81 = arith.cmpi sge, %18, %80 : vector<16x1xi32>
    %cst_24 = arith.constant 0.000000e+00 : f32
    %82 = vector.shape_cast %81 : vector<16x1xi1> to vector<16x1xi1>
    %83 = vector.broadcast %82 : vector<16x1xi1> to vector<16x128xi1>
    %84 = vector.broadcast %cst_24 : f32 to vector<16x128xf32>
    %85 = arith.select %83, %79, %84 : vector<16x128xi1>, vector<16x128xf32>
    %cst_25 = arith.constant 0.000000e+00 : f32
    %86 = vector.broadcast %cst_25 : f32 to vector<1x128xf32>
    %87 = vector.extract_strided_slice %75 {offsets = [1, 0], sizes = [15, 128], strides = [1, 1]} : vector<16x128xf32> to vector<15x128xf32>
    %88 = tpu.concatenate %87, %86 in 0 : vector<15x128xf32>, vector<1x128xf32> -> vector<16x128xf32>
    %c7_i32 = arith.constant 7 : i32
    %89 = vector.broadcast %c7_i32 : i32 to vector<16x1xi32>
    %90 = arith.cmpi slt, %18, %89 : vector<16x1xi32>
    %cst_26 = arith.constant 0.000000e+00 : f32
    %91 = vector.shape_cast %90 : vector<16x1xi1> to vector<16x1xi1>
    %92 = vector.broadcast %91 : vector<16x1xi1> to vector<16x128xi1>
    %93 = vector.broadcast %cst_26 : f32 to vector<16x128xf32>
    %94 = arith.select %92, %88, %93 : vector<16x128xi1>, vector<16x128xf32>
    %95 = tpu.concatenate %85, %75, %94 in 1 : vector<16x128xf32>, vector<16x128xf32>, vector<16x128xf32> -> vector<16x384xf32>
    %96 = arith.truncf %95 : vector<16x384xf32> to vector<16x384xbf16>
    %c0_27 = arith.constant 0 : index
    %c0_28 = arith.constant 0 : index
    %97 = vector.load %arg4[%c0_27, %c0_28] : memref<384x128xbf16, #tpu.memory_space<vmem>>, vector<384x128xbf16>
    %cst_29 = arith.constant dense<0.000000e+00> : vector<16x128xf32>
    %98 = tpu.matmul %96, %97, %cst_29 {dimension_numbers = #tpu.dot_dimension_numbers<[1], [0], [0], [1], [0, 0, 1, 1], [], []>} : vector<16x384xbf16>, vector<384x128xbf16>, vector<16x128xf32> -> vector<16x128xf32>
    %c0_30 = arith.constant 0 : index
    %c0_31 = arith.constant 0 : index
    %99 = vector.load %arg5[%c0_30, %c0_31] : memref<1x128xf32, #tpu.memory_space<vmem>>, vector<1x128xf32>
    %100 = vector.broadcast %99 : vector<1x128xf32> to vector<16x128xf32>
    %101 = arith.addf %98, %100 : vector<16x128xf32>
    %102 = vector.extract_strided_slice %101 {offsets = [0, 0], sizes = [16, 64], strides = [1, 1]} : vector<16x128xf32> to vector<16x64xf32>
    %103 = math.tanh %102 : vector<16x64xf32>
    %104 = vector.extract_strided_slice %101 {offsets = [0, 64], sizes = [16, 64], strides = [1, 1]} : vector<16x128xf32> to vector<16x64xf32>
    %105 = arith.negf %104 : vector<16x64xf32>
    %106 = math.exp %105 : vector<16x64xf32>
    %cst_32 = arith.constant 1.000000e+00 : f32
    %107 = vector.broadcast %cst_32 : f32 to vector<16x64xf32>
    %108 = arith.addf %107, %106 : vector<16x64xf32>
    %109 = arith.divf %107, %108 : vector<16x64xf32>
    %110 = arith.mulf %103, %109 : vector<16x64xf32>
    %111 = tpu.concatenate %75, %110 in 1 : vector<16x128xf32>, vector<16x64xf32> -> vector<16x192xf32>
    %cst_33 = arith.constant 0.000000e+00 : f32
    %112 = vector.broadcast %cst_33 : f32 to vector<2x192xf32>
    %113 = vector.extract_strided_slice %111 {offsets = [0, 0], sizes = [14, 192], strides = [1, 1]} : vector<16x192xf32> to vector<14x192xf32>
    %114 = tpu.concatenate %112, %113 in 0 : vector<2x192xf32>, vector<14x192xf32> -> vector<16x192xf32>
    %c2_i32 = arith.constant 2 : i32
    %115 = vector.broadcast %c2_i32 : i32 to vector<16x1xi32>
    %116 = arith.cmpi sge, %18, %115 : vector<16x1xi32>
    %cst_34 = arith.constant 0.000000e+00 : f32
    %117 = vector.shape_cast %116 : vector<16x1xi1> to vector<16x1xi1>
    %118 = vector.broadcast %117 : vector<16x1xi1> to vector<16x192xi1>
    %119 = vector.broadcast %cst_34 : f32 to vector<16x192xf32>
    %120 = arith.select %118, %114, %119 : vector<16x192xi1>, vector<16x192xf32>
    %cst_35 = arith.constant 0.000000e+00 : f32
    %121 = vector.broadcast %cst_35 : f32 to vector<2x192xf32>
    %122 = vector.extract_strided_slice %111 {offsets = [2, 0], sizes = [14, 192], strides = [1, 1]} : vector<16x192xf32> to vector<14x192xf32>
    %123 = tpu.concatenate %122, %121 in 0 : vector<14x192xf32>, vector<2x192xf32> -> vector<16x192xf32>
    %c6_i32 = arith.constant 6 : i32
    %124 = vector.broadcast %c6_i32 : i32 to vector<16x1xi32>
    %125 = arith.cmpi slt, %18, %124 : vector<16x1xi32>
    %cst_36 = arith.constant 0.000000e+00 : f32
    %126 = vector.shape_cast %125 : vector<16x1xi1> to vector<16x1xi1>
    %127 = vector.broadcast %126 : vector<16x1xi1> to vector<16x192xi1>
    %128 = vector.broadcast %cst_36 : f32 to vector<16x192xf32>
    %129 = arith.select %127, %123, %128 : vector<16x192xi1>, vector<16x192xf32>
    %130 = tpu.concatenate %120, %111, %129 in 1 : vector<16x192xf32>, vector<16x192xf32>, vector<16x192xf32> -> vector<16x576xf32>
    %131 = arith.truncf %130 : vector<16x576xf32> to vector<16x576xbf16>
    %c0_37 = arith.constant 0 : index
    %c0_38 = arith.constant 0 : index
    %132 = vector.load %arg6[%c0_37, %c0_38] : memref<576x128xbf16, #tpu.memory_space<vmem>>, vector<576x128xbf16>
    %cst_39 = arith.constant dense<0.000000e+00> : vector<16x128xf32>
    %133 = tpu.matmul %131, %132, %cst_39 {dimension_numbers = #tpu.dot_dimension_numbers<[1], [0], [0], [1], [0, 0, 1, 1], [], []>} : vector<16x576xbf16>, vector<576x128xbf16>, vector<16x128xf32> -> vector<16x128xf32>
    %c0_40 = arith.constant 0 : index
    %c0_41 = arith.constant 0 : index
    %134 = vector.load %arg7[%c0_40, %c0_41] : memref<1x128xf32, #tpu.memory_space<vmem>>, vector<1x128xf32>
    %135 = vector.broadcast %134 : vector<1x128xf32> to vector<16x128xf32>
    %136 = arith.addf %133, %135 : vector<16x128xf32>
    %137 = vector.extract_strided_slice %136 {offsets = [0, 0], sizes = [16, 64], strides = [1, 1]} : vector<16x128xf32> to vector<16x64xf32>
    %138 = math.tanh %137 : vector<16x64xf32>
    %139 = vector.extract_strided_slice %136 {offsets = [0, 64], sizes = [16, 64], strides = [1, 1]} : vector<16x128xf32> to vector<16x64xf32>
    %140 = arith.negf %139 : vector<16x64xf32>
    %141 = math.exp %140 : vector<16x64xf32>
    %cst_42 = arith.constant 1.000000e+00 : f32
    %142 = vector.broadcast %cst_42 : f32 to vector<16x64xf32>
    %143 = arith.addf %142, %141 : vector<16x64xf32>
    %144 = arith.divf %142, %143 : vector<16x64xf32>
    %145 = arith.mulf %138, %144 : vector<16x64xf32>
    %146 = tpu.concatenate %111, %145 in 1 : vector<16x192xf32>, vector<16x64xf32> -> vector<16x256xf32>
    %cst_43 = arith.constant 0.000000e+00 : f32
    %147 = vector.broadcast %cst_43 : f32 to vector<4x256xf32>
    %148 = vector.extract_strided_slice %146 {offsets = [0, 0], sizes = [12, 256], strides = [1, 1]} : vector<16x256xf32> to vector<12x256xf32>
    %149 = tpu.concatenate %147, %148 in 0 : vector<4x256xf32>, vector<12x256xf32> -> vector<16x256xf32>
    %c4_i32 = arith.constant 4 : i32
    %150 = vector.broadcast %c4_i32 : i32 to vector<16x1xi32>
    %151 = arith.cmpi sge, %18, %150 : vector<16x1xi32>
    %cst_44 = arith.constant 0.000000e+00 : f32
    %152 = vector.shape_cast %151 : vector<16x1xi1> to vector<16x1xi1>
    %153 = vector.broadcast %152 : vector<16x1xi1> to vector<16x256xi1>
    %154 = vector.broadcast %cst_44 : f32 to vector<16x256xf32>
    %155 = arith.select %153, %149, %154 : vector<16x256xi1>, vector<16x256xf32>
    %cst_45 = arith.constant 0.000000e+00 : f32
    %156 = vector.broadcast %cst_45 : f32 to vector<4x256xf32>
    %157 = vector.extract_strided_slice %146 {offsets = [4, 0], sizes = [12, 256], strides = [1, 1]} : vector<16x256xf32> to vector<12x256xf32>
    %158 = tpu.concatenate %157, %156 in 0 : vector<12x256xf32>, vector<4x256xf32> -> vector<16x256xf32>
    %c4_i32_46 = arith.constant 4 : i32
    %159 = vector.broadcast %c4_i32_46 : i32 to vector<16x1xi32>
    %160 = arith.cmpi slt, %18, %159 : vector<16x1xi32>
    %cst_47 = arith.constant 0.000000e+00 : f32
    %161 = vector.shape_cast %160 : vector<16x1xi1> to vector<16x1xi1>
    %162 = vector.broadcast %161 : vector<16x1xi1> to vector<16x256xi1>
    %163 = vector.broadcast %cst_47 : f32 to vector<16x256xf32>
    %164 = arith.select %162, %158, %163 : vector<16x256xi1>, vector<16x256xf32>
    %165 = tpu.concatenate %155, %146, %164 in 1 : vector<16x256xf32>, vector<16x256xf32>, vector<16x256xf32> -> vector<16x768xf32>
    %166 = arith.truncf %165 : vector<16x768xf32> to vector<16x768xbf16>
    %c0_48 = arith.constant 0 : index
    %c0_49 = arith.constant 0 : index
    %167 = vector.load %arg8[%c0_48, %c0_49] : memref<768x128xbf16, #tpu.memory_space<vmem>>, vector<768x128xbf16>
    %cst_50 = arith.constant dense<0.000000e+00> : vector<16x128xf32>
    %168 = tpu.matmul %166, %167, %cst_50 {dimension_numbers = #tpu.dot_dimension_numbers<[1], [0], [0], [1], [0, 0, 1, 1], [], []>} : vector<16x768xbf16>, vector<768x128xbf16>, vector<16x128xf32> -> vector<16x128xf32>
    %c0_51 = arith.constant 0 : index
    %c0_52 = arith.constant 0 : index
    %169 = vector.load %arg9[%c0_51, %c0_52] : memref<1x128xf32, #tpu.memory_space<vmem>>, vector<1x128xf32>
    %170 = vector.broadcast %169 : vector<1x128xf32> to vector<16x128xf32>
    %171 = arith.addf %168, %170 : vector<16x128xf32>
    %172 = vector.extract_strided_slice %171 {offsets = [0, 0], sizes = [16, 64], strides = [1, 1]} : vector<16x128xf32> to vector<16x64xf32>
    %173 = math.tanh %172 : vector<16x64xf32>
    %174 = vector.extract_strided_slice %171 {offsets = [0, 64], sizes = [16, 64], strides = [1, 1]} : vector<16x128xf32> to vector<16x64xf32>
    %175 = arith.negf %174 : vector<16x64xf32>
    %176 = math.exp %175 : vector<16x64xf32>
    %cst_53 = arith.constant 1.000000e+00 : f32
    %177 = vector.broadcast %cst_53 : f32 to vector<16x64xf32>
    %178 = arith.addf %177, %176 : vector<16x64xf32>
    %179 = arith.divf %177, %178 : vector<16x64xf32>
    %180 = arith.mulf %173, %179 : vector<16x64xf32>
    %181 = tpu.concatenate %146, %180 in 1 : vector<16x256xf32>, vector<16x64xf32> -> vector<16x320xf32>
    %182 = arith.truncf %181 : vector<16x320xf32> to vector<16x320xbf16>
    %c0_54 = arith.constant 0 : index
    %c0_55 = arith.constant 0 : index
    %183 = vector.load %arg10[%c0_54, %c0_55] : memref<320x960xbf16, #tpu.memory_space<vmem>>, vector<320x960xbf16>
    %cst_56 = arith.constant dense<0.000000e+00> : vector<16x960xf32>
    %184 = tpu.matmul %182, %183, %cst_56 {dimension_numbers = #tpu.dot_dimension_numbers<[1], [0], [0], [1], [0, 0, 1, 1], [], []>} : vector<16x320xbf16>, vector<320x960xbf16>, vector<16x960xf32> -> vector<16x960xf32>
    %c0_57 = arith.constant 0 : index
    %c0_58 = arith.constant 0 : index
    %185 = vector.load %arg11[%c0_57, %c0_58] : memref<1x960xf32, #tpu.memory_space<vmem>>, vector<1x960xf32>
    %186 = vector.broadcast %185 : vector<1x960xf32> to vector<16x960xf32>
    %187 = arith.addf %184, %186 : vector<16x960xf32>
    %188 = vector.extract_strided_slice %187 {offsets = [0, 0], sizes = [16, 384], strides = [1, 1]} : vector<16x960xf32> to vector<16x384xf32>
    %189 = vector.extract_strided_slice %187 {offsets = [0, 384], sizes = [16, 384], strides = [1, 1]} : vector<16x960xf32> to vector<16x384xf32>
    %190 = vector.extract_strided_slice %187 {offsets = [0, 768], sizes = [16, 192], strides = [1, 1]} : vector<16x960xf32> to vector<16x192xf32>
    %191 = vector.extract_strided_slice %188 {offsets = [0, 0], sizes = [8, 384], strides = [1, 1]} : vector<16x384xf32> to vector<8x384xf32>
    %192 = arith.truncf %191 : vector<8x384xf32> to vector<8x384xbf16>
    %193 = vector.extract_strided_slice %189 {offsets = [0, 0], sizes = [8, 384], strides = [1, 1]} : vector<16x384xf32> to vector<8x384xf32>
    %194 = arith.truncf %193 : vector<8x384xf32> to vector<8x384xbf16>
    %195 = vector.extract_strided_slice %190 {offsets = [0, 0], sizes = [8, 192], strides = [1, 1]} : vector<16x192xf32> to vector<8x192xf32>
    %196 = arith.truncf %195 : vector<8x192xf32> to vector<8x192xbf16>
    %cst_59 = arith.constant dense<0.000000e+00> : vector<8x8xf32>
    %197 = tpu.matmul %192, %194, %cst_59 {dimension_numbers = #tpu.dot_dimension_numbers<[1], [1], [0], [0], [0, 0, 1, 0], [], []>} : vector<8x384xbf16>, vector<8x384xbf16>, vector<8x8xf32> -> vector<8x8xf32>
    %198 = vector.extract_strided_slice %1 {offsets = [0, 0], sizes = [1, 8], strides = [1, 1]} : vector<2x8xf32> to vector<1x8xf32>
    %199 = vector.broadcast %198 : vector<1x8xf32> to vector<8x8xf32>
    %200 = arith.addf %197, %199 : vector<8x8xf32>
    %cst_60 = arith.constant 0.0510310382 : f32
    %201 = vector.broadcast %cst_60 : f32 to vector<8x8xf32>
    %202 = arith.mulf %200, %201 : vector<8x8xf32>
    %cst_61 = arith.constant dense<0xFF800000> : vector<8xf32>
    %203 = vector.multi_reduction <maximumf>, %202, %cst_61 [0] : vector<8x8xf32> to vector<8xf32>
    %204 = vector.shape_cast %203 : vector<8xf32> to vector<1x8xf32>
    %205 = vector.broadcast %204 : vector<1x8xf32> to vector<8x8xf32>
    %206 = arith.subf %202, %205 : vector<8x8xf32>
    %207 = math.exp %206 : vector<8x8xf32>
    %cst_62 = arith.constant dense<0.000000e+00> : vector<8xf32>
    %208 = vector.multi_reduction <add>, %207, %cst_62 [0] : vector<8x8xf32> to vector<8xf32>
    %209 = vector.shape_cast %208 : vector<8xf32> to vector<1x8xf32>
    %210 = vector.broadcast %209 : vector<1x8xf32> to vector<8x8xf32>
    %211 = arith.divf %207, %210 : vector<8x8xf32>
    %212 = arith.truncf %211 : vector<8x8xf32> to vector<8x8xbf16>
    %cst_63 = arith.constant dense<0.000000e+00> : vector<8x192xf32>
    %213 = tpu.matmul %212, %196, %cst_63 {dimension_numbers = #tpu.dot_dimension_numbers<[1], [0], [0], [1], [0, 0, 1, 1], [], []>} : vector<8x8xbf16>, vector<8x192xbf16>, vector<8x192xf32> -> vector<8x192xf32>
    %214 = vector.extract_strided_slice %188 {offsets = [8, 0], sizes = [8, 384], strides = [1, 1]} : vector<16x384xf32> to vector<8x384xf32>
    %215 = arith.truncf %214 : vector<8x384xf32> to vector<8x384xbf16>
    %216 = vector.extract_strided_slice %189 {offsets = [8, 0], sizes = [8, 384], strides = [1, 1]} : vector<16x384xf32> to vector<8x384xf32>
    %217 = arith.truncf %216 : vector<8x384xf32> to vector<8x384xbf16>
    %218 = vector.extract_strided_slice %190 {offsets = [8, 0], sizes = [8, 192], strides = [1, 1]} : vector<16x192xf32> to vector<8x192xf32>
    %219 = arith.truncf %218 : vector<8x192xf32> to vector<8x192xbf16>
    %cst_64 = arith.constant dense<0.000000e+00> : vector<8x8xf32>
    %220 = tpu.matmul %215, %217, %cst_64 {dimension_numbers = #tpu.dot_dimension_numbers<[1], [1], [0], [0], [0, 0, 1, 0], [], []>} : vector<8x384xbf16>, vector<8x384xbf16>, vector<8x8xf32> -> vector<8x8xf32>
    %221 = vector.extract_strided_slice %1 {offsets = [1, 0], sizes = [1, 8], strides = [1, 1]} : vector<2x8xf32> to vector<1x8xf32>
    %222 = vector.broadcast %221 : vector<1x8xf32> to vector<8x8xf32>
    %223 = arith.addf %220, %222 : vector<8x8xf32>
    %cst_65 = arith.constant 0.0510310382 : f32
    %224 = vector.broadcast %cst_65 : f32 to vector<8x8xf32>
    %225 = arith.mulf %223, %224 : vector<8x8xf32>
    %cst_66 = arith.constant dense<0xFF800000> : vector<8xf32>
    %226 = vector.multi_reduction <maximumf>, %225, %cst_66 [0] : vector<8x8xf32> to vector<8xf32>
    %227 = vector.shape_cast %226 : vector<8xf32> to vector<1x8xf32>
    %228 = vector.broadcast %227 : vector<1x8xf32> to vector<8x8xf32>
    %229 = arith.subf %225, %228 : vector<8x8xf32>
    %230 = math.exp %229 : vector<8x8xf32>
    %cst_67 = arith.constant dense<0.000000e+00> : vector<8xf32>
    %231 = vector.multi_reduction <add>, %230, %cst_67 [0] : vector<8x8xf32> to vector<8xf32>
    %232 = vector.shape_cast %231 : vector<8xf32> to vector<1x8xf32>
    %233 = vector.broadcast %232 : vector<1x8xf32> to vector<8x8xf32>
    %234 = arith.divf %230, %233 : vector<8x8xf32>
    %235 = arith.truncf %234 : vector<8x8xf32> to vector<8x8xbf16>
    %cst_68 = arith.constant dense<0.000000e+00> : vector<8x192xf32>
    %236 = tpu.matmul %235, %219, %cst_68 {dimension_numbers = #tpu.dot_dimension_numbers<[1], [0], [0], [1], [0, 0, 1, 1], [], []>} : vector<8x8xbf16>, vector<8x192xbf16>, vector<8x192xf32> -> vector<8x192xf32>
    %237 = tpu.concatenate %213, %236 in 0 : vector<8x192xf32>, vector<8x192xf32> -> vector<16x192xf32>
    %238 = tpu.concatenate %181, %237 in 1 : vector<16x320xf32>, vector<16x192xf32> -> vector<16x512xf32>
    %c0_69 = arith.constant 0 : index
    %c0_70 = arith.constant 0 : index
    %239 = vector.load %arg23[%c0_69, %c0_70] : memref<16x512xf32, #tpu.memory_space<vmem>>, vector<16x512xf32>
    tpu.vector_store %arg23[%c0_69, %c0_70], %238 {strides = array<i32>} : memref<16x512xf32, #tpu.memory_space<vmem>>, vector<16x512xf32>,
    %cst_71 = arith.constant 0.000000e+00 : f32
    %240 = vector.broadcast %cst_71 : f32 to vector<1x512xf32>
    %241 = vector.extract_strided_slice %238 {offsets = [0, 0], sizes = [15, 512], strides = [1, 1]} : vector<16x512xf32> to vector<15x512xf32>
    %242 = tpu.concatenate %240, %241 in 0 : vector<1x512xf32>, vector<15x512xf32> -> vector<16x512xf32>
    %c1_i32_72 = arith.constant 1 : i32
    %243 = vector.broadcast %c1_i32_72 : i32 to vector<16x1xi32>
    %244 = arith.cmpi sge, %18, %243 : vector<16x1xi32>
    %cst_73 = arith.constant 0.000000e+00 : f32
    %245 = vector.shape_cast %244 : vector<16x1xi1> to vector<16x1xi1>
    %246 = vector.broadcast %245 : vector<16x1xi1> to vector<16x512xi1>
    %247 = vector.broadcast %cst_73 : f32 to vector<16x512xf32>
    %248 = arith.select %246, %242, %247 : vector<16x512xi1>, vector<16x512xf32>
    %cst_74 = arith.constant 0.000000e+00 : f32
    %249 = vector.broadcast %cst_74 : f32 to vector<1x512xf32>
    %250 = vector.extract_strided_slice %238 {offsets = [1, 0], sizes = [15, 512], strides = [1, 1]} : vector<16x512xf32> to vector<15x512xf32>
    %251 = tpu.concatenate %250, %249 in 0 : vector<15x512xf32>, vector<1x512xf32> -> vector<16x512xf32>
    %c7_i32_75 = arith.constant 7 : i32
    %252 = vector.broadcast %c7_i32_75 : i32 to vector<16x1xi32>
    %253 = arith.cmpi slt, %18, %252 : vector<16x1xi32>
    %cst_76 = arith.constant 0.000000e+00 : f32
    %254 = vector.shape_cast %253 : vector<16x1xi1> to vector<16x1xi1>
    %255 = vector.broadcast %254 : vector<16x1xi1> to vector<16x512xi1>
    %256 = vector.broadcast %cst_76 : f32 to vector<16x512xf32>
    %257 = arith.select %255, %251, %256 : vector<16x512xi1>, vector<16x512xf32>
    %258 = tpu.concatenate %248, %238, %257 in 1 : vector<16x512xf32>, vector<16x512xf32>, vector<16x512xf32> -> vector<16x1536xf32>
    %259 = arith.truncf %258 : vector<16x1536xf32> to vector<16x1536xbf16>
    %c0_77 = arith.constant 0 : index
    %c0_78 = arith.constant 0 : index
    %260 = vector.load %arg12[%c0_77, %c0_78] : memref<1536x256xbf16, #tpu.memory_space<vmem>>, vector<1536x256xbf16>
    %cst_79 = arith.constant dense<0.000000e+00> : vector<16x256xf32>
    %261 = tpu.matmul %259, %260, %cst_79 {dimension_numbers = #tpu.dot_dimension_numbers<[1], [0], [0], [1], [0, 0, 1, 1], [], []>} : vector<16x1536xbf16>, vector<1536x256xbf16>, vector<16x256xf32> -> vector<16x256xf32>
    %c0_80 = arith.constant 0 : index
    %c0_81 = arith.constant 0 : index
    %262 = vector.load %arg13[%c0_80, %c0_81] : memref<1x256xf32, #tpu.memory_space<vmem>>, vector<1x256xf32>
    %263 = vector.broadcast %262 : vector<1x256xf32> to vector<16x256xf32>
    %264 = arith.addf %261, %263 : vector<16x256xf32>
    %265 = vector.extract_strided_slice %264 {offsets = [0, 0], sizes = [16, 128], strides = [1, 1]} : vector<16x256xf32> to vector<16x128xf32>
    %266 = math.tanh %265 : vector<16x128xf32>
    %267 = vector.extract_strided_slice %264 {offsets = [0, 128], sizes = [16, 128], strides = [1, 1]} : vector<16x256xf32> to vector<16x128xf32>
    %268 = arith.negf %267 : vector<16x128xf32>
    %269 = math.exp %268 : vector<16x128xf32>
    %cst_82 = arith.constant 1.000000e+00 : f32
    %270 = vector.broadcast %cst_82 : f32 to vector<16x128xf32>
    %271 = arith.addf %270, %269 : vector<16x128xf32>
    %272 = arith.divf %270, %271 : vector<16x128xf32>
    %273 = arith.mulf %266, %272 : vector<16x128xf32>
    %274 = tpu.concatenate %238, %273 in 1 : vector<16x512xf32>, vector<16x128xf32> -> vector<16x640xf32>
    %cst_83 = arith.constant 0.000000e+00 : f32
    %275 = vector.broadcast %cst_83 : f32 to vector<2x640xf32>
    %276 = vector.extract_strided_slice %274 {offsets = [0, 0], sizes = [14, 640], strides = [1, 1]} : vector<16x640xf32> to vector<14x640xf32>
    %277 = tpu.concatenate %275, %276 in 0 : vector<2x640xf32>, vector<14x640xf32> -> vector<16x640xf32>
    %c2_i32_84 = arith.constant 2 : i32
    %278 = vector.broadcast %c2_i32_84 : i32 to vector<16x1xi32>
    %279 = arith.cmpi sge, %18, %278 : vector<16x1xi32>
    %cst_85 = arith.constant 0.000000e+00 : f32
    %280 = vector.shape_cast %279 : vector<16x1xi1> to vector<16x1xi1>
    %281 = vector.broadcast %280 : vector<16x1xi1> to vector<16x640xi1>
    %282 = vector.broadcast %cst_85 : f32 to vector<16x640xf32>
    %283 = arith.select %281, %277, %282 : vector<16x640xi1>, vector<16x640xf32>
    %cst_86 = arith.constant 0.000000e+00 : f32
    %284 = vector.broadcast %cst_86 : f32 to vector<2x640xf32>
    %285 = vector.extract_strided_slice %274 {offsets = [2, 0], sizes = [14, 640], strides = [1, 1]} : vector<16x640xf32> to vector<14x640xf32>
    %286 = tpu.concatenate %285, %284 in 0 : vector<14x640xf32>, vector<2x640xf32> -> vector<16x640xf32>
    %c6_i32_87 = arith.constant 6 : i32
    %287 = vector.broadcast %c6_i32_87 : i32 to vector<16x1xi32>
    %288 = arith.cmpi slt, %18, %287 : vector<16x1xi32>
    %cst_88 = arith.constant 0.000000e+00 : f32
    %289 = vector.shape_cast %288 : vector<16x1xi1> to vector<16x1xi1>
    %290 = vector.broadcast %289 : vector<16x1xi1> to vector<16x640xi1>
    %291 = vector.broadcast %cst_88 : f32 to vector<16x640xf32>
    %292 = arith.select %290, %286, %291 : vector<16x640xi1>, vector<16x640xf32>
    %293 = tpu.concatenate %283, %274, %292 in 1 : vector<16x640xf32>, vector<16x640xf32>, vector<16x640xf32> -> vector<16x1920xf32>
    %294 = arith.truncf %293 : vector<16x1920xf32> to vector<16x1920xbf16>
    %c0_89 = arith.constant 0 : index
    %c0_90 = arith.constant 0 : index
    %295 = vector.load %arg14[%c0_89, %c0_90] : memref<1920x256xbf16, #tpu.memory_space<vmem>>, vector<1920x256xbf16>
    %cst_91 = arith.constant dense<0.000000e+00> : vector<16x256xf32>
    %296 = tpu.matmul %294, %295, %cst_91 {dimension_numbers = #tpu.dot_dimension_numbers<[1], [0], [0], [1], [0, 0, 1, 1], [], []>} : vector<16x1920xbf16>, vector<1920x256xbf16>, vector<16x256xf32> -> vector<16x256xf32>
    %c0_92 = arith.constant 0 : index
    %c0_93 = arith.constant 0 : index
    %297 = vector.load %arg15[%c0_92, %c0_93] : memref<1x256xf32, #tpu.memory_space<vmem>>, vector<1x256xf32>
    %298 = vector.broadcast %297 : vector<1x256xf32> to vector<16x256xf32>
    %299 = arith.addf %296, %298 : vector<16x256xf32>
    %300 = vector.extract_strided_slice %299 {offsets = [0, 0], sizes = [16, 128], strides = [1, 1]} : vector<16x256xf32> to vector<16x128xf32>
    %301 = math.tanh %300 : vector<16x128xf32>
    %302 = vector.extract_strided_slice %299 {offsets = [0, 128], sizes = [16, 128], strides = [1, 1]} : vector<16x256xf32> to vector<16x128xf32>
    %303 = arith.negf %302 : vector<16x128xf32>
    %304 = math.exp %303 : vector<16x128xf32>
    %cst_94 = arith.constant 1.000000e+00 : f32
    %305 = vector.broadcast %cst_94 : f32 to vector<16x128xf32>
    %306 = arith.addf %305, %304 : vector<16x128xf32>
    %307 = arith.divf %305, %306 : vector<16x128xf32>
    %308 = arith.mulf %301, %307 : vector<16x128xf32>
    %309 = tpu.concatenate %274, %308 in 1 : vector<16x640xf32>, vector<16x128xf32> -> vector<16x768xf32>
    %cst_95 = arith.constant 0.000000e+00 : f32
    %310 = vector.broadcast %cst_95 : f32 to vector<4x768xf32>
    %311 = vector.extract_strided_slice %309 {offsets = [0, 0], sizes = [12, 768], strides = [1, 1]} : vector<16x768xf32> to vector<12x768xf32>
    %312 = tpu.concatenate %310, %311 in 0 : vector<4x768xf32>, vector<12x768xf32> -> vector<16x768xf32>
    %c4_i32_96 = arith.constant 4 : i32
    %313 = vector.broadcast %c4_i32_96 : i32 to vector<16x1xi32>
    %314 = arith.cmpi sge, %18, %313 : vector<16x1xi32>
    %cst_97 = arith.constant 0.000000e+00 : f32
    %315 = vector.shape_cast %314 : vector<16x1xi1> to vector<16x1xi1>
    %316 = vector.broadcast %315 : vector<16x1xi1> to vector<16x768xi1>
    %317 = vector.broadcast %cst_97 : f32 to vector<16x768xf32>
    %318 = arith.select %316, %312, %317 : vector<16x768xi1>, vector<16x768xf32>
    %cst_98 = arith.constant 0.000000e+00 : f32
    %319 = vector.broadcast %cst_98 : f32 to vector<4x768xf32>
    %320 = vector.extract_strided_slice %309 {offsets = [4, 0], sizes = [12, 768], strides = [1, 1]} : vector<16x768xf32> to vector<12x768xf32>
    %321 = tpu.concatenate %320, %319 in 0 : vector<12x768xf32>, vector<4x768xf32> -> vector<16x768xf32>
    %c4_i32_99 = arith.constant 4 : i32
    %322 = vector.broadcast %c4_i32_99 : i32 to vector<16x1xi32>
    %323 = arith.cmpi slt, %18, %322 : vector<16x1xi32>
    %cst_100 = arith.constant 0.000000e+00 : f32
    %324 = vector.shape_cast %323 : vector<16x1xi1> to vector<16x1xi1>
    %325 = vector.broadcast %324 : vector<16x1xi1> to vector<16x768xi1>
    %326 = vector.broadcast %cst_100 : f32 to vector<16x768xf32>
    %327 = arith.select %325, %321, %326 : vector<16x768xi1>, vector<16x768xf32>
    %328 = tpu.concatenate %318, %309, %327 in 1 : vector<16x768xf32>, vector<16x768xf32>, vector<16x768xf32> -> vector<16x2304xf32>
    %329 = arith.truncf %328 : vector<16x2304xf32> to vector<16x2304xbf16>
    %c0_101 = arith.constant 0 : index
    %c0_102 = arith.constant 0 : index
    %330 = vector.load %arg16[%c0_101, %c0_102] : memref<2304x256xbf16, #tpu.memory_space<vmem>>, vector<2304x256xbf16>
    %cst_103 = arith.constant dense<0.000000e+00> : vector<16x256xf32>
    %331 = tpu.matmul %329, %330, %cst_103 {dimension_numbers = #tpu.dot_dimension_numbers<[1], [0], [0], [1], [0, 0, 1, 1], [], []>} : vector<16x2304xbf16>, vector<2304x256xbf16>, vector<16x256xf32> -> vector<16x256xf32>
    %c0_104 = arith.constant 0 : index
    %c0_105 = arith.constant 0 : index
    %332 = vector.load %arg17[%c0_104, %c0_105] : memref<1x256xf32, #tpu.memory_space<vmem>>, vector<1x256xf32>
    %333 = vector.broadcast %332 : vector<1x256xf32> to vector<16x256xf32>
    %334 = arith.addf %331, %333 : vector<16x256xf32>
    %335 = vector.extract_strided_slice %334 {offsets = [0, 0], sizes = [16, 128], strides = [1, 1]} : vector<16x256xf32> to vector<16x128xf32>
    %336 = math.tanh %335 : vector<16x128xf32>
    %337 = vector.extract_strided_slice %334 {offsets = [0, 128], sizes = [16, 128], strides = [1, 1]} : vector<16x256xf32> to vector<16x128xf32>
    %338 = arith.negf %337 : vector<16x128xf32>
    %339 = math.exp %338 : vector<16x128xf32>
    %cst_106 = arith.constant 1.000000e+00 : f32
    %340 = vector.broadcast %cst_106 : f32 to vector<16x128xf32>
    %341 = arith.addf %340, %339 : vector<16x128xf32>
    %342 = arith.divf %340, %341 : vector<16x128xf32>
    %343 = arith.mulf %336, %342 : vector<16x128xf32>
    %344 = tpu.concatenate %309, %343 in 1 : vector<16x768xf32>, vector<16x128xf32> -> vector<16x896xf32>
    %345 = arith.truncf %344 : vector<16x896xf32> to vector<16x896xbf16>
    %c0_107 = arith.constant 0 : index
    %c0_108 = arith.constant 0 : index
    %346 = vector.load %arg18[%c0_107, %c0_108] : memref<896x1920xbf16, #tpu.memory_space<vmem>>, vector<896x1920xbf16>
    %cst_109 = arith.constant dense<0.000000e+00> : vector<16x1920xf32>
    %347 = tpu.matmul %345, %346, %cst_109 {dimension_numbers = #tpu.dot_dimension_numbers<[1], [0], [0], [1], [0, 0, 1, 1], [], []>} : vector<16x896xbf16>, vector<896x1920xbf16>, vector<16x1920xf32> -> vector<16x1920xf32>
    %c0_110 = arith.constant 0 : index
    %c0_111 = arith.constant 0 : index
    %348 = vector.load %arg19[%c0_110, %c0_111] : memref<1x1920xf32, #tpu.memory_space<vmem>>, vector<1x1920xf32>
    %349 = vector.broadcast %348 : vector<1x1920xf32> to vector<16x1920xf32>
    %350 = arith.addf %347, %349 : vector<16x1920xf32>
    %351 = vector.extract_strided_slice %350 {offsets = [0, 0], sizes = [16, 768], strides = [1, 1]} : vector<16x1920xf32> to vector<16x768xf32>
    %352 = vector.extract_strided_slice %350 {offsets = [0, 768], sizes = [16, 768], strides = [1, 1]} : vector<16x1920xf32> to vector<16x768xf32>
    %353 = vector.extract_strided_slice %350 {offsets = [0, 1536], sizes = [16, 384], strides = [1, 1]} : vector<16x1920xf32> to vector<16x384xf32>
    %354 = vector.extract_strided_slice %351 {offsets = [0, 0], sizes = [8, 768], strides = [1, 1]} : vector<16x768xf32> to vector<8x768xf32>
    %355 = arith.truncf %354 : vector<8x768xf32> to vector<8x768xbf16>
    %356 = vector.extract_strided_slice %352 {offsets = [0, 0], sizes = [8, 768], strides = [1, 1]} : vector<16x768xf32> to vector<8x768xf32>
    %357 = arith.truncf %356 : vector<8x768xf32> to vector<8x768xbf16>
    %358 = vector.extract_strided_slice %353 {offsets = [0, 0], sizes = [8, 384], strides = [1, 1]} : vector<16x384xf32> to vector<8x384xf32>
    %359 = arith.truncf %358 : vector<8x384xf32> to vector<8x384xbf16>
    %cst_112 = arith.constant dense<0.000000e+00> : vector<8x8xf32>
    %360 = tpu.matmul %355, %357, %cst_112 {dimension_numbers = #tpu.dot_dimension_numbers<[1], [1], [0], [0], [0, 0, 1, 0], [], []>} : vector<8x768xbf16>, vector<8x768xbf16>, vector<8x8xf32> -> vector<8x8xf32>
    %361 = vector.extract_strided_slice %1 {offsets = [0, 0], sizes = [1, 8], strides = [1, 1]} : vector<2x8xf32> to vector<1x8xf32>
    %362 = vector.broadcast %361 : vector<1x8xf32> to vector<8x8xf32>
    %363 = arith.addf %360, %362 : vector<8x8xf32>
    %cst_113 = arith.constant 0.0360843912 : f32
    %364 = vector.broadcast %cst_113 : f32 to vector<8x8xf32>
    %365 = arith.mulf %363, %364 : vector<8x8xf32>
    %cst_114 = arith.constant dense<0xFF800000> : vector<8xf32>
    %366 = vector.multi_reduction <maximumf>, %365, %cst_114 [0] : vector<8x8xf32> to vector<8xf32>
    %367 = vector.shape_cast %366 : vector<8xf32> to vector<1x8xf32>
    %368 = vector.broadcast %367 : vector<1x8xf32> to vector<8x8xf32>
    %369 = arith.subf %365, %368 : vector<8x8xf32>
    %370 = math.exp %369 : vector<8x8xf32>
    %cst_115 = arith.constant dense<0.000000e+00> : vector<8xf32>
    %371 = vector.multi_reduction <add>, %370, %cst_115 [0] : vector<8x8xf32> to vector<8xf32>
    %372 = vector.shape_cast %371 : vector<8xf32> to vector<1x8xf32>
    %373 = vector.broadcast %372 : vector<1x8xf32> to vector<8x8xf32>
    %374 = arith.divf %370, %373 : vector<8x8xf32>
    %375 = arith.truncf %374 : vector<8x8xf32> to vector<8x8xbf16>
    %cst_116 = arith.constant dense<0.000000e+00> : vector<8x384xf32>
    %376 = tpu.matmul %375, %359, %cst_116 {dimension_numbers = #tpu.dot_dimension_numbers<[1], [0], [0], [1], [0, 0, 1, 1], [], []>} : vector<8x8xbf16>, vector<8x384xbf16>, vector<8x384xf32> -> vector<8x384xf32>
    %377 = vector.extract_strided_slice %351 {offsets = [8, 0], sizes = [8, 768], strides = [1, 1]} : vector<16x768xf32> to vector<8x768xf32>
    %378 = arith.truncf %377 : vector<8x768xf32> to vector<8x768xbf16>
    %379 = vector.extract_strided_slice %352 {offsets = [8, 0], sizes = [8, 768], strides = [1, 1]} : vector<16x768xf32> to vector<8x768xf32>
    %380 = arith.truncf %379 : vector<8x768xf32> to vector<8x768xbf16>
    %381 = vector.extract_strided_slice %353 {offsets = [8, 0], sizes = [8, 384], strides = [1, 1]} : vector<16x384xf32> to vector<8x384xf32>
    %382 = arith.truncf %381 : vector<8x384xf32> to vector<8x384xbf16>
    %cst_117 = arith.constant dense<0.000000e+00> : vector<8x8xf32>
    %383 = tpu.matmul %378, %380, %cst_117 {dimension_numbers = #tpu.dot_dimension_numbers<[1], [1], [0], [0], [0, 0, 1, 0], [], []>} : vector<8x768xbf16>, vector<8x768xbf16>, vector<8x8xf32> -> vector<8x8xf32>
    %384 = vector.extract_strided_slice %1 {offsets = [1, 0], sizes = [1, 8], strides = [1, 1]} : vector<2x8xf32> to vector<1x8xf32>
    %385 = vector.broadcast %384 : vector<1x8xf32> to vector<8x8xf32>
    %386 = arith.addf %383, %385 : vector<8x8xf32>
    %cst_118 = arith.constant 0.0360843912 : f32
    %387 = vector.broadcast %cst_118 : f32 to vector<8x8xf32>
    %388 = arith.mulf %386, %387 : vector<8x8xf32>
    %cst_119 = arith.constant dense<0xFF800000> : vector<8xf32>
    %389 = vector.multi_reduction <maximumf>, %388, %cst_119 [0] : vector<8x8xf32> to vector<8xf32>
    %390 = vector.shape_cast %389 : vector<8xf32> to vector<1x8xf32>
    %391 = vector.broadcast %390 : vector<1x8xf32> to vector<8x8xf32>
    %392 = arith.subf %388, %391 : vector<8x8xf32>
    %393 = math.exp %392 : vector<8x8xf32>
    %cst_120 = arith.constant dense<0.000000e+00> : vector<8xf32>
    %394 = vector.multi_reduction <add>, %393, %cst_120 [0] : vector<8x8xf32> to vector<8xf32>
    %395 = vector.shape_cast %394 : vector<8xf32> to vector<1x8xf32>
    %396 = vector.broadcast %395 : vector<1x8xf32> to vector<8x8xf32>
    %397 = arith.divf %393, %396 : vector<8x8xf32>
    %398 = arith.truncf %397 : vector<8x8xf32> to vector<8x8xbf16>
    %cst_121 = arith.constant dense<0.000000e+00> : vector<8x384xf32>
    %399 = tpu.matmul %398, %382, %cst_121 {dimension_numbers = #tpu.dot_dimension_numbers<[1], [0], [0], [1], [0, 0, 1, 1], [], []>} : vector<8x8xbf16>, vector<8x384xbf16>, vector<8x384xf32> -> vector<8x384xf32>
    %400 = tpu.concatenate %376, %399 in 0 : vector<8x384xf32>, vector<8x384xf32> -> vector<16x384xf32>
    %401 = tpu.concatenate %344, %400 in 1 : vector<16x896xf32>, vector<16x384xf32> -> vector<16x1280xf32>
    %402 = arith.truncf %401 : vector<16x1280xf32> to vector<16x1280xbf16>
    %c0_122 = arith.constant 0 : index
    %c0_123 = arith.constant 0 : index
    %403 = vector.load %arg20[%c0_122, %c0_123] : memref<1280x32xbf16, #tpu.memory_space<vmem>>, vector<1280x32xbf16>
    %cst_124 = arith.constant dense<0.000000e+00> : vector<16x32xf32>
    %404 = tpu.matmul %402, %403, %cst_124 {dimension_numbers = #tpu.dot_dimension_numbers<[1], [0], [0], [1], [0, 0, 1, 1], [], []>} : vector<16x1280xbf16>, vector<1280x32xbf16>, vector<16x32xf32> -> vector<16x32xf32>
    %c0_125 = arith.constant 0 : index
    %c0_126 = arith.constant 0 : index
    %405 = vector.load %arg21[%c0_125, %c0_126] : memref<1x32xf32, #tpu.memory_space<vmem>>, vector<1x32xf32>
    %406 = vector.broadcast %405 : vector<1x32xf32> to vector<16x32xf32>
    %407 = arith.addf %404, %406 : vector<16x32xf32>
    %c0_127 = arith.constant 0 : index
    %c0_128 = arith.constant 0 : index
    %408 = vector.load %arg24[%c0_127, %c0_128] : memref<16x32xf32, #tpu.memory_space<vmem>>, vector<16x32xf32>
    tpu.vector_store %arg24[%c0_127, %c0_128], %407 {strides = array<i32>} : memref<16x32xf32, #tpu.memory_space<vmem>>, vector<16x32xf32>,
    return
  }
}

</mosaic_0001>

<bundles_post_ra>
// kernel: _lambda_.1
= control target key start
LH: loop header
LB: loop body
LE: loop exit
PB: predicated region body
PF: predicated region fallthrough
CT: control target
= control target key end

     0   :  { %s25153_s0 = inlined_call_operand.hbm [shape: f32[16,32], index: 0, kind: input, shape index: {}]   ;;  %s25154_s1 = inlined_call_operand.vmem [shape: f32[2,8], index: 1, kind: input, shape index: {}]   ;;  %s25155_s2 = inlined_call_operand.hbm [shape: bf16[32,480], index: 2, kind: input, shape index: {}]   ;;  %s25156_s3 = inlined_call_operand.hbm [shape: f32[1,480], index: 3, kind: input, shape index: {}]   ;;  %s25157_s4 = inlined_call_operand.hbm [shape: bf16[384,128], index: 4, kind: input, shape index: {}]   ;;  %s25158_s5 = inlined_call_operand.hbm [shape: f32[1,128], index: 5, kind: input, shape index: {}]   ;;  %s25159_s6 = inlined_call_operand.hbm [shape: bf16[576,128], index: 6, kind: input, shape index: {}]   ;;  %s25160_s7 = inlined_call_operand.hbm [shape: f32[1,128], index: 7, kind: input, shape index: {}]   ;;  %s25161_s8 = inlined_call_operand.hbm [shape: bf16[768,128], index: 8, kind: input, shape index: {}]   ;;  %s25162_s9 = inlined_call_operand.hbm [shape: f32[1,128], index: 9, kind: input, shape index: {}]   ;;  %s25163_s10 = inlined_call_operand.hbm [shape: bf16[320,960], index: 10, kind: input, shape index: {}]   ;;  %s25164_s11 = inlined_call_operand.hbm [shape: f32[1,960], index: 11, kind: input, shape index: {}]   ;;  %s25165_s12 = inlined_call_operand.hbm [shape: bf16[1536,256], index: 12, kind: input, shape index: {}]   ;;  %s25166_s13 = inlined_call_operand.hbm [shape: f32[1,256], index: 13, kind: input, shape index: {}]   ;;  %s25167_s14 = inlined_call_operand.hbm [shape: bf16[1920,256], index: 14, kind: input, shape index: {}]   ;;  %s25168_s15 = inlined_call_operand.hbm [shape: f32[1,256], index: 15, kind: input, shape index: {}]   ;;  %s25169_s16 = inlined_call_operand.hbm [shape: bf16[2304,256], index: 16, kind: input, shape index: {}]   ;;  %s25170_s17 = inlined_call_operand.hbm [shape: f32[1,256], index: 17, kind: input, shape index: {}]   ;;  %s25171_s18 = inlined_call_operand.hbm [shape: bf16[896,1920], index: 18, kind: input, shape index: {}]   ;;  %s25172_s19 = inlined_call_operand.hbm [shape: f32[1,1920], index: 19, kind: input, shape index: {}]   ;;  %s25173_s20 = inlined_call_operand.vmem [shape: bf16[1280,32], index: 20, kind: input, shape index: {}]   ;;  %s25174_s21 = inlined_call_operand.hbm [shape: f32[1,32], index: 21, kind: input, shape index: {}]   ;;  %s25175_s22 = inlined_call_operand.hbm [shape: f32[16,128], index: 22, kind: output, shape index: {0}]   ;;  %s25176_s23 = inlined_call_operand.hbm [shape: f32[16,512], index: 23, kind: output, shape index: {1}]   ;;  %s25177_s24 = inlined_call_operand.hbm [shape: f32[16,32], index: 24, kind: output, shape index: {2}]  }
   0x1   :  { %25203 = sst [smem:[#allocation55_spill]] %s25153_s0 }
   0x2   :  { %25204 = sst [smem:[#allocation56_spill]] %s25154_s1 }
   0x3   :  { %25205 = sst [smem:[#allocation57_spill]] %s25155_s2 }
   0x4   :  { %25206 = sst [smem:[#allocation58_spill]] %s25156_s3 }
   0x5   :  { %25207 = sst [smem:[#allocation59_spill]] %s25157_s4 }
   0x6   :  { %25208 = sst [smem:[#allocation60_spill]] %s25158_s5 }
   0x7   :  { %25209 = sst [smem:[#allocation61_spill]] %s25159_s6 }
   0x8   :  { %25210 = sst [smem:[#allocation62_spill]] %s25160_s7 }
   0x9   :  { %25211 = sst [smem:[#allocation63_spill]] %s25161_s8 }
   0xa   :  { %25212 = sst [smem:[#allocation64_spill]] %s25175_s22 }
   0xb   :  { %25213 = sst [smem:[#allocation65_spill]] %s25176_s23 }
   0xc   :  { %25214 = sst [smem:[#allocation66_spill]] %s25177_s24 }
   0xd   :  { %30 = vsyncpa [#allocation3], 0 }
   0xe   :  { %31 = vsyncpa [#allocation6], 0 }
   0xf   :  { %32 = vsyncpa [#allocation9], 0 }
  0x10   :  { %33 = vsyncpa [#allocation12], 0 }
  0x11   :  { %34 = vsyncpa [#allocation15], 0 }
  0x12   :  { %35 = vsyncpa [#allocation18], 0 }
  0x13   :  { %36 = vsyncpa [#allocation21], 0 }
  0x14   :  { %37 = vsyncpa [#allocation24], 0 }
  0x15   :  { %38 = vsyncpa [#allocation27], 0 }
  0x16   :  { %39 = vsyncpa [#allocation30], 0 }
  0x17   :  { %40 = vsyncpa [#allocation33], 0 }
  0x18   :  { %41 = vsyncpa [#allocation4], 0 }
  0x19   :  { %42 = vsyncpa [#allocation36], 0  ;;  %s23486_s5 = smov [#allocation5]   ;;  %s25215_s6 = sld [smem:[#allocation57_spill]] }
  0x1a   :  { %s62_s26 = sshll.u32 %s23486_s5, 4  ;;  %s63_s26 = int_to_ptr.vmem [resolvable:$true] %s62_s26 }
  0x1f   :  { %s22954_s2 = scalar_lea.hbm %s25215_s6, 1024 }
  0x20   :  { %p22955_p0 = scmp.ne.s32.totalorder %s25215_s6, %s22954_s2  ;;  %p22958_p1 = scmp.lt.u32.totalorder %s22954_s2, %s25215_s6 }
  0x22   :  { %p22960_p2 = pnand %p22958_p1, %p22955_p0 }
  0x24   :  { %22963 = shalt.err (!%p22960_p2)
}
  0x25   :  { %s22964_s3 = scalar_lea.vmem %s63_s26, 1024  ;;  %p22969_p4 = scmp.lt.s32.totalorder %s63_s26, %s63_s26 }
  0x26   :  { %p22965_p3 = scmp.ne.s32.totalorder %s63_s26, %s22964_s3  ;;  %p22970_p5 = scmp.lt.s32.totalorder %s22964_s3, %s22964_s3 }
  0x28   :  { %p22971_p6 = por %p22970_p5, %p22969_p4 }
  0x2a   :  { %p22972_p7 = pnand %p22971_p6, %p22965_p3 }
  0x2c   :  { %22975 = shalt.err (!%p22972_p7)
}
  0x2d   :  { %s23487_s25 = smov 256   ;;  %s23488_s8 = smov 16  }
  0x2e   :  { %68 = dma.hbm_to_vmem [thread:$0]  %s25215_s6, 1024, %s63_s26, [#allocation6], %s23487_s25, %s23487_s25, %s23488_s8  }
  0x2f   :  { %s23489_s5 = smov [#allocation8]   ;;  %s25216_s29 = sld [smem:[#allocation59_spill]] }
  0x30   :  { %s84_s27 = sshll.u32 %s23489_s5, 4  ;;  %s85_s27 = int_to_ptr.vmem [resolvable:$true] %s84_s27 }
  0x35   :  { %s22976_s0 = scalar_lea.hbm %s25216_s29, 3072 }
  0x36   :  { %p22977_p8 = scmp.ne.s32.totalorder %s25216_s29, %s22976_s0  ;;  %p22980_p9 = scmp.lt.u32.totalorder %s22976_s0, %s25216_s29 }
  0x38   :  { %p22982_p10 = pnand %p22980_p9, %p22977_p8 }
  0x3a   :  { %22985 = shalt.err (!%p22982_p10)
}
  0x3b   :  { %s22986_s22 = scalar_lea.vmem %s85_s27, 3072  ;;  %p22991_p12 = scmp.lt.s32.totalorder %s85_s27, %s85_s27 }
  0x3c   :  { %p22987_p11 = scmp.ne.s32.totalorder %s85_s27, %s22986_s22  ;;  %p22992_p13 = scmp.lt.s32.totalorder %s22986_s22, %s22986_s22 }
  0x3e   :  { %p22993_p0 = por %p22992_p13, %p22991_p12 }
  0x40   :  { %p22994_p1 = pnand %p22993_p0, %p22987_p11 }
  0x42   :  { %22997 = shalt.err (!%p22994_p1)
}
  0x43   :  { %s23490_s26 = smov 64   ;;  %s23491_s6 = smov 4  }
  0x44   :  { %90 = dma.hbm_to_vmem [thread:$0]  %s25216_s29, 3072, %s85_s27, [#allocation9], %s23490_s26, %s23490_s26, %s23491_s6  }
  0x45   :  { %s23492_s24 = smov [#allocation11]   ;;  %s23493_s1 = smov [#allocation14]  }
  0x46   :  { %s106_s4 = sshll.u32 %s23492_s24, 4  ;;  %s128_s5 = sshll.u32 %s23493_s1, 4  ;;  %s107_s4 = int_to_ptr.vmem [resolvable:$true] %s106_s4  ;;  %s23674_s5 = int_to_ptr.vmem [resolvable:$true] %s128_s5 }
  0x47   :  { %s25217_s2 = sld [smem:[#allocation61_spill]] }
  0x4d   :  { %s22998_s0 = scalar_lea.hbm %s25217_s2, 4608 }
  0x4e   :  { %p22999_p2 = scmp.ne.s32.totalorder %s25217_s2, %s22998_s0  ;;  %p23002_p3 = scmp.lt.u32.totalorder %s22998_s0, %s25217_s2 }
  0x50   :  { %p23004_p4 = pnand %p23002_p3, %p22999_p2 }
  0x52   :  { %23007 = shalt.err (!%p23004_p4)
}
  0x53   :  { %s23008_s27 = scalar_lea.vmem %s107_s4, 4608  ;;  %p23013_p6 = scmp.lt.s32.totalorder %s107_s4, %s107_s4 }
  0x54   :  { %p23009_p5 = scmp.ne.s32.totalorder %s107_s4, %s23008_s27  ;;  %p23014_p7 = scmp.lt.s32.totalorder %s23008_s27, %s23008_s27 }
  0x56   :  { %p23015_p8 = por %p23014_p7, %p23013_p6 }
  0x58   :  { %p23016_p9 = pnand %p23015_p8, %p23009_p5 }
  0x5a   :  { %23019 = shalt.err (!%p23016_p9)
}
  0x5b   :  { %112 = dma.hbm_to_vmem [thread:$0]  %s25217_s2, 4608, %s107_s4, [#allocation12], %s23490_s26, %s23490_s26, %s23491_s6  }
  0x5c   :  { %s25218_s23 = sld [smem:[#allocation63_spill]] }
  0x62   :  { %s23020_s1 = scalar_lea.hbm %s25218_s23, 6144 }
  0x63   :  { %p23021_p10 = scmp.ne.s32.totalorder %s25218_s23, %s23020_s1  ;;  %p23024_p11 = scmp.lt.u32.totalorder %s23020_s1, %s25218_s23 }
  0x65   :  { %p23026_p12 = pnand %p23024_p11, %p23021_p10 }
  0x67   :  { %23029 = shalt.err (!%p23026_p12)
}
  0x68   :  { %s23030_s30 = scalar_lea.vmem %s23674_s5, 6144  ;;  %p23035_p0 = scmp.lt.s32.totalorder %s23674_s5, %s23674_s5 }
  0x69   :  { %p23031_p13 = scmp.ne.s32.totalorder %s23674_s5, %s23030_s30  ;;  %p23036_p1 = scmp.lt.s32.totalorder %s23030_s30, %s23030_s30 }
  0x6b   :  { %p23037_p2 = por %p23036_p1, %p23035_p0 }
  0x6d   :  { %p23038_p3 = pnand %p23037_p2, %p23031_p13 }
  0x6f   :  { %23041 = shalt.err (!%p23038_p3)
}
  0x70   :  { %134 = dma.hbm_to_vmem [thread:$0]  %s25218_s23, 6144, %s23674_s5, [#allocation15], %s23490_s26, %s23490_s26, %s23491_s6  }
  0x71   :  { %s23494_s3 = smov [#allocation17]   ;;  %s23042_s8 = scalar_lea.hbm %s25163_s10, 20480 }
  0x72   :  { %s150_s27 = sshll.u32 %s23494_s3, 4  ;;  %p23043_p4 = scmp.ne.s32.totalorder %s25163_s10, %s23042_s8  ;;  %s151_s27 = int_to_ptr.vmem [resolvable:$true] %s150_s27 }
  0x73   :  { %p23046_p5 = scmp.lt.u32.totalorder %s23042_s8, %s25163_s10 }
  0x75   :  { %p23048_p6 = pnand %p23046_p5, %p23043_p4 }
  0x77   :  { %23051 = shalt.err (!%p23048_p6)
}
  0x78   :  { %s23052_s0 = scalar_lea.vmem %s151_s27, 20480  ;;  %p23057_p8 = scmp.lt.s32.totalorder %s151_s27, %s151_s27 }
  0x79   :  { %p23053_p7 = scmp.ne.s32.totalorder %s151_s27, %s23052_s0  ;;  %p23058_p9 = scmp.lt.s32.totalorder %s23052_s0, %s23052_s0 }
  0x7b   :  { %p23059_p10 = por %p23058_p9, %p23057_p8 }
  0x7d   :  { %p23060_p11 = pnand %p23059_p10, %p23053_p7 }
  0x7f   :  { %23063 = shalt.err (!%p23060_p11)
}
  0x80   :  { %s23495_s6 = smov 512   ;;  %s23496_s5 = smov 32  }
  0x81   :  { %156 = dma.hbm_to_vmem [thread:$0]  %s25163_s10, 20480, %s151_s27, [#allocation18], %s23495_s6, %s23495_s6, %s23496_s5  }
  0x82   :  { %s23497_s30 = smov [#allocation20]   ;;  %s23498_s2 = smov [#allocation23]  }
  0x83   :  { %s172_s4 = sshll.u32 %s23497_s30, 4  ;;  %s194_s3 = sshll.u32 %s23498_s2, 4  ;;  %s173_s4 = int_to_ptr.vmem [resolvable:$true] %s172_s4  ;;  %s195_s3 = int_to_ptr.vmem [resolvable:$true] %s194_s3 }
  0x84   :  { %s23064_s8 = scalar_lea.hbm %s25165_s12, 24576 }
  0x85   :  { %p23065_p12 = scmp.ne.s32.totalorder %s25165_s12, %s23064_s8  ;;  %p23068_p13 = scmp.lt.u32.totalorder %s23064_s8, %s25165_s12 }
  0x87   :  { %p23070_p0 = pnand %p23068_p13, %p23065_p12 }
  0x89   :  { %23073 = shalt.err (!%p23070_p0)
}
  0x8a   :  { %s23074_s10 = scalar_lea.vmem %s173_s4, 24576  ;;  %p23079_p2 = scmp.lt.s32.totalorder %s173_s4, %s173_s4 }
  0x8b   :  { %p23075_p1 = scmp.ne.s32.totalorder %s173_s4, %s23074_s10  ;;  %p23080_p3 = scmp.lt.s32.totalorder %s23074_s10, %s23074_s10 }
  0x8d   :  { %p23081_p4 = por %p23080_p3, %p23079_p2 }
  0x8f   :  { %p23082_p5 = pnand %p23081_p4, %p23075_p1 }
  0x91   :  { %23085 = shalt.err (!%p23082_p5)
}
  0x92   :  { %s23499_s27 = smov 128   ;;  %s23500_s0 = smov 8  }
  0x93   :  { %178 = dma.hbm_to_vmem [thread:$0]  %s25165_s12, 24576, %s173_s4, [#allocation21], %s23499_s27, %s23499_s27, %s23500_s0  }
  0x94   :  { %s23086_s29 = scalar_lea.hbm %s25167_s14, 30720 }
  0x95   :  { %p23087_p6 = scmp.ne.s32.totalorder %s25167_s14, %s23086_s29  ;;  %p23090_p7 = scmp.lt.u32.totalorder %s23086_s29, %s25167_s14 }
  0x97   :  { %p23092_p8 = pnand %p23090_p7, %p23087_p6 }
  0x99   :  { %23095 = shalt.err (!%p23092_p8)
}
  0x9a   :  { %s23096_s22 = scalar_lea.vmem %s195_s3, 30720  ;;  %p23101_p10 = scmp.lt.s32.totalorder %s195_s3, %s195_s3 }
  0x9b   :  { %p23097_p9 = scmp.ne.s32.totalorder %s195_s3, %s23096_s22  ;;  %p23102_p11 = scmp.lt.s32.totalorder %s23096_s22, %s23096_s22 }
  0x9d   :  { %p23103_p12 = por %p23102_p11, %p23101_p10 }
  0x9f   :  { %p23104_p13 = pnand %p23103_p12, %p23097_p9 }
  0xa1   :  { %23107 = shalt.err (!%p23104_p13)
}
  0xa2   :  { %200 = dma.hbm_to_vmem [thread:$0]  %s25167_s14, 30720, %s195_s3, [#allocation24], %s23499_s27, %s23499_s27, %s23500_s0  }
  0xa3   :  { %s23501_s28 = smov [#allocation26]   ;;  %s23502_s23 = smov [#allocation29]  }
  0xa4   :  { %s216_s10 = sshll.u32 %s23501_s28, 4  ;;  %s238_s7 = sshll.u32 %s23502_s23, 4  ;;  %s217_s10 = int_to_ptr.vmem [resolvable:$true] %s216_s10  ;;  %s239_s7 = int_to_ptr.vmem [resolvable:$true] %s238_s7 }
  0xa5   :  { %s23108_s29 = scalar_lea.hbm %s25169_s16, 36864 }
  0xa6   :  { %p23109_p0 = scmp.ne.s32.totalorder %s25169_s16, %s23108_s29  ;;  %p23112_p1 = scmp.lt.u32.totalorder %s23108_s29, %s25169_s16 }
  0xa8   :  { %p23114_p2 = pnand %p23112_p1, %p23109_p0 }
  0xaa   :  { %23117 = shalt.err (!%p23114_p2)
}
  0xab   :  { %s23118_s14 = scalar_lea.vmem %s217_s10, 36864  ;;  %p23123_p4 = scmp.lt.s32.totalorder %s217_s10, %s217_s10 }
  0xac   :  { %p23119_p3 = scmp.ne.s32.totalorder %s217_s10, %s23118_s14  ;;  %p23124_p5 = scmp.lt.s32.totalorder %s23118_s14, %s23118_s14 }
  0xae   :  { %p23125_p6 = por %p23124_p5, %p23123_p4 }
  0xb0   :  { %p23126_p7 = pnand %p23125_p6, %p23119_p3 }
  0xb2   :  { %23129 = shalt.err (!%p23126_p7)
}
  0xb3   :  { %222 = dma.hbm_to_vmem [thread:$0]  %s25169_s16, 36864, %s217_s10, [#allocation27], %s23499_s27, %s23499_s27, %s23500_s0  }
  0xb4   :  { %s23130_s28 = scalar_lea.hbm %s25171_s18, 107520 }
  0xb5   :  { %p23131_p8 = scmp.ne.s32.totalorder %s25171_s18, %s23130_s28  ;;  %p23134_p9 = scmp.lt.u32.totalorder %s23130_s28, %s25171_s18 }
  0xb7   :  { %p23136_p10 = pnand %p23134_p9, %p23131_p8 }
  0xb9   :  { %23139 = shalt.err (!%p23136_p10)
}
  0xba   :  { %s23140_s25 = scalar_lea.vmem %s239_s7, 107520  ;;  %p23145_p12 = scmp.lt.s32.totalorder %s239_s7, %s239_s7 }
  0xbb   :  { %p23141_p11 = scmp.ne.s32.totalorder %s239_s7, %s23140_s25  ;;  %p23146_p13 = scmp.lt.s32.totalorder %s23140_s25, %s23140_s25 }
  0xbd   :  { %p23147_p0 = por %p23146_p13, %p23145_p12 }
  0xbf   :  { %p23148_p1 = pnand %p23147_p0, %p23141_p11 }
  0xc1   :  { %23151 = shalt.err (!%p23148_p1)
}
  0xc2   :  { %s23503_s16 = smov 960   ;;  %s23504_s10 = smov 60  }
  0xc3   :  { %244 = dma.hbm_to_vmem [thread:$0]  %s25171_s18, 107520, %s239_s7, [#allocation30], %s23503_s16, %s23503_s16, %s23504_s10  }
  0xc4   :  { %s23505_s1 = smov [#allocation2]   ;;  %s23506_s3 = smov [#allocation7]  }
  0xc5   :  { %s48_s14 = sshll.u32 %s23505_s1, 4  ;;  %s75_s22 = sshll.u32 %s23506_s3, 4  ;;  %s49_s14 = int_to_ptr.vmem [resolvable:$true] %s48_s14  ;;  %s76_s22 = int_to_ptr.vmem [resolvable:$true] %s75_s22 }
  0xc6   :  { %s25219_s28 = sld [smem:[#allocation55_spill]] }
  0xcc   :  { %s23152_s23 = scalar_lea.hbm %s25219_s28, 256 }
  0xcd   :  { %p23153_p2 = scmp.ne.s32.totalorder %s25219_s28, %s23152_s23  ;;  %p23156_p3 = scmp.lt.u32.totalorder %s23152_s23, %s25219_s28 }
  0xcf   :  { %p23158_p4 = pnand %p23156_p3, %p23153_p2 }
  0xd1   :  { %23161 = shalt.err (!%p23158_p4)
}
  0xd2   :  { %s23162_s18 = scalar_lea.vmem %s49_s14, 256  ;;  %p23167_p6 = scmp.lt.s32.totalorder %s49_s14, %s49_s14 }
  0xd3   :  { %p23163_p5 = scmp.ne.s32.totalorder %s49_s14, %s23162_s18  ;;  %p23168_p7 = scmp.lt.s32.totalorder %s23162_s18, %s23162_s18 }
  0xd5   :  { %p23169_p8 = por %p23168_p7, %p23167_p6 }
  0xd7   :  { %p23170_p9 = pnand %p23169_p8, %p23163_p5 }
  0xd9   :  { %23173 = shalt.err (!%p23170_p9)
}
  0xda   :  { %54 = dma.hbm_to_vmem [thread:$0]  %s25219_s28, 256, %s49_s14, [#allocation3], %s23499_s27, %s23499_s27, %s23500_s0  }
  0xdb   :  { %s25220_s24 = sld [smem:[#allocation58_spill]] }
  0xe1   :  { %s23174_s1 = scalar_lea.hbm %s25220_s24, 64 }
  0xe2   :  { %p23175_p10 = scmp.ne.s32.totalorder %s25220_s24, %s23174_s1  ;;  %p23178_p11 = scmp.lt.u32.totalorder %s23174_s1, %s25220_s24 }
  0xe4   :  { %p23180_p12 = pnand %p23178_p11, %p23175_p10 }
  0xe6   :  { %23183 = shalt.err (!%p23180_p12)
}
  0xe7   :  { %s23184_s30 = scalar_lea.vmem %s76_s22, 64  ;;  %p23189_p0 = scmp.lt.s32.totalorder %s76_s22, %s76_s22 }
  0xe8   :  { %p23185_p13 = scmp.ne.s32.totalorder %s76_s22, %s23184_s30  ;;  %p23190_p1 = scmp.lt.s32.totalorder %s23184_s30, %s23184_s30 }
  0xea   :  { %p23191_p2 = por %p23190_p1, %p23189_p0 }
  0xec   :  { %p23192_p3 = pnand %p23191_p2, %p23185_p13 }
  0xee   :  { %23195 = shalt.err (!%p23192_p3)
}
  0xef   :  { %78 = dma.hbm_to_vmem [thread:$0]  %s25220_s24, 64, %s76_s22, [#allocation6]  }
  0xf0   :  { %s23507_s2 = smov [#allocation10]   ;;  %s23508_s25 = smov [#allocation13]  }
  0xf1   :  { %s97_s29 = sshll.u32 %s23507_s2, 4  ;;  %s119_s18 = sshll.u32 %s23508_s25, 4  ;;  %s98_s29 = int_to_ptr.vmem [resolvable:$true] %s97_s29  ;;  %s120_s18 = int_to_ptr.vmem [resolvable:$true] %s119_s18 }
  0xf2   :  { %s25221_s10 = sld [smem:[#allocation60_spill]] }
  0xf8   :  { %s23196_s8 = scalar_lea.hbm %s25221_s10, 16 }
  0xf9   :  { %p23197_p4 = scmp.ne.s32.totalorder %s25221_s10, %s23196_s8  ;;  %p23200_p5 = scmp.lt.u32.totalorder %s23196_s8, %s25221_s10 }
  0xfb   :  { %p23202_p6 = pnand %p23200_p5, %p23197_p4 }
  0xfd   :  { %23205 = shalt.err (!%p23202_p6)
}
  0xfe   :  { %s23206_s22 = scalar_lea.vmem %s98_s29, 16  ;;  %s23210_s24 = scalar_lea.vmem %s98_s29, 32 }
  0xff   :  { %p23207_p7 = scmp.ne.s32.totalorder %s98_s29, %s23206_s22  ;;  %p23211_p8 = scmp.lt.s32.totalorder %s98_s29, %s98_s29 }
 0x100   :  { %p23212_p9 = scmp.lt.s32.totalorder %s23210_s24, %s23206_s22 }
 0x102   :  { %p23213_p10 = por %p23212_p9, %p23211_p8 }
 0x104   :  { %p23214_p11 = pnand %p23213_p10, %p23207_p7 }
 0x106   :  { %23217 = shalt.err (!%p23214_p11)
}
 0x107   :  { %100 = dma.hbm_to_vmem [thread:$0]  %s25221_s10, 16, %s98_s29, [#allocation9]  }
 0x108   :  { %s25222_s2 = sld [smem:[#allocation62_spill]] }
 0x10e   :  { %s23218_s25 = scalar_lea.hbm %s25222_s2, 16 }
 0x10f   :  { %p23219_p12 = scmp.ne.s32.totalorder %s25222_s2, %s23218_s25  ;;  %p23222_p13 = scmp.lt.u32.totalorder %s23218_s25, %s25222_s2 }
 0x111   :  { %p23224_p0 = pnand %p23222_p13, %p23219_p12 }
 0x113   :  { %23227 = shalt.err (!%p23224_p0)
}
 0x114   :  { %s23228_s3 = scalar_lea.vmem %s120_s18, 16  ;;  %s23232_s12 = scalar_lea.vmem %s120_s18, 32 }
 0x115   :  { %p23229_p1 = scmp.ne.s32.totalorder %s120_s18, %s23228_s3  ;;  %p23233_p2 = scmp.lt.s32.totalorder %s120_s18, %s120_s18 }
 0x116   :  { %p23234_p3 = scmp.lt.s32.totalorder %s23232_s12, %s23228_s3 }
 0x118   :  { %p23235_p4 = por %p23234_p3, %p23233_p2 }
 0x11a   :  { %p23236_p5 = pnand %p23235_p4, %p23229_p1 }
 0x11c   :  { %23239 = shalt.err (!%p23236_p5)
}
 0x11d   :  { %122 = dma.hbm_to_vmem [thread:$0]  %s25222_s2, 16, %s120_s18, [#allocation12]  }
 0x11e   :  { %s23509_s4 = smov [#allocation16]   ;;  %s23510_s24 = smov [#allocation19]  }
 0x11f   :  { %s141_s22 = sshll.u32 %s23509_s4, 4  ;;  %s163_s23 = sshll.u32 %s23510_s24, 4  ;;  %s142_s22 = int_to_ptr.vmem [resolvable:$true] %s141_s22  ;;  %s164_s23 = int_to_ptr.vmem [resolvable:$true] %s163_s23 }
 0x120   :  { %s23240_s28 = scalar_lea.hbm %s25162_s9, 16 }
 0x121   :  { %p23241_p6 = scmp.ne.s32.totalorder %s25162_s9, %s23240_s28  ;;  %p23244_p7 = scmp.lt.u32.totalorder %s23240_s28, %s25162_s9 }
 0x123   :  { %p23246_p8 = pnand %p23244_p7, %p23241_p6 }
 0x125   :  { %23249 = shalt.err (!%p23246_p8)
}
 0x126   :  { %s23250_s18 = scalar_lea.vmem %s142_s22, 16  ;;  %s23254_s2 = scalar_lea.vmem %s142_s22, 32 }
 0x127   :  { %p23251_p9 = scmp.ne.s32.totalorder %s142_s22, %s23250_s18  ;;  %p23255_p10 = scmp.lt.s32.totalorder %s142_s22, %s142_s22 }
 0x128   :  { %p23256_p11 = scmp.lt.s32.totalorder %s23254_s2, %s23250_s18 }
 0x12a   :  { %p23257_p12 = por %p23256_p11, %p23255_p10 }
 0x12c   :  { %p23258_p13 = pnand %p23257_p12, %p23251_p9 }
 0x12e   :  { %23261 = shalt.err (!%p23258_p13)
}
 0x12f   :  { %144 = dma.hbm_to_vmem [thread:$0]  %s25162_s9, 16, %s142_s22, [#allocation15]  }
 0x130   :  { %s23262_s10 = scalar_lea.hbm %s25164_s11, 128 }
 0x131   :  { %p23263_p0 = scmp.ne.s32.totalorder %s25164_s11, %s23262_s10  ;;  %p23266_p1 = scmp.lt.u32.totalorder %s23262_s10, %s25164_s11 }
 0x133   :  { %p23268_p2 = pnand %p23266_p1, %p23263_p0 }
 0x135   :  { %23271 = shalt.err (!%p23268_p2)
}
 0x136   :  { %s23272_s28 = scalar_lea.vmem %s164_s23, 128  ;;  %p23277_p4 = scmp.lt.s32.totalorder %s164_s23, %s164_s23 }
 0x137   :  { %p23273_p3 = scmp.ne.s32.totalorder %s164_s23, %s23272_s28  ;;  %p23278_p5 = scmp.lt.s32.totalorder %s23272_s28, %s23272_s28 }
 0x139   :  { %p23279_p6 = por %p23278_p5, %p23277_p4 }
 0x13b   :  { %p23280_p7 = pnand %p23279_p6, %p23273_p3 }
 0x13d   :  { %23283 = shalt.err (!%p23280_p7)
}
 0x13e   :  { %166 = dma.hbm_to_vmem [thread:$0]  %s25164_s11, 128, %s164_s23, [#allocation18]  }
 0x13f   :  { %s23511_s25 = smov [#allocation22]   ;;  %s23512_s16 = smov [#allocation25]  }
 0x140   :  { %s185_s7 = sshll.u32 %s23511_s25, 4  ;;  %s207_s8 = sshll.u32 %s23512_s16, 4  ;;  %s186_s7 = int_to_ptr.vmem [resolvable:$true] %s185_s7  ;;  %s208_s8 = int_to_ptr.vmem [resolvable:$true] %s207_s8 }
 0x141   :  { %s23284_s1 = scalar_lea.hbm %s25166_s13, 32 }
 0x142   :  { %p23285_p8 = scmp.ne.s32.totalorder %s25166_s13, %s23284_s1  ;;  %p23288_p9 = scmp.lt.u32.totalorder %s23284_s1, %s25166_s13 }
 0x144   :  { %p23290_p10 = pnand %p23288_p9, %p23285_p8 }
 0x146   :  { %23293 = shalt.err (!%p23290_p10)
}
 0x147   :  { %s23294_s11 = scalar_lea.vmem %s186_s7, 32  ;;  %p23299_p12 = scmp.lt.s32.totalorder %s186_s7, %s186_s7 }
 0x148   :  { %p23295_p11 = scmp.ne.s32.totalorder %s186_s7, %s23294_s11  ;;  %p23300_p13 = scmp.lt.s32.totalorder %s23294_s11, %s23294_s11 }
 0x14a   :  { %p23301_p0 = por %p23300_p13, %p23299_p12 }
 0x14c   :  { %p23302_p1 = pnand %p23301_p0, %p23295_p11 }
 0x14e   :  { %23305 = shalt.err (!%p23302_p1)
}
 0x14f   :  { %188 = dma.hbm_to_vmem [thread:$0]  %s25166_s13, 32, %s186_s7, [#allocation21]  }
 0x150   :  { %s23306_s14 = scalar_lea.hbm %s25168_s15, 32 }
 0x151   :  { %p23307_p2 = scmp.ne.s32.totalorder %s25168_s15, %s23306_s14  ;;  %p23310_p3 = scmp.lt.u32.totalorder %s23306_s14, %s25168_s15 }
 0x153   :  { %p23312_p4 = pnand %p23310_p3, %p23307_p2 }
 0x155   :  { %23315 = shalt.err (!%p23312_p4)
}
 0x156   :  { %s23316_s16 = scalar_lea.vmem %s208_s8, 32  ;;  %p23321_p6 = scmp.lt.s32.totalorder %s208_s8, %s208_s8 }
 0x157   :  { %p23317_p5 = scmp.ne.s32.totalorder %s208_s8, %s23316_s16  ;;  %p23322_p7 = scmp.lt.s32.totalorder %s23316_s16, %s23316_s16 }
 0x159   :  { %p23323_p8 = por %p23322_p7, %p23321_p6 }
 0x15b   :  { %p23324_p9 = pnand %p23323_p8, %p23317_p5 }
 0x15d   :  { %23327 = shalt.err (!%p23324_p9)
}
 0x15e   :  { %210 = dma.hbm_to_vmem [thread:$0]  %s25168_s15, 32, %s208_s8, [#allocation24]  }
 0x15f   :  { %s23513_s18 = smov [#allocation28]   ;;  %s23514_s1 = smov [#allocation31]  }
 0x160   :  { %s229_s2 = sshll.u32 %s23513_s18, 4  ;;  %s251_s3 = sshll.u32 %s23514_s1, 4  ;;  %s230_s2 = int_to_ptr.vmem [resolvable:$true] %s229_s2  ;;  %s252_s3 = int_to_ptr.vmem [resolvable:$true] %s251_s3 }
 0x161   :  { %s23328_s10 = scalar_lea.hbm %s25170_s17, 32 }
 0x162   :  { %p23329_p10 = scmp.ne.s32.totalorder %s25170_s17, %s23328_s10  ;;  %p23332_p11 = scmp.lt.u32.totalorder %s23328_s10, %s25170_s17 }
 0x164   :  { %p23334_p12 = pnand %p23332_p11, %p23329_p10 }
 0x166   :  { %23337 = shalt.err (!%p23334_p12)
}
 0x167   :  { %s23338_s15 = scalar_lea.vmem %s230_s2, 32  ;;  %p23343_p0 = scmp.lt.s32.totalorder %s230_s2, %s230_s2 }
 0x168   :  { %p23339_p13 = scmp.ne.s32.totalorder %s230_s2, %s23338_s15  ;;  %p23344_p1 = scmp.lt.s32.totalorder %s23338_s15, %s23338_s15 }
 0x16a   :  { %p23345_p2 = por %p23344_p1, %p23343_p0 }
 0x16c   :  { %p23346_p3 = pnand %p23345_p2, %p23339_p13 }
 0x16e   :  { %23349 = shalt.err (!%p23346_p3)
}
 0x16f   :  { %232 = dma.hbm_to_vmem [thread:$0]  %s25170_s17, 32, %s230_s2, [#allocation27]  }
 0x170   :  { %s23350_s9 = scalar_lea.hbm %s25172_s19, 240 }
 0x171   :  { %p23351_p4 = scmp.ne.s32.totalorder %s25172_s19, %s23350_s9  ;;  %p23354_p5 = scmp.lt.u32.totalorder %s23350_s9, %s25172_s19 }
 0x173   :  { %p23356_p6 = pnand %p23354_p5, %p23351_p4 }
 0x175   :  { %23359 = shalt.err (!%p23356_p6)
}
 0x176   :  { %s23360_s7 = scalar_lea.vmem %s252_s3, 240  ;;  %s23364_s18 = scalar_lea.vmem %s252_s3, 256 }
 0x177   :  { %p23361_p7 = scmp.ne.s32.totalorder %s252_s3, %s23360_s7  ;;  %p23365_p8 = scmp.lt.s32.totalorder %s252_s3, %s252_s3 }
 0x178   :  { %p23366_p9 = scmp.lt.s32.totalorder %s23364_s18, %s23360_s7 }
 0x17a   :  { %p23367_p10 = por %p23366_p9, %p23365_p8 }
 0x17c   :  { %p23368_p11 = pnand %p23367_p10, %p23361_p7 }
 0x17e   :  { %23371 = shalt.err (!%p23368_p11)
}
 0x17f   :  { %254 = dma.hbm_to_vmem [thread:$0]  %s25172_s19, 240, %s252_s3, [#allocation30]  }
 0x180   :  { %s23515_s1 = smov [#allocation32]   ;;  %s23372_s11 = scalar_lea.hbm %s25174_s21, 16 }
 0x181   :  { %s263_s12 = sshll.u32 %s23515_s1, 4  ;;  %p23373_p12 = scmp.ne.s32.totalorder %s25174_s21, %s23372_s11  ;;  %s264_s12 = int_to_ptr.vmem [resolvable:$true] %s263_s12 }
 0x182   :  { %p23376_p13 = scmp.lt.u32.totalorder %s23372_s11, %s25174_s21 }
 0x184   :  { %p23378_p0 = pnand %p23376_p13, %p23373_p12 }
 0x186   :  { %23381 = shalt.err (!%p23378_p0)
}
 0x187   :  { %s23382_s8 = scalar_lea.vmem %s264_s12, 16  ;;  %s23386_s19 = scalar_lea.vmem %s264_s12, 32 }
 0x188   :  { %p23383_p1 = scmp.ne.s32.totalorder %s264_s12, %s23382_s8  ;;  %p23387_p2 = scmp.lt.s32.totalorder %s264_s12, %s264_s12 }
 0x189   :  { %p23388_p3 = scmp.lt.s32.totalorder %s23386_s19, %s23382_s8 }
 0x18b   :  { %p23389_p4 = por %p23388_p3, %p23387_p2 }
 0x18d   :  { %p23390_p5 = pnand %p23389_p4, %p23383_p1 }
 0x18f   :  { %23393 = shalt.err (!%p23390_p5)
}
 0x190   :  { %266 = dma.hbm_to_vmem [thread:$0]  %s25174_s21, 16, %s264_s12, [#allocation33]  }
 0x191   :  { %23460 = dma.done.wait [#allocation3], 256  }
 0x192   :  { %23461 = vsyncadd [#allocation3], 4294967040 }
 0x193   :  { %23462 = dma.done.wait [#allocation6], 1088  }
 0x194   :  { %23463 = vsyncadd [#allocation6], 4294966208 }
 0x195   :  { %23464 = dma.done.wait [#allocation9], 3088  }
 0x196   :  { %23465 = vsyncadd [#allocation9], 4294964208 }
 0x197   :  { %23466 = dma.done.wait [#allocation12], 4624  }
 0x198   :  { %23467 = vsyncadd [#allocation12], 4294962672 }
 0x199   :  { %23468 = dma.done.wait [#allocation15], 6160  }
 0x19a   :  { %23469 = vsyncadd [#allocation15], 4294961136 }
 0x19b   :  { %23470 = dma.done.wait [#allocation18], 20608  }
 0x19c   :  { %23471 = vsyncadd [#allocation18], 4294946688 }
 0x19d   :  { %23472 = dma.done.wait [#allocation21], 24608  }
 0x19e   :  { %23473 = vsyncadd [#allocation21], 4294942688 }
 0x19f   :  { %23474 = dma.done.wait [#allocation24], 30752  }
 0x1a0   :  { %23475 = vsyncadd [#allocation24], 4294936544 }
 0x1a1   :  { %23476 = dma.done.wait [#allocation27], 36896  }
 0x1a2   :  { %23477 = vsyncadd [#allocation27], 4294930400 }
 0x1a3   :  { %23478 = dma.done.wait [#allocation30], 107760  }
 0x1a4   :  { %23479 = vsyncadd [#allocation30], 4294859536 }
 0x1a5   :  { %23480 = dma.done.wait [#allocation33], 16  }
 0x1a6   :  { %23481 = vsyncadd [#allocation33], 4294967280  ;;  %v25191_v0 = vmov 0   ;;  %v20342_v1 = vld [vmem:[#allocation5 + $0x4] ss:$16 sps:$4 sm:$0xff]   ;;  %v329_v10 = vld [vmem:[#allocation2 + $0x8] sm:$0xff]  ;;  %v331_v13 = vlaneseq }
 0x1a7   :  { %465 = vmatprep.mubr.bf16.mxu0 %v25191_v0  ;;  %508 = vmatprep.mubr.bf16.mxu1 %v25191_v0  ;;  %v20344_v2 = vld [vmem:[#allocation5] ss:$16 sps:$4 sm:$0xff]   ;;  %v20345_v3 = vld [vmem:[#allocation5 + $0xc] ss:$16 sps:$4 sm:$0xff]   ;;  %v20347_v4 = vld [vmem:[#allocation5 + $0x8] ss:$16 sps:$4 sm:$0xff]  }
 0x1a8   :  { %433 = vmatprep.subr.bf16.mxu0 %v20342_v1  ;;  %v20348_v5 = vld [vmem:[#allocation5 + $0x24] ss:$16 sps:$4 sm:$0xff]   ;;  %v20350_v6 = vld [vmem:[#allocation5 + $0x20] ss:$16 sps:$4 sm:$0xff]   ;;  %476 = vmatprep.subr.bf16.mxu1 %v20345_v3  ;;  %v20351_v7 = vld [vmem:[#allocation5 + $0x2c] ss:$16 sps:$4 sm:$0xff]  }
 0x1a9   :  { %434 = vmatpush1.bf16.msra.mxu0 %v20344_v2  ;;  %477 = vmatpush1.bf16.msra.mxu1 %v20347_v4  ;;  %v20353_v8 = vld [vmem:[#allocation5 + $0x28] ss:$16 sps:$4 sm:$0xff]   ;;  %v328_v9 = vld [vmem:[#allocation2] sm:$0xff]  ;;  %vm25189_vm0 = vcmask 261120   ;;  %v25193_v12 = vmov 0.0   ;;  %v23923_v14 = vshrl.u32 %v331_v13, 7 }
 0x1aa   :  { %435 = vmatprep.subr.bf16.mxu0 %v20348_v5  ;;  %478 = vmatprep.subr.bf16.mxu1 %v20351_v7  ;;  %v358_v11 = vpack.c.bf16 %v329_v10, %v328_v9  ;;  %v367_v15 = vld [vmem:[#allocation7] sm:$0xf]  ;;  %vm533_vm1 = vcmask 523264   ;;  %vm608_vm2 = vcmask 1043456   ;;  %vm23518_vm3 = vmmov 0   ;;  %s25225_s28 = sld [smem:[#allocation56_spill]] }
 0x1ab   :  { %25223 = vst [vmem:[#allocation51_spill] sm:$0xff] %v23923_v14  ;;  %v23926_v16 = vsub.s32 1, %v23923_v14  ;;  %v23929_v17 = vsub.s32 2, %v23923_v14  ;;  %v23932_v18 = vsub.s32 3, %v23923_v14  ;;  %v23947_v42 = vsub.s32 0, %v23923_v14  ;;  %s23520_s13 = smov [#allocation34]  }
 0x1ac   :  { %vm25190_vm4 = vcmask 64512   ;;  %vm795_vm5 = vcmask 1040384   ;;  %vm810_vm7 = vcmask 1046528   ;;  %vm1158_vm8 = vcmask 1045504   ;;  %s17479_s7 = sshll.u32 %s23520_s13, 4  ;;  %s17480_s7 = int_to_ptr.vmem [resolvable:$true] %s17479_s7 }
 0x1ad   :  { %436 = vmatpush1.bf16.msra.mxu0 %v20350_v6  ;;  %479 = vmatpush1.bf16.msra.mxu1 %v20353_v8  ;;  %25224 = vst [vmem:[#allocation52_spill] sm:$0xff] %v23932_v18  ;;  %v376_v19 = vrot.slane %v367_v15, %v23926_v16  ;;  %v380_v20 = vrot.slane %v367_v15, %v23929_v17 }
 0x1ae   :  { %19944 = vmatprep.subr.bf16.mxu1 %v25193_v12  ;;  %v384_v22 = vrot.slane %v367_v15, %v23932_v18  ;;  %v372_v45 = vrot.slane %v367_v15, %v23947_v42 }
 0x1b0   :  { %17540 = vmatmul.mubr.msk.bf16.vlgmr.msra.gmra.mrb[0].mxu0 %vm25189_vm0, %v358_v11  ;;  %17541 = vmatmul.mubr.msk.bf16.vlgmr.msra.gmra.mrb[0].mxu1 %vm25189_vm0, %v358_v11  ;;  %v330_v54 = vld [vmem:[%s25225_s28] sm:$0x3] }
 0x1b1   :  { %19946 = vmatprep.mubr.msk.bf16.mxu1 %vm23518_vm3, %v25193_v12  ;;  %v23961_v55 = vrot.slane %v330_v54, %v23947_v42  ;;  %v23966_v63 = vrot.slane %v330_v54, %v23926_v16  ;;  %v20354_v54 = vld [vmem:[#allocation8 + $0x40] sm:$0xff]  }
 0x283   :  { %v467_v21 = vpop.f32.mrb[0].mxu0  ;;  %v510_v26 = vpop.f32.mrb[0].mxu1 }
 0x284   :  { %v469_v23 = vpop.f32.mrb[1].mxu0  ;;  %v511_v27 = vadd.f32 %v510_v26, %v380_v20  ;;  %v512_v29 = vpop.f32.mrb[1].mxu1  ;;  %v468_v49 = vadd.f32 %v467_v21, %v372_v45 }
 0x285   :  { %v470_v24 = vadd.f32 %v469_v23, %v376_v19  ;;  %v471_v25 = vpop.f32.mrb[2].mxu0  ;;  %v513_v32 = vadd.f32 %v512_v29, %v384_v22  ;;  %v514_v33 = vpop.f32.mrb[2].mxu1 }
 0x286   :  { %v473_v28 = vpop.f32.mrb[3].mxu0  ;;  %v521_v34 = vpack.c.bf16 %v511_v27, %v511_v27  ;;  %v515_v35 = vadd.f32 %v514_v33, %v380_v20  ;;  %v516_v36 = vpop.f32.mrb[3].mxu1  ;;  %v519_v50 = vpack.c.bf16 %v468_v49, %v468_v49  ;;  %v472_v52 = vadd.f32 %v471_v25, %v372_v45 }
 0x287   :  { %v520_v30 = vpack.c.bf16 %v470_v24, %v470_v24  ;;  %v474_v31 = vadd.f32 %v473_v28, %v376_v19  ;;  %v522_v38 = vpack.c.bf16 %v513_v32, %v513_v32  ;;  %v23937_v39 = vadd.f32 %v516_v36, %v384_v22 }
 0x288   :  { %v654_v41 = vpack.c.bf16 %v515_v35, %v515_v35  ;;  %v652_v53 = vpack.c.bf16 %v472_v52, %v472_v52 }
 0x289   :  { %v653_v37 = vpack.c.bf16 %v474_v31, %v474_v31  ;;  %529 = vrot.lane.b32.xlu0 %v520_v30, %s23490_s26  ;;  %17543 = vmatprep.mubr.msk.bf16.mxu0 %vm533_vm1, %v520_v30  ;;  %v610_v40 = vsel %vm608_vm2, %v522_v38, 0 }
 0x28a   :  { %19945 = vmatpush3.bf16.msra.mxu1 %v610_v40 }
 0x28b   :  { %662 = vrot.lane.b32.xlu1 %v653_v37, %s23490_s26  ;;  %19950 = vmatprep.subr.bf16.mxu1 %v25193_v12 }
 0x28d   :  { %531 = vrot.lane.b32.xlu0 %v521_v34, %s23490_s26 }
 0x28f   :  { %664 = vrot.lane.b32.xlu1 %v654_v41, %s23490_s26 }
 0x2fb   :  { %v530_v43 = vpop.permute.xlu0 %529 }
 0x2fd   :  { %v663_v44 = vpop.permute.xlu1 %662 }
 0x2ff   :  { %v532_v46 = vpop.permute.xlu0 %531 }
 0x300   :  { %v534_v47 = vsel %vm533_vm1, %v530_v43, %v532_v46  ;;  %17542 = vmatprep.subr.msk.bf16.mxu0 %vm533_vm1, %v532_v46 }
 0x301   :  { %v665_v48 = vpop.permute.xlu1 %664  ;;  %544 = vmatpush1.bf16.xpose.msra.mxu0 %v534_v47 }
 0x302   :  { %17545 = vmatprep.subr.msk.bf16.mxu0 %vm533_vm1, %v665_v48  ;;  %v666_v51 = vsel %vm533_vm1, %v663_v44, %v665_v48  ;;  %v655_v44 = vpack.c.bf16 %v23937_v39, %v23937_v39 }
 0x304   :  { %v739_v47 = vsel %vm608_vm2, %v655_v44, 0 }
 0x308   :  { %576 = vmatmul.mubr.bf16.vlgmr.msra.gmra.mrb[4].mxu0 %v519_v50 }
 0x309   :  { %675 = vmatpush1.bf16.xpose.msra.mxu0 %v666_v51  ;;  %17546 = vmatprep.mubr.msk.bf16.mxu0 %vm533_vm1, %v653_v37 }
 0x30a   :  { %19605 = vmatprep.subr.bf16.mxu0 %v20354_v54 }
 0x310   :  { %707 = vmatmul.mubr.bf16.vlgmr.msra.gmra.mrb[8].mxu0 %v652_v53 }
 0x3db   :  { %v577_v56 = vpop.f32.mrb[4].mxu0 }
 0x3dc   :  { %v578_v57 = vadd.f32 %v577_v56, %v23961_v55  ;;  %v579_v58 = vpop.f32.mrb[5].mxu0  ;;  %v20355_v56 = vld [vmem:[#allocation8] sm:$0xff]  }
 0x3dd   :  { %v580_v59 = vpop.f32.mrb[6].mxu0  ;;  %v20357_v58 = vld [vmem:[#allocation8 + $0x48] sm:$0xff]   ;;  %19606 = vmatpush3.bf16.msra.mxu0 %v20355_v56 }
 0x3de   :  { %v583_v60 = vmul.f32 0.07216878, %v578_v57  ;;  %v581_v61 = vpop.f32.mrb[7].mxu0  ;;  %v20356_v57 = vld [vmem:[#allocation8 + $0x80] sm:$0xff]   ;;  %v20359_v59 = vld [vmem:[#allocation8 + $0x88] sm:$0xff]   ;;  %19607 = vmatprep.subr.bf16.mxu0 %v20357_v58 }
 0x3df   :  { %v20360_v61 = vld [vmem:[#allocation8 + $0x50] sm:$0xff]   ;;  %v21215_v58 = vld [vmem:[#allocation29 + $0x168] ss:$60 sps:$4 sm:$0xff]  }
 0x3e0   :  { %v585_v62 = vsel %vm25190_vm4, %v583_v60, -inf }
 0x3e1   :  { %v586_v1 = vrot.slane %v585_v62, 4 }
 0x3e3   :  { %v587_v2 = vmax.f32 %v585_v62, %v586_v1  ;;  %v708_v3 = vpop.f32.mrb[8].mxu0  ;;  %v20362_v62 = vld [vmem:[#allocation8 + $0x90] sm:$0xff]  }
 0x3e4   :  { %v709_v4 = vadd.f32 %v708_v3, %v23966_v63  ;;  %v710_v5 = vpop.f32.mrb[9].mxu0  ;;  %v20361_v1 = vld [vmem:[#allocation8 + $0x10] sm:$0xff]   ;;  %v20365_v3 = vld [vmem:[#allocation8 + $0x98] sm:$0xff]  }
 0x3e5   :  { %v588_v6 = vrot.slane %v587_v2, 2  ;;  %v711_v7 = vpop.f32.mrb[10].mxu0  ;;  %v20366_v5 = vld [vmem:[#allocation8 + $0x60] sm:$0xff]  }
 0x3e6   :  { %v714_v8 = vmul.f32 0.07216878, %v709_v4  ;;  %v712_v9 = vpop.f32.mrb[11].mxu0  ;;  %v20364_v4 = vld [vmem:[#allocation8 + $0x18] sm:$0xff]   ;;  %v20367_v7 = vld [vmem:[#allocation8 + $0x20] sm:$0xff]  }
 0x3e7   :  { %v589_v10 = vmax.f32 %v587_v2, %v588_v6  ;;  %v20363_v2 = vld [vmem:[#allocation8 + $0x58] sm:$0xff]   ;;  %v20368_v6 = vld [vmem:[#allocation8 + $0xa0] sm:$0xff]   ;;  %v20370_v9 = vld [vmem:[#allocation8 + $0x28] sm:$0xff]  }
 0x3e8   :  { %v715_v11 = vsel %vm25190_vm4, %v714_v8, -inf }
 0x3e9   :  { %v590_v13 = vrot.slane %v589_v10, 1  ;;  %v716_v15 = vrot.slane %v715_v11, 4 }
 0x3eb   :  { %v591_v19 = vmax.f32 %v589_v10, %v590_v13  ;;  %v717_v20 = vmax.f32 %v715_v11, %v716_v15  ;;  %v20371_v10 = vld [vmem:[#allocation8 + $0xa8] sm:$0xff]   ;;  %v20372_v11 = vld [vmem:[#allocation8 + $0x70] sm:$0xff]  }
 0x3ec   :  { %v20374_v13 = vld [vmem:[#allocation8 + $0xb0] sm:$0xff]  }
 0x3ed   :  { %v592_v21 = vsub.f32 %v583_v60, %v591_v19  ;;  %v718_v22 = vrot.slane %v717_v20, 2  ;;  %v20358_v60 = vld [vmem:[#allocation8 + $0x8] sm:$0xff]   ;;  %v20373_v15 = vld [vmem:[#allocation8 + $0x30] sm:$0xff]   ;;  %v20375_v19 = vld [vmem:[#allocation8 + $0x78] sm:$0xff]  }
 0x3ee   :  { %19608 = vmatpush3.bf16.msra.mxu0 %v20358_v60 }
 0x3ef   :  { %v593_v23 = vmul.f32 1.442695, %v592_v21  ;;  %v719_v24 = vmax.f32 %v717_v20, %v718_v22  ;;  %19609 = vmatprep.subr.bf16.mxu0 %v20360_v61  ;;  %v20376_v20 = vld [vmem:[#allocation8 + $0x38] sm:$0xff]  }
 0x3f0   :  { %v20377_v21 = vld [vmem:[#allocation8 + $0xb8] sm:$0xff]  }
 0x3f1   :  { %22854 = vpow2.f32 %v593_v23  ;;  %v720_v25 = vrot.slane %v719_v24, 1 }
 0x3f2   :  { %19610 = vmatpush3.bf16.msra.mxu0 %v20361_v1 }
 0x3f3   :  { %v721_v26 = vmax.f32 %v719_v24, %v720_v25  ;;  %19611 = vmatprep.subr.bf16.mxu0 %v20363_v2 }
 0x3f5   :  { %v722_v27 = vsub.f32 %v714_v8, %v721_v26  ;;  %v20369_v8 = vld [vmem:[#allocation8 + $0x68] sm:$0xff]  }
 0x3f6   :  { %19612 = vmatpush3.bf16.msra.mxu0 %v20364_v4 }
 0x3f7   :  { %v723_v28 = vmul.f32 1.442695, %v722_v27  ;;  %19613 = vmatprep.subr.bf16.mxu0 %v20366_v5 }
 0x3f9   :  { %22856 = vpow2.f32 %v723_v28 }
 0x3fa   :  { %19614 = vmatpush3.bf16.msra.mxu0 %v20367_v7 }
 0x3fb   :  { %v22855_v29 = vpop.eup %22854  ;;  %19615 = vmatprep.subr.bf16.mxu0 %v20369_v8 }
 0x3fc   :  { %v595_v30 = vsel %vm25190_vm4, %v22855_v29, 0.0 }
 0x3fd   :  { %v596_v31 = vrot.slane %v595_v30, 4 }
 0x3fe   :  { %19616 = vmatpush3.bf16.msra.mxu0 %v20370_v9 }
 0x3ff   :  { %v597_v32 = vadd.f32 %v596_v31, %v595_v30  ;;  %19617 = vmatprep.subr.bf16.mxu0 %v20372_v11  ;;  %v333_v31 = vadd.s32 8, %v23923_v14 }
 0x401   :  { %v598_v33 = vrot.slane %v597_v32, 2 }
 0x402   :  { %19618 = vmatpush3.bf16.msra.mxu0 %v20373_v15 }
 0x403   :  { %v22857_v34 = vpop.eup %22856  ;;  %v599_v35 = vadd.f32 %v598_v33, %v597_v32  ;;  %19619 = vmatprep.subr.bf16.mxu0 %v20375_v19  ;;  %v22950_v32 = vld [vmem:[#allocation2] sm:$0xff] }
 0x404   :  { %v725_v36 = vsel %vm25190_vm4, %v22857_v34, 0.0 }
 0x405   :  { %v600_v37 = vrot.slane %v599_v35, 1  ;;  %v726_v38 = vrot.slane %v725_v36, 4 }
 0x406   :  { %19620 = vmatpush3.bf16.msra.mxu0 %v20376_v20 }
 0x407   :  { %v601_v40 = vadd.f32 %v600_v37, %v599_v35  ;;  %v727_v41 = vadd.f32 %v726_v38, %v725_v36  ;;  %v24000_v35 = vand.u32 7, %v333_v31  ;;  %v22951_v38 = vld [vmem:[#allocation2 + $0x8] sm:$0xff]  ;;  %v20385_v31 = vld [vmem:[#allocation11 + $0x8] sm:$0xff]  }
 0x409   :  { %22858 = vrcp.f32 %v601_v40  ;;  %v728_v43 = vrot.slane %v727_v41, 2  ;;  %vm803_vm9 = vcmp.ge.s32.totalorder %v24000_v35, 1  ;;  %vm818_vm11 = vcmp.lt.s32.totalorder %v24000_v35, 7 }
 0x40a   :  { %vm1172_vm13 = vcmp.lt.s32.totalorder %v24000_v35, 6 }
 0x40b   :  { %v729_v45 = vadd.f32 %v728_v43, %v727_v41 }
 0x40d   :  { %v730_v46 = vrot.slane %v729_v45, 1 }
 0x40f   :  { %v731_v48 = vadd.f32 %v730_v46, %v729_v45 }
 0x411   :  { %22860 = vrcp.f32 %v731_v48 }
 0x413   :  { %v22859_v49 = vpop.eup %22858 }
 0x414   :  { %v603_v50 = vmul.f32 %v22859_v49, %v22855_v29  ;;  %v20657_v49 = vld [vmem:[#allocation20 + $0x210] ss:$8 sps:$4 sm:$0xff]  }
 0x416   :  { %v604_v51 = vpack.c.bf16 %v603_v50, %v603_v50 }
 0x418   :  { %19947 = vmatmul.mubr.msk.bf16.vlgmr.msra.gmra.mrb[4].mxu1 %vm25190_vm4, %v604_v51 }
 0x419   :  { %19951 = vmatpush3.bf16.msra.mxu1 %v739_v47  ;;  %19952 = vmatprep.mubr.msk.bf16.mxu1 %vm23518_vm3, %v25193_v12 }
 0x41a   :  { %19956 = vmatprep.subr.bf16.mxu1 %v25193_v12 }
 0x41b   :  { %v22861_v52 = vpop.eup %22860 }
 0x41c   :  { %v733_v53 = vmul.f32 %v22861_v52, %v22857_v34  ;;  %v23998_v34 = vand.u32 7, %v23923_v14 }
 0x41e   :  { %v734_v39 = vpack.c.bf16 %v733_v53, %v733_v53  ;;  %vm802_vm6 = vcmp.ge.s32.totalorder %v23998_v34, 1  ;;  %vm817_vm10 = vcmp.lt.s32.totalorder %v23998_v34, 7  ;;  %vm1171_vm12 = vcmp.lt.s32.totalorder %v23998_v34, 6  ;;  %v20857_v53 = vld [vmem:[#allocation26 + $0x34] ss:$8 sps:$4 sm:$0xff]  }
 0x41f   :  { %vm24028_vm14 = vmpackc.low %vm803_vm9, %vm802_vm6  ;;  %vm1135_vm9 = vcmask 1041408  }
 0x420   :  { %19953 = vmatmul.mubr.msk.bf16.vlgmr.msra.gmra.mrb[8].mxu1 %vm25190_vm4, %v734_v39  ;;  %vm24040_vm15 = vmpackc.low %vm818_vm11, %vm817_vm10  ;;  %vm1148_vm10 = vcmp.ge.s32.totalorder %v23998_v34, 2  ;;  %vm1149_vm11 = vcmp.ge.s32.totalorder %v24000_v35, 2 }
 0x421   :  { %19972 = vmatprep.mubr.msk.bf16.mxu1 %vm23518_vm3, %v25193_v12  ;;  %19957 = vmatpush3.bf16.msra.mxu1 %v20356_v57  ;;  %vm24054_vm6 = vmpackc.low %vm1172_vm13, %vm1171_vm12 }
 0x422   :  { %19958 = vmatprep.subr.bf16.mxu1 %v25193_v12 }
 0x425   :  { %19959 = vmatpush3.bf16.msra.mxu1 %v20359_v59 }
 0x426   :  { %19960 = vmatprep.subr.bf16.mxu1 %v25193_v12 }
 0x429   :  { %19961 = vmatpush3.bf16.msra.mxu1 %v20362_v62  ;;  %v17548_v62 = vld [vmem:[#allocation10] ss:$0 sm:$0xff] }
 0x42a   :  { %19962 = vmatprep.subr.bf16.mxu1 %v25193_v12 }
 0x42d   :  { %19963 = vmatpush3.bf16.msra.mxu1 %v20365_v3 }
 0x42e   :  { %19964 = vmatprep.subr.bf16.mxu1 %v25193_v12 }
 0x431   :  { %19965 = vmatpush3.bf16.msra.mxu1 %v20368_v6 }
 0x432   :  { %19966 = vmatprep.subr.bf16.mxu1 %v25193_v12 }
 0x435   :  { %19967 = vmatpush3.bf16.msra.mxu1 %v20371_v10 }
 0x436   :  { %19968 = vmatprep.subr.bf16.mxu1 %v25193_v12 }
 0x439   :  { %19969 = vmatpush3.bf16.msra.mxu1 %v20374_v13 }
 0x43a   :  { %19970 = vmatprep.subr.bf16.mxu1 %v25193_v12 }
 0x43d   :  { %19971 = vmatpush3.bf16.msra.mxu1 %v20377_v21 }
 0x4eb   :  { %v646_v22 = vpop.f32.mrb[4].mxu1 }
 0x4ec   :  { %783 = vrot.lane.b32.xlu0 %v646_v22, %s23496_s5  ;;  %v19948_v23 = vpop.f32.mrb[5].mxu1 }
 0x4ed   :  { %v649_v24 = vpop.f32.mrb[6].mxu1 }
 0x4ee   :  { %v19949_v25 = vpop.f32.mrb[7].mxu1  ;;  %v20378_v24 = vld [vmem:[#allocation11 + $0xc0] sm:$0xff]  }
 0x4ef   :  { %v20379_v25 = vld [vmem:[#allocation11 + $0x80] sm:$0xff]   ;;  %19658 = vmatprep.subr.bf16.mxu1 %v20378_v24 }
 0x4f3   :  { %v775_v26 = vpop.f32.mrb[8].mxu1 }
 0x4f4   :  { %785 = vrot.lane.b32.xlu1 %v775_v26, %s23496_s5  ;;  %v19954_v27 = vpop.f32.mrb[9].mxu1  ;;  %v20380_v26 = vld [vmem:[#allocation11 + $0x40] sm:$0xff]  }
 0x4f5   :  { %v778_v28 = vpop.f32.mrb[10].mxu1  ;;  %v20381_v27 = vld [vmem:[#allocation11] sm:$0xff]   ;;  %19636 = vmatprep.subr.bf16.mxu0 %v20380_v26 }
 0x4f6   :  { %v19955_v29 = vpop.f32.mrb[11].mxu1  ;;  %v20382_v28 = vld [vmem:[#allocation11 + $0xc8] sm:$0xff]  }
 0x4f7   :  { %v20384_v29 = vld [vmem:[#allocation11 + $0x48] sm:$0xff]  }
 0x55e   :  { %v784_v30 = vpop.permute.xlu0 %783 }
 0x55f   :  { %v23993_v33 = vsel %vm25189_vm0, %v22950_v32, %v784_v30  ;;  %v20383_v30 = vld [vmem:[#allocation11 + $0x88] sm:$0xff]   ;;  %v20386_v32 = vld [vmem:[#allocation11 + $0xd0] sm:$0xff]  }
 0x560   :  { %3926 = vst [vmem:[#allocation35] sm:$0xff] %v23993_v33  ;;  %791 = vst [vmem:[#allocation34] sm:$0xff] %v23993_v33  ;;  %v796_v36 = vrot.slane %v23993_v33, 7  ;;  %v811_v41 = vrot.slane %v23993_v33, 1  ;;  %v1159_v43 = vrot.slane %v23993_v33, 2 }
 0x562   :  { %v801_v48 = vsel %vm795_vm5, 0.0, %v796_v36 }
 0x566   :  { %v786_v37 = vpop.permute.xlu1 %785 }
 0x567   :  { %v24009_v40 = vsel %vm25189_vm0, %v22951_v38, %v786_v37  ;;  %v20388_v37 = vld [vmem:[#allocation11 + $0x50] sm:$0xff]   ;;  %vm24112_vm0 = vmpackc.low %vm1149_vm11, %vm1148_vm10 }
 0x568   :  { %v24016_v44 = vpack.c.bf16 %v24009_v40, %v23993_v33  ;;  %3930 = vst [vmem:[#allocation35 + $0x20] sm:$0xff] %v24009_v40  ;;  %792 = vst [vmem:[#allocation34 + $0x8] sm:$0xff] %v24009_v40  ;;  %v797_v45 = vrot.slane %v24009_v40, 7  ;;  %v812_v46 = vrot.slane %v24009_v40, 1  ;;  %v1160_v47 = vrot.slane %v24009_v40, 2 }
 0x56a   :  { %1059 = vmatprep.mubr.bf16.mxu0 %v24016_v44  ;;  %v798_v50 = vsel %vm795_vm5, %v796_v36, %v797_v45  ;;  %v813_v51 = vsel %vm810_vm7, %v811_v41, %v812_v46  ;;  %v816_v52 = vsel %vm810_vm7, %v812_v46, 0.0  ;;  %v1161_v39 = vsel %vm1158_vm8, %v1159_v43, %v1160_v47  ;;  %v20387_v41 = vld [vmem:[#allocation11 + $0x90] sm:$0xff]   ;;  %v20390_v45 = vld [vmem:[#allocation11 + $0xd8] sm:$0xff]  }
 0x56b   :  { %v24045_v54 = vpack.c.bf16 %v798_v50, %v801_v48  ;;  %v24047_v56 = vpack.c.bf16 %v816_v52, %v813_v51  ;;  %v1169_v57 = vsel %vm1158_vm8, %v1160_v47, 0.0  ;;  %v20389_v43 = vld [vmem:[#allocation11 + $0x10] sm:$0xff]   ;;  %v20392_v46 = vld [vmem:[#allocation11 + $0x58] sm:$0xff]   ;;  %v20394_v50 = vld [vmem:[#allocation11 + $0xe0] sm:$0xff]  }
 0x56c   :  { %v24058_v59 = vpack.c.bf16 %v1169_v57, %v1161_v39  ;;  %v20391_v47 = vld [vmem:[#allocation11 + $0x98] sm:$0xff]   ;;  %v20396_v51 = vld [vmem:[#allocation11 + $0x60] sm:$0xff]   ;;  %v20398_v57 = vld [vmem:[#allocation11 + $0xe8] sm:$0xff]  }
 0x56d   :  { %17575 = vmatmul.mubr.msk.bf16.vlgmr.msra.gmra.mrb[12].mxu0 %vm24028_vm14, %v24045_v54  ;;  %19973 = vmatmul.mubr.msk.bf16.vlgmr.msra.gmra.mrb[12].mxu1 %vm24040_vm15, %v24047_v56  ;;  %v20393_v48 = vld [vmem:[#allocation11 + $0x18] sm:$0xff]   ;;  %v20395_v52 = vld [vmem:[#allocation11 + $0xa0] sm:$0xff]  }
 0x56e   :  { %17623 = vmatprep.mubr.msk.bf16.mxu1 %vm24054_vm6, %v24058_v59  ;;  %19659 = vmatpush3.bf16.msra.mxu1 %v20379_v25  ;;  %v20397_v39 = vld [vmem:[#allocation11 + $0x20] sm:$0xff]   ;;  %v1138_v25 = vrot.slane %v24009_v40, 6 }
 0x56f   :  { %19637 = vmatpush3.bf16.msra.mxu0 %v20381_v27  ;;  %19660 = vmatprep.subr.bf16.mxu1 %v20382_v28 }
 0x570   :  { %19638 = vmatprep.subr.bf16.mxu0 %v20384_v29 }
 0x572   :  { %19661 = vmatpush3.bf16.msra.mxu1 %v20383_v30 }
 0x573   :  { %19639 = vmatpush3.bf16.msra.mxu0 %v20385_v31  ;;  %19662 = vmatprep.subr.bf16.mxu1 %v20386_v32  ;;  %v1136_v31 = vrot.slane %v23993_v33, 6 }
 0x574   :  { %19640 = vmatprep.subr.bf16.mxu0 %v20388_v37 }
 0x576   :  { %19663 = vmatpush3.bf16.msra.mxu1 %v20387_v41  ;;  %v1139_v41 = vsel %vm1135_vm9, %v1136_v31, %v1138_v25 }
 0x577   :  { %19641 = vmatpush3.bf16.msra.mxu0 %v20389_v43  ;;  %19664 = vmatprep.subr.bf16.mxu1 %v20390_v45 }
 0x578   :  { %19642 = vmatprep.subr.bf16.mxu0 %v20392_v46 }
 0x57a   :  { %19665 = vmatpush3.bf16.msra.mxu1 %v20391_v47 }
 0x57b   :  { %19643 = vmatpush3.bf16.msra.mxu0 %v20393_v48  ;;  %19666 = vmatprep.subr.bf16.mxu1 %v20394_v50  ;;  %v20410_v48 = vld [vmem:[#allocation11 + $0x100] sm:$0xff]  }
 0x57c   :  { %19644 = vmatprep.subr.bf16.mxu0 %v20396_v51 }
 0x57e   :  { %19667 = vmatpush3.bf16.msra.mxu1 %v20395_v52  ;;  %v1146_v52 = vsel %vm1135_vm9, 0.0, %v1136_v31 }
 0x57f   :  { %19645 = vmatpush3.bf16.msra.mxu0 %v20397_v39  ;;  %19668 = vmatprep.subr.bf16.mxu1 %v20398_v57  ;;  %v24116_v57 = vpack.c.bf16 %v1139_v41, %v1146_v52  ;;  %v20414_v52 = vld [vmem:[#allocation14 + $0xc0] sm:$0xff]  }
 0x580   :  { %v21005_v39 = vld [vmem:[#allocation23 + $0x350] ss:$8 sps:$4 sm:$0xff]  }
 0x640   :  { %v19621_v60 = vpop.f32.mrb[12].mxu0  ;;  %v1102_v61 = vpop.f32.mrb[12].mxu1 }
 0x641   :  { %v19622_v1 = vpop.f32.mrb[13].mxu0  ;;  %v19974_v2 = vpop.f32.mrb[13].mxu1 }
 0x642   :  { %v19623_v3 = vadd.f32 %v19622_v1, %v19621_v60  ;;  %v19624_v4 = vpop.f32.mrb[14].mxu0  ;;  %v1105_v5 = vpop.f32.mrb[14].mxu1  ;;  %v20400_v60 = vld [vmem:[#allocation11 + $0x68] sm:$0xff]   ;;  %v20402_v1 = vld [vmem:[#allocation11 + $0xf0] sm:$0xff]  }
 0x643   :  { %v19625_v6 = vpop.f32.mrb[15].mxu0  ;;  %v19975_v7 = vpop.f32.mrb[15].mxu1  ;;  %19646 = vmatprep.subr.bf16.mxu0 %v20400_v60  ;;  %v20403_v2 = vld [vmem:[#allocation11 + $0xb0] sm:$0xff]   ;;  %v20411_v60 = vld [vmem:[#allocation11 + $0x108] sm:$0xff]  }
 0x644   :  { %v1062_v8 = vadd.f32 %v19623_v3, %v17548_v62  ;;  %v19626_v9 = vadd.f32 %v19625_v6, %v19624_v4  ;;  %v20404_v3 = vld [vmem:[#allocation11 + $0x70] sm:$0xff]   ;;  %v20407_v6 = vld [vmem:[#allocation11 + $0xb8] sm:$0xff]  }
 0x645   :  { %v20405_v4 = vld [vmem:[#allocation11 + $0x30] sm:$0xff]   ;;  %v20408_v7 = vld [vmem:[#allocation11 + $0x78] sm:$0xff]  }
 0x646   :  { %v24069_v10 = vadd.f32 %v1102_v61, %v1062_v8  ;;  %v1065_v11 = vadd.f32 %v19626_v9, %v17548_v62  ;;  %v20399_v61 = vld [vmem:[#allocation11 + $0xa8] sm:$0xff]   ;;  %v20409_v8 = vld [vmem:[#allocation11 + $0x38] sm:$0xff]  }
 0x647   :  { %v20401_v62 = vld [vmem:[#allocation11 + $0x28] sm:$0xff]   ;;  %19669 = vmatpush3.bf16.msra.mxu1 %v20399_v61 }
 0x648   :  { %v17579_v13 = vmul.f32 -1.442695, %v24069_v10  ;;  %v24072_v15 = vadd.f32 %v1105_v5, %v1065_v11  ;;  %19647 = vmatpush3.bf16.msra.mxu0 %v20401_v62  ;;  %19670 = vmatprep.subr.bf16.mxu1 %v20402_v1  ;;  %v20406_v5 = vld [vmem:[#allocation11 + $0xf8] sm:$0xff]   ;;  %v20412_v62 = vld [vmem:[#allocation11 + $0x110] sm:$0xff]  }
 0x649   :  { %19648 = vmatprep.subr.bf16.mxu0 %v20404_v3 }
 0x64a   :  { %22862 = vpow2.f32 %v17579_v13  ;;  %v17580_v19 = vmul.f32 -1.442695, %v24072_v15 }
 0x64b   :  { %19671 = vmatpush3.bf16.msra.mxu1 %v20403_v2 }
 0x64c   :  { %22864 = vpow2.f32 %v17580_v19  ;;  %19649 = vmatpush3.bf16.msra.mxu0 %v20405_v4  ;;  %19672 = vmatprep.subr.bf16.mxu1 %v20406_v5  ;;  %v20413_v4 = vld [vmem:[#allocation11 + $0x118] sm:$0xff]  }
 0x64d   :  { %19650 = vmatprep.subr.bf16.mxu0 %v20408_v7 }
 0x64f   :  { %19673 = vmatpush3.bf16.msra.mxu1 %v20407_v6 }
 0x650   :  { %19976 = vmatprep.subr.bf16.mxu1 %v25193_v12  ;;  %19651 = vmatpush3.bf16.msra.mxu0 %v20409_v8 }
 0x651   :  { %19707 = vmatprep.subr.bf16.mxu0 %v20414_v52  ;;  %v20446_v52 = vld [vmem:[#allocation14 + $0x140] sm:$0xff]  }
 0x654   :  { %v22863_v20 = vpop.eup %22862 }
 0x655   :  { %v1117_v21 = vadd.f32 1.0, %v22863_v20 }
 0x656   :  { %v22865_v22 = vpop.eup %22864 }
 0x657   :  { %22866 = vrcp.f32 %v1117_v21  ;;  %v1118_v23 = vadd.f32 1.0, %v22865_v22 }
 0x659   :  { %22868 = vrcp.f32 %v1118_v23 }
 0x65a   :  { %22870 = vtanh.f32 %v24069_v10 }
 0x65b   :  { %22872 = vtanh.f32 %v24072_v15 }
 0x661   :  { %v22867_v36 = vpop.eup %22866 }
 0x662   :  { %1125 = vrot.lane.b32.xlu0 %v22867_v36, %s23490_s26 }
 0x663   :  { %v22869_v38 = vpop.eup %22868 }
 0x664   :  { %1127 = vrot.lane.b32.xlu1 %v22869_v38, %s23490_s26  ;;  %v22871_v9 = vpop.eup %22870 }
 0x665   :  { %v22873_v10 = vpop.eup %22872 }
 0x6d4   :  { %v1126_v11 = vpop.permute.xlu0 %1125 }
 0x6d5   :  { %v24080_v13 = vmul.f32 %v22871_v9, %v1126_v11 }
 0x6d6   :  { %v1128_v19 = vpop.permute.xlu1 %1127 }
 0x6d7   :  { %v24082_v15 = vmul.f32 %v22873_v10, %v1128_v19  ;;  %v20332_v20 = vpack.i.bf16 %v24080_v13, %v23993_v33  ;;  %v1137_v22 = vrot.slane %v24080_v13, 6  ;;  %v1162_v1 = vrot.slane %v24080_v13, 2  ;;  %v17581_v19 = vld [vmem:[#allocation13] ss:$0 sm:$0xff] }
 0x6d9   :  { %20333 = vrot.lane.b32.xlu0 %v20332_v20, %s23490_s26  ;;  %v20337_v21 = vpack.i.bf16 %v24082_v15, %v24009_v40  ;;  %v1140_v23 = vrot.slane %v24082_v15, 6  ;;  %v1147_v29 = vsel %vm1135_vm9, 0.0, %v1137_v22  ;;  %v1163_v61 = vrot.slane %v24082_v15, 2 }
 0x6da   :  { %v1155_v37 = vsel %vm1148_vm10, %v1147_v29, 0.0  ;;  %vm1685_vm10 = vcmp.lt.s32.totalorder %v23998_v34, 4 }
 0x6db   :  { %20338 = vrot.lane.b32.xlu1 %v20337_v21, %s23490_s26  ;;  %v1141_v28 = vsel %vm1135_vm9, %v1137_v22, %v1140_v23  ;;  %v1164_v2 = vsel %vm1158_vm8, %v1162_v1, %v1163_v61  ;;  %v1170_v3 = vsel %vm1158_vm8, %v1163_v61, 0.0  ;;  %v20416_v61 = vld [vmem:[#allocation14 + $0x40] sm:$0xff]   ;;  %v20418_v1 = vld [vmem:[#allocation14 + $0xc8] sm:$0xff]  }
 0x6dc   :  { %v1157_v38 = vsel %vm1149_vm11, %v1141_v28, 0.0  ;;  %v1180_v5 = vsel %vm1172_vm13, %v1170_v3, 0.0  ;;  %v1178_v6 = vsel %vm1171_vm12, %v1164_v2, 0.0  ;;  %v20420_v2 = vld [vmem:[#allocation14 + $0x48] sm:$0xff]   ;;  %vm1671_vm12 = vcmp.ge.s32.totalorder %v23998_v34, 4 }
 0x6dd   :  { %v1201_v7 = vpack.c.bf16 %v1180_v5, %v1178_v6  ;;  %v20419_v3 = vld [vmem:[#allocation14 + $0x88] sm:$0xff]   ;;  %v20422_v5 = vld [vmem:[#allocation14 + $0xd0] sm:$0xff]   ;;  %vm1672_vm13 = vcmp.ge.s32.totalorder %v24000_v35, 4  ;;  %vm1686_vm11 = vcmp.lt.s32.totalorder %v24000_v35, 4 }
 0x6de   :  { %v20424_v6 = vld [vmem:[#allocation14 + $0x50] sm:$0xff]   ;;  %vm24182_vm4 = vmpackc.low %vm1672_vm13, %vm1671_vm12  ;;  %vm25243_vm13 = vcmask 64512  }
 0x6df   :  { %vm24206_vm12 = vmpackc.low %vm1686_vm11, %vm1685_vm10 }
 0x6e0   :  { %vm25244_vm10 = vmmov %vm25243_vm13 }
 0x6e1   :  { %vm25245_vm11 = vmmov %vm25244_vm10 }
 0x74b   :  { %v20334_v24 = vpop.permute.xlu0 %20333 }
 0x74c   :  { %v20336_v26 = vunpack.i.h.bf16 %v20334_v24  ;;  %v20335_v27 = vunpack.i.l.bf16 %v20334_v24 }
 0x74d   :  { %v20339_v30 = vpop.permute.xlu1 %20338 }
 0x74e   :  { %v20341_v32 = vunpack.i.h.bf16 %v20339_v30  ;;  %v20340_v36 = vunpack.i.l.bf16 %v20339_v30  ;;  %v1189_v43 = vsel %vm533_vm1, %v20335_v27, %v20336_v26  ;;  %v1195_v46 = vsel %vm533_vm1, %v1155_v37, %v20335_v27 }
 0x750   :  { %v1190_v45 = vsel %vm533_vm1, %v20340_v36, %v20341_v32  ;;  %v1196_v47 = vsel %vm533_vm1, %v1157_v38, %v20340_v36 }
 0x751   :  { %v1199_v50 = vpack.c.bf16 %v1190_v45, %v1189_v43  ;;  %v1198_v51 = vpack.c.bf16 %v1196_v47, %v1195_v46 }
 0x753   :  { %1532 = vmatprep.mubr.bf16.mxu0 %v1198_v51  ;;  %1574 = vmatmul.mubr.bf16.vlgmr.msra.gmra.mrb[16].mxu1 %v1199_v50 }
 0x754   :  { %19977 = vmatpush3.bf16.msra.mxu1 %v20410_v48  ;;  %17620 = vmatmul.mubr.msk.bf16.vlgmr.msra.gmra.mrb[16].mxu0 %vm24112_vm0, %v24116_v57 }
 0x755   :  { %19978 = vmatprep.subr.bf16.mxu1 %v25193_v12  ;;  %19984 = vmatprep.mubr.msk.bf16.mxu1 %vm23518_vm3, %v25193_v12 }
 0x758   :  { %19979 = vmatpush3.bf16.msra.mxu1 %v20411_v60  ;;  %v20415_v60 = vld [vmem:[#allocation14 + $0x80] sm:$0xff]  }
 0x759   :  { %19980 = vmatprep.subr.bf16.mxu1 %v25193_v12  ;;  %19708 = vmatpush3.bf16.msra.mxu0 %v20415_v60 }
 0x75a   :  { %19709 = vmatprep.subr.bf16.mxu0 %v20418_v1 }
 0x75c   :  { %19981 = vmatpush3.bf16.msra.mxu1 %v20412_v62  ;;  %v20417_v62 = vld [vmem:[#allocation14] sm:$0xff]  }
 0x75d   :  { %19982 = vmatprep.subr.bf16.mxu1 %v25193_v12  ;;  %19710 = vmatpush3.bf16.msra.mxu0 %v20419_v3  ;;  %v1659_v3 = vrot.slane %v23993_v33, 4 }
 0x75e   :  { %19711 = vmatprep.subr.bf16.mxu0 %v20422_v5  ;;  %v24154_v5 = vld [vmem:[#allocation17 + $0x40] sm:$0xff] }
 0x760   :  { %19983 = vmatpush3.bf16.msra.mxu1 %v20413_v4  ;;  %v20421_v4 = vld [vmem:[#allocation14 + $0x8] sm:$0xff]  }
 0x761   :  { %19685 = vmatprep.subr.bf16.mxu1 %v20416_v61 }
 0x763   :  { %19985 = vmatmul.mubr.msk.bf16.vlgmr.msra.gmra.mrb[20].mxu1 %vm533_vm1, %v1201_v7  ;;  %v20423_v7 = vld [vmem:[#allocation14 + $0x90] sm:$0xff]  }
 0x764   :  { %19686 = vmatpush3.bf16.msra.mxu1 %v20417_v62  ;;  %19712 = vmatpush3.bf16.msra.mxu0 %v20423_v7  ;;  %v1669_v7 = vsel %vm608_vm2, 0.0, %v1659_v3 }
 0x765   :  { %19687 = vmatprep.subr.bf16.mxu1 %v20420_v2  ;;  %v1661_v2 = vrot.slane %v24009_v40, 4  ;;  %v2260_v40 = vld [vmem:[#allocation17 + $0xa8] sm:$0xff] }
 0x768   :  { %19688 = vmatpush3.bf16.msra.mxu1 %v20421_v4  ;;  %v24152_v4 = vsel %vm608_vm2, %v1659_v3, %v1661_v2 }
 0x769   :  { %19689 = vmatprep.subr.bf16.mxu1 %v20424_v6  ;;  %v2251_v6 = vld [vmem:[#allocation17 + $0x60] sm:$0xff] }
 0x76a   :  { %v17699_v33 = vcombine.high %v24154_v5, %v2251_v6 }
 0x826   :  { %v19674_v8 = vpop.f32.mrb[16].mxu1 }
 0x827   :  { %v19652_v9 = vpop.f32.mrb[16].mxu0  ;;  %v19675_v11 = vpop.f32.mrb[17].mxu1 }
 0x828   :  { %v19676_v10 = vadd.f32 %v19675_v11, %v19674_v8  ;;  %v19653_v20 = vpop.f32.mrb[17].mxu0  ;;  %v19677_v21 = vpop.f32.mrb[18].mxu1  ;;  %v20426_v11 = vld [vmem:[#allocation14 + $0xd8] sm:$0xff]  }
 0x829   :  { %v19654_v22 = vadd.f32 %v19653_v20, %v19652_v9  ;;  %v19655_v23 = vpop.f32.mrb[18].mxu0  ;;  %v19678_v24 = vpop.f32.mrb[19].mxu1  ;;  %v20425_v9 = vld [vmem:[#allocation14 + $0x10] sm:$0xff]   ;;  %v20427_v20 = vld [vmem:[#allocation14 + $0x98] sm:$0xff]   ;;  %19713 = vmatprep.subr.bf16.mxu0 %v20426_v11 }
 0x82a   :  { %v19679_v25 = vadd.f32 %v19678_v24, %v19677_v21  ;;  %v19656_v26 = vpop.f32.mrb[19].mxu0  ;;  %19690 = vmatpush3.bf16.msra.mxu1 %v20425_v9  ;;  %v20429_v21 = vld [vmem:[#allocation14 + $0x18] sm:$0xff]   ;;  %19714 = vmatpush3.bf16.msra.mxu0 %v20427_v20  ;;  %v20431_v24 = vld [vmem:[#allocation14 + $0xa0] sm:$0xff]   ;;  %v24158_v9 = vpack.c.bf16 %v24152_v4, %v1669_v7  ;;  %v17698_v20 = vcombine.low %v24154_v5, %v2251_v6 }
 0x82b   :  { %v1535_v27 = vadd.f32 %v19654_v22, %v17581_v19  ;;  %v19657_v28 = vadd.f32 %v19656_v26, %v19655_v23  ;;  %v20430_v22 = vld [vmem:[#allocation14 + $0xe0] sm:$0xff]   ;;  %v20434_v26 = vld [vmem:[#allocation14 + $0xe8] sm:$0xff]  }
 0x82c   :  { %v20432_v23 = vld [vmem:[#allocation14 + $0x60] sm:$0xff]   ;;  %19715 = vmatprep.subr.bf16.mxu0 %v20430_v22 }
 0x82d   :  { %v1538_v29 = vadd.f32 %v19657_v28, %v17581_v19  ;;  %v1576_v30 = vadd.f32 %v19676_v10, %v1535_v27  ;;  %v20428_v10 = vld [vmem:[#allocation14 + $0x58] sm:$0xff]   ;;  %v20436_v27 = vld [vmem:[#allocation14 + $0x68] sm:$0xff]  }
 0x82e   :  { %19691 = vmatprep.subr.bf16.mxu1 %v20428_v10  ;;  %19716 = vmatpush3.bf16.msra.mxu0 %v20431_v24  ;;  %v20435_v28 = vld [vmem:[#allocation14 + $0xa8] sm:$0xff]  }
 0x82f   :  { %v1579_v31 = vadd.f32 %v19679_v25, %v1538_v29  ;;  %19692 = vmatpush3.bf16.msra.mxu1 %v20429_v21  ;;  %v20433_v25 = vld [vmem:[#allocation14 + $0x20] sm:$0xff]   ;;  %19717 = vmatprep.subr.bf16.mxu0 %v20434_v26  ;;  %v20437_v29 = vld [vmem:[#allocation14 + $0x28] sm:$0xff]  }
 0x830   :  { %19693 = vmatprep.subr.bf16.mxu1 %v20432_v23  ;;  %v2263_v6 = vld [vmem:[#allocation17 + $0xc0] sm:$0xff] }
 0x831   :  { %v2267_v7 = vld [vmem:[#allocation17 + $0xe0] sm:$0xff] }
 0x832   :  { %19718 = vmatpush3.bf16.msra.mxu0 %v20435_v28 }
 0x833   :  { %19694 = vmatpush3.bf16.msra.mxu1 %v20433_v25 }
 0x834   :  { %19695 = vmatprep.subr.bf16.mxu1 %v20436_v27 }
 0x836   :  { %v1616_v32 = vpop.f32.mrb[20].mxu1 }
 0x837   :  { %v24135_v36 = vadd.f32 %v1616_v32, %v1576_v30  ;;  %v19986_v37 = vpop.f32.mrb[21].mxu1  ;;  %v20438_v30 = vld [vmem:[#allocation14 + $0xf0] sm:$0xff]   ;;  %19696 = vmatpush3.bf16.msra.mxu1 %v20437_v29 }
 0x838   :  { %v1619_v38 = vpop.f32.mrb[22].mxu1  ;;  %19719 = vmatprep.subr.bf16.mxu0 %v20438_v30  ;;  %v20440_v32 = vld [vmem:[#allocation14 + $0x70] sm:$0xff]  }
 0x839   :  { %v17625_v41 = vmul.f32 -1.442695, %v24135_v36  ;;  %v24138_v43 = vadd.f32 %v1619_v38, %v1579_v31  ;;  %v19987_v45 = vpop.f32.mrb[23].mxu1  ;;  %v20439_v31 = vld [vmem:[#allocation14 + $0xb0] sm:$0xff]   ;;  %v20442_v38 = vld [vmem:[#allocation14 + $0xf8] sm:$0xff]   ;;  %19697 = vmatprep.subr.bf16.mxu1 %v20440_v32 }
 0x83a   :  { %19720 = vmatpush3.bf16.msra.mxu0 %v20439_v31  ;;  %v20441_v37 = vld [vmem:[#allocation14 + $0x30] sm:$0xff]   ;;  %v20444_v45 = vld [vmem:[#allocation14 + $0x78] sm:$0xff]  }
 0x83b   :  { %22874 = vpow2.f32 %v17625_v41  ;;  %v17626_v46 = vmul.f32 -1.442695, %v24138_v43  ;;  %v20443_v41 = vld [vmem:[#allocation14 + $0xb8] sm:$0xff]   ;;  %19698 = vmatpush3.bf16.msra.mxu1 %v20441_v37  ;;  %19721 = vmatprep.subr.bf16.mxu0 %v20442_v38  ;;  %v2255_v38 = vld [vmem:[#allocation17 + $0x80] sm:$0xff] }
 0x83c   :  { %19699 = vmatprep.subr.bf16.mxu1 %v20444_v45  ;;  %v21413_v32 = vld [vmem:[#allocation26 + $0x350] ss:$8 sps:$4 sm:$0xff]  }
 0x83d   :  { %22876 = vpow2.f32 %v17626_v46  ;;  %v20445_v46 = vld [vmem:[#allocation14 + $0x38] sm:$0xff]  }
 0x83e   :  { %19722 = vmatpush3.bf16.msra.mxu0 %v20443_v41  ;;  %v2259_v41 = vld [vmem:[#allocation17 + $0xa0] sm:$0xff] }
 0x83f   :  { %19700 = vmatpush3.bf16.msra.mxu1 %v20445_v46  ;;  %v17707_v35 = vcombine.high %v2255_v38, %v2259_v41 }
 0x840   :  { %19729 = vmatprep.subr.bf16.mxu1 %v20446_v52 }
 0x845   :  { %v22875_v47 = vpop.eup %22874 }
 0x846   :  { %v1631_v48 = vadd.f32 1.0, %v22875_v47  ;;  %v2239_v47 = vld [vmem:[#allocation17] sm:$0xff] }
 0x847   :  { %v22877_v50 = vpop.eup %22876 }
 0x848   :  { %22878 = vrcp.f32 %v1631_v48  ;;  %v1632_v51 = vadd.f32 1.0, %v22877_v50  ;;  %v2243_v48 = vld [vmem:[#allocation17 + $0x20] sm:$0xff] }
 0x849   :  { %v17690_v50 = vcombine.low %v2239_v47, %v2243_v48 }
 0x84a   :  { %22880 = vrcp.f32 %v1632_v51  ;;  %v17691_v51 = vcombine.high %v2239_v47, %v2243_v48  ;;  %v20447_v48 = vld [vmem:[#allocation14 + $0x100] sm:$0xff]  }
 0x84b   :  { %22882 = vtanh.f32 %v24135_v36 }
 0x84c   :  { %22884 = vtanh.f32 %v24138_v43  ;;  %3244 = vmatprep.subr.bf16.mxu0 %v17691_v51 }
 0x852   :  { %v22879_v8 = vpop.eup %22878 }
 0x853   :  { %1639 = vrot.lane.b32.xlu0 %v22879_v8, %s23490_s26 }
 0x854   :  { %v22881_v19 = vpop.eup %22880 }
 0x855   :  { %1641 = vrot.lane.b32.xlu1 %v22881_v19, %s23490_s26  ;;  %v22883_v36 = vpop.eup %22882 }
 0x856   :  { %v22885_v62 = vpop.eup %22884 }
 0x8c5   :  { %v1640_v60 = vpop.permute.xlu0 %1639 }
 0x8c6   :  { %v1645_v61 = vmul.f32 %v22883_v36, %v1640_v60  ;;  %v21701_v60 = vld [vmem:[#allocation29 + $0x270] ss:$60 sps:$4 sm:$0xff]  }
 0x8c7   :  { %v1642_v1 = vpop.permute.xlu1 %1641 }
 0x8c8   :  { %v1646_v43 = vmul.f32 %v22885_v62, %v1642_v1  ;;  %1649 = vrot.lane.b32.xlu0 %v1645_v61, %s23490_s26  ;;  %v20448_v61 = vld [vmem:[#allocation14 + $0x148] sm:$0xff]  }
 0x8ca   :  { %1651 = vrot.lane.b32.xlu1 %v1646_v43, %s23490_s26 }
 0x93a   :  { %v1650_v8 = vpop.permute.xlu0 %1649 }
 0x93b   :  { %v1655_v11 = vsel %vm533_vm1, %v24080_v13, %v1650_v8 }
 0x93c   :  { %3927 = vst [vmem:[#allocation35 + $0x8] sm:$0xff] %v1655_v11  ;;  %v1652_v10 = vpop.permute.xlu1 %1651  ;;  %v1660_v19 = vrot.slane %v1655_v11, 4  ;;  %v5432_v21 = vrot.slane %v1655_v11, 6  ;;  %v3936_v13 = vrot.slane %v1655_v11, 7  ;;  %v3960_v23 = vrot.slane %v1655_v11, 1 }
 0x93d   :  { %v1656_v22 = vsel %vm533_vm1, %v24082_v15, %v1652_v10  ;;  %v5464_v27 = vrot.slane %v1655_v11, 2  ;;  %v20450_v10 = vld [vmem:[#allocation14 + $0x150] sm:$0xff]  }
 0x93e   :  { %v24170_v24 = vpack.c.bf16 %v1656_v22, %v1655_v11  ;;  %3931 = vst [vmem:[#allocation35 + $0x28] sm:$0xff] %v1656_v22  ;;  %v1663_v25 = vrot.slane %v1656_v22, 4  ;;  %v5436_v26 = vrot.slane %v1656_v22, 6  ;;  %v1670_v28 = vsel %vm608_vm2, 0.0, %v1660_v19  ;;  %v20449_v11 = vld [vmem:[#allocation14 + $0x108] sm:$0xff]  }
 0x93f   :  { %v24174_v29 = vsel %vm1135_vm9, 0.0, %v5432_v21  ;;  %v3939_v30 = vrot.slane %v1656_v22, 7  ;;  %v3961_v31 = vrot.slane %v1656_v22, 1  ;;  %v5465_v46 = vrot.slane %v1656_v22, 2  ;;  %v2275_v22 = vld [vmem:[#allocation17 + $0x120] sm:$0xff] }
 0x940   :  { %2164 = vmatprep.mubr.bf16.mxu0 %v24170_v24  ;;  %v1664_v15 = vsel %vm608_vm2, %v1660_v19, %v1663_v25  ;;  %v1684_v37 = vsel %vm608_vm2, %v1663_v25, 0.0  ;;  %v24188_v45 = vsel %vm1135_vm9, %v5432_v21, %v5436_v26  ;;  %v24199_v36 = vsel %vm795_vm5, 0.0, %v3936_v13  ;;  %v2271_v21 = vld [vmem:[#allocation17 + $0x100] sm:$0xff]  ;;  %v20452_v25 = vld [vmem:[#allocation14 + $0x158] sm:$0xff]  }
 0x941   :  { %2165 = vmatmul.mubr.bf16.vlgmr.msra.gmra.mrb[20].mxu0 %v24016_v44  ;;  %v24191_v47 = vpack.c.bf16 %v1664_v15, %v1670_v28  ;;  %v24196_v52 = vsel %vm795_vm5, %v3936_v13, %v3939_v30  ;;  %v24213_v1 = vsel %vm810_vm7, %v3960_v23, %v3961_v31  ;;  %v24216_v43 = vsel %vm810_vm7, %v3961_v31, 0.0  ;;  %v20451_v13 = vld [vmem:[#allocation14 + $0x110] sm:$0xff]   ;;  %v2283_v28 = vld [vmem:[#allocation17 + $0x160] sm:$0xff]  ;;  %v20453_v30 = vld [vmem:[#allocation14 + $0x118] sm:$0xff]  }
 0x942   :  { %3245 = vmatpush1.bf16.msra.mxu0 %v17690_v50  ;;  %3276 = vmatprep.mubr.bf16.mxu0 %v24170_v24  ;;  %v24219_v50 = vsel %vm1158_vm8, %v5464_v27, %v5465_v46  ;;  %v24224_v34 = vpack.c.bf16 %v1684_v37, %v1664_v15  ;;  %v24229_v5 = vsel %vm1158_vm8, %v5465_v46, 0.0  ;;  %v17715_v19 = vcombine.high %v2263_v6, %v2267_v7  ;;  %v2279_v27 = vld [vmem:[#allocation17 + $0x140] sm:$0xff] }
 0x943   :  { %17678 = vmatprep.mubr.msk.bf16.mxu1 %vm24182_vm4, %v24191_v47  ;;  %3246 = vmatprep.subr.bf16.mxu0 %v17699_v33  ;;  %v17706_v33 = vcombine.low %v2255_v38, %v2259_v41  ;;  %v17714_v23 = vcombine.low %v2263_v6, %v2267_v7  ;;  %v17723_v26 = vcombine.high %v2271_v21, %v2275_v22  ;;  %v20454_v31 = vld [vmem:[#allocation14 + $0x160] sm:$0xff]   ;;  %v20457_v7 = vld [vmem:[#allocation14 + $0x128] sm:$0xff]  }
 0x944   :  { %17681 = vmatmul.mubr.msk.bf16.vlgmr.msra.gmra.mrb[24].mxu1 %vm24182_vm4, %v24158_v9  ;;  %v17731_v15 = vcombine.high %v2279_v27, %v2283_v28  ;;  %v2287_v37 = vld [vmem:[#allocation17 + $0x180] sm:$0xff]  ;;  %v17730_v46 = vcombine.low %v2279_v27, %v2283_v28  ;;  %v2244_v27 = vld [vmem:[#allocation17 + $0x28] sm:$0xff] }
 0x945   :  { %19730 = vmatpush3.bf16.msra.mxu1 %v20447_v48  ;;  %17684 = vmatprep.mubr.msk.bf16.mxu1 %vm24206_vm12, %v24224_v34  ;;  %v2291_v38 = vld [vmem:[#allocation17 + $0x1a0] sm:$0xff] }
 0x946   :  { %3247 = vmatpush1.bf16.msra.mxu0 %v17698_v20  ;;  %19731 = vmatprep.subr.bf16.mxu1 %v20448_v61  ;;  %v17722_v20 = vcombine.low %v2271_v21, %v2275_v22  ;;  %v20455_v41 = vld [vmem:[#allocation14 + $0x120] sm:$0xff]   ;;  %v20456_v48 = vld [vmem:[#allocation14 + $0x168] sm:$0xff]   ;;  %v17739_v61 = vcombine.high %v2287_v37, %v2291_v38  ;;  %v20459_v22 = vld [vmem:[#allocation14 + $0x130] sm:$0xff]  }
 0x947   :  { %3248 = vmatprep.subr.bf16.mxu0 %v17707_v35  ;;  %v2295_v35 = vld [vmem:[#allocation17 + $0x1c0] sm:$0xff] }
 0x948   :  { %v2299_v6 = vld [vmem:[#allocation17 + $0x1e0] sm:$0xff] }
 0x949   :  { %19732 = vmatpush3.bf16.msra.mxu1 %v20449_v11  ;;  %v17738_v11 = vcombine.low %v2287_v37, %v2291_v38  ;;  %v2307_v21 = vld [vmem:[#allocation17 + $0x220] sm:$0xff]  ;;  %v1683_v37 = vsel %vm608_vm2, %v1661_v2, 0.0 }
 0x94a   :  { %3249 = vmatpush1.bf16.msra.mxu0 %v17706_v33  ;;  %19733 = vmatprep.subr.bf16.mxu1 %v20450_v10  ;;  %v20458_v33 = vld [vmem:[#allocation14 + $0x170] sm:$0xff]   ;;  %v17747_v10 = vcombine.high %v2295_v35, %v2299_v6  ;;  %v2311_v28 = vld [vmem:[#allocation17 + $0x240] sm:$0xff] }
 0x94b   :  { %3250 = vmatprep.subr.bf16.mxu0 %v17715_v19  ;;  %v2303_v19 = vld [vmem:[#allocation17 + $0x200] sm:$0xff] }
 0x94c   :  { %v2327_v2 = vld [vmem:[#allocation17 + $0x2c0] sm:$0xff] }
 0x94d   :  { %19734 = vmatpush3.bf16.msra.mxu1 %v20451_v13  ;;  %v17746_v13 = vcombine.low %v2295_v35, %v2299_v6  ;;  %v24243_v6 = vpack.c.bf16 %v1683_v37, %v24152_v4  ;;  %v2276_v37 = vld [vmem:[#allocation17 + $0x128] sm:$0xff] }
 0x94e   :  { %3251 = vmatpush1.bf16.msra.mxu0 %v17714_v23  ;;  %19735 = vmatprep.subr.bf16.mxu1 %v20452_v25  ;;  %v20460_v23 = vld [vmem:[#allocation14 + $0x178] sm:$0xff]   ;;  %v17755_v25 = vcombine.high %v2303_v19, %v2307_v21 }
 0x94f   :  { %3252 = vmatprep.subr.bf16.mxu0 %v17723_v26  ;;  %v2240_v26 = vld [vmem:[#allocation17 + $0x8] sm:$0xff] }
 0x950   :  { %v17692_v35 = vcombine.low %v2240_v26, %v2244_v27 }
 0x951   :  { %19736 = vmatpush3.bf16.msra.mxu1 %v20453_v30  ;;  %v2315_v30 = vld [vmem:[#allocation17 + $0x260] sm:$0xff] }
 0x952   :  { %3253 = vmatpush1.bf16.msra.mxu0 %v17722_v20  ;;  %19737 = vmatprep.subr.bf16.mxu1 %v20454_v31  ;;  %v20461_v20 = vld [vmem:[#allocation14 + $0x138] sm:$0xff]   ;;  %v17754_v31 = vcombine.low %v2303_v19, %v2307_v21  ;;  %v17763_v38 = vcombine.high %v2311_v28, %v2315_v30  ;;  %v2331_v19 = vld [vmem:[#allocation17 + $0x2e0] sm:$0xff] }
 0x953   :  { %3254 = vmatprep.subr.bf16.mxu0 %v17731_v15  ;;  %v17693_v15 = vcombine.high %v2240_v26, %v2244_v27  ;;  %v2335_v26 = vld [vmem:[#allocation17 + $0x300] sm:$0xff] }
 0x954   :  { %v2339_v27 = vld [vmem:[#allocation17 + $0x320] sm:$0xff] }
 0x955   :  { %19738 = vmatpush3.bf16.msra.mxu1 %v20455_v41  ;;  %v2248_v41 = vld [vmem:[#allocation17 + $0x48] sm:$0xff] }
 0x956   :  { %3255 = vmatpush1.bf16.msra.mxu0 %v17730_v46  ;;  %19739 = vmatprep.subr.bf16.mxu1 %v20456_v48  ;;  %v2252_v46 = vld [vmem:[#allocation17 + $0x68] sm:$0xff]  ;;  %v2319_v48 = vld [vmem:[#allocation17 + $0x280] sm:$0xff] }
 0x957   :  { %3256 = vmatprep.subr.bf16.mxu0 %v17739_v61  ;;  %v2323_v61 = vld [vmem:[#allocation17 + $0x2a0] sm:$0xff]  ;;  %v17700_v21 = vcombine.low %v2248_v41, %v2252_v46 }
 0x958   :  { %v17770_v4 = vcombine.low %v2319_v48, %v2323_v61 }
 0x959   :  { %19740 = vmatpush3.bf16.msra.mxu1 %v20457_v7  ;;  %v17762_v7 = vcombine.low %v2311_v28, %v2315_v30  ;;  %v17778_v30 = vcombine.low %v2327_v2, %v2331_v19 }
 0x95a   :  { %3257 = vmatpush1.bf16.msra.mxu0 %v17738_v11  ;;  %19741 = vmatprep.subr.bf16.mxu1 %v20458_v33  ;;  %v17701_v11 = vcombine.high %v2248_v41, %v2252_v46  ;;  %v17771_v33 = vcombine.high %v2319_v48, %v2323_v61  ;;  %v2347_v41 = vld [vmem:[#allocation17 + $0x360] sm:$0xff]  ;;  %v17786_v48 = vcombine.low %v2335_v26, %v2339_v27 }
 0x95b   :  { %3258 = vmatprep.subr.bf16.mxu0 %v17747_v10  ;;  %v2256_v10 = vld [vmem:[#allocation17 + $0x88] sm:$0xff] }
 0x95c   :  { %v17708_v28 = vcombine.low %v2256_v10, %v2260_v40 }
 0x95d   :  { %19742 = vmatpush3.bf16.msra.mxu1 %v20459_v22  ;;  %v17709_v22 = vcombine.high %v2256_v10, %v2260_v40  ;;  %v2355_v10 = vld [vmem:[#allocation17 + $0x3a0] sm:$0xff] }
 0x95e   :  { %3259 = vmatpush1.bf16.msra.mxu0 %v17746_v13  ;;  %19743 = vmatprep.subr.bf16.mxu1 %v20460_v23  ;;  %v17779_v13 = vcombine.high %v2327_v2, %v2331_v19  ;;  %v2264_v23 = vld [vmem:[#allocation17 + $0xc8] sm:$0xff] }
 0x95f   :  { %3260 = vmatprep.subr.bf16.mxu0 %v17755_v25  ;;  %v2268_v25 = vld [vmem:[#allocation17 + $0xe8] sm:$0xff] }
 0x960   :  { %v17716_v46 = vcombine.low %v2264_v23, %v2268_v25 }
 0x961   :  { %19744 = vmatpush3.bf16.msra.mxu1 %v20461_v20  ;;  %v17717_v20 = vcombine.high %v2264_v23, %v2268_v25  ;;  %v2363_v23 = vld [vmem:[#allocation17 + $0x3e0] sm:$0xff] }
 0x962   :  { %3261 = vmatpush1.bf16.msra.mxu0 %v17754_v31  ;;  %3330 = vmatprep.subr.bf16.mxu1 %v17693_v15  ;;  %v17787_v31 = vcombine.high %v2335_v26, %v2339_v27  ;;  %v2272_v15 = vld [vmem:[#allocation17 + $0x108] sm:$0xff] }
 0x963   :  { %3262 = vmatprep.subr.bf16.mxu0 %v17763_v38  ;;  %v2343_v38 = vld [vmem:[#allocation17 + $0x340] sm:$0xff]  ;;  %v17725_v61 = vcombine.high %v2272_v15, %v2276_v37  ;;  %v17724_v40 = vcombine.low %v2272_v15, %v2276_v37 }
 0x964   :  { %17687 = vmatmul.mubr.msk.bf16.vlgmr.msra.gmra.mrb[28].mxu1 %vm24206_vm12, %v24243_v6  ;;  %v17794_v2 = vcombine.low %v2343_v38, %v2347_v41 }
 0x965   :  { %3331 = vmatpush1.bf16.msra.mxu1 %v17692_v35  ;;  %3362 = vmatprep.mubr.bf16.mxu1 %v24170_v24  ;;  %v17795_v35 = vcombine.high %v2343_v38, %v2347_v41  ;;  %v2304_v38 = vld [vmem:[#allocation17 + $0x208] sm:$0xff] }
 0x966   :  { %3263 = vmatpush1.bf16.msra.mxu0 %v17762_v7  ;;  %3332 = vmatprep.subr.bf16.mxu1 %v17701_v11  ;;  %v2280_v7 = vld [vmem:[#allocation17 + $0x148] sm:$0xff] }
 0x967   :  { %3264 = vmatprep.subr.bf16.mxu0 %v17771_v33  ;;  %v2284_v11 = vld [vmem:[#allocation17 + $0x168] sm:$0xff]  ;;  %v2351_v33 = vld [vmem:[#allocation17 + $0x380] sm:$0xff] }
 0x968   :  { %v17733_v19 = vcombine.high %v2280_v7, %v2284_v11  ;;  %v17732_v25 = vcombine.low %v2280_v7, %v2284_v11  ;;  %v17802_v26 = vcombine.low %v2351_v33, %v2355_v10  ;;  %v2308_v41 = vld [vmem:[#allocation17 + $0x228] sm:$0xff] }
 0x969   :  { %3333 = vmatpush1.bf16.msra.mxu1 %v17700_v21  ;;  %v17803_v21 = vcombine.high %v2351_v33, %v2355_v10  ;;  %v17756_v7 = vcombine.low %v2304_v38, %v2308_v41  ;;  %v2320_v33 = vld [vmem:[#allocation17 + $0x288] sm:$0xff] }
 0x96a   :  { %3265 = vmatpush1.bf16.msra.mxu0 %v17770_v4  ;;  %3334 = vmatprep.subr.bf16.mxu1 %v17709_v22  ;;  %v2288_v4 = vld [vmem:[#allocation17 + $0x188] sm:$0xff] }
 0x96b   :  { %3266 = vmatprep.subr.bf16.mxu0 %v17779_v13  ;;  %v2292_v22 = vld [vmem:[#allocation17 + $0x1a8] sm:$0xff]  ;;  %v2359_v13 = vld [vmem:[#allocation17 + $0x3c0] sm:$0xff] }
 0x96c   :  { %v17741_v27 = vcombine.high %v2288_v4, %v2292_v22  ;;  %v17810_v15 = vcombine.low %v2359_v13, %v2363_v23  ;;  %v2324_v10 = vld [vmem:[#allocation17 + $0x2a8] sm:$0xff] }
 0x96d   :  { %3335 = vmatpush1.bf16.msra.mxu1 %v17708_v28  ;;  %v17811_v28 = vcombine.high %v2359_v13, %v2363_v23  ;;  %v2336_v13 = vld [vmem:[#allocation17 + $0x308] sm:$0xff] }
 0x96e   :  { %3267 = vmatpush1.bf16.msra.mxu0 %v17778_v30  ;;  %3336 = vmatprep.subr.bf16.mxu1 %v17717_v20  ;;  %v2296_v30 = vld [vmem:[#allocation17 + $0x1c8] sm:$0xff] }
 0x96f   :  { %3268 = vmatprep.subr.bf16.mxu0 %v17787_v31  ;;  %v2300_v20 = vld [vmem:[#allocation17 + $0x1e8] sm:$0xff]  ;;  %v17740_v31 = vcombine.low %v2288_v4, %v2292_v22  ;;  %v17772_v4 = vcombine.low %v2320_v33, %v2324_v10 }
 0x970   :  { %v17749_v37 = vcombine.high %v2296_v30, %v2300_v20  ;;  %v2340_v23 = vld [vmem:[#allocation17 + $0x328] sm:$0xff] }
 0x971   :  { %3337 = vmatpush1.bf16.msra.mxu1 %v17716_v46  ;;  %v17748_v46 = vcombine.low %v2296_v30, %v2300_v20  ;;  %v17788_v30 = vcombine.low %v2336_v13, %v2340_v23 }
 0x972   :  { %3269 = vmatpush1.bf16.msra.mxu0 %v17786_v48  ;;  %3338 = vmatprep.subr.bf16.mxu1 %v17725_v61  ;;  %v17757_v48 = vcombine.high %v2304_v38, %v2308_v41  ;;  %v2312_v61 = vld [vmem:[#allocation17 + $0x248] sm:$0xff] }
 0x973   :  { %3270 = vmatprep.subr.bf16.mxu0 %v17795_v35  ;;  %v2316_v35 = vld [vmem:[#allocation17 + $0x268] sm:$0xff] }
 0x974   :  { %v17765_v11 = vcombine.high %v2312_v61, %v2316_v35  ;;  %v2360_v41 = vld [vmem:[#allocation17 + $0x3c8] sm:$0xff] }
 0x975   :  { %3339 = vmatpush1.bf16.msra.mxu1 %v17724_v40  ;;  %v17764_v40 = vcombine.low %v2312_v61, %v2316_v35 }
 0x976   :  { %3271 = vmatpush1.bf16.msra.mxu0 %v17794_v2  ;;  %3340 = vmatprep.subr.bf16.mxu1 %v17733_v19  ;;  %v17773_v2 = vcombine.high %v2320_v33, %v2324_v10  ;;  %v2328_v19 = vld [vmem:[#allocation17 + $0x2c8] sm:$0xff] }
 0x977   :  { %3272 = vmatprep.subr.bf16.mxu0 %v17803_v21  ;;  %v2332_v21 = vld [vmem:[#allocation17 + $0x2e8] sm:$0xff] }
 0x978   :  { %v17781_v22 = vcombine.high %v2328_v19, %v2332_v21  ;;  %v2368_v33 = vld [vmem:[#allocation17 + $0x408] sm:$0xff] }
 0x979   :  { %3341 = vmatpush1.bf16.msra.mxu1 %v17732_v25  ;;  %v17780_v25 = vcombine.low %v2328_v19, %v2332_v21  ;;  %v2375_v19 = vld [vmem:[#allocation17 + $0x440] sm:$0xff] }
 0x97a   :  { %3273 = vmatpush1.bf16.msra.mxu0 %v17802_v26  ;;  %3342 = vmatprep.subr.bf16.mxu1 %v17741_v27  ;;  %v17789_v26 = vcombine.high %v2336_v13, %v2340_v23  ;;  %v2344_v27 = vld [vmem:[#allocation17 + $0x348] sm:$0xff]  ;;  %v2379_v21 = vld [vmem:[#allocation17 + $0x460] sm:$0xff] }
 0x97b   :  { %3274 = vmatprep.subr.bf16.mxu0 %v17811_v28  ;;  %v2348_v28 = vld [vmem:[#allocation17 + $0x368] sm:$0xff]  ;;  %v17827_v13 = vcombine.high %v2375_v19, %v2379_v21 }
 0x97c   :  { %v17797_v20 = vcombine.high %v2344_v27, %v2348_v28  ;;  %v2376_v23 = vld [vmem:[#allocation17 + $0x448] sm:$0xff] }
 0x97d   :  { %3343 = vmatpush1.bf16.msra.mxu1 %v17740_v31  ;;  %v2352_v31 = vld [vmem:[#allocation17 + $0x388] sm:$0xff] }
 0x97e   :  { %3275 = vmatpush1.bf16.msra.mxu0 %v17810_v15  ;;  %3344 = vmatprep.subr.bf16.mxu1 %v17749_v37  ;;  %v2356_v15 = vld [vmem:[#allocation17 + $0x3a8] sm:$0xff]  ;;  %v17796_v37 = vcombine.low %v2344_v27, %v2348_v28  ;;  %v2387_v28 = vld [vmem:[#allocation17 + $0x4a0] sm:$0xff] }
 0x97f   :  { %v17805_v38 = vcombine.high %v2352_v31, %v2356_v15 }
 0x981   :  { %3277 = vmatmul.mubr.bf16.vlgmr.msra.gmra.mrb[24].mxu0 %v24016_v44  ;;  %3345 = vmatpush1.bf16.msra.mxu1 %v17748_v46  ;;  %v2364_v46 = vld [vmem:[#allocation17 + $0x3e8] sm:$0xff] }
 0x982   :  { %3346 = vmatprep.subr.bf16.mxu1 %v17757_v48  ;;  %3319 = vmatprep.mubr.bf16.mxu0 %v25191_v0  ;;  %v17804_v48 = vcombine.low %v2352_v31, %v2356_v15  ;;  %v17813_v61 = vcombine.high %v2360_v41, %v2364_v46  ;;  %v17812_v35 = vcombine.low %v2360_v41, %v2364_v46 }
 0x983   :  { %v17826_v31 = vcombine.low %v2375_v19, %v2379_v21 }
 0x985   :  { %3347 = vmatpush1.bf16.msra.mxu1 %v17756_v7  ;;  %v2367_v7 = vld [vmem:[#allocation17 + $0x400] sm:$0xff] }
 0x986   :  { %3348 = vmatprep.subr.bf16.mxu1 %v17765_v11  ;;  %v2371_v11 = vld [vmem:[#allocation17 + $0x420] sm:$0xff] }
 0x987   :  { %v17818_v10 = vcombine.low %v2367_v7, %v2371_v11 }
 0x989   :  { %3349 = vmatpush1.bf16.msra.mxu1 %v17764_v40  ;;  %v17819_v40 = vcombine.high %v2367_v7, %v2371_v11 }
 0x98a   :  { %3350 = vmatprep.subr.bf16.mxu1 %v17773_v2  ;;  %v2372_v2 = vld [vmem:[#allocation17 + $0x428] sm:$0xff] }
 0x98b   :  { %3287 = vmatprep.subr.bf16.mxu0 %v17819_v40  ;;  %v17627_v40 = vld [vmem:[#allocation16] ss:$0 sm:$0xff] }
 0x98c   :  { %3288 = vmatpush1.bf16.msra.mxu0 %v17818_v10 }
 0x98d   :  { %3351 = vmatpush1.bf16.msra.mxu1 %v17772_v4  ;;  %v17820_v4 = vcombine.low %v2368_v33, %v2372_v2  ;;  %3289 = vmatprep.subr.bf16.mxu0 %v17827_v13 }
 0x98e   :  { %3352 = vmatprep.subr.bf16.mxu1 %v17781_v22  ;;  %v17821_v22 = vcombine.high %v2368_v33, %v2372_v2 }
 0x990   :  { %3290 = vmatpush1.bf16.msra.mxu0 %v17826_v31 }
 0x991   :  { %3353 = vmatpush1.bf16.msra.mxu1 %v17780_v25  ;;  %v2380_v25 = vld [vmem:[#allocation17 + $0x468] sm:$0xff] }
 0x992   :  { %3354 = vmatprep.subr.bf16.mxu1 %v17789_v26  ;;  %v2383_v26 = vld [vmem:[#allocation17 + $0x480] sm:$0xff]  ;;  %v17829_v27 = vcombine.high %v2376_v23, %v2380_v25  ;;  %v17828_v15 = vcombine.low %v2376_v23, %v2380_v25 }
 0x993   :  { %v17834_v41 = vcombine.low %v2383_v26, %v2387_v28 }
 0x995   :  { %3355 = vmatpush1.bf16.msra.mxu1 %v17788_v30  ;;  %v2384_v30 = vld [vmem:[#allocation17 + $0x488] sm:$0xff] }
 0x996   :  { %3356 = vmatprep.subr.bf16.mxu1 %v17797_v20  ;;  %v2388_v20 = vld [vmem:[#allocation17 + $0x4a8] sm:$0xff] }
 0x997   :  { %v17836_v46 = vcombine.low %v2384_v30, %v2388_v20 }
 0x999   :  { %3357 = vmatpush1.bf16.msra.mxu1 %v17796_v37  ;;  %v17835_v37 = vcombine.high %v2383_v26, %v2387_v28 }
 0x99a   :  { %3358 = vmatprep.subr.bf16.mxu1 %v17805_v38  ;;  %v17837_v38 = vcombine.high %v2384_v30, %v2388_v20 }
 0x99b   :  { %3291 = vmatprep.subr.bf16.mxu0 %v17835_v37 }
 0x99c   :  { %3292 = vmatpush1.bf16.msra.mxu0 %v17834_v41 }
 0x99d   :  { %3359 = vmatpush1.bf16.msra.mxu1 %v17804_v48 }
 0x99e   :  { %3360 = vmatprep.subr.bf16.mxu1 %v17813_v61 }
 0x9a1   :  { %3361 = vmatpush1.bf16.msra.mxu1 %v17812_v35 }
 0x9a2   :  { %3373 = vmatprep.subr.bf16.mxu1 %v17821_v22 }
 0x9a4   :  { %3363 = vmatmul.mubr.bf16.vlgmr.msra.gmra.mrb[32].mxu1 %v24016_v44 }
 0x9a5   :  { %3405 = vmatprep.mubr.bf16.mxu1 %v25191_v0  ;;  %3374 = vmatpush1.bf16.msra.mxu1 %v17820_v4 }
 0x9a6   :  { %3375 = vmatprep.subr.bf16.mxu1 %v17829_v27 }
 0x9a9   :  { %3376 = vmatpush1.bf16.msra.mxu1 %v17828_v15 }
 0x9aa   :  { %3377 = vmatprep.subr.bf16.mxu1 %v17837_v38 }
 0x9ad   :  { %3378 = vmatpush1.bf16.msra.mxu1 %v17836_v46 }
 0xa14   :  { %v19723_v48 = vpop.f32.mrb[20].mxu0 }
 0xa15   :  { %v19724_v61 = vpop.f32.mrb[21].mxu0 }
 0xa16   :  { %v19725_v35 = vadd.f32 %v19724_v61, %v19723_v48  ;;  %v19726_v7 = vpop.f32.mrb[22].mxu0  ;;  %v2391_v61 = vld [vmem:[#allocation17 + $0x4c0] sm:$0xff] }
 0xa17   :  { %v19701_v11 = vpop.f32.mrb[24].mxu1  ;;  %v19727_v33 = vpop.f32.mrb[23].mxu0 }
 0xa18   :  { %v19728_v10 = vadd.f32 %v19727_v33, %v19726_v7  ;;  %v19702_v2 = vpop.f32.mrb[25].mxu1  ;;  %v2395_v7 = vld [vmem:[#allocation17 + $0x4e0] sm:$0xff] }
 0xa19   :  { %v19703_v19 = vadd.f32 %v19702_v2, %v19701_v11  ;;  %v19704_v21 = vpop.f32.mrb[26].mxu1  ;;  %v2392_v11 = vld [vmem:[#allocation17 + $0x4c8] sm:$0xff] }
 0xa1a   :  { %v19705_v4 = vpop.f32.mrb[27].mxu1 }
 0xa1b   :  { %v2126_v22 = vadd.f32 %v19703_v19, %v17627_v40  ;;  %v19706_v13 = vadd.f32 %v19705_v4, %v19704_v21 }
 0xa1d   :  { %v2129_v23 = vadd.f32 %v19706_v13, %v17627_v40  ;;  %v2167_v25 = vadd.f32 %v19725_v35, %v2126_v22  ;;  %v17842_v40 = vcombine.low %v2391_v61, %v2395_v7  ;;  %v17843_v35 = vcombine.high %v2391_v61, %v2395_v7  ;;  %v2241_v22 = vld [vmem:[#allocation17 + $0x10] sm:$0xff] }
 0xa1e   :  { %v2245_v13 = vld [vmem:[#allocation17 + $0x30] sm:$0xff] }
 0xa1f   :  { %v2170_v26 = vadd.f32 %v19728_v10, %v2129_v23  ;;  %v2396_v10 = vld [vmem:[#allocation17 + $0x4e8] sm:$0xff]  ;;  %3293 = vmatprep.subr.bf16.mxu0 %v17843_v35  ;;  %v2242_v23 = vld [vmem:[#allocation17 + $0x18] sm:$0xff]  ;;  %v2249_v61 = vld [vmem:[#allocation17 + $0x50] sm:$0xff] }
 0xa20   :  { %v17844_v19 = vcombine.low %v2392_v11, %v2396_v10  ;;  %v17845_v21 = vcombine.high %v2392_v11, %v2396_v10  ;;  %3294 = vmatpush1.bf16.msra.mxu0 %v17842_v40  ;;  %v2250_v40 = vld [vmem:[#allocation17 + $0x58] sm:$0xff] }
 0xa21   :  { %v2254_v35 = vld [vmem:[#allocation17 + $0x78] sm:$0xff] }
 0xa22   :  { %3379 = vmatprep.subr.bf16.mxu1 %v17845_v21  ;;  %v2258_v21 = vld [vmem:[#allocation17 + $0x98] sm:$0xff] }
 0xa23   :  { %3380 = vmatpush1.bf16.msra.mxu1 %v17844_v19 }
 0xa37   :  { %v19745_v27 = vpop.f32.mrb[28].mxu1 }
 0xa38   :  { %v19746_v28 = vpop.f32.mrb[29].mxu1 }
 0xa39   :  { %v19747_v30 = vadd.f32 %v19746_v28, %v19745_v27  ;;  %v19748_v20 = vpop.f32.mrb[30].mxu1  ;;  %v2246_v27 = vld [vmem:[#allocation17 + $0x38] sm:$0xff] }
 0xa3a   :  { %v19749_v31 = vpop.f32.mrb[31].mxu1  ;;  %v17696_v28 = vcombine.low %v2242_v23, %v2246_v27 }
 0xa3b   :  { %v2208_v15 = vadd.f32 %v19747_v30, %v2167_v25  ;;  %v19750_v37 = vadd.f32 %v19749_v31, %v19748_v20  ;;  %v17694_v25 = vcombine.low %v2241_v22, %v2245_v13  ;;  %v17697_v30 = vcombine.high %v2242_v23, %v2246_v27  ;;  %v2265_v27 = vld [vmem:[#allocation17 + $0xd0] sm:$0xff] }
 0xa3d   :  { %v17688_v38 = vmul.f32 -1.442695, %v2208_v15  ;;  %v2211_v41 = vadd.f32 %v19750_v37, %v2170_v26  ;;  %v17695_v26 = vcombine.high %v2241_v22, %v2245_v13  ;;  %3502 = vmatprep.subr.bf16.mxu1 %v17697_v30  ;;  %v17704_v13 = vcombine.low %v2250_v40, %v2254_v35  ;;  %v2269_v30 = vld [vmem:[#allocation17 + $0xf0] sm:$0xff] }
 0xa3f   :  { %22886 = vpow2.f32 %v17688_v38  ;;  %v17689_v46 = vmul.f32 -1.442695, %v2211_v41  ;;  %3416 = vmatprep.subr.bf16.mxu0 %v17695_v26 }
 0xa41   :  { %22888 = vpow2.f32 %v17689_v46 }
 0xa49   :  { %v22887_v48 = vpop.eup %22886 }
 0xa4a   :  { %v2222_v33 = vadd.f32 1.0, %v22887_v48 }
 0xa4b   :  { %v22889_v2 = vpop.eup %22888 }
 0xa4c   :  { %22890 = vrcp.f32 %v2222_v33  ;;  %v2223_v4 = vadd.f32 1.0, %v22889_v2  ;;  %v2253_v33 = vld [vmem:[#allocation17 + $0x70] sm:$0xff] }
 0xa4d   :  { %v2257_v2 = vld [vmem:[#allocation17 + $0x90] sm:$0xff]  ;;  %v17703_v19 = vcombine.high %v2249_v61, %v2253_v33  ;;  %v17702_v22 = vcombine.low %v2249_v61, %v2253_v33  ;;  %v2274_v61 = vld [vmem:[#allocation17 + $0x118] sm:$0xff] }
 0xa4e   :  { %22892 = vrcp.f32 %v2223_v4  ;;  %v2262_v4 = vld [vmem:[#allocation17 + $0xb8] sm:$0xff] }
 0xa4f   :  { %22894 = vtanh.f32 %v2208_v15  ;;  %v17705_v15 = vcombine.high %v2250_v40, %v2254_v35  ;;  %v17713_v26 = vcombine.high %v2258_v21, %v2262_v4  ;;  %v2278_v33 = vld [vmem:[#allocation17 + $0x138] sm:$0xff]  ;;  %v17718_v40 = vcombine.low %v2265_v27, %v2269_v30 }
 0xa50   :  { %22896 = vtanh.f32 %v2211_v41  ;;  %v2261_v41 = vld [vmem:[#allocation17 + $0xb0] sm:$0xff] }
 0xa51   :  { %v17711_v23 = vcombine.high %v2257_v2, %v2261_v41 }
 0xa56   :  { %v22891_v20 = vpop.eup %22890 }
 0xa57   :  { %2230 = vrot.lane.b32.xlu0 %v22891_v20, %s23490_s26  ;;  %v2266_v20 = vld [vmem:[#allocation17 + $0xd8] sm:$0xff] }
 0xa58   :  { %v22893_v31 = vpop.eup %22892 }
 0xa59   :  { %2232 = vrot.lane.b32.xlu1 %v22893_v31, %s23490_s26  ;;  %v22895_v38 = vpop.eup %22894  ;;  %v2270_v31 = vld [vmem:[#allocation17 + $0xf8] sm:$0xff] }
 0xa5a   :  { %v22897_v46 = vpop.eup %22896  ;;  %v17720_v35 = vcombine.low %v2266_v20, %v2270_v31 }
 0xac9   :  { %v2231_v37 = vpop.permute.xlu0 %2230 }
 0xaca   :  { %v24255_v7 = vmul.f32 %v22895_v38, %v2231_v37  ;;  %v17710_v37 = vcombine.low %v2257_v2, %v2261_v41  ;;  %v17712_v38 = vcombine.low %v2258_v21, %v2262_v4  ;;  %v2282_v2 = vld [vmem:[#allocation17 + $0x158] sm:$0xff]  ;;  %v17728_v4 = vcombine.low %v2274_v61, %v2278_v33 }
 0xacb   :  { %v2233_v48 = vpop.permute.xlu1 %2232  ;;  %v2286_v41 = vld [vmem:[#allocation17 + $0x178] sm:$0xff] }
 0xacc   :  { %v24257_v11 = vmul.f32 %v22897_v46, %v2233_v48  ;;  %v2273_v46 = vld [vmem:[#allocation17 + $0x110] sm:$0xff] }
 0xacd   :  { %v2277_v48 = vld [vmem:[#allocation17 + $0x130] sm:$0xff] }
 0xace   :  { %v24261_v10 = vpack.c.bf16 %v24257_v11, %v24255_v7  ;;  %v17726_v21 = vcombine.low %v2273_v46, %v2277_v48 }
 0xad0   :  { %17850 = vmatmul.mubr.msk.bf16.vlgmr.msra.gmra.mrb[24].mxu0 %vm533_vm1, %v24261_v10  ;;  %17851 = vmatmul.mubr.msk.bf16.vlgmr.msra.gmra.mrb[32].mxu1 %vm533_vm1, %v24261_v10 }
 0xad1   :  { %3417 = vmatpush1.bf16.msra.mxu0 %v17694_v25  ;;  %3503 = vmatpush1.bf16.msra.mxu1 %v17696_v28  ;;  %v17719_v25 = vcombine.high %v2265_v27, %v2269_v30  ;;  %v17721_v28 = vcombine.high %v2266_v20, %v2270_v31  ;;  %v2290_v27 = vld [vmem:[#allocation17 + $0x198] sm:$0xff]  ;;  %v17736_v31 = vcombine.low %v2282_v2, %v2286_v41 }
 0xad2   :  { %3448 = vmatprep.mubr.bf16.mxu0 %v24170_v24  ;;  %3534 = vmatprep.mubr.bf16.mxu1 %v24170_v24  ;;  %v2294_v30 = vld [vmem:[#allocation17 + $0x1b8] sm:$0xff] }
 0xad3   :  { %3418 = vmatprep.subr.bf16.mxu0 %v17703_v19  ;;  %3504 = vmatprep.subr.bf16.mxu1 %v17705_v15  ;;  %v17727_v19 = vcombine.high %v2273_v46, %v2277_v48  ;;  %v17729_v15 = vcombine.high %v2274_v61, %v2278_v33  ;;  %v2298_v46 = vld [vmem:[#allocation17 + $0x1d8] sm:$0xff]  ;;  %v17744_v33 = vcombine.low %v2290_v27, %v2294_v30 }
 0xad4   :  { %v2302_v48 = vld [vmem:[#allocation17 + $0x1f8] sm:$0xff] }
 0xad5   :  { %3419 = vmatpush1.bf16.msra.mxu0 %v17702_v22  ;;  %3505 = vmatpush1.bf16.msra.mxu1 %v17704_v13  ;;  %v2281_v22 = vld [vmem:[#allocation17 + $0x150] sm:$0xff] }
 0xad6   :  { %3420 = vmatprep.subr.bf16.mxu0 %v17711_v23  ;;  %3506 = vmatprep.subr.bf16.mxu1 %v17713_v26  ;;  %v2285_v13 = vld [vmem:[#allocation17 + $0x170] sm:$0xff]  ;;  %v17737_v26 = vcombine.high %v2282_v2, %v2286_v41  ;;  %v17752_v41 = vcombine.low %v2298_v46, %v2302_v48 }
 0xad7   :  { %v17735_v23 = vcombine.high %v2281_v22, %v2285_v13  ;;  %v17734_v20 = vcombine.low %v2281_v22, %v2285_v13  ;;  %v2306_v22 = vld [vmem:[#allocation17 + $0x218] sm:$0xff] }
 0xad8   :  { %v2310_v13 = vld [vmem:[#allocation17 + $0x238] sm:$0xff] }
 0xad9   :  { %3421 = vmatpush1.bf16.msra.mxu0 %v17710_v37  ;;  %3507 = vmatpush1.bf16.msra.mxu1 %v17712_v38  ;;  %v2289_v37 = vld [vmem:[#allocation17 + $0x190] sm:$0xff] }
 0xada   :  { %3422 = vmatprep.subr.bf16.mxu0 %v17719_v25  ;;  %3508 = vmatprep.subr.bf16.mxu1 %v17721_v28  ;;  %v2293_v38 = vld [vmem:[#allocation17 + $0x1b0] sm:$0xff]  ;;  %v17745_v28 = vcombine.high %v2290_v27, %v2294_v30  ;;  %v17760_v30 = vcombine.low %v2306_v22, %v2310_v13 }
 0xadb   :  { %v17743_v25 = vcombine.high %v2289_v37, %v2293_v38  ;;  %v17742_v61 = vcombine.low %v2289_v37, %v2293_v38  ;;  %v2314_v37 = vld [vmem:[#allocation17 + $0x258] sm:$0xff] }
 0xadc   :  { %v2318_v38 = vld [vmem:[#allocation17 + $0x278] sm:$0xff] }
 0xadd   :  { %3423 = vmatpush1.bf16.msra.mxu0 %v17718_v40  ;;  %3509 = vmatpush1.bf16.msra.mxu1 %v17720_v35  ;;  %v2297_v40 = vld [vmem:[#allocation17 + $0x1d0] sm:$0xff] }
 0xade   :  { %3424 = vmatprep.subr.bf16.mxu0 %v17727_v19  ;;  %3510 = vmatprep.subr.bf16.mxu1 %v17729_v15  ;;  %v2301_v35 = vld [vmem:[#allocation17 + $0x1f0] sm:$0xff]  ;;  %v17753_v15 = vcombine.high %v2298_v46, %v2302_v48  ;;  %v17768_v48 = vcombine.low %v2314_v37, %v2318_v38 }
 0xadf   :  { %v17751_v19 = vcombine.high %v2297_v40, %v2301_v35  ;;  %v17750_v2 = vcombine.low %v2297_v40, %v2301_v35  ;;  %v2322_v40 = vld [vmem:[#allocation17 + $0x298] sm:$0xff] }
 0xae0   :  { %v2326_v35 = vld [vmem:[#allocation17 + $0x2b8] sm:$0xff] }
 0xae1   :  { %3425 = vmatpush1.bf16.msra.mxu0 %v17726_v21  ;;  %3511 = vmatpush1.bf16.msra.mxu1 %v17728_v4  ;;  %v2305_v21 = vld [vmem:[#allocation17 + $0x210] sm:$0xff] }
 0xae2   :  { %3426 = vmatprep.subr.bf16.mxu0 %v17735_v23  ;;  %3512 = vmatprep.subr.bf16.mxu1 %v17737_v26  ;;  %v2309_v4 = vld [vmem:[#allocation17 + $0x230] sm:$0xff]  ;;  %v17761_v26 = vcombine.high %v2306_v22, %v2310_v13  ;;  %v17776_v13 = vcombine.low %v2322_v40, %v2326_v35 }
 0xae3   :  { %v17759_v23 = vcombine.high %v2305_v21, %v2309_v4  ;;  %v17758_v27 = vcombine.low %v2305_v21, %v2309_v4  ;;  %v2330_v21 = vld [vmem:[#allocation17 + $0x2d8] sm:$0xff] }
 0xae4   :  { %v2334_v4 = vld [vmem:[#allocation17 + $0x2f8] sm:$0xff] }
 0xae5   :  { %3427 = vmatpush1.bf16.msra.mxu0 %v17734_v20  ;;  %3513 = vmatpush1.bf16.msra.mxu1 %v17736_v31  ;;  %v2313_v20 = vld [vmem:[#allocation17 + $0x250] sm:$0xff] }
 0xae6   :  { %3428 = vmatprep.subr.bf16.mxu0 %v17743_v25  ;;  %3514 = vmatprep.subr.bf16.mxu1 %v17745_v28  ;;  %v2317_v31 = vld [vmem:[#allocation17 + $0x270] sm:$0xff]  ;;  %v17769_v28 = vcombine.high %v2314_v37, %v2318_v38  ;;  %v17784_v38 = vcombine.low %v2330_v21, %v2334_v4 }
 0xae7   :  { %v17767_v25 = vcombine.high %v2313_v20, %v2317_v31  ;;  %v17766_v46 = vcombine.low %v2313_v20, %v2317_v31  ;;  %v2338_v20 = vld [vmem:[#allocation17 + $0x318] sm:$0xff] }
 0xae8   :  { %v2342_v31 = vld [vmem:[#allocation17 + $0x338] sm:$0xff] }
 0xae9   :  { %3429 = vmatpush1.bf16.msra.mxu0 %v17742_v61  ;;  %3515 = vmatpush1.bf16.msra.mxu1 %v17744_v33  ;;  %v2321_v61 = vld [vmem:[#allocation17 + $0x290] sm:$0xff] }
 0xaea   :  { %3430 = vmatprep.subr.bf16.mxu0 %v17751_v19  ;;  %3516 = vmatprep.subr.bf16.mxu1 %v17753_v15  ;;  %v2325_v33 = vld [vmem:[#allocation17 + $0x2b0] sm:$0xff]  ;;  %v17777_v15 = vcombine.high %v2322_v40, %v2326_v35  ;;  %v17792_v35 = vcombine.low %v2338_v20, %v2342_v31 }
 0xaeb   :  { %v17775_v19 = vcombine.high %v2321_v61, %v2325_v33  ;;  %v17774_v22 = vcombine.low %v2321_v61, %v2325_v33  ;;  %v2346_v61 = vld [vmem:[#allocation17 + $0x358] sm:$0xff] }
 0xaec   :  { %v2350_v33 = vld [vmem:[#allocation17 + $0x378] sm:$0xff] }
 0xaed   :  { %3431 = vmatpush1.bf16.msra.mxu0 %v17750_v2  ;;  %3517 = vmatpush1.bf16.msra.mxu1 %v17752_v41  ;;  %v2329_v2 = vld [vmem:[#allocation17 + $0x2d0] sm:$0xff] }
 0xaee   :  { %3432 = vmatprep.subr.bf16.mxu0 %v17759_v23  ;;  %3518 = vmatprep.subr.bf16.mxu1 %v17761_v26  ;;  %v2333_v41 = vld [vmem:[#allocation17 + $0x2f0] sm:$0xff]  ;;  %v17785_v26 = vcombine.high %v2330_v21, %v2334_v4  ;;  %v17800_v4 = vcombine.low %v2346_v61, %v2350_v33 }
 0xaef   :  { %v17783_v23 = vcombine.high %v2329_v2, %v2333_v41  ;;  %v17782_v37 = vcombine.low %v2329_v2, %v2333_v41  ;;  %v2354_v2 = vld [vmem:[#allocation17 + $0x398] sm:$0xff] }
 0xaf0   :  { %v2358_v41 = vld [vmem:[#allocation17 + $0x3b8] sm:$0xff] }
 0xaf1   :  { %3433 = vmatpush1.bf16.msra.mxu0 %v17758_v27  ;;  %3519 = vmatpush1.bf16.msra.mxu1 %v17760_v30  ;;  %v2337_v27 = vld [vmem:[#allocation17 + $0x310] sm:$0xff] }
 0xaf2   :  { %3434 = vmatprep.subr.bf16.mxu0 %v17767_v25  ;;  %3520 = vmatprep.subr.bf16.mxu1 %v17769_v28  ;;  %v2341_v30 = vld [vmem:[#allocation17 + $0x330] sm:$0xff]  ;;  %v17793_v28 = vcombine.high %v2338_v20, %v2342_v31  ;;  %v17808_v31 = vcombine.low %v2354_v2, %v2358_v41 }
 0xaf3   :  { %v17791_v25 = vcombine.high %v2337_v27, %v2341_v30  ;;  %v17790_v40 = vcombine.low %v2337_v27, %v2341_v30  ;;  %v2362_v27 = vld [vmem:[#allocation17 + $0x3d8] sm:$0xff] }
 0xaf4   :  { %v2366_v30 = vld [vmem:[#allocation17 + $0x3f8] sm:$0xff] }
 0xaf5   :  { %3435 = vmatpush1.bf16.msra.mxu0 %v17766_v46  ;;  %3521 = vmatpush1.bf16.msra.mxu1 %v17768_v48  ;;  %v2345_v46 = vld [vmem:[#allocation17 + $0x350] sm:$0xff] }
 0xaf6   :  { %3436 = vmatprep.subr.bf16.mxu0 %v17775_v19  ;;  %3522 = vmatprep.subr.bf16.mxu1 %v17777_v15  ;;  %v2349_v48 = vld [vmem:[#allocation17 + $0x370] sm:$0xff]  ;;  %v17801_v15 = vcombine.high %v2346_v61, %v2350_v33  ;;  %v17816_v33 = vcombine.low %v2362_v27, %v2366_v30 }
 0xaf7   :  { %v17799_v19 = vcombine.high %v2345_v46, %v2349_v48  ;;  %v17798_v21 = vcombine.low %v2345_v46, %v2349_v48  ;;  %v2370_v46 = vld [vmem:[#allocation17 + $0x418] sm:$0xff] }
 0xaf8   :  { %v2374_v48 = vld [vmem:[#allocation17 + $0x438] sm:$0xff] }
 0xaf9   :  { %3437 = vmatpush1.bf16.msra.mxu0 %v17774_v22  ;;  %3523 = vmatpush1.bf16.msra.mxu1 %v17776_v13  ;;  %v2353_v22 = vld [vmem:[#allocation17 + $0x390] sm:$0xff] }
 0xafa   :  { %3438 = vmatprep.subr.bf16.mxu0 %v17783_v23  ;;  %3524 = vmatprep.subr.bf16.mxu1 %v17785_v26  ;;  %v2357_v13 = vld [vmem:[#allocation17 + $0x3b0] sm:$0xff]  ;;  %v17809_v26 = vcombine.high %v2354_v2, %v2358_v41  ;;  %v17824_v41 = vcombine.low %v2370_v46, %v2374_v48 }
 0xafb   :  { %v17807_v23 = vcombine.high %v2353_v22, %v2357_v13  ;;  %v17806_v20 = vcombine.low %v2353_v22, %v2357_v13  ;;  %v2378_v22 = vld [vmem:[#allocation17 + $0x458] sm:$0xff] }
 0xafc   :  { %v2382_v13 = vld [vmem:[#allocation17 + $0x478] sm:$0xff] }
 0xafd   :  { %3439 = vmatpush1.bf16.msra.mxu0 %v17782_v37  ;;  %3525 = vmatpush1.bf16.msra.mxu1 %v17784_v38  ;;  %v2361_v37 = vld [vmem:[#allocation17 + $0x3d0] sm:$0xff] }
 0xafe   :  { %3440 = vmatprep.subr.bf16.mxu0 %v17791_v25  ;;  %3526 = vmatprep.subr.bf16.mxu1 %v17793_v28  ;;  %v2365_v38 = vld [vmem:[#allocation17 + $0x3f0] sm:$0xff]  ;;  %v17817_v28 = vcombine.high %v2362_v27, %v2366_v30  ;;  %v17832_v30 = vcombine.low %v2378_v22, %v2382_v13 }
 0xaff   :  { %v17815_v25 = vcombine.high %v2361_v37, %v2365_v38  ;;  %v17814_v61 = vcombine.low %v2361_v37, %v2365_v38  ;;  %v2386_v37 = vld [vmem:[#allocation17 + $0x498] sm:$0xff] }
 0xb00   :  { %v2390_v38 = vld [vmem:[#allocation17 + $0x4b8] sm:$0xff] }
 0xb01   :  { %3441 = vmatpush1.bf16.msra.mxu0 %v17790_v40  ;;  %3527 = vmatpush1.bf16.msra.mxu1 %v17792_v35  ;;  %v2369_v40 = vld [vmem:[#allocation17 + $0x410] sm:$0xff] }
 0xb02   :  { %3442 = vmatprep.subr.bf16.mxu0 %v17799_v19  ;;  %3528 = vmatprep.subr.bf16.mxu1 %v17801_v15  ;;  %v2373_v35 = vld [vmem:[#allocation17 + $0x430] sm:$0xff]  ;;  %v17825_v15 = vcombine.high %v2370_v46, %v2374_v48  ;;  %v2394_v46 = vld [vmem:[#allocation17 + $0x4d8] sm:$0xff] }
 0xb03   :  { %v17823_v19 = vcombine.high %v2369_v40, %v2373_v35  ;;  %v17822_v2 = vcombine.low %v2369_v40, %v2373_v35  ;;  %v2393_v40 = vld [vmem:[#allocation17 + $0x4d0] sm:$0xff]  ;;  %v2398_v48 = vld [vmem:[#allocation17 + $0x4f8] sm:$0xff] }
 0xb04   :  { %v2397_v35 = vld [vmem:[#allocation17 + $0x4f0] sm:$0xff] }
 0xb05   :  { %3443 = vmatpush1.bf16.msra.mxu0 %v17798_v21  ;;  %3529 = vmatpush1.bf16.msra.mxu1 %v17800_v4  ;;  %v2377_v21 = vld [vmem:[#allocation17 + $0x450] sm:$0xff] }
 0xb06   :  { %3444 = vmatprep.subr.bf16.mxu0 %v17807_v23  ;;  %3530 = vmatprep.subr.bf16.mxu1 %v17809_v26  ;;  %v2381_v4 = vld [vmem:[#allocation17 + $0x470] sm:$0xff]  ;;  %v17833_v26 = vcombine.high %v2378_v22, %v2382_v13  ;;  %v24277_v22 = vld [vmem:[#allocation19] sm:$0xff] }
 0xb07   :  { %v17831_v23 = vcombine.high %v2377_v21, %v2381_v4  ;;  %v17830_v27 = vcombine.low %v2377_v21, %v2381_v4  ;;  %v17846_v21 = vcombine.low %v2393_v40, %v2397_v35  ;;  %v17848_v4 = vcombine.low %v2394_v46, %v2398_v48 }
 0xb08   :  { %v2408_v13 = vrot.slane %v24277_v22, %v23926_v16 }
 0xb09   :  { %3445 = vmatpush1.bf16.msra.mxu0 %v17806_v20  ;;  %3531 = vmatpush1.bf16.msra.mxu1 %v17808_v31  ;;  %v2385_v20 = vld [vmem:[#allocation17 + $0x490] sm:$0xff] }
 0xb0a   :  { %3446 = vmatprep.subr.bf16.mxu0 %v17815_v25  ;;  %3532 = vmatprep.subr.bf16.mxu1 %v17817_v28  ;;  %v2389_v31 = vld [vmem:[#allocation17 + $0x4b0] sm:$0xff]  ;;  %v17841_v28 = vcombine.high %v2386_v37, %v2390_v38 }
 0xb0b   :  { %v17839_v25 = vcombine.high %v2385_v20, %v2389_v31 }
 0xb0d   :  { %3447 = vmatpush1.bf16.msra.mxu0 %v17814_v61  ;;  %3533 = vmatpush1.bf16.msra.mxu1 %v17816_v33  ;;  %v17838_v61 = vcombine.low %v2385_v20, %v2389_v31  ;;  %v17840_v33 = vcombine.low %v2386_v37, %v2390_v38 }
 0xb0e   :  { %3459 = vmatprep.subr.bf16.mxu0 %v17823_v19  ;;  %3545 = vmatprep.subr.bf16.mxu1 %v17825_v15  ;;  %v17847_v19 = vcombine.high %v2393_v40, %v2397_v35  ;;  %v17849_v15 = vcombine.high %v2394_v46, %v2398_v48  ;;  %v2416_v40 = vrot.slane %v24277_v22, %v23932_v18  ;;  %v24293_v46 = vsub.s32 6, %v23923_v14 }
 0xb10   :  { %3449 = vmatmul.mubr.bf16.vlgmr.msra.gmra.mrb[28].mxu0 %v24016_v44  ;;  %3535 = vmatmul.mubr.bf16.vlgmr.msra.gmra.mrb[36].mxu1 %v24016_v44 }
 0xb11   :  { %3460 = vmatpush1.bf16.msra.mxu0 %v17822_v2  ;;  %3546 = vmatpush1.bf16.msra.mxu1 %v17824_v41 }
 0xb12   :  { %3461 = vmatprep.subr.bf16.mxu0 %v17831_v23  ;;  %3547 = vmatprep.subr.bf16.mxu1 %v17833_v26 }
 0xb13   :  { %3491 = vmatprep.mubr.bf16.mxu0 %v25191_v0  ;;  %3577 = vmatprep.mubr.bf16.mxu1 %v25191_v0 }
 0xb15   :  { %3462 = vmatpush1.bf16.msra.mxu0 %v17830_v27  ;;  %3548 = vmatpush1.bf16.msra.mxu1 %v17832_v30 }
 0xb16   :  { %3463 = vmatprep.subr.bf16.mxu0 %v17839_v25  ;;  %3549 = vmatprep.subr.bf16.mxu1 %v17841_v28 }
 0xb19   :  { %3464 = vmatpush1.bf16.msra.mxu0 %v17838_v61  ;;  %3550 = vmatpush1.bf16.msra.mxu1 %v17840_v33 }
 0xb1a   :  { %3465 = vmatprep.subr.bf16.mxu0 %v17847_v19  ;;  %3551 = vmatprep.subr.bf16.mxu1 %v17849_v15  ;;  %v24296_v19 = vsub.s32 5, %v23923_v14 }
 0xb1c   :  { %25239 = vst [vmem:[#allocation54_spill] sm:$0xff] %v24296_v19  ;;  %v2424_v51 = vrot.slane %v24277_v22, %v24296_v19 }
 0xb1d   :  { %3466 = vmatpush1.bf16.msra.mxu0 %v17846_v21  ;;  %3552 = vmatpush1.bf16.msra.mxu1 %v17848_v4  ;;  %v2428_v21 = vrot.slane %v24277_v22, %v24293_v46 }
 0xb20   :  { %17852 = vmatmul.mubr.msk.bf16.vlgmr.msra.gmra.mrb[28].mxu0 %vm533_vm1, %v24261_v10  ;;  %17853 = vmatmul.mubr.msk.bf16.vlgmr.msra.gmra.mrb[36].mxu1 %vm533_vm1, %v24261_v10  ;;  %v24286_v10 = vsub.s32 4, %v23923_v14 }
 0xb22   :  { %25238 = vst [vmem:[#allocation53_spill] sm:$0xff] %v24286_v10  ;;  %v2420_v35 = vrot.slane %v24277_v22, %v24286_v10 }
 0xba3   :  { %v3321_v2 = vpop.f32.mrb[24].mxu0  ;;  %v24281_v41 = vpop.f32.mrb[32].mxu1 }
 0xba4   :  { %v3323_v23 = vpop.f32.mrb[25].mxu0  ;;  %v3409_v26 = vpop.f32.mrb[33].mxu1 }
 0xba5   :  { %v20033_v20 = vadd.f32 %v3323_v23, %v2408_v13  ;;  %v3325_v31 = vpop.f32.mrb[26].mxu0  ;;  %v24283_v37 = vpop.f32.mrb[34].mxu1  ;;  %v20037_v48 = vadd.f32 %v3409_v26, %v2416_v40 }
 0xba6   :  { %v3327_v38 = vpop.f32.mrb[27].mxu0  ;;  %v3413_v27 = vpop.f32.mrb[35].mxu1 }
 0xba7   :  { %v3589_v30 = vpack.c.bf16 %v20033_v20, %v20033_v20  ;;  %v20035_v25 = vadd.f32 %v3327_v38, %v2408_v13  ;;  %v25202_v13 = vsub.s32 7, %v23923_v14  ;;  %v20039_v20 = vadd.f32 %v3413_v27, %v2416_v40 }
 0xba9   :  { %v3748_v28 = vpack.c.bf16 %v20035_v25, %v20035_v25  ;;  %3628 = vmatprep.mubr.bf16.mxu0 %v3589_v30  ;;  %v2404_v25 = vrot.slane %v24277_v22, %v23947_v42  ;;  %v2432_v0 = vrot.slane %v24277_v22, %v25202_v13  ;;  %v3750_v40 = vpack.c.bf16 %v20039_v20, %v20039_v20 }
 0xbab   :  { %3787 = vmatprep.mubr.bf16.mxu1 %v3748_v28  ;;  %v20032_v12 = vadd.f32 %v3321_v2, %v2404_v25  ;;  %v2412_v2 = vrot.slane %v24277_v22, %v23929_v17 }
 0xbad   :  { %v3588_v19 = vpack.c.bf16 %v20032_v12, %v20032_v12 }
 0xbf3   :  { %v3493_v61 = vpop.f32.mrb[28].mxu0  ;;  %v3579_v33 = vpop.f32.mrb[36].mxu1 }
 0xbf4   :  { %v20040_v15 = vadd.f32 %v3493_v61, %v2420_v35  ;;  %v3495_v4 = vpop.f32.mrb[29].mxu0  ;;  %v3581_v23 = vpop.f32.mrb[37].mxu1  ;;  %v3591_v61 = vpack.c.bf16 %v20037_v48, %v20037_v48  ;;  %v20044_v12 = vadd.f32 %v3579_v33, %v2428_v21  ;;  %v20473_v33 = vld [vmem:[#allocation23 + $0x34] ss:$8 sps:$4 sm:$0xff]  }
 0xbf5   :  { %v3497_v38 = vpop.f32.mrb[30].mxu0  ;;  %v3583_v30 = vpop.f32.mrb[38].mxu1 }
 0xbf6   :  { %v3592_v26 = vpack.c.bf16 %v20040_v15, %v20040_v15  ;;  %v20042_v28 = vadd.f32 %v3497_v38, %v2420_v35  ;;  %v24303_v8 = vadd.f32 %v3583_v30, %v2428_v21  ;;  %v3499_v3 = vpop.f32.mrb[31].mxu0  ;;  %v3585_v62 = vpop.f32.mrb[39].mxu1  ;;  %v25240_v15 = vmov 0.0   ;;  %v20471_v21 = vld [vmem:[#allocation23 + $0x30] ss:$8 sps:$4 sm:$0xff]  }
 0xbf7   :  { %v20041_v35 = vadd.f32 %v3495_v4, %v2424_v51  ;;  %v20034_v38 = vadd.f32 %v3325_v31, %v2404_v25  ;;  %v20045_v30 = vadd.f32 %v3581_v23, %v2432_v0  ;;  %v20043_v48 = vadd.f32 %v3499_v3, %v2424_v51  ;;  %v20462_v4 = vld [vmem:[#allocation23] ss:$8 sps:$4 sm:$0xff]   ;;  %v20476_v25 = vld [vmem:[#allocation23 + $0x44] ss:$8 sps:$4 sm:$0xff]  }
 0xbf8   :  { %v3751_v27 = vpack.c.bf16 %v20042_v28, %v20042_v28  ;;  %3596 = vmatprep.subr.bf16.mxu0 %v3592_v26  ;;  %v20464_v28 = vld [vmem:[#allocation23 + $0x4] ss:$8 sps:$4 sm:$0xff]   ;;  %v20036_v51 = vadd.f32 %v24281_v41, %v2412_v2  ;;  %v20038_v3 = vadd.f32 %v24283_v37, %v2412_v2  ;;  %v3594_v31 = vpack.c.bf16 %v20044_v12, %v20044_v12  ;;  %v20468_v37 = vld [vmem:[#allocation23 + $0x20] ss:$8 sps:$4 sm:$0xff]  }
 0xbf9   :  { %3597 = vmatpush1.bf16.xpose.msra.mxu0 %v3591_v61  ;;  %v3593_v10 = vpack.c.bf16 %v20041_v35, %v20041_v35  ;;  %v3747_v18 = vpack.c.bf16 %v20034_v38, %v20034_v38  ;;  %v3595_v14 = vpack.c.bf16 %v20045_v30, %v20045_v30  ;;  %v3752_v26 = vpack.c.bf16 %v20043_v48, %v20043_v48  ;;  %v20474_v61 = vld [vmem:[#allocation23 + $0x40] ss:$8 sps:$4 sm:$0xff]   ;;  %v20485_v35 = vld [vmem:[#allocation23 + $0x74] ss:$8 sps:$4 sm:$0xff]   ;;  %v20483_v38 = vld [vmem:[#allocation23 + $0x70] ss:$8 sps:$4 sm:$0xff]  }
 0xbfa   :  { %3755 = vmatprep.subr.bf16.mxu1 %v3751_v27  ;;  %19988 = vmatprep.subr.bf16.mxu0 %v25240_v15  ;;  %v3749_v23 = vpack.c.bf16 %v20038_v3, %v20038_v3  ;;  %v3701_v22 = vsel %vm608_vm2, %v3594_v31, 0  ;;  %v25242_v41 = vpack.c.bf16 %v24188_v45, %v24174_v29  ;;  %v20479_v27 = vld [vmem:[#allocation23 + $0x54] ss:$8 sps:$4 sm:$0xff]   ;;  %v20477_v29 = vld [vmem:[#allocation23 + $0x50] ss:$8 sps:$4 sm:$0xff]  }
 0xbfb   :  { %3756 = vmatpush1.bf16.xpose.msra.mxu1 %v3750_v40  ;;  %v20482_v45 = vld [vmem:[#allocation23 + $0x64] ss:$8 sps:$4 sm:$0xff]   ;;  %v20480_v40 = vld [vmem:[#allocation23 + $0x60] ss:$8 sps:$4 sm:$0xff]   ;;  %v20495_v3 = vld [vmem:[#allocation23 + $0xb0] ss:$8 sps:$4 sm:$0xff]  }
 0xbfc   :  { %19994 = vmatprep.subr.bf16.mxu1 %v25240_v15  ;;  %v20488_v30 = vld [vmem:[#allocation23 + $0x84] ss:$8 sps:$4 sm:$0xff]   ;;  %v20486_v48 = vld [vmem:[#allocation23 + $0x80] ss:$8 sps:$4 sm:$0xff]  }
 0xbfd   :  { %v20494_v2 = vld [vmem:[#allocation23 + $0xa4] ss:$8 sps:$4 sm:$0xff]   ;;  %v20492_v12 = vld [vmem:[#allocation23 + $0xa0] ss:$8 sps:$4 sm:$0xff]  }
 0xbfe   :  { %v20500_v31 = vld [vmem:[#allocation23 + $0xc4] ss:$8 sps:$4 sm:$0xff]  }
 0xc00   :  { %3629 = vmatmul.mubr.bf16.vlgmr.msra.gmra.mrb[32].mxu0 %v3588_v19  ;;  %v3590_v19 = vpack.c.bf16 %v20036_v51, %v20036_v51  ;;  %v20497_v51 = vld [vmem:[#allocation23 + $0xb4] ss:$8 sps:$4 sm:$0xff]  }
 0xc01   :  { %19989 = vmatpush3.bf16.xpose.msra.mxu0 %v3593_v10  ;;  %19990 = vmatprep.mubr.msk.bf16.mxu0 %vm23518_vm3, %v25240_v15  ;;  %v20047_v10 = vadd.f32 %v3585_v62, %v2432_v0  ;;  %v20465_v0 = vld [vmem:[#allocation23 + $0x10] ss:$8 sps:$4 sm:$0xff]   ;;  %v20470_v62 = vld [vmem:[#allocation23 + $0x24] ss:$8 sps:$4 sm:$0xff]  }
 0xc02   :  { %17854 = vmatprep.subr.msk.bf16.mxu0 %vm608_vm2, %v3595_v14  ;;  %3788 = vmatmul.mubr.bf16.vlgmr.msra.gmra.mrb[40].mxu1 %v3747_v18  ;;  %v20467_v14 = vld [vmem:[#allocation23 + $0x14] ss:$8 sps:$4 sm:$0xff]   ;;  %v25241_v18 = vmov 0  }
 0xc03   :  { %19995 = vmatpush3.bf16.xpose.msra.mxu1 %v3752_v26  ;;  %19996 = vmatprep.mubr.msk.bf16.mxu1 %vm23518_vm3, %v25240_v15  ;;  %v3754_v20 = vpack.c.bf16 %v20047_v10, %v20047_v10  ;;  %v20489_v26 = vld [vmem:[#allocation23 + $0x90] ss:$8 sps:$4 sm:$0xff]   ;;  %v20498_v10 = vld [vmem:[#allocation23 + $0xc0] ss:$8 sps:$4 sm:$0xff]  }
 0xc04   :  { %6957 = vmatprep.subr.bf16.mxu1 %v20464_v28  ;;  %v20491_v28 = vld [vmem:[#allocation23 + $0x94] ss:$8 sps:$4 sm:$0xff]  }
 0xc0c   :  { %19991 = vmatmul.mubr.bf16.vlgmr.msra.gmra.mrb[32].mxu0 %v3590_v19  ;;  %v20503_v19 = vld [vmem:[#allocation23 + $0xd4] ss:$8 sps:$4 sm:$0xff]  }
 0xc0d   :  { %3707 = vmatpush1.bf16.msra.mxu0 %v3701_v22  ;;  %3738 = vmatprep.mubr.bf16.mxu0 %v25241_v18  ;;  %v20504_v22 = vld [vmem:[#allocation23 + $0xe0] ss:$8 sps:$4 sm:$0xff]  }
 0xc0e   :  { %17856 = vmatprep.subr.msk.bf16.mxu0 %vm608_vm2, %v3754_v20  ;;  %19997 = vmatmul.mubr.bf16.vlgmr.msra.gmra.mrb[40].mxu1 %v3749_v23  ;;  %v20506_v23 = vld [vmem:[#allocation23 + $0xe4] ss:$8 sps:$4 sm:$0xff]   ;;  %v20509_v20 = vld [vmem:[#allocation23 + $0xf4] ss:$8 sps:$4 sm:$0xff]  }
 0xc0f   :  { %6958 = vmatpush1.bf16.msra.mxu1 %v20462_v4  ;;  %18318 = vmatprep.mubr.msk.bf16.mxu1 %vm24112_vm0, %v25242_v41  ;;  %v20501_v4 = vld [vmem:[#allocation23 + $0xd0] ss:$8 sps:$4 sm:$0xff]  }
 0xc10   :  { %6959 = vmatprep.subr.bf16.mxu1 %v20467_v14  ;;  %v20507_v14 = vld [vmem:[#allocation23 + $0xf0] ss:$8 sps:$4 sm:$0xff]  }
 0xc13   :  { %6960 = vmatpush1.bf16.msra.mxu1 %v20465_v0 }
 0xc14   :  { %6961 = vmatprep.subr.bf16.mxu1 %v20470_v62 }
 0xc17   :  { %6962 = vmatpush1.bf16.msra.mxu1 %v20468_v37 }
 0xc18   :  { %6963 = vmatprep.subr.bf16.mxu1 %v20473_v33 }
 0xc1b   :  { %6964 = vmatpush1.bf16.msra.mxu1 %v20471_v21 }
 0xc1c   :  { %6965 = vmatprep.subr.bf16.mxu1 %v20476_v25 }
 0xc1f   :  { %6966 = vmatpush1.bf16.msra.mxu1 %v20474_v61 }
 0xc20   :  { %6967 = vmatprep.subr.bf16.mxu1 %v20479_v27 }
 0xc23   :  { %6968 = vmatpush1.bf16.msra.mxu1 %v20477_v29 }
 0xc24   :  { %6969 = vmatprep.subr.bf16.mxu1 %v20482_v45 }
 0xc27   :  { %6970 = vmatpush1.bf16.msra.mxu1 %v20480_v40 }
 0xc28   :  { %6971 = vmatprep.subr.bf16.mxu1 %v20485_v35 }
 0xc2b   :  { %6972 = vmatpush1.bf16.msra.mxu1 %v20483_v38 }
 0xc2c   :  { %6973 = vmatprep.subr.bf16.mxu1 %v20488_v30 }
 0xc2f   :  { %6974 = vmatpush1.bf16.msra.mxu1 %v20486_v48 }
 0xc30   :  { %6975 = vmatprep.subr.bf16.mxu1 %v20491_v28 }
 0xc33   :  { %6976 = vmatpush1.bf16.msra.mxu1 %v20489_v26 }
 0xc34   :  { %6977 = vmatprep.subr.bf16.mxu1 %v20494_v2 }
 0xc37   :  { %6978 = vmatpush1.bf16.msra.mxu1 %v20492_v12 }
 0xc38   :  { %6979 = vmatprep.subr.bf16.mxu1 %v20497_v51 }
 0xc3b   :  { %6980 = vmatpush1.bf16.msra.mxu1 %v20495_v3 }
 0xc3c   :  { %6981 = vmatprep.subr.bf16.mxu1 %v20500_v31 }
 0xc3f   :  { %6982 = vmatpush1.bf16.msra.mxu1 %v20498_v10 }
 0xc40   :  { %6983 = vmatprep.subr.bf16.mxu1 %v20503_v19 }
 0xc43   :  { %6984 = vmatpush1.bf16.msra.mxu1 %v20501_v4 }
 0xc44   :  { %6985 = vmatprep.subr.bf16.mxu1 %v20506_v23 }
 0xc47   :  { %6986 = vmatpush1.bf16.msra.mxu1 %v20504_v22 }
 0xc48   :  { %6987 = vmatprep.subr.bf16.mxu1 %v20509_v20 }
 0xc4b   :  { %6988 = vmatpush1.bf16.msra.mxu1 %v20507_v14 }
 0xc4e   :  { %18321 = vmatmul.mubr.msk.bf16.vlgmr.msra.gmra.mrb[44].mxu1 %vm24112_vm0, %v24116_v57 }
 0xcdf   :  { %v3670_v41 = vpop.f32.mrb[32].mxu0 }
 0xce0   :  { %v20048_v0 = vadd.f32 %v3670_v41, %v23961_v55  ;;  %v19992_v62 = vpop.f32.mrb[33].mxu0 }
 0xce1   :  { %v3673_v37 = vpop.f32.mrb[34].mxu0  ;;  %v3829_v33 = vpop.f32.mrb[40].mxu1 }
 0xce2   :  { %v3676_v21 = vmul.f32 0.05103104, %v20048_v0  ;;  %v20049_v25 = vadd.f32 %v3829_v33, %v23966_v63  ;;  %v19993_v61 = vpop.f32.mrb[35].mxu0  ;;  %v19998_v27 = vpop.f32.mrb[41].mxu1 }
 0xce3   :  { %v3832_v29 = vpop.f32.mrb[42].mxu1 }
 0xce4   :  { %v3677_v45 = vsel %vm25243_vm13, %v3676_v21, -inf  ;;  %v3835_v40 = vmul.f32 0.05103104, %v20049_v25  ;;  %v19999_v35 = vpop.f32.mrb[43].mxu1  ;;  %vm25246_vm13 = vmmov %vm25244_vm10 }
 0xce5   :  { %v3678_v38 = vrot.slane %v3677_v45, 4 }
 0xce6   :  { %v3836_v30 = vsel %vm25244_vm10, %v3835_v40, -inf }
 0xce7   :  { %v3679_v57 = vmax.f32 %v3677_v45, %v3678_v38  ;;  %v3837_v48 = vrot.slane %v3836_v30, 4 }
 0xce9   :  { %v3680_v28 = vrot.slane %v3679_v57, 2  ;;  %v3838_v26 = vmax.f32 %v3836_v30, %v3837_v48  ;;  %v3753_v48 = vpack.c.bf16 %v24303_v8, %v24303_v8  ;;  %v25248_v8 = vpack.c.bf16 %v24196_v52, %v24199_v36  ;;  %v20525_v52 = vld [vmem:[#allocation20 + $0x50] ss:$8 sps:$4 sm:$0xff]   ;;  %v20530_v36 = vld [vmem:[#allocation20 + $0x64] ss:$8 sps:$4 sm:$0xff]  }
 0xceb   :  { %v3681_v2 = vmax.f32 %v3679_v57, %v3680_v28  ;;  %v3839_v12 = vrot.slane %v3838_v26, 2 }
 0xced   :  { %v3682_v51 = vrot.slane %v3681_v2, 1  ;;  %v3840_v3 = vmax.f32 %v3838_v26, %v3839_v12 }
 0xcef   :  { %v3683_v31 = vmax.f32 %v3681_v2, %v3682_v51  ;;  %v3841_v10 = vrot.slane %v3840_v3, 1  ;;  %v20512_v2 = vld [vmem:[#allocation20 + $0x4] ss:$8 sps:$4 sm:$0xff]   ;;  %v3860_v51 = vsel %vm608_vm2, %v3753_v48, 0  ;;  %v20551_v48 = vld [vmem:[#allocation20 + $0xd4] ss:$8 sps:$4 sm:$0xff]  }
 0xcf1   :  { %v3684_v19 = vsub.f32 %v3676_v21, %v3683_v31  ;;  %v3842_v4 = vmax.f32 %v3840_v3, %v3841_v10  ;;  %v20510_v31 = vld [vmem:[#allocation20] ss:$8 sps:$4 sm:$0xff]  }
 0xcf3   :  { %v3685_v23 = vmul.f32 1.442695, %v3684_v19  ;;  %v3843_v22 = vsub.f32 %v3835_v40, %v3842_v4  ;;  %v20515_v19 = vld [vmem:[#allocation20 + $0x14] ss:$8 sps:$4 sm:$0xff]   ;;  %v20513_v4 = vld [vmem:[#allocation20 + $0x10] ss:$8 sps:$4 sm:$0xff]  }
 0xcf5   :  { %22898 = vpow2.f32 %v3685_v23  ;;  %v3844_v20 = vmul.f32 1.442695, %v3843_v22  ;;  %v20518_v23 = vld [vmem:[#allocation20 + $0x24] ss:$8 sps:$4 sm:$0xff]   ;;  %v20516_v22 = vld [vmem:[#allocation20 + $0x20] ss:$8 sps:$4 sm:$0xff]  }
 0xcf7   :  { %22900 = vpow2.f32 %v3844_v20  ;;  %v20521_v20 = vld [vmem:[#allocation20 + $0x34] ss:$8 sps:$4 sm:$0xff]  }
 0xcff   :  { %v22899_v14 = vpop.eup %22898 }
 0xd00   :  { %v3687_v41 = vsel %vm25245_vm11, %v22899_v14, 0.0  ;;  %vm25247_vm11 = vmmov %vm25244_vm10 }
 0xd01   :  { %v22901_v0 = vpop.eup %22900  ;;  %v3688_v62 = vrot.slane %v3687_v41, 4 }
 0xd02   :  { %v3846_v37 = vsel %vm25246_vm13, %v22901_v0, 0.0 }
 0xd03   :  { %v3689_v33 = vadd.f32 %v3688_v62, %v3687_v41  ;;  %v3847_v25 = vrot.slane %v3846_v37, 4  ;;  %v20524_v41 = vld [vmem:[#allocation20 + $0x44] ss:$8 sps:$4 sm:$0xff]   ;;  %v20527_v62 = vld [vmem:[#allocation20 + $0x54] ss:$8 sps:$4 sm:$0xff]  }
 0xd05   :  { %v3690_v61 = vrot.slane %v3689_v33, 2  ;;  %v3848_v27 = vadd.f32 %v3847_v25, %v3846_v37  ;;  %v20528_v37 = vld [vmem:[#allocation20 + $0x60] ss:$8 sps:$4 sm:$0xff]   ;;  %v20531_v25 = vld [vmem:[#allocation20 + $0x70] ss:$8 sps:$4 sm:$0xff]  }
 0xd07   :  { %v3691_v29 = vadd.f32 %v3690_v61, %v3689_v33  ;;  %v3849_v45 = vrot.slane %v3848_v27, 2  ;;  %v20533_v33 = vld [vmem:[#allocation20 + $0x74] ss:$8 sps:$4 sm:$0xff]   ;;  %v20536_v61 = vld [vmem:[#allocation20 + $0x84] ss:$8 sps:$4 sm:$0xff]  }
 0xd09   :  { %v3692_v21 = vrot.slane %v3691_v29, 1  ;;  %v3850_v35 = vadd.f32 %v3849_v45, %v3848_v27  ;;  %v20534_v27 = vld [vmem:[#allocation20 + $0x80] ss:$8 sps:$4 sm:$0xff]   ;;  %v20537_v45 = vld [vmem:[#allocation20 + $0x90] ss:$8 sps:$4 sm:$0xff]  }
 0xd0b   :  { %v3693_v38 = vadd.f32 %v3692_v21, %v3691_v29  ;;  %v3851_v40 = vrot.slane %v3850_v35, 1  ;;  %v20539_v29 = vld [vmem:[#allocation20 + $0x94] ss:$8 sps:$4 sm:$0xff]   ;;  %v20542_v21 = vld [vmem:[#allocation20 + $0xa4] ss:$8 sps:$4 sm:$0xff]  }
 0xd0d   :  { %22902 = vrcp.f32 %v3693_v38  ;;  %v3852_v30 = vadd.f32 %v3851_v40, %v3850_v35  ;;  %v20540_v35 = vld [vmem:[#allocation20 + $0xa0] ss:$8 sps:$4 sm:$0xff]   ;;  %v20545_v38 = vld [vmem:[#allocation20 + $0xb4] ss:$8 sps:$4 sm:$0xff]   ;;  %v20543_v40 = vld [vmem:[#allocation20 + $0xb0] ss:$8 sps:$4 sm:$0xff]  }
 0xd0f   :  { %22904 = vrcp.f32 %v3852_v30  ;;  %v20548_v30 = vld [vmem:[#allocation20 + $0xc4] ss:$8 sps:$4 sm:$0xff]  }
 0xd17   :  { %v22903_v57 = vpop.eup %22902 }
 0xd18   :  { %v3695_v28 = vmul.f32 %v22903_v57, %v22899_v14  ;;  %v20519_v14 = vld [vmem:[#allocation20 + $0x30] ss:$8 sps:$4 sm:$0xff]   ;;  %v20546_v57 = vld [vmem:[#allocation20 + $0xc0] ss:$8 sps:$4 sm:$0xff]  }
 0xd19   :  { %v22905_v12 = vpop.eup %22904 }
 0xd1a   :  { %v3696_v26 = vpack.c.bf16 %v3695_v28, %v3695_v28  ;;  %v3854_v3 = vmul.f32 %v22905_v12, %v22901_v0  ;;  %v20522_v0 = vld [vmem:[#allocation20 + $0x40] ss:$8 sps:$4 sm:$0xff]   ;;  %v20549_v28 = vld [vmem:[#allocation20 + $0xd0] ss:$8 sps:$4 sm:$0xff]   ;;  %v20557_v12 = vld [vmem:[#allocation20 + $0xf4] ss:$8 sps:$4 sm:$0xff]  }
 0xd1c   :  { %17855 = vmatmul.mubr.msk.bf16.vlgmr.msra.gmra.mrb[36].mxu0 %vm25244_vm10, %v3696_v26  ;;  %v3855_v10 = vpack.c.bf16 %v3854_v3, %v3854_v3  ;;  %v20554_v26 = vld [vmem:[#allocation20 + $0xe4] ss:$8 sps:$4 sm:$0xff]   ;;  %v20558_v3 = vld [vmem:[#allocation20 + $0x100] ss:$8 sps:$4 sm:$0xff]  }
 0xd1d   :  { %3866 = vmatpush1.bf16.msra.mxu0 %v3860_v51  ;;  %3897 = vmatprep.mubr.bf16.mxu0 %v25241_v18  ;;  %v20555_v51 = vld [vmem:[#allocation20 + $0xf0] ss:$8 sps:$4 sm:$0xff]  }
 0xd1e   :  { %5156 = vmatprep.subr.bf16.mxu0 %v20512_v2  ;;  %v20552_v2 = vld [vmem:[#allocation20 + $0xe0] ss:$8 sps:$4 sm:$0xff]  }
 0xd24   :  { %17857 = vmatmul.mubr.msk.bf16.vlgmr.msra.gmra.mrb[40].mxu0 %vm25247_vm11, %v3855_v10  ;;  %v20561_v10 = vld [vmem:[#allocation23 + $0x100] ss:$8 sps:$4 sm:$0xff]  }
 0xd25   :  { %5157 = vmatpush1.bf16.msra.mxu0 %v20510_v31  ;;  %18052 = vmatprep.mubr.msk.bf16.mxu0 %vm24028_vm14, %v25248_v8  ;;  %v20560_v31 = vld [vmem:[#allocation20 + $0x104] ss:$8 sps:$4 sm:$0xff]   ;;  %v20566_v8 = vld [vmem:[#allocation20 + $0x114] ss:$8 sps:$4 sm:$0xff]  }
 0xd26   :  { %5158 = vmatprep.subr.bf16.mxu0 %v20515_v19  ;;  %v20563_v19 = vld [vmem:[#allocation23 + $0x104] ss:$8 sps:$4 sm:$0xff]  }
 0xd27   :  { %7000 = vmatprep.subr.bf16.mxu1 %v20563_v19  ;;  %v20612_v19 = vld [vmem:[#allocation20 + $0x190] ss:$8 sps:$4 sm:$0xff]  }
 0xd28   :  { %7001 = vmatpush1.bf16.msra.mxu1 %v20561_v10  ;;  %v20617_v10 = vld [vmem:[#allocation23 + $0x194] ss:$8 sps:$4 sm:$0xff]  }
 0xd29   :  { %5159 = vmatpush1.bf16.msra.mxu0 %v20513_v4  ;;  %v20569_v4 = vld [vmem:[#allocation23 + $0x114] ss:$8 sps:$4 sm:$0xff]  }
 0xd2a   :  { %5160 = vmatprep.subr.bf16.mxu0 %v20518_v23  ;;  %v20564_v23 = vld [vmem:[#allocation20 + $0x110] ss:$8 sps:$4 sm:$0xff]   ;;  %7002 = vmatprep.subr.bf16.mxu1 %v20569_v4  ;;  %v20620_v4 = vld [vmem:[#allocation20 + $0x1a4] ss:$8 sps:$4 sm:$0xff]  }
 0xd2d   :  { %5161 = vmatpush1.bf16.msra.mxu0 %v20516_v22  ;;  %v20567_v22 = vld [vmem:[#allocation23 + $0x110] ss:$8 sps:$4 sm:$0xff]  }
 0xd2e   :  { %5162 = vmatprep.subr.bf16.mxu0 %v20521_v20  ;;  %v20572_v20 = vld [vmem:[#allocation20 + $0x124] ss:$8 sps:$4 sm:$0xff]   ;;  %7003 = vmatpush1.bf16.msra.mxu1 %v20567_v22  ;;  %v20618_v22 = vld [vmem:[#allocation20 + $0x1a0] ss:$8 sps:$4 sm:$0xff]  }
 0xd31   :  { %5163 = vmatpush1.bf16.msra.mxu0 %v20519_v14  ;;  %v20575_v14 = vld [vmem:[#allocation23 + $0x124] ss:$8 sps:$4 sm:$0xff]  }
 0xd32   :  { %5164 = vmatprep.subr.bf16.mxu0 %v20524_v41  ;;  %v20570_v41 = vld [vmem:[#allocation20 + $0x120] ss:$8 sps:$4 sm:$0xff]   ;;  %7004 = vmatprep.subr.bf16.mxu1 %v20575_v14  ;;  %v20626_v14 = vld [vmem:[#allocation20 + $0x1b4] ss:$8 sps:$4 sm:$0xff]  }
 0xd35   :  { %5165 = vmatpush1.bf16.msra.mxu0 %v20522_v0  ;;  %v20578_v0 = vld [vmem:[#allocation20 + $0x134] ss:$8 sps:$4 sm:$0xff]  }
 0xd36   :  { %5166 = vmatprep.subr.bf16.mxu0 %v20527_v62  ;;  %v20581_v62 = vld [vmem:[#allocation23 + $0x134] ss:$8 sps:$4 sm:$0xff]  }
 0xd39   :  { %5167 = vmatpush1.bf16.msra.mxu0 %v20525_v52  ;;  %v20576_v52 = vld [vmem:[#allocation20 + $0x130] ss:$8 sps:$4 sm:$0xff]  }
 0xd3a   :  { %5168 = vmatprep.subr.bf16.mxu0 %v20530_v36  ;;  %v20579_v36 = vld [vmem:[#allocation23 + $0x130] ss:$8 sps:$4 sm:$0xff]  }
 0xd3d   :  { %5169 = vmatpush1.bf16.msra.mxu0 %v20528_v37  ;;  %v20584_v37 = vld [vmem:[#allocation20 + $0x144] ss:$8 sps:$4 sm:$0xff]  }
 0xd3e   :  { %5170 = vmatprep.subr.bf16.mxu0 %v20533_v33  ;;  %v20587_v33 = vld [vmem:[#allocation23 + $0x144] ss:$8 sps:$4 sm:$0xff]  }
 0xd41   :  { %5171 = vmatpush1.bf16.msra.mxu0 %v20531_v25  ;;  %v20582_v25 = vld [vmem:[#allocation20 + $0x140] ss:$8 sps:$4 sm:$0xff]  }
 0xd42   :  { %5172 = vmatprep.subr.bf16.mxu0 %v20536_v61  ;;  %v20585_v61 = vld [vmem:[#allocation23 + $0x140] ss:$8 sps:$4 sm:$0xff]  }
 0xd45   :  { %5173 = vmatpush1.bf16.msra.mxu0 %v20534_v27  ;;  %v20590_v27 = vld [vmem:[#allocation20 + $0x154] ss:$8 sps:$4 sm:$0xff]  }
 0xd46   :  { %5174 = vmatprep.subr.bf16.mxu0 %v20539_v29  ;;  %v20593_v29 = vld [vmem:[#allocation23 + $0x154] ss:$8 sps:$4 sm:$0xff]  }
 0xd49   :  { %5175 = vmatpush1.bf16.msra.mxu0 %v20537_v45  ;;  %v20588_v45 = vld [vmem:[#allocation20 + $0x150] ss:$8 sps:$4 sm:$0xff]  }
 0xd4a   :  { %5176 = vmatprep.subr.bf16.mxu0 %v20542_v21  ;;  %v20591_v21 = vld [vmem:[#allocation23 + $0x150] ss:$8 sps:$4 sm:$0xff]  }
 0xd4d   :  { %5177 = vmatpush1.bf16.msra.mxu0 %v20540_v35  ;;  %v20596_v35 = vld [vmem:[#allocation20 + $0x164] ss:$8 sps:$4 sm:$0xff]  }
 0xd4e   :  { %5178 = vmatprep.subr.bf16.mxu0 %v20545_v38  ;;  %v20599_v38 = vld [vmem:[#allocation23 + $0x164] ss:$8 sps:$4 sm:$0xff]  }
 0xd51   :  { %5179 = vmatpush1.bf16.msra.mxu0 %v20543_v40  ;;  %v20594_v40 = vld [vmem:[#allocation20 + $0x160] ss:$8 sps:$4 sm:$0xff]  }
 0xd52   :  { %5180 = vmatprep.subr.bf16.mxu0 %v20548_v30  ;;  %v20597_v30 = vld [vmem:[#allocation23 + $0x160] ss:$8 sps:$4 sm:$0xff]  }
 0xd55   :  { %5181 = vmatpush1.bf16.msra.mxu0 %v20546_v57  ;;  %v20602_v57 = vld [vmem:[#allocation20 + $0x174] ss:$8 sps:$4 sm:$0xff]  }
 0xd56   :  { %5182 = vmatprep.subr.bf16.mxu0 %v20551_v48  ;;  %v20605_v48 = vld [vmem:[#allocation23 + $0x174] ss:$8 sps:$4 sm:$0xff]  }
 0xd59   :  { %5183 = vmatpush1.bf16.msra.mxu0 %v20549_v28  ;;  %v20600_v28 = vld [vmem:[#allocation20 + $0x170] ss:$8 sps:$4 sm:$0xff]  }
 0xd5a   :  { %5184 = vmatprep.subr.bf16.mxu0 %v20554_v26  ;;  %v20603_v26 = vld [vmem:[#allocation23 + $0x170] ss:$8 sps:$4 sm:$0xff]  }
 0xd5d   :  { %5185 = vmatpush1.bf16.msra.mxu0 %v20552_v2  ;;  %v20608_v2 = vld [vmem:[#allocation20 + $0x184] ss:$8 sps:$4 sm:$0xff]  }
 0xd5e   :  { %5186 = vmatprep.subr.bf16.mxu0 %v20557_v12  ;;  %v20611_v12 = vld [vmem:[#allocation23 + $0x184] ss:$8 sps:$4 sm:$0xff]  }
 0xd61   :  { %5187 = vmatpush1.bf16.msra.mxu0 %v20555_v51  ;;  %v20606_v51 = vld [vmem:[#allocation20 + $0x180] ss:$8 sps:$4 sm:$0xff]  }
 0xd62   :  { %5199 = vmatprep.subr.bf16.mxu0 %v20560_v31  ;;  %v20614_v31 = vld [vmem:[#allocation20 + $0x194] ss:$8 sps:$4 sm:$0xff]  }
 0xd64   :  { %18055 = vmatmul.mubr.msk.bf16.vlgmr.msra.gmra.mrb[44].mxu0 %vm24028_vm14, %v24045_v54  ;;  %v20573_v54 = vld [vmem:[#allocation23 + $0x120] ss:$8 sps:$4 sm:$0xff]  }
 0xd65   :  { %5200 = vmatpush1.bf16.msra.mxu0 %v20558_v3  ;;  %7005 = vmatpush1.bf16.msra.mxu1 %v20573_v54  ;;  %v20609_v3 = vld [vmem:[#allocation23 + $0x180] ss:$8 sps:$4 sm:$0xff]   ;;  %v20624_v54 = vld [vmem:[#allocation20 + $0x1b0] ss:$8 sps:$4 sm:$0xff]  }
 0xd66   :  { %5201 = vmatprep.subr.bf16.mxu0 %v20566_v8  ;;  %7006 = vmatprep.subr.bf16.mxu1 %v20581_v62  ;;  %v20615_v8 = vld [vmem:[#allocation23 + $0x190] ss:$8 sps:$4 sm:$0xff]   ;;  %v20632_v62 = vld [vmem:[#allocation20 + $0x1c4] ss:$8 sps:$4 sm:$0xff]  }
 0xd69   :  { %5202 = vmatpush1.bf16.msra.mxu0 %v20564_v23  ;;  %7007 = vmatpush1.bf16.msra.mxu1 %v20579_v36  ;;  %v20623_v23 = vld [vmem:[#allocation23 + $0x1a4] ss:$8 sps:$4 sm:$0xff]  }
 0xd6a   :  { %5203 = vmatprep.subr.bf16.mxu0 %v20572_v20  ;;  %7008 = vmatprep.subr.bf16.mxu1 %v20587_v33  ;;  %v20621_v20 = vld [vmem:[#allocation23 + $0x1a0] ss:$8 sps:$4 sm:$0xff]   ;;  %v20635_v36 = vld [vmem:[#allocation23 + $0x1c4] ss:$8 sps:$4 sm:$0xff]   ;;  %v20638_v33 = vld [vmem:[#allocation20 + $0x1d4] ss:$8 sps:$4 sm:$0xff]  }
 0xd6d   :  { %5204 = vmatpush1.bf16.msra.mxu0 %v20570_v41  ;;  %7009 = vmatpush1.bf16.msra.mxu1 %v20585_v61  ;;  %v20629_v41 = vld [vmem:[#allocation23 + $0x1b4] ss:$8 sps:$4 sm:$0xff]   ;;  %v20639_v61 = vld [vmem:[#allocation23 + $0x1d0] ss:$8 sps:$4 sm:$0xff]  }
 0xd6e   :  { %5205 = vmatprep.subr.bf16.mxu0 %v20578_v0  ;;  %7010 = vmatprep.subr.bf16.mxu1 %v20593_v29  ;;  %v20627_v0 = vld [vmem:[#allocation23 + $0x1b0] ss:$8 sps:$4 sm:$0xff]   ;;  %v20644_v29 = vld [vmem:[#allocation20 + $0x1e4] ss:$8 sps:$4 sm:$0xff]  }
 0xd71   :  { %5206 = vmatpush1.bf16.msra.mxu0 %v20576_v52  ;;  %7011 = vmatpush1.bf16.msra.mxu1 %v20591_v21  ;;  %v20630_v52 = vld [vmem:[#allocation20 + $0x1c0] ss:$8 sps:$4 sm:$0xff]  }
 0xd72   :  { %5207 = vmatprep.subr.bf16.mxu0 %v20584_v37  ;;  %7012 = vmatprep.subr.bf16.mxu1 %v20599_v38  ;;  %v20633_v37 = vld [vmem:[#allocation23 + $0x1c0] ss:$8 sps:$4 sm:$0xff]   ;;  %v20647_v21 = vld [vmem:[#allocation23 + $0x1e4] ss:$8 sps:$4 sm:$0xff]   ;;  %v20650_v38 = vld [vmem:[#allocation20 + $0x1f4] ss:$8 sps:$4 sm:$0xff]  }
 0xd75   :  { %5208 = vmatpush1.bf16.msra.mxu0 %v20582_v25  ;;  %7013 = vmatpush1.bf16.msra.mxu1 %v20597_v30  ;;  %v20636_v25 = vld [vmem:[#allocation20 + $0x1d0] ss:$8 sps:$4 sm:$0xff]  }
 0xd76   :  { %5209 = vmatprep.subr.bf16.mxu0 %v20590_v27  ;;  %7014 = vmatprep.subr.bf16.mxu1 %v20605_v48  ;;  %v20641_v27 = vld [vmem:[#allocation23 + $0x1d4] ss:$8 sps:$4 sm:$0xff]   ;;  %v20651_v30 = vld [vmem:[#allocation23 + $0x1f0] ss:$8 sps:$4 sm:$0xff]  }
 0xd79   :  { %5210 = vmatpush1.bf16.msra.mxu0 %v20588_v45  ;;  %7015 = vmatpush1.bf16.msra.mxu1 %v20603_v26  ;;  %v20642_v45 = vld [vmem:[#allocation20 + $0x1e0] ss:$8 sps:$4 sm:$0xff]  }
 0xd7a   :  { %5211 = vmatprep.subr.bf16.mxu0 %v20596_v35  ;;  %7016 = vmatprep.subr.bf16.mxu1 %v20611_v12  ;;  %v20645_v35 = vld [vmem:[#allocation23 + $0x1e0] ss:$8 sps:$4 sm:$0xff]  }
 0xd7d   :  { %5212 = vmatpush1.bf16.msra.mxu0 %v20594_v40  ;;  %7017 = vmatpush1.bf16.msra.mxu1 %v20609_v3  ;;  %v20648_v40 = vld [vmem:[#allocation20 + $0x1f0] ss:$8 sps:$4 sm:$0xff]  }
 0xd7e   :  { %5213 = vmatprep.subr.bf16.mxu0 %v20602_v57  ;;  %7018 = vmatprep.subr.bf16.mxu1 %v20617_v10  ;;  %v20653_v57 = vld [vmem:[#allocation23 + $0x1f4] ss:$8 sps:$4 sm:$0xff]  }
 0xd81   :  { %5214 = vmatpush1.bf16.msra.mxu0 %v20600_v28  ;;  %7019 = vmatpush1.bf16.msra.mxu1 %v20615_v8 }
 0xd82   :  { %5215 = vmatprep.subr.bf16.mxu0 %v20608_v2  ;;  %7020 = vmatprep.subr.bf16.mxu1 %v20623_v23  ;;  %v20656_v2 = vld [vmem:[#allocation20 + $0x204] ss:$8 sps:$4 sm:$0xff]  }
 0xd85   :  { %5216 = vmatpush1.bf16.msra.mxu0 %v20606_v51  ;;  %7021 = vmatpush1.bf16.msra.mxu1 %v20621_v20 }
 0xd86   :  { %5217 = vmatprep.subr.bf16.mxu0 %v20614_v31  ;;  %7022 = vmatprep.subr.bf16.mxu1 %v20629_v41 }
 0xd89   :  { %5218 = vmatpush1.bf16.msra.mxu0 %v20612_v19  ;;  %7023 = vmatpush1.bf16.msra.mxu1 %v20627_v0 }
 0xd8a   :  { %5219 = vmatprep.subr.bf16.mxu0 %v20620_v4  ;;  %7024 = vmatprep.subr.bf16.mxu1 %v20635_v36 }
 0xd8d   :  { %5220 = vmatpush1.bf16.msra.mxu0 %v20618_v22  ;;  %7025 = vmatpush1.bf16.msra.mxu1 %v20633_v37 }
 0xd8e   :  { %5221 = vmatprep.subr.bf16.mxu0 %v20626_v14  ;;  %7026 = vmatprep.subr.bf16.mxu1 %v20641_v27 }
 0xd91   :  { %5222 = vmatpush1.bf16.msra.mxu0 %v20624_v54  ;;  %7027 = vmatpush1.bf16.msra.mxu1 %v20639_v61 }
 0xd92   :  { %5223 = vmatprep.subr.bf16.mxu0 %v20632_v62  ;;  %7028 = vmatprep.subr.bf16.mxu1 %v20647_v21 }
 0xd95   :  { %5224 = vmatpush1.bf16.msra.mxu0 %v20630_v52  ;;  %7029 = vmatpush1.bf16.msra.mxu1 %v20645_v35 }
 0xd96   :  { %5225 = vmatprep.subr.bf16.mxu0 %v20638_v33  ;;  %7030 = vmatprep.subr.bf16.mxu1 %v20653_v57 }
 0xd99   :  { %5226 = vmatpush1.bf16.msra.mxu0 %v20636_v25  ;;  %7031 = vmatpush1.bf16.msra.mxu1 %v20651_v30 }
 0xd9a   :  { %5227 = vmatprep.subr.bf16.mxu0 %v20644_v29 }
 0xd9d   :  { %5228 = vmatpush1.bf16.msra.mxu0 %v20642_v45 }
 0xd9e   :  { %5229 = vmatprep.subr.bf16.mxu0 %v20650_v38 }
 0xda1   :  { %5230 = vmatpush1.bf16.msra.mxu0 %v20648_v40 }
 0xda2   :  { %5242 = vmatprep.subr.bf16.mxu0 %v20656_v2 }
 0xdef   :  { %v3740_v48 = vpop.f32.mrb[36].mxu0 }
 0xdf0   :  { %3910 = vrot.lane.b32.xlu0 %v3740_v48, %s23490_s26  ;;  %v3742_v28 = vpop.f32.mrb[37].mxu0 }
 0xdf1   :  { %3912 = vrot.lane.b32.xlu1 %v3742_v28, %s23490_s26  ;;  %v3744_v26 = vpop.f32.mrb[38].mxu0 }
 0xdf2   :  { %v3745_v12 = vpop.f32.mrb[39].mxu0 }
 0xdf7   :  { %v3899_v51 = vpop.f32.mrb[40].mxu0 }
 0xdf8   :  { %3914 = vrot.lane.b32.xlu0 %v3899_v51, %s23490_s26  ;;  %v3901_v3 = vpop.f32.mrb[41].mxu0 }
 0xdf9   :  { %3916 = vrot.lane.b32.xlu1 %v3901_v3, %s23490_s26  ;;  %v3903_v31 = vpop.f32.mrb[42].mxu0 }
 0xdfa   :  { %v3904_v10 = vpop.f32.mrb[43].mxu0 }
 0xe62   :  { %v3911_v19 = vpop.permute.xlu0 %3910 }
 0xe63   :  { %v3924_v8 = vsel %vm533_vm1, %v24255_v7, %v3911_v19  ;;  %v3913_v4 = vpop.permute.xlu1 %3912 }
 0xe64   :  { %3928 = vst [vmem:[#allocation35 + $0x10] sm:$0xff] %v3924_v8  ;;  %v24359_v23 = vsel %vm533_vm1, %v3911_v19, %v3913_v4  ;;  %v3937_v22 = vrot.slane %v3924_v8, 7  ;;  %v5433_v20 = vrot.slane %v3924_v8, 6  ;;  %v7319_v14 = vrot.slane %v3924_v8, 4 }
 0xe65   :  { %3929 = vst [vmem:[#allocation35 + $0x18] sm:$0xff] %v24359_v23  ;;  %v3938_v41 = vrot.slane %v24359_v23, 7  ;;  %v5434_v54 = vrot.slane %v24359_v23, 6  ;;  %v3963_v0 = vrot.slane %v3924_v8, 1  ;;  %v5467_v62 = vrot.slane %v3924_v8, 2 }
 0xe66   :  { %v7320_v52 = vrot.slane %v24359_v23, 4  ;;  %v3952_v7 = vsel %vm795_vm5, 0.0, %v3937_v22  ;;  %v5453_v37 = vsel %vm1135_vm9, 0.0, %v5433_v20  ;;  %v3966_v33 = vrot.slane %v24359_v23, 1 }
 0xe67   :  { %v24369_v25 = vsel %vm608_vm2, 0.0, %v7319_v14  ;;  %v3953_v29 = vsel %vm795_vm5, 0.0, %v3938_v41  ;;  %v5454_v45 = vsel %vm1135_vm9, 0.0, %v5434_v54  ;;  %v5470_v21 = vrot.slane %v24359_v23, 2 }
 0xe68   :  { %v24380_v26 = vsel %vm608_vm2, 0.0, %v7320_v52 }
 0xe6a   :  { %v3915_v36 = vpop.permute.xlu0 %3914 }
 0xe6b   :  { %v3925_v61 = vsel %vm533_vm1, %v24257_v11, %v3915_v36  ;;  %v3917_v27 = vpop.permute.xlu1 %3916 }
 0xe6c   :  { %3932 = vst [vmem:[#allocation35 + $0x30] sm:$0xff] %v3925_v61  ;;  %v3941_v35 = vrot.slane %v3925_v61, 7  ;;  %v3964_v38 = vrot.slane %v3925_v61, 1  ;;  %v24376_v40 = vpack.c.bf16 %v3925_v61, %v3924_v8  ;;  %v5438_v30 = vrot.slane %v3925_v61, 6 }
 0xe6d   :  { %v5468_v57 = vrot.slane %v3925_v61, 2  ;;  %v7323_v48 = vrot.slane %v3925_v61, 4  ;;  %v3919_v28 = vsel %vm533_vm1, %v3915_v36, %v3917_v27  ;;  %v20654_v27 = vld [vmem:[#allocation20 + $0x200] ss:$8 sps:$4 sm:$0xff]  }
 0xe6e   :  { %3933 = vst [vmem:[#allocation35 + $0x38] sm:$0xff] %v3919_v28  ;;  %v24383_v11 = vpack.c.bf16 %v3919_v28, %v24359_v23  ;;  %v3943_v2 = vrot.slane %v3919_v28, 7  ;;  %v5440_v12 = vrot.slane %v3919_v28, 6  ;;  %v3942_v51 = vsel %vm795_vm5, %v3937_v22, %v3941_v35 }
 0xe6f   :  { %v18060_v3 = vpack.c.bf16 %v3942_v51, %v3952_v7  ;;  %v5439_v31 = vsel %vm1135_vm9, %v5433_v20, %v5438_v30  ;;  %v3967_v10 = vrot.slane %v3919_v28, 1  ;;  %v24388_v19 = vsel %vm810_vm7, %v3963_v0, %v3964_v38  ;;  %v20659_v7 = vld [vmem:[#allocation20 + $0x214] ss:$8 sps:$4 sm:$0xff]   ;;  %v20660_v51 = vld [vmem:[#allocation20 + $0x220] ss:$8 sps:$4 sm:$0xff]  }
 0xe70   :  { %v3944_v8 = vsel %vm795_vm5, %v3938_v41, %v3943_v2  ;;  %v5441_v4 = vsel %vm1135_vm9, %v5434_v54, %v5440_v12  ;;  %v18326_v36 = vpack.c.bf16 %v5439_v31, %v5453_v37  ;;  %v24393_v61 = vsel %vm810_vm7, %v3964_v38, 0.0  ;;  %v20668_v31 = vld [vmem:[#allocation20 + $0x244] ss:$8 sps:$4 sm:$0xff]  }
 0xe71   :  { %v18057_v23 = vpack.c.bf16 %v3944_v8, %v3953_v29  ;;  %v18323_v13 = vpack.c.bf16 %v5441_v4, %v5454_v45  ;;  %v24396_v22 = vsel %vm810_vm7, %v3966_v33, %v3967_v10  ;;  %v24399_v20 = vsel %vm810_vm7, %v3967_v10, 0.0  ;;  %v20666_v10 = vld [vmem:[#allocation20 + $0x240] ss:$8 sps:$4 sm:$0xff]   ;;  %v20671_v8 = vld [vmem:[#allocation20 + $0x254] ss:$8 sps:$4 sm:$0xff]  }
 0xe72   :  { %v18069_v0 = vpack.c.bf16 %v24399_v20, %v24396_v22  ;;  %v18072_v41 = vpack.c.bf16 %v24393_v61, %v24388_v19  ;;  %v7325_v54 = vrot.slane %v3919_v28, 4  ;;  %v24406_v37 = vsel %vm608_vm2, %v7319_v14, %v7323_v48  ;;  %v20669_v4 = vld [vmem:[#allocation20 + $0x250] ss:$8 sps:$4 sm:$0xff]   ;;  %v20818_v20 = vld [vmem:[#allocation20 + $0x564] ss:$8 sps:$4 sm:$0xff]  }
 0xe73   :  { %18058 = vmatprep.mubr.msk.bf16.mxu0 %vm24028_vm14, %v18057_v23  ;;  %18324 = vmatprep.mubr.msk.bf16.mxu1 %vm24112_vm0, %v18323_v13  ;;  %v18646_v33 = vpack.c.bf16 %v24406_v37, %v24369_v25  ;;  %v5471_v29 = vrot.slane %v3919_v28, 2  ;;  %v24415_v45 = vsel %vm1158_vm8, %v5467_v62, %v5468_v57  ;;  %v24418_v35 = vsel %vm1158_vm8, %v5468_v57, 0.0  ;;  %v20672_v23 = vld [vmem:[#allocation20 + $0x260] ss:$8 sps:$4 sm:$0xff]   ;;  %v20813_v22 = vld [vmem:[#allocation20 + $0x550] ss:$8 sps:$4 sm:$0xff]  }
 0xe74   :  { %18061 = vmatmul.mubr.msk.bf16.vlgmr.msra.gmra.mrb[44].mxu0 %vm24028_vm14, %v18060_v3  ;;  %18327 = vmatmul.mubr.msk.bf16.vlgmr.msra.gmra.mrb[44].mxu1 %vm24112_vm0, %v18326_v36  ;;  %v24425_v14 = vsel %vm608_vm2, %v7320_v52, %v7325_v54  ;;  %v18341_v13 = vpack.c.bf16 %v24418_v35, %v24415_v45  ;;  %v24430_v38 = vsel %vm608_vm2, %v7325_v54, 0.0  ;;  %v24433_v62 = vsel %vm608_vm2, %v7323_v48, 0.0  ;;  %v20662_v48 = vld [vmem:[#allocation20 + $0x224] ss:$8 sps:$4 sm:$0xff]   ;;  %v20663_v3 = vld [vmem:[#allocation20 + $0x230] ss:$8 sps:$4 sm:$0xff]  }
 0xe75   :  { %5243 = vmatpush1.bf16.msra.mxu0 %v20654_v27  ;;  %5274 = vmatprep.mubr.bf16.mxu0 %v24170_v24  ;;  %v18643_v30 = vpack.c.bf16 %v24425_v14, %v24380_v26  ;;  %v24439_v57 = vsel %vm1158_vm8, %v5470_v21, %v5471_v29  ;;  %v24442_v52 = vsel %vm1158_vm8, %v5471_v29, 0.0  ;;  %v18661_v28 = vpack.c.bf16 %v24430_v38, %v24425_v14  ;;  %v20665_v21 = vld [vmem:[#allocation20 + $0x234] ss:$8 sps:$4 sm:$0xff]   ;;  %v20674_v36 = vld [vmem:[#allocation20 + $0x264] ss:$8 sps:$4 sm:$0xff]  }
 0xe76   :  { %7075 = vmatprep.mubr.bf16.mxu1 %v24016_v44  ;;  %5244 = vmatprep.subr.bf16.mxu0 %v20659_v7  ;;  %v18338_v2 = vpack.c.bf16 %v24442_v52, %v24439_v57  ;;  %v18664_v12 = vpack.c.bf16 %v24433_v62, %v24406_v37  ;;  %v20677_v27 = vld [vmem:[#allocation20 + $0x274] ss:$8 sps:$4 sm:$0xff]   ;;  %v20675_v7 = vld [vmem:[#allocation20 + $0x270] ss:$8 sps:$4 sm:$0xff]   ;;  %v20680_v54 = vld [vmem:[#allocation20 + $0x284] ss:$8 sps:$4 sm:$0xff]  }
 0xe77   :  { %v20678_v29 = vld [vmem:[#allocation20 + $0x280] ss:$8 sps:$4 sm:$0xff]   ;;  %v20852_v19 = vld [vmem:[#allocation26 + $0x20] ss:$8 sps:$4 sm:$0xff]   ;;  %v20909_v26 = vld [vmem:[#allocation26 + $0x150] ss:$8 sps:$4 sm:$0xff]  }
 0xe78   :  { %v20948_v61 = vld [vmem:[#allocation23 + $0x220] ss:$8 sps:$4 sm:$0xff]   ;;  %v21149_v57 = vld [vmem:[#allocation23 + $0x650] ss:$8 sps:$4 sm:$0xff]   ;;  %v21154_v52 = vld [vmem:[#allocation23 + $0x664] ss:$8 sps:$4 sm:$0xff]  }
 0xe79   :  { %5245 = vmatpush1.bf16.msra.mxu0 %v20657_v49  ;;  %v20683_v49 = vld [vmem:[#allocation20 + $0x294] ss:$8 sps:$4 sm:$0xff]   ;;  %v21610_v38 = vld [vmem:[#allocation26 + $0x764] ss:$8 sps:$4 sm:$0xff]   ;;  %v21650_v62 = vld [vmem:[#allocation26 + $0x840] ss:$8 sps:$4 sm:$0xff]  }
 0xe7a   :  { %5246 = vmatprep.subr.bf16.mxu0 %v20662_v48  ;;  %v20681_v48 = vld [vmem:[#allocation20 + $0x290] ss:$8 sps:$4 sm:$0xff]   ;;  %v21605_v14 = vld [vmem:[#allocation26 + $0x750] ss:$8 sps:$4 sm:$0xff]  }
 0xe7b   :  { %v21199_v45 = vld [vmem:[#allocation23 + $0x754] ss:$8 sps:$4 sm:$0xff]   ;;  %v21197_v35 = vld [vmem:[#allocation23 + $0x750] ss:$8 sps:$4 sm:$0xff]  }
 0xe7c   :  { %v21652_v37 = vld [vmem:[#allocation26 + $0x844] ss:$8 sps:$4 sm:$0xff]  }
 0xe7d   :  { %5247 = vmatpush1.bf16.msra.mxu0 %v20660_v51  ;;  %v20686_v51 = vld [vmem:[#allocation20 + $0x2a4] ss:$8 sps:$4 sm:$0xff]  }
 0xe7e   :  { %5248 = vmatprep.subr.bf16.mxu0 %v20665_v21  ;;  %v20684_v21 = vld [vmem:[#allocation20 + $0x2a0] ss:$8 sps:$4 sm:$0xff]  }
 0xe81   :  { %5249 = vmatpush1.bf16.msra.mxu0 %v20663_v3  ;;  %v20689_v3 = vld [vmem:[#allocation20 + $0x2b4] ss:$8 sps:$4 sm:$0xff]  }
 0xe82   :  { %5250 = vmatprep.subr.bf16.mxu0 %v20668_v31  ;;  %v20687_v31 = vld [vmem:[#allocation20 + $0x2b0] ss:$8 sps:$4 sm:$0xff]  }
 0xe85   :  { %5251 = vmatpush1.bf16.msra.mxu0 %v20666_v10  ;;  %v20692_v10 = vld [vmem:[#allocation20 + $0x2c4] ss:$8 sps:$4 sm:$0xff]  }
 0xe86   :  { %5252 = vmatprep.subr.bf16.mxu0 %v20671_v8  ;;  %v20690_v8 = vld [vmem:[#allocation20 + $0x2c0] ss:$8 sps:$4 sm:$0xff]  }
 0xe89   :  { %5253 = vmatpush1.bf16.msra.mxu0 %v20669_v4  ;;  %v20695_v4 = vld [vmem:[#allocation20 + $0x2d4] ss:$8 sps:$4 sm:$0xff]  }
 0xe8a   :  { %5254 = vmatprep.subr.bf16.mxu0 %v20674_v36  ;;  %v20693_v36 = vld [vmem:[#allocation20 + $0x2d0] ss:$8 sps:$4 sm:$0xff]  }
 0xe8d   :  { %5255 = vmatpush1.bf16.msra.mxu0 %v20672_v23  ;;  %v20698_v23 = vld [vmem:[#allocation20 + $0x2e4] ss:$8 sps:$4 sm:$0xff]  }
 0xe8e   :  { %5256 = vmatprep.subr.bf16.mxu0 %v20677_v27  ;;  %v20696_v27 = vld [vmem:[#allocation20 + $0x2e0] ss:$8 sps:$4 sm:$0xff]  }
 0xe91   :  { %5257 = vmatpush1.bf16.msra.mxu0 %v20675_v7  ;;  %v20701_v7 = vld [vmem:[#allocation20 + $0x2f4] ss:$8 sps:$4 sm:$0xff]  }
 0xe92   :  { %5258 = vmatprep.subr.bf16.mxu0 %v20680_v54  ;;  %v20699_v54 = vld [vmem:[#allocation20 + $0x2f0] ss:$8 sps:$4 sm:$0xff]  }
 0xe95   :  { %5259 = vmatpush1.bf16.msra.mxu0 %v20678_v29  ;;  %v20704_v29 = vld [vmem:[#allocation20 + $0x304] ss:$8 sps:$4 sm:$0xff]  }
 0xe96   :  { %5260 = vmatprep.subr.bf16.mxu0 %v20683_v49  ;;  %v20702_v49 = vld [vmem:[#allocation20 + $0x300] ss:$8 sps:$4 sm:$0xff]  }
 0xe99   :  { %5261 = vmatpush1.bf16.msra.mxu0 %v20681_v48  ;;  %v20707_v48 = vld [vmem:[#allocation20 + $0x314] ss:$8 sps:$4 sm:$0xff]  }
 0xe9a   :  { %5262 = vmatprep.subr.bf16.mxu0 %v20686_v51  ;;  %v20705_v51 = vld [vmem:[#allocation20 + $0x310] ss:$8 sps:$4 sm:$0xff]  }
 0xe9d   :  { %5263 = vmatpush1.bf16.msra.mxu0 %v20684_v21  ;;  %v20710_v21 = vld [vmem:[#allocation20 + $0x324] ss:$8 sps:$4 sm:$0xff]  }
 0xe9e   :  { %5264 = vmatprep.subr.bf16.mxu0 %v20689_v3  ;;  %v20708_v3 = vld [vmem:[#allocation20 + $0x320] ss:$8 sps:$4 sm:$0xff]  }
 0xea1   :  { %5265 = vmatpush1.bf16.msra.mxu0 %v20687_v31  ;;  %v20713_v31 = vld [vmem:[#allocation20 + $0x334] ss:$8 sps:$4 sm:$0xff]  }
 0xea2   :  { %5266 = vmatprep.subr.bf16.mxu0 %v20692_v10  ;;  %v20711_v10 = vld [vmem:[#allocation20 + $0x330] ss:$8 sps:$4 sm:$0xff]  }
 0xea5   :  { %5267 = vmatpush1.bf16.msra.mxu0 %v20690_v8  ;;  %v20716_v8 = vld [vmem:[#allocation20 + $0x344] ss:$8 sps:$4 sm:$0xff]  }
 0xea6   :  { %5268 = vmatprep.subr.bf16.mxu0 %v20695_v4  ;;  %v20714_v4 = vld [vmem:[#allocation20 + $0x340] ss:$8 sps:$4 sm:$0xff]  }
 0xea9   :  { %5269 = vmatpush1.bf16.msra.mxu0 %v20693_v36  ;;  %v20719_v36 = vld [vmem:[#allocation20 + $0x354] ss:$8 sps:$4 sm:$0xff]  }
 0xeaa   :  { %5270 = vmatprep.subr.bf16.mxu0 %v20698_v23  ;;  %v20717_v23 = vld [vmem:[#allocation20 + $0x350] ss:$8 sps:$4 sm:$0xff]  }
 0xead   :  { %5271 = vmatpush1.bf16.msra.mxu0 %v20696_v27  ;;  %v20722_v27 = vld [vmem:[#allocation20 + $0x364] ss:$8 sps:$4 sm:$0xff]  }
 0xeae   :  { %5272 = vmatprep.subr.bf16.mxu0 %v20701_v7  ;;  %v20720_v7 = vld [vmem:[#allocation20 + $0x360] ss:$8 sps:$4 sm:$0xff]  }
 0xeb1   :  { %5273 = vmatpush1.bf16.msra.mxu0 %v20699_v54  ;;  %v20725_v54 = vld [vmem:[#allocation20 + $0x374] ss:$8 sps:$4 sm:$0xff]  }
 0xeb2   :  { %5285 = vmatprep.subr.bf16.mxu0 %v20704_v29  ;;  %v20723_v29 = vld [vmem:[#allocation20 + $0x370] ss:$8 sps:$4 sm:$0xff]  }
 0xeb4   :  { %5275 = vmatmul.mubr.bf16.vlgmr.msra.gmra.mrb[44].mxu0 %v24016_v44 }
 0xeb5   :  { %5286 = vmatpush1.bf16.msra.mxu0 %v20702_v49  ;;  %5317 = vmatprep.mubr.bf16.mxu0 %v24383_v11  ;;  %v20728_v49 = vld [vmem:[#allocation20 + $0x384] ss:$8 sps:$4 sm:$0xff]  }
 0xeb6   :  { %5287 = vmatprep.subr.bf16.mxu0 %v20707_v48  ;;  %v20726_v48 = vld [vmem:[#allocation20 + $0x380] ss:$8 sps:$4 sm:$0xff]  }
 0xeb9   :  { %5288 = vmatpush1.bf16.msra.mxu0 %v20705_v51  ;;  %v20731_v51 = vld [vmem:[#allocation20 + $0x394] ss:$8 sps:$4 sm:$0xff]  }
 0xeba   :  { %5289 = vmatprep.subr.bf16.mxu0 %v20710_v21  ;;  %v20729_v21 = vld [vmem:[#allocation20 + $0x390] ss:$8 sps:$4 sm:$0xff]  }
 0xebd   :  { %5290 = vmatpush1.bf16.msra.mxu0 %v20708_v3  ;;  %v20734_v3 = vld [vmem:[#allocation20 + $0x3a4] ss:$8 sps:$4 sm:$0xff]  }
 0xebe   :  { %5291 = vmatprep.subr.bf16.mxu0 %v20713_v31  ;;  %v20732_v31 = vld [vmem:[#allocation20 + $0x3a0] ss:$8 sps:$4 sm:$0xff]  }
 0xec1   :  { %5292 = vmatpush1.bf16.msra.mxu0 %v20711_v10  ;;  %v20737_v10 = vld [vmem:[#allocation20 + $0x3b4] ss:$8 sps:$4 sm:$0xff]  }
 0xec2   :  { %5293 = vmatprep.subr.bf16.mxu0 %v20716_v8  ;;  %v20735_v8 = vld [vmem:[#allocation20 + $0x3b0] ss:$8 sps:$4 sm:$0xff]  }
 0xec5   :  { %5294 = vmatpush1.bf16.msra.mxu0 %v20714_v4  ;;  %v20740_v4 = vld [vmem:[#allocation20 + $0x3c4] ss:$8 sps:$4 sm:$0xff]  }
 0xec6   :  { %5295 = vmatprep.subr.bf16.mxu0 %v20719_v36  ;;  %v20738_v36 = vld [vmem:[#allocation20 + $0x3c0] ss:$8 sps:$4 sm:$0xff]  }
 0xec9   :  { %5296 = vmatpush1.bf16.msra.mxu0 %v20717_v23  ;;  %v20743_v23 = vld [vmem:[#allocation20 + $0x3d4] ss:$8 sps:$4 sm:$0xff]  }
 0xeca   :  { %5297 = vmatprep.subr.bf16.mxu0 %v20722_v27  ;;  %v20741_v27 = vld [vmem:[#allocation20 + $0x3d0] ss:$8 sps:$4 sm:$0xff]  }
 0xecd   :  { %5298 = vmatpush1.bf16.msra.mxu0 %v20720_v7  ;;  %v20746_v7 = vld [vmem:[#allocation20 + $0x3e4] ss:$8 sps:$4 sm:$0xff]  }
 0xece   :  { %5299 = vmatprep.subr.bf16.mxu0 %v20725_v54  ;;  %v20744_v54 = vld [vmem:[#allocation20 + $0x3e0] ss:$8 sps:$4 sm:$0xff]  }
 0xed1   :  { %5300 = vmatpush1.bf16.msra.mxu0 %v20723_v29  ;;  %v20749_v29 = vld [vmem:[#allocation20 + $0x3f4] ss:$8 sps:$4 sm:$0xff]  }
 0xed2   :  { %5301 = vmatprep.subr.bf16.mxu0 %v20728_v49  ;;  %v20747_v49 = vld [vmem:[#allocation20 + $0x3f0] ss:$8 sps:$4 sm:$0xff]  }
 0xed5   :  { %5302 = vmatpush1.bf16.msra.mxu0 %v20726_v48  ;;  %v20752_v48 = vld [vmem:[#allocation20 + $0x404] ss:$8 sps:$4 sm:$0xff]  }
 0xed6   :  { %5303 = vmatprep.subr.bf16.mxu0 %v20731_v51  ;;  %v20750_v51 = vld [vmem:[#allocation20 + $0x400] ss:$8 sps:$4 sm:$0xff]  }
 0xed9   :  { %5304 = vmatpush1.bf16.msra.mxu0 %v20729_v21  ;;  %v20755_v21 = vld [vmem:[#allocation20 + $0x414] ss:$8 sps:$4 sm:$0xff]  }
 0xeda   :  { %5305 = vmatprep.subr.bf16.mxu0 %v20734_v3  ;;  %v25249_v3 = vpack.c.bf16 %v24216_v43, %v24213_v1  ;;  %v20765_v1 = vld [vmem:[#allocation20 + $0x450] ss:$8 sps:$4 sm:$0xff]   ;;  %v20770_v43 = vld [vmem:[#allocation20 + $0x464] ss:$8 sps:$4 sm:$0xff]  }
 0xedd   :  { %5306 = vmatpush1.bf16.msra.mxu0 %v20732_v31  ;;  %v20753_v31 = vld [vmem:[#allocation20 + $0x410] ss:$8 sps:$4 sm:$0xff]  }
 0xede   :  { %5307 = vmatprep.subr.bf16.mxu0 %v20737_v10  ;;  %v20758_v10 = vld [vmem:[#allocation20 + $0x424] ss:$8 sps:$4 sm:$0xff]  }
 0xee1   :  { %5308 = vmatpush1.bf16.msra.mxu0 %v20735_v8  ;;  %v20756_v8 = vld [vmem:[#allocation20 + $0x420] ss:$8 sps:$4 sm:$0xff]  }
 0xee2   :  { %5309 = vmatprep.subr.bf16.mxu0 %v20740_v4  ;;  %v20761_v4 = vld [vmem:[#allocation20 + $0x434] ss:$8 sps:$4 sm:$0xff]  }
 0xee5   :  { %5310 = vmatpush1.bf16.msra.mxu0 %v20738_v36  ;;  %v20759_v36 = vld [vmem:[#allocation20 + $0x430] ss:$8 sps:$4 sm:$0xff]  }
 0xee6   :  { %5311 = vmatprep.subr.bf16.mxu0 %v20743_v23  ;;  %v20764_v23 = vld [vmem:[#allocation20 + $0x444] ss:$8 sps:$4 sm:$0xff]  }
 0xee9   :  { %5312 = vmatpush1.bf16.msra.mxu0 %v20741_v27  ;;  %v20762_v27 = vld [vmem:[#allocation20 + $0x440] ss:$8 sps:$4 sm:$0xff]  }
 0xeea   :  { %5313 = vmatprep.subr.bf16.mxu0 %v20746_v7  ;;  %v20767_v7 = vld [vmem:[#allocation20 + $0x454] ss:$8 sps:$4 sm:$0xff]  }
 0xeed   :  { %5314 = vmatpush1.bf16.msra.mxu0 %v20744_v54  ;;  %v20768_v54 = vld [vmem:[#allocation20 + $0x460] ss:$8 sps:$4 sm:$0xff]  }
 0xeee   :  { %5315 = vmatprep.subr.bf16.mxu0 %v20749_v29  ;;  %v20773_v29 = vld [vmem:[#allocation20 + $0x474] ss:$8 sps:$4 sm:$0xff]  }
 0xef1   :  { %5316 = vmatpush1.bf16.msra.mxu0 %v20747_v49  ;;  %v20771_v49 = vld [vmem:[#allocation20 + $0x470] ss:$8 sps:$4 sm:$0xff]  }
 0xef2   :  { %5328 = vmatprep.subr.bf16.mxu0 %v20752_v48  ;;  %v20776_v48 = vld [vmem:[#allocation20 + $0x484] ss:$8 sps:$4 sm:$0xff]  }
 0xef4   :  { %5318 = vmatmul.mubr.bf16.vlgmr.msra.gmra.mrb[44].mxu0 %v24376_v40 }
 0xef5   :  { %5329 = vmatpush1.bf16.msra.mxu0 %v20750_v51  ;;  %18064 = vmatprep.mubr.msk.bf16.mxu0 %vm24040_vm15, %v25249_v3  ;;  %v20774_v51 = vld [vmem:[#allocation20 + $0x480] ss:$8 sps:$4 sm:$0xff]   ;;  %v20777_v3 = vld [vmem:[#allocation20 + $0x490] ss:$8 sps:$4 sm:$0xff]  }
 0xef6   :  { %5330 = vmatprep.subr.bf16.mxu0 %v20755_v21  ;;  %v20779_v21 = vld [vmem:[#allocation20 + $0x494] ss:$8 sps:$4 sm:$0xff]  }
 0xef9   :  { %5331 = vmatpush1.bf16.msra.mxu0 %v20753_v31  ;;  %v20782_v31 = vld [vmem:[#allocation20 + $0x4a4] ss:$8 sps:$4 sm:$0xff]  }
 0xefa   :  { %5332 = vmatprep.subr.bf16.mxu0 %v20758_v10  ;;  %v20780_v10 = vld [vmem:[#allocation20 + $0x4a0] ss:$8 sps:$4 sm:$0xff]  }
 0xefd   :  { %5333 = vmatpush1.bf16.msra.mxu0 %v20756_v8  ;;  %v20785_v8 = vld [vmem:[#allocation20 + $0x4b4] ss:$8 sps:$4 sm:$0xff]  }
 0xefe   :  { %5334 = vmatprep.subr.bf16.mxu0 %v20761_v4  ;;  %v20783_v4 = vld [vmem:[#allocation20 + $0x4b0] ss:$8 sps:$4 sm:$0xff]  }
 0xf01   :  { %5335 = vmatpush1.bf16.msra.mxu0 %v20759_v36  ;;  %v20788_v36 = vld [vmem:[#allocation20 + $0x4c4] ss:$8 sps:$4 sm:$0xff]  }
 0xf02   :  { %5336 = vmatprep.subr.bf16.mxu0 %v20764_v23  ;;  %v20786_v23 = vld [vmem:[#allocation20 + $0x4c0] ss:$8 sps:$4 sm:$0xff]  }
 0xf05   :  { %5337 = vmatpush1.bf16.msra.mxu0 %v20762_v27  ;;  %v20791_v27 = vld [vmem:[#allocation20 + $0x4d4] ss:$8 sps:$4 sm:$0xff]  }
 0xf06   :  { %5338 = vmatprep.subr.bf16.mxu0 %v20767_v7  ;;  %v20789_v7 = vld [vmem:[#allocation20 + $0x4d0] ss:$8 sps:$4 sm:$0xff]  }
 0xf09   :  { %5339 = vmatpush1.bf16.msra.mxu0 %v20765_v1  ;;  %v20794_v1 = vld [vmem:[#allocation20 + $0x4e4] ss:$8 sps:$4 sm:$0xff]  }
 0xf0a   :  { %5340 = vmatprep.subr.bf16.mxu0 %v20770_v43  ;;  %v20792_v43 = vld [vmem:[#allocation20 + $0x4e0] ss:$8 sps:$4 sm:$0xff]  }
 0xf0d   :  { %5341 = vmatpush1.bf16.msra.mxu0 %v20768_v54  ;;  %v20797_v54 = vld [vmem:[#allocation20 + $0x4f4] ss:$8 sps:$4 sm:$0xff]  }
 0xf0e   :  { %5342 = vmatprep.subr.bf16.mxu0 %v20773_v29  ;;  %v20795_v29 = vld [vmem:[#allocation20 + $0x4f0] ss:$8 sps:$4 sm:$0xff]  }
 0xf11   :  { %5343 = vmatpush1.bf16.msra.mxu0 %v20771_v49  ;;  %v20800_v49 = vld [vmem:[#allocation20 + $0x504] ss:$8 sps:$4 sm:$0xff]  }
 0xf12   :  { %5344 = vmatprep.subr.bf16.mxu0 %v20776_v48  ;;  %v20798_v48 = vld [vmem:[#allocation20 + $0x500] ss:$8 sps:$4 sm:$0xff]  }
 0xf15   :  { %5345 = vmatpush1.bf16.msra.mxu0 %v20774_v51  ;;  %v20803_v51 = vld [vmem:[#allocation20 + $0x514] ss:$8 sps:$4 sm:$0xff]  }
 0xf16   :  { %5346 = vmatprep.subr.bf16.mxu0 %v20779_v21  ;;  %v20801_v21 = vld [vmem:[#allocation20 + $0x510] ss:$8 sps:$4 sm:$0xff]  }
 0xf19   :  { %5347 = vmatpush1.bf16.msra.mxu0 %v20777_v3  ;;  %v20806_v3 = vld [vmem:[#allocation20 + $0x524] ss:$8 sps:$4 sm:$0xff]  }
 0xf1a   :  { %5348 = vmatprep.subr.bf16.mxu0 %v20782_v31  ;;  %v20804_v31 = vld [vmem:[#allocation20 + $0x520] ss:$8 sps:$4 sm:$0xff]  }
 0xf1d   :  { %5349 = vmatpush1.bf16.msra.mxu0 %v20780_v10  ;;  %v20809_v10 = vld [vmem:[#allocation20 + $0x534] ss:$8 sps:$4 sm:$0xff]  }
 0xf1e   :  { %5350 = vmatprep.subr.bf16.mxu0 %v20785_v8  ;;  %v20807_v8 = vld [vmem:[#allocation20 + $0x530] ss:$8 sps:$4 sm:$0xff]  }
 0xf21   :  { %5351 = vmatpush1.bf16.msra.mxu0 %v20783_v4  ;;  %v20812_v4 = vld [vmem:[#allocation20 + $0x544] ss:$8 sps:$4 sm:$0xff]  }
 0xf22   :  { %5352 = vmatprep.subr.bf16.mxu0 %v20788_v36  ;;  %v20815_v36 = vld [vmem:[#allocation20 + $0x554] ss:$8 sps:$4 sm:$0xff]  }
 0xf25   :  { %5353 = vmatpush1.bf16.msra.mxu0 %v20786_v23  ;;  %v20821_v23 = vld [vmem:[#allocation20 + $0x574] ss:$8 sps:$4 sm:$0xff]  }
 0xf26   :  { %5354 = vmatprep.subr.bf16.mxu0 %v20791_v27  ;;  %v20819_v27 = vld [vmem:[#allocation20 + $0x570] ss:$8 sps:$4 sm:$0xff]  }
 0xf29   :  { %5355 = vmatpush1.bf16.msra.mxu0 %v20789_v7  ;;  %v20824_v7 = vld [vmem:[#allocation20 + $0x584] ss:$8 sps:$4 sm:$0xff]  }
 0xf2a   :  { %5356 = vmatprep.subr.bf16.mxu0 %v20794_v1  ;;  %v20822_v1 = vld [vmem:[#allocation20 + $0x580] ss:$8 sps:$4 sm:$0xff]  }
 0xf2d   :  { %5357 = vmatpush1.bf16.msra.mxu0 %v20792_v43  ;;  %v20827_v43 = vld [vmem:[#allocation20 + $0x594] ss:$8 sps:$4 sm:$0xff]  }
 0xf2e   :  { %5358 = vmatprep.subr.bf16.mxu0 %v20797_v54  ;;  %v20825_v54 = vld [vmem:[#allocation20 + $0x590] ss:$8 sps:$4 sm:$0xff]  }
 0xf31   :  { %5359 = vmatpush1.bf16.msra.mxu0 %v20795_v29  ;;  %v20830_v29 = vld [vmem:[#allocation20 + $0x5a4] ss:$8 sps:$4 sm:$0xff]  }
 0xf32   :  { %5371 = vmatprep.subr.bf16.mxu0 %v20800_v49  ;;  %v20828_v49 = vld [vmem:[#allocation20 + $0x5a0] ss:$8 sps:$4 sm:$0xff]  }
 0xf34   :  { %18067 = vmatmul.mubr.msk.bf16.vlgmr.msra.gmra.mrb[44].mxu0 %vm24040_vm15, %v24047_v56  ;;  %v20810_v56 = vld [vmem:[#allocation20 + $0x540] ss:$8 sps:$4 sm:$0xff]  }
 0xf35   :  { %5372 = vmatpush1.bf16.msra.mxu0 %v20798_v48  ;;  %18070 = vmatprep.mubr.msk.bf16.mxu0 %vm24040_vm15, %v18069_v0  ;;  %v20816_v0 = vld [vmem:[#allocation20 + $0x560] ss:$8 sps:$4 sm:$0xff]   ;;  %v20833_v48 = vld [vmem:[#allocation20 + $0x5b4] ss:$8 sps:$4 sm:$0xff]  }
 0xf36   :  { %5373 = vmatprep.subr.bf16.mxu0 %v20803_v51  ;;  %v20831_v51 = vld [vmem:[#allocation20 + $0x5b0] ss:$8 sps:$4 sm:$0xff]  }
 0xf39   :  { %5374 = vmatpush1.bf16.msra.mxu0 %v20801_v21  ;;  %v20836_v21 = vld [vmem:[#allocation20 + $0x5c4] ss:$8 sps:$4 sm:$0xff]  }
 0xf3a   :  { %5375 = vmatprep.subr.bf16.mxu0 %v20806_v3  ;;  %v20834_v3 = vld [vmem:[#allocation20 + $0x5c0] ss:$8 sps:$4 sm:$0xff]  }
 0xf3d   :  { %5376 = vmatpush1.bf16.msra.mxu0 %v20804_v31  ;;  %v20839_v31 = vld [vmem:[#allocation20 + $0x5d4] ss:$8 sps:$4 sm:$0xff]  }
 0xf3e   :  { %5377 = vmatprep.subr.bf16.mxu0 %v20809_v10  ;;  %v20837_v10 = vld [vmem:[#allocation20 + $0x5d0] ss:$8 sps:$4 sm:$0xff]  }
 0xf41   :  { %5378 = vmatpush1.bf16.msra.mxu0 %v20807_v8  ;;  %v20842_v8 = vld [vmem:[#allocation20 + $0x5e4] ss:$8 sps:$4 sm:$0xff]  }
 0xf42   :  { %5379 = vmatprep.subr.bf16.mxu0 %v20812_v4  ;;  %v20840_v4 = vld [vmem:[#allocation20 + $0x5e0] ss:$8 sps:$4 sm:$0xff]  }
 0xf45   :  { %5380 = vmatpush1.bf16.msra.mxu0 %v20810_v56  ;;  %v20845_v56 = vld [vmem:[#allocation20 + $0x5f4] ss:$8 sps:$4 sm:$0xff]  }
 0xf46   :  { %5381 = vmatprep.subr.bf16.mxu0 %v20815_v36  ;;  %v20843_v36 = vld [vmem:[#allocation20 + $0x5f0] ss:$8 sps:$4 sm:$0xff]  }
 0xf49   :  { %5382 = vmatpush1.bf16.msra.mxu0 %v20813_v22  ;;  %v20848_v22 = vld [vmem:[#allocation26 + $0x4] ss:$8 sps:$4 sm:$0xff]  }
 0xf4a   :  { %5383 = vmatprep.subr.bf16.mxu0 %v20818_v20  ;;  %v20846_v20 = vld [vmem:[#allocation26] ss:$8 sps:$4 sm:$0xff]  }
 0xf4d   :  { %5384 = vmatpush1.bf16.msra.mxu0 %v20816_v0  ;;  %v20851_v0 = vld [vmem:[#allocation26 + $0x14] ss:$8 sps:$4 sm:$0xff]  }
 0xf4e   :  { %5385 = vmatprep.subr.bf16.mxu0 %v20821_v23  ;;  %v20942_v23 = vld [vmem:[#allocation23 + $0x200] ss:$8 sps:$4 sm:$0xff]  }
 0xf51   :  { %5386 = vmatpush1.bf16.msra.mxu0 %v20819_v27  ;;  %v20944_v27 = vld [vmem:[#allocation23 + $0x204] ss:$8 sps:$4 sm:$0xff]  }
 0xf52   :  { %5387 = vmatprep.subr.bf16.mxu0 %v20824_v7  ;;  %v20849_v7 = vld [vmem:[#allocation26 + $0x10] ss:$8 sps:$4 sm:$0xff]   ;;  %7043 = vmatprep.subr.bf16.mxu1 %v20944_v27  ;;  %v20872_v27 = vld [vmem:[#allocation26 + $0x84] ss:$8 sps:$4 sm:$0xff]  }
 0xf53   :  { %7044 = vmatpush1.bf16.msra.mxu1 %v20942_v23  ;;  %v20867_v23 = vld [vmem:[#allocation26 + $0x70] ss:$8 sps:$4 sm:$0xff]  }
 0xf55   :  { %5388 = vmatpush1.bf16.msra.mxu0 %v20822_v1  ;;  %v20947_v1 = vld [vmem:[#allocation23 + $0x214] ss:$8 sps:$4 sm:$0xff]  }
 0xf56   :  { %5389 = vmatprep.subr.bf16.mxu0 %v20827_v43  ;;  %v20854_v43 = vld [vmem:[#allocation26 + $0x24] ss:$8 sps:$4 sm:$0xff]   ;;  %7045 = vmatprep.subr.bf16.mxu1 %v20947_v1  ;;  %v20875_v1 = vld [vmem:[#allocation26 + $0x94] ss:$8 sps:$4 sm:$0xff]  }
 0xf59   :  { %5390 = vmatpush1.bf16.msra.mxu0 %v20825_v54  ;;  %v20945_v54 = vld [vmem:[#allocation23 + $0x210] ss:$8 sps:$4 sm:$0xff]  }
 0xf5a   :  { %5391 = vmatprep.subr.bf16.mxu0 %v20830_v29  ;;  %v20950_v29 = vld [vmem:[#allocation23 + $0x224] ss:$8 sps:$4 sm:$0xff]   ;;  %7046 = vmatpush1.bf16.msra.mxu1 %v20945_v54 }
 0xf5b   :  { %7047 = vmatprep.subr.bf16.mxu1 %v20950_v29  ;;  %v20878_v54 = vld [vmem:[#allocation26 + $0xa4] ss:$8 sps:$4 sm:$0xff]   ;;  %v20876_v29 = vld [vmem:[#allocation26 + $0xa0] ss:$8 sps:$4 sm:$0xff]  }
 0xf5d   :  { %5392 = vmatpush1.bf16.msra.mxu0 %v20828_v49  ;;  %v20855_v49 = vld [vmem:[#allocation26 + $0x30] ss:$8 sps:$4 sm:$0xff]  }
 0xf5e   :  { %5393 = vmatprep.subr.bf16.mxu0 %v20833_v48  ;;  %7048 = vmatpush1.bf16.msra.mxu1 %v20948_v61  ;;  %v20951_v48 = vld [vmem:[#allocation23 + $0x230] ss:$8 sps:$4 sm:$0xff]  }
 0xf5f   :  { %v20884_v61 = vld [vmem:[#allocation26 + $0xc4] ss:$8 sps:$4 sm:$0xff]  }
 0xf61   :  { %5394 = vmatpush1.bf16.msra.mxu0 %v20831_v51  ;;  %v20956_v51 = vld [vmem:[#allocation23 + $0x244] ss:$8 sps:$4 sm:$0xff]  }
 0xf62   :  { %5395 = vmatprep.subr.bf16.mxu0 %v20836_v21  ;;  %v20858_v21 = vld [vmem:[#allocation26 + $0x40] ss:$8 sps:$4 sm:$0xff]  }
 0xf65   :  { %5396 = vmatpush1.bf16.msra.mxu0 %v20834_v3  ;;  %v20863_v3 = vld [vmem:[#allocation26 + $0x54] ss:$8 sps:$4 sm:$0xff]  }
 0xf66   :  { %5397 = vmatprep.subr.bf16.mxu0 %v20839_v31  ;;  %v20954_v31 = vld [vmem:[#allocation23 + $0x240] ss:$8 sps:$4 sm:$0xff]  }
 0xf69   :  { %5398 = vmatpush1.bf16.msra.mxu0 %v20837_v10  ;;  %v20959_v10 = vld [vmem:[#allocation23 + $0x254] ss:$8 sps:$4 sm:$0xff]  }
 0xf6a   :  { %5399 = vmatprep.subr.bf16.mxu0 %v20842_v8  ;;  %v20861_v8 = vld [vmem:[#allocation26 + $0x50] ss:$8 sps:$4 sm:$0xff]  }
 0xf6d   :  { %5400 = vmatpush1.bf16.msra.mxu0 %v20840_v4  ;;  %v20866_v4 = vld [vmem:[#allocation26 + $0x64] ss:$8 sps:$4 sm:$0xff]  }
 0xf6e   :  { %5401 = vmatprep.subr.bf16.mxu0 %v20845_v56  ;;  %v20957_v56 = vld [vmem:[#allocation23 + $0x250] ss:$8 sps:$4 sm:$0xff]  }
 0xf71   :  { %5402 = vmatpush1.bf16.msra.mxu0 %v20843_v36  ;;  %v20962_v36 = vld [vmem:[#allocation23 + $0x264] ss:$8 sps:$4 sm:$0xff]  }
 0xf72   :  { %9116 = vmatprep.subr.bf16.mxu0 %v20848_v22  ;;  %v20864_v22 = vld [vmem:[#allocation26 + $0x60] ss:$8 sps:$4 sm:$0xff]  }
 0xf74   :  { %18073 = vmatmul.mubr.msk.bf16.vlgmr.msra.gmra.mrb[44].mxu0 %vm24040_vm15, %v18072_v41  ;;  %v20953_v41 = vld [vmem:[#allocation23 + $0x234] ss:$8 sps:$4 sm:$0xff]  }
 0xf75   :  { %9117 = vmatpush1.bf16.msra.mxu0 %v20846_v20  ;;  %18638 = vmatprep.mubr.msk.bf16.mxu0 %vm24182_vm4, %v24191_v47  ;;  %v20860_v47 = vld [vmem:[#allocation26 + $0x44] ss:$8 sps:$4 sm:$0xff]   ;;  %v20869_v20 = vld [vmem:[#allocation26 + $0x74] ss:$8 sps:$4 sm:$0xff]  }
 0xf76   :  { %9118 = vmatprep.subr.bf16.mxu0 %v20851_v0  ;;  %7049 = vmatprep.subr.bf16.mxu1 %v20953_v41  ;;  %v20960_v0 = vld [vmem:[#allocation23 + $0x260] ss:$8 sps:$4 sm:$0xff]  }
 0xf77   :  { %7050 = vmatpush1.bf16.msra.mxu1 %v20951_v48  ;;  %v20882_v41 = vld [vmem:[#allocation26 + $0xc0] ss:$8 sps:$4 sm:$0xff]   ;;  %v20890_v48 = vld [vmem:[#allocation26 + $0xe4] ss:$8 sps:$4 sm:$0xff]  }
 0xf78   :  { %7051 = vmatprep.subr.bf16.mxu1 %v20956_v51  ;;  %v20888_v51 = vld [vmem:[#allocation26 + $0xe0] ss:$8 sps:$4 sm:$0xff]  }
 0xf79   :  { %9119 = vmatpush1.bf16.msra.mxu0 %v20849_v7  ;;  %v20870_v7 = vld [vmem:[#allocation26 + $0x80] ss:$8 sps:$4 sm:$0xff]  }
 0xf7a   :  { %9120 = vmatprep.subr.bf16.mxu0 %v20854_v43  ;;  %v20873_v43 = vld [vmem:[#allocation26 + $0x90] ss:$8 sps:$4 sm:$0xff]  }
 0xf7b   :  { %7052 = vmatpush1.bf16.msra.mxu1 %v20954_v31  ;;  %v20896_v31 = vld [vmem:[#allocation26 + $0x104] ss:$8 sps:$4 sm:$0xff]  }
 0xf7c   :  { %7053 = vmatprep.subr.bf16.mxu1 %v20959_v10  ;;  %v20894_v10 = vld [vmem:[#allocation26 + $0x100] ss:$8 sps:$4 sm:$0xff]  }
 0xf7d   :  { %9121 = vmatpush1.bf16.msra.mxu0 %v20852_v19  ;;  %v20881_v19 = vld [vmem:[#allocation26 + $0xb4] ss:$8 sps:$4 sm:$0xff]  }
 0xf7e   :  { %9122 = vmatprep.subr.bf16.mxu0 %v20857_v53  ;;  %v20879_v53 = vld [vmem:[#allocation26 + $0xb0] ss:$8 sps:$4 sm:$0xff]  }
 0xf7f   :  { %7054 = vmatpush1.bf16.msra.mxu1 %v20957_v56  ;;  %v20902_v56 = vld [vmem:[#allocation26 + $0x124] ss:$8 sps:$4 sm:$0xff]  }
 0xf80   :  { %7055 = vmatprep.subr.bf16.mxu1 %v20962_v36  ;;  %v20900_v36 = vld [vmem:[#allocation26 + $0x120] ss:$8 sps:$4 sm:$0xff]  }
 0xf81   :  { %9123 = vmatpush1.bf16.msra.mxu0 %v20855_v49  ;;  %v20887_v49 = vld [vmem:[#allocation26 + $0xd4] ss:$8 sps:$4 sm:$0xff]  }
 0xf82   :  { %9124 = vmatprep.subr.bf16.mxu0 %v20860_v47  ;;  %v20885_v47 = vld [vmem:[#allocation26 + $0xd0] ss:$8 sps:$4 sm:$0xff]  }
 0xf83   :  { %7056 = vmatpush1.bf16.msra.mxu1 %v20960_v0  ;;  %v20908_v0 = vld [vmem:[#allocation26 + $0x144] ss:$8 sps:$4 sm:$0xff]  }
 0xf85   :  { %9125 = vmatpush1.bf16.msra.mxu0 %v20858_v21  ;;  %v20893_v21 = vld [vmem:[#allocation26 + $0xf4] ss:$8 sps:$4 sm:$0xff]  }
 0xf86   :  { %9126 = vmatprep.subr.bf16.mxu0 %v20863_v3  ;;  %v20891_v3 = vld [vmem:[#allocation26 + $0xf0] ss:$8 sps:$4 sm:$0xff]  }
 0xf89   :  { %9127 = vmatpush1.bf16.msra.mxu0 %v20861_v8  ;;  %v20899_v8 = vld [vmem:[#allocation26 + $0x114] ss:$8 sps:$4 sm:$0xff]  }
 0xf8a   :  { %9128 = vmatprep.subr.bf16.mxu0 %v20866_v4  ;;  %v20897_v4 = vld [vmem:[#allocation26 + $0x110] ss:$8 sps:$4 sm:$0xff]  }
 0xf8d   :  { %9129 = vmatpush1.bf16.msra.mxu0 %v20864_v22  ;;  %v20905_v22 = vld [vmem:[#allocation26 + $0x134] ss:$8 sps:$4 sm:$0xff]  }
 0xf8e   :  { %9130 = vmatprep.subr.bf16.mxu0 %v20869_v20  ;;  %v20903_v20 = vld [vmem:[#allocation26 + $0x130] ss:$8 sps:$4 sm:$0xff]  }
 0xf91   :  { %9131 = vmatpush1.bf16.msra.mxu0 %v20867_v23  ;;  %v20911_v23 = vld [vmem:[#allocation26 + $0x154] ss:$8 sps:$4 sm:$0xff]  }
 0xf92   :  { %9132 = vmatprep.subr.bf16.mxu0 %v20872_v27  ;;  %v20914_v27 = vld [vmem:[#allocation26 + $0x164] ss:$8 sps:$4 sm:$0xff]  }
 0xf95   :  { %9133 = vmatpush1.bf16.msra.mxu0 %v20870_v7  ;;  %v20917_v7 = vld [vmem:[#allocation26 + $0x174] ss:$8 sps:$4 sm:$0xff]  }
 0xf96   :  { %9134 = vmatprep.subr.bf16.mxu0 %v20875_v1  ;;  %v20965_v1 = vld [vmem:[#allocation23 + $0x274] ss:$8 sps:$4 sm:$0xff]  }
 0xf97   :  { %7057 = vmatprep.subr.bf16.mxu1 %v20965_v1  ;;  %v20984_v1 = vld [vmem:[#allocation23 + $0x2e0] ss:$8 sps:$4 sm:$0xff]  }
 0xf99   :  { %9135 = vmatpush1.bf16.msra.mxu0 %v20873_v43  ;;  %v20963_v43 = vld [vmem:[#allocation23 + $0x270] ss:$8 sps:$4 sm:$0xff]  }
 0xf9a   :  { %9136 = vmatprep.subr.bf16.mxu0 %v20878_v54  ;;  %v20915_v54 = vld [vmem:[#allocation26 + $0x170] ss:$8 sps:$4 sm:$0xff]   ;;  %7058 = vmatpush1.bf16.msra.mxu1 %v20963_v43  ;;  %v20936_v43 = vld [vmem:[#allocation26 + $0x1e0] ss:$8 sps:$4 sm:$0xff]  }
 0xf9d   :  { %9137 = vmatpush1.bf16.msra.mxu0 %v20876_v29  ;;  %v20920_v29 = vld [vmem:[#allocation26 + $0x184] ss:$8 sps:$4 sm:$0xff]  }
 0xf9e   :  { %9138 = vmatprep.subr.bf16.mxu0 %v20881_v19  ;;  %v20968_v19 = vld [vmem:[#allocation23 + $0x284] ss:$8 sps:$4 sm:$0xff]  }
 0xf9f   :  { %7059 = vmatprep.subr.bf16.mxu1 %v20968_v19  ;;  %v20941_v19 = vld [vmem:[#allocation26 + $0x1f4] ss:$8 sps:$4 sm:$0xff]  }
 0xfa1   :  { %9139 = vmatpush1.bf16.msra.mxu0 %v20879_v53  ;;  %v20966_v53 = vld [vmem:[#allocation23 + $0x280] ss:$8 sps:$4 sm:$0xff]  }
 0xfa2   :  { %9140 = vmatprep.subr.bf16.mxu0 %v20884_v61  ;;  %v20918_v61 = vld [vmem:[#allocation26 + $0x180] ss:$8 sps:$4 sm:$0xff]   ;;  %7060 = vmatpush1.bf16.msra.mxu1 %v20966_v53 }
 0xfa3   :  { %v20992_v53 = vld [vmem:[#allocation23 + $0x304] ss:$8 sps:$4 sm:$0xff]  }
 0xfa5   :  { %9141 = vmatpush1.bf16.msra.mxu0 %v20882_v41  ;;  %v20923_v41 = vld [vmem:[#allocation26 + $0x194] ss:$8 sps:$4 sm:$0xff]  }
 0xfa6   :  { %9142 = vmatprep.subr.bf16.mxu0 %v20887_v49  ;;  %v20971_v49 = vld [vmem:[#allocation23 + $0x294] ss:$8 sps:$4 sm:$0xff]  }
 0xfa7   :  { %7061 = vmatprep.subr.bf16.mxu1 %v20971_v49 }
 0xfa9   :  { %9143 = vmatpush1.bf16.msra.mxu0 %v20885_v47  ;;  %v20969_v47 = vld [vmem:[#allocation23 + $0x290] ss:$8 sps:$4 sm:$0xff]  }
 0xfaa   :  { %9144 = vmatprep.subr.bf16.mxu0 %v20890_v48  ;;  %v20921_v48 = vld [vmem:[#allocation26 + $0x190] ss:$8 sps:$4 sm:$0xff]   ;;  %7062 = vmatpush1.bf16.msra.mxu1 %v20969_v47 }
 0xfad   :  { %9145 = vmatpush1.bf16.msra.mxu0 %v20888_v51  ;;  %v20926_v51 = vld [vmem:[#allocation26 + $0x1a4] ss:$8 sps:$4 sm:$0xff]  }
 0xfae   :  { %9146 = vmatprep.subr.bf16.mxu0 %v20893_v21  ;;  %v20974_v21 = vld [vmem:[#allocation23 + $0x2a4] ss:$8 sps:$4 sm:$0xff]  }
 0xfaf   :  { %7063 = vmatprep.subr.bf16.mxu1 %v20974_v21 }
 0xfb1   :  { %9147 = vmatpush1.bf16.msra.mxu0 %v20891_v3  ;;  %v20972_v3 = vld [vmem:[#allocation23 + $0x2a0] ss:$8 sps:$4 sm:$0xff]  }
 0xfb2   :  { %9159 = vmatprep.subr.bf16.mxu0 %v20896_v31  ;;  %v20924_v31 = vld [vmem:[#allocation26 + $0x1a0] ss:$8 sps:$4 sm:$0xff]   ;;  %7064 = vmatpush1.bf16.msra.mxu1 %v20972_v3 }
 0xfb4   :  { %18641 = vmatmul.mubr.msk.bf16.vlgmr.msra.gmra.mrb[48].mxu0 %vm24182_vm4, %v24158_v9  ;;  %v20906_v9 = vld [vmem:[#allocation26 + $0x140] ss:$8 sps:$4 sm:$0xff]  }
 0xfb5   :  { %9160 = vmatpush1.bf16.msra.mxu0 %v20894_v10  ;;  %18644 = vmatprep.mubr.msk.bf16.mxu0 %vm24182_vm4, %v18643_v30  ;;  %v20912_v30 = vld [vmem:[#allocation26 + $0x160] ss:$8 sps:$4 sm:$0xff]   ;;  %v20929_v10 = vld [vmem:[#allocation26 + $0x1b4] ss:$8 sps:$4 sm:$0xff]  }
 0xfb6   :  { %9161 = vmatprep.subr.bf16.mxu0 %v20899_v8  ;;  %v20977_v8 = vld [vmem:[#allocation23 + $0x2b4] ss:$8 sps:$4 sm:$0xff]  }
 0xfb7   :  { %7065 = vmatprep.subr.bf16.mxu1 %v20977_v8 }
 0xfb9   :  { %9162 = vmatpush1.bf16.msra.mxu0 %v20897_v4  ;;  %v20975_v4 = vld [vmem:[#allocation23 + $0x2b0] ss:$8 sps:$4 sm:$0xff]  }
 0xfba   :  { %9163 = vmatprep.subr.bf16.mxu0 %v20902_v56  ;;  %v20927_v56 = vld [vmem:[#allocation26 + $0x1b0] ss:$8 sps:$4 sm:$0xff]   ;;  %7066 = vmatpush1.bf16.msra.mxu1 %v20975_v4 }
 0xfbd   :  { %9164 = vmatpush1.bf16.msra.mxu0 %v20900_v36  ;;  %v20932_v36 = vld [vmem:[#allocation26 + $0x1c4] ss:$8 sps:$4 sm:$0xff]  }
 0xfbe   :  { %9165 = vmatprep.subr.bf16.mxu0 %v20905_v22  ;;  %v20980_v22 = vld [vmem:[#allocation23 + $0x2c4] ss:$8 sps:$4 sm:$0xff]  }
 0xfbf   :  { %7067 = vmatprep.subr.bf16.mxu1 %v20980_v22 }
 0xfc1   :  { %9166 = vmatpush1.bf16.msra.mxu0 %v20903_v20  ;;  %v20978_v20 = vld [vmem:[#allocation23 + $0x2c0] ss:$8 sps:$4 sm:$0xff]  }
 0xfc2   :  { %9167 = vmatprep.subr.bf16.mxu0 %v20908_v0  ;;  %v20930_v0 = vld [vmem:[#allocation26 + $0x1c0] ss:$8 sps:$4 sm:$0xff]   ;;  %7068 = vmatpush1.bf16.msra.mxu1 %v20978_v20 }
 0xfc5   :  { %9168 = vmatpush1.bf16.msra.mxu0 %v20906_v9  ;;  %v20935_v9 = vld [vmem:[#allocation26 + $0x1d4] ss:$8 sps:$4 sm:$0xff]  }
 0xfc6   :  { %9169 = vmatprep.subr.bf16.mxu0 %v20911_v23  ;;  %v20983_v23 = vld [vmem:[#allocation23 + $0x2d4] ss:$8 sps:$4 sm:$0xff]  }
 0xfc7   :  { %7069 = vmatprep.subr.bf16.mxu1 %v20983_v23 }
 0xfc9   :  { %9170 = vmatpush1.bf16.msra.mxu0 %v20909_v26  ;;  %v20981_v26 = vld [vmem:[#allocation23 + $0x2d0] ss:$8 sps:$4 sm:$0xff]  }
 0xfca   :  { %9171 = vmatprep.subr.bf16.mxu0 %v20914_v27  ;;  %v20933_v27 = vld [vmem:[#allocation26 + $0x1d0] ss:$8 sps:$4 sm:$0xff]   ;;  %7070 = vmatpush1.bf16.msra.mxu1 %v20981_v26 }
 0xfcd   :  { %9172 = vmatpush1.bf16.msra.mxu0 %v20912_v30  ;;  %v20938_v30 = vld [vmem:[#allocation26 + $0x1e4] ss:$8 sps:$4 sm:$0xff]  }
 0xfce   :  { %9173 = vmatprep.subr.bf16.mxu0 %v20917_v7  ;;  %v20986_v7 = vld [vmem:[#allocation23 + $0x2e4] ss:$8 sps:$4 sm:$0xff]  }
 0xfcf   :  { %7071 = vmatprep.subr.bf16.mxu1 %v20986_v7 }
 0xfd0   :  { %7072 = vmatpush1.bf16.msra.mxu1 %v20984_v1 }
 0xfd1   :  { %9174 = vmatpush1.bf16.msra.mxu0 %v20915_v54  ;;  %v20987_v54 = vld [vmem:[#allocation23 + $0x2f0] ss:$8 sps:$4 sm:$0xff]  }
 0xfd2   :  { %9175 = vmatprep.subr.bf16.mxu0 %v20920_v29  ;;  %v20989_v29 = vld [vmem:[#allocation23 + $0x2f4] ss:$8 sps:$4 sm:$0xff]  }
 0xfd3   :  { %7073 = vmatprep.subr.bf16.mxu1 %v20989_v29 }
 0xfd4   :  { %7074 = vmatpush1.bf16.msra.mxu1 %v20987_v54 }
 0xfd5   :  { %9176 = vmatpush1.bf16.msra.mxu0 %v20918_v61  ;;  %v20939_v61 = vld [vmem:[#allocation26 + $0x1f0] ss:$8 sps:$4 sm:$0xff]   ;;  %7086 = vmatprep.subr.bf16.mxu1 %v20992_v53 }
 0xfd6   :  { %9177 = vmatprep.subr.bf16.mxu0 %v20923_v41  ;;  %v4184_v41 = vld [vmem:[#allocation22] sm:$0x3] }
 0xfd7   :  { %v4193_v49 = vrot.slane %v4184_v41, %v23926_v16  ;;  %v4189_v4 = vrot.slane %v4184_v41, %v23947_v42  ;;  %v20990_v41 = vld [vmem:[#allocation23 + $0x300] ss:$8 sps:$4 sm:$0xff]  }
 0xfd9   :  { %9178 = vmatpush1.bf16.msra.mxu0 %v20921_v48 }
 0xfda   :  { %9179 = vmatprep.subr.bf16.mxu0 %v20926_v51 }
 0xfdd   :  { %9180 = vmatpush1.bf16.msra.mxu0 %v20924_v31 }
 0xfde   :  { %9181 = vmatprep.subr.bf16.mxu0 %v20929_v10 }
 0xfe1   :  { %9182 = vmatpush1.bf16.msra.mxu0 %v20927_v56 }
 0xfe2   :  { %9183 = vmatprep.subr.bf16.mxu0 %v20932_v36 }
 0xfe5   :  { %9184 = vmatpush1.bf16.msra.mxu0 %v20930_v0 }
 0xfe6   :  { %9185 = vmatprep.subr.bf16.mxu0 %v20935_v9 }
 0xfe9   :  { %9186 = vmatpush1.bf16.msra.mxu0 %v20933_v27 }
 0xfea   :  { %9187 = vmatprep.subr.bf16.mxu0 %v20938_v30 }
 0xfed   :  { %9188 = vmatpush1.bf16.msra.mxu0 %v20936_v43 }
 0xfee   :  { %9189 = vmatprep.subr.bf16.mxu0 %v20941_v19 }
 0xff1   :  { %9190 = vmatpush1.bf16.msra.mxu0 %v20939_v61 }
 0xff4   :  { %18647 = vmatmul.mubr.msk.bf16.vlgmr.msra.gmra.mrb[48].mxu0 %vm24182_vm4, %v18646_v33 }
0x1047   :  { %v5405_v47 = vpop.f32.mrb[44].mxu0 }
0x1048   :  { %v5407_v48 = vpop.f32.mrb[45].mxu0  ;;  %v20050_v56 = vadd.f32 %v5405_v47, %v4189_v4 }
0x1049   :  { %v20051_v51 = vadd.f32 %v5407_v48, %v4193_v49  ;;  %v5409_v21 = vpop.f32.mrb[46].mxu0 }
0x104a   :  { %v5411_v3 = vpop.f32.mrb[47].mxu0  ;;  %v20052_v36 = vadd.f32 %v5409_v21, %v4189_v4 }
0x104b   :  { %v18074_v31 = vmul.f32 -1.442695, %v20051_v51  ;;  %v20053_v10 = vadd.f32 %v5411_v3, %v4193_v49  ;;  %v20995_v3 = vld [vmem:[#allocation23 + $0x314] ss:$8 sps:$4 sm:$0xff]  }
0x104d   :  { %22906 = vpow2.f32 %v18074_v31  ;;  %v18075_v8 = vmul.f32 -1.442695, %v20053_v10 }
0x104f   :  { %22908 = vpow2.f32 %v18075_v8 }
0x1050   :  { %22910 = vtanh.f32 %v20050_v56 }
0x1057   :  { %v22907_v25 = vpop.eup %22906 }
0x1058   :  { %v5422_v22 = vadd.f32 1.0, %v22907_v25  ;;  %v20993_v25 = vld [vmem:[#allocation23 + $0x310] ss:$8 sps:$4 sm:$0xff]  }
0x1059   :  { %v22909_v33 = vpop.eup %22908 }
0x105a   :  { %22912 = vrcp.f32 %v5422_v22  ;;  %v5423_v20 = vadd.f32 1.0, %v22909_v33  ;;  %v22911_v0 = vpop.eup %22910  ;;  %v20996_v22 = vld [vmem:[#allocation23 + $0x320] ss:$8 sps:$4 sm:$0xff]   ;;  %v21001_v33 = vld [vmem:[#allocation23 + $0x334] ss:$8 sps:$4 sm:$0xff]  }
0x105b   :  { %22914 = vtanh.f32 %v20052_v36  ;;  %v20998_v36 = vld [vmem:[#allocation23 + $0x324] ss:$8 sps:$4 sm:$0xff]  }
0x105c   :  { %22916 = vrcp.f32 %v5423_v20  ;;  %v20999_v20 = vld [vmem:[#allocation23 + $0x330] ss:$8 sps:$4 sm:$0xff]  }
0x1064   :  { %v22913_v9 = vpop.eup %22912 }
0x1065   :  { %v22915_v23 = vpop.eup %22914  ;;  %v5428_v26 = vmul.f32 %v22913_v9, %v22911_v0  ;;  %v21004_v0 = vld [vmem:[#allocation23 + $0x344] ss:$8 sps:$4 sm:$0xff]   ;;  %v21002_v9 = vld [vmem:[#allocation23 + $0x340] ss:$8 sps:$4 sm:$0xff]  }
0x1066   :  { %v22917_v27 = vpop.eup %22916 }
0x1067   :  { %v5429_v30 = vmul.f32 %v22917_v27, %v22915_v23  ;;  %v5435_v7 = vrot.slane %v5428_v26, 6  ;;  %v7321_v1 = vrot.slane %v5428_v26, 4  ;;  %v5473_v29 = vrot.slane %v5428_v26, 2  ;;  %v21007_v23 = vld [vmem:[#allocation23 + $0x354] ss:$8 sps:$4 sm:$0xff]  }
0x1068   :  { %v21008_v27 = vld [vmem:[#allocation23 + $0x360] ss:$8 sps:$4 sm:$0xff]  }
0x1069   :  { %v24490_v43 = vpack.c.bf16 %v5429_v30, %v5428_v26  ;;  %v5442_v54 = vrot.slane %v5429_v30, 6  ;;  %v5474_v19 = vrot.slane %v5429_v30, 2  ;;  %v5455_v53 = vsel %vm1135_vm9, 0.0, %v5435_v7  ;;  %v21010_v26 = vld [vmem:[#allocation23 + $0x364] ss:$8 sps:$4 sm:$0xff]  }
0x106a   :  { %v7327_v61 = vrot.slane %v5429_v30, 4  ;;  %v24501_v51 = vsel %vm608_vm2, 0.0, %v7321_v1  ;;  %v21013_v30 = vld [vmem:[#allocation23 + $0x374] ss:$8 sps:$4 sm:$0xff]  }
0x106b   :  { %v5443_v49 = vsel %vm1135_vm9, %v5435_v7, %v5442_v54  ;;  %v24495_v47 = vsel %vm1158_vm8, %v5473_v29, %v5474_v19  ;;  %v24498_v48 = vsel %vm1158_vm8, %v5474_v19, 0.0  ;;  %v21011_v7 = vld [vmem:[#allocation23 + $0x370] ss:$8 sps:$4 sm:$0xff]   ;;  %v21014_v54 = vld [vmem:[#allocation23 + $0x380] ss:$8 sps:$4 sm:$0xff]  }
0x106c   :  { %v18329_v21 = vpack.c.bf16 %v5443_v49, %v5455_v53  ;;  %v18344_v31 = vpack.c.bf16 %v24498_v48, %v24495_v47  ;;  %v24506_v10 = vsel %vm608_vm2, %v7321_v1, %v7327_v61  ;;  %v24509_v8 = vsel %vm608_vm2, %v7327_v61, 0.0  ;;  %v21016_v1 = vld [vmem:[#allocation23 + $0x384] ss:$8 sps:$4 sm:$0xff]   ;;  %v21019_v29 = vld [vmem:[#allocation23 + $0x394] ss:$8 sps:$4 sm:$0xff]  }
0x106d   :  { %v18652_v4 = vpack.c.bf16 %v24506_v10, %v24501_v51  ;;  %v18670_v56 = vpack.c.bf16 %v24509_v8, %v24506_v10  ;;  %v21017_v19 = vld [vmem:[#allocation23 + $0x390] ss:$8 sps:$4 sm:$0xff]   ;;  %v21022_v53 = vld [vmem:[#allocation23 + $0x3a4] ss:$8 sps:$4 sm:$0xff]   ;;  %v21020_v61 = vld [vmem:[#allocation23 + $0x3a0] ss:$8 sps:$4 sm:$0xff]  }
0x106e   :  { %18330 = vmatmul.mubr.msk.bf16.vlgmr.msra.gmra.mrb[44].mxu1 %vm24112_vm0, %v18329_v21  ;;  %v21023_v49 = vld [vmem:[#allocation23 + $0x3b0] ss:$8 sps:$4 sm:$0xff]   ;;  %v21028_v21 = vld [vmem:[#allocation23 + $0x3c4] ss:$8 sps:$4 sm:$0xff]   ;;  %vm25256_vm0 = vmmov %vm25244_vm10 }
0x106f   :  { %7087 = vmatpush1.bf16.msra.mxu1 %v20990_v41  ;;  %7118 = vmatprep.mubr.bf16.mxu1 %v24376_v40  ;;  %v21025_v41 = vld [vmem:[#allocation23 + $0x3b4] ss:$8 sps:$4 sm:$0xff]   ;;  %v21317_v47 = vld [vmem:[#allocation26 + $0x220] ss:$8 sps:$4 sm:$0xff]   ;;  %v21319_v48 = vld [vmem:[#allocation26 + $0x224] ss:$8 sps:$4 sm:$0xff]  }
0x1070   :  { %7088 = vmatprep.subr.bf16.mxu1 %v20995_v3  ;;  %v21026_v3 = vld [vmem:[#allocation23 + $0x3c0] ss:$8 sps:$4 sm:$0xff]   ;;  %v21703_v10 = vld [vmem:[#allocation29 + $0x274] ss:$60 sps:$4 sm:$0xff]   ;;  %v21706_v8 = vld [vmem:[#allocation29 + $0x2ec] ss:$60 sps:$4 sm:$0xff]  }
0x1071   :  { %v21415_v51 = vld [vmem:[#allocation26 + $0x354] ss:$8 sps:$4 sm:$0xff]   ;;  %vm25257_vm1 = vmmov %vm25256_vm0 }
0x1072   :  { %vm25259_vm5 = vmmov %vm25256_vm0 }
0x1073   :  { %7089 = vmatpush1.bf16.msra.mxu1 %v20993_v25  ;;  %v21031_v25 = vld [vmem:[#allocation23 + $0x3d4] ss:$8 sps:$4 sm:$0xff]   ;;  %vm25262_vm7 = vmmov %vm25256_vm0 }
0x1074   :  { %7090 = vmatprep.subr.bf16.mxu1 %v20998_v36  ;;  %v21029_v36 = vld [vmem:[#allocation23 + $0x3d0] ss:$8 sps:$4 sm:$0xff]   ;;  %vm25263_vm8 = vmmov %vm25256_vm0 }
0x1077   :  { %7091 = vmatpush1.bf16.msra.mxu1 %v20996_v22  ;;  %v21034_v22 = vld [vmem:[#allocation23 + $0x3e4] ss:$8 sps:$4 sm:$0xff]  }
0x1078   :  { %7092 = vmatprep.subr.bf16.mxu1 %v21001_v33  ;;  %v21032_v33 = vld [vmem:[#allocation23 + $0x3e0] ss:$8 sps:$4 sm:$0xff]  }
0x107b   :  { %7093 = vmatpush1.bf16.msra.mxu1 %v20999_v20  ;;  %v21037_v20 = vld [vmem:[#allocation23 + $0x3f4] ss:$8 sps:$4 sm:$0xff]  }
0x107c   :  { %7094 = vmatprep.subr.bf16.mxu1 %v21004_v0  ;;  %v21035_v0 = vld [vmem:[#allocation23 + $0x3f0] ss:$8 sps:$4 sm:$0xff]  }
0x107f   :  { %7095 = vmatpush1.bf16.msra.mxu1 %v21002_v9  ;;  %v21040_v9 = vld [vmem:[#allocation23 + $0x404] ss:$8 sps:$4 sm:$0xff]  }
0x1080   :  { %7096 = vmatprep.subr.bf16.mxu1 %v21007_v23  ;;  %v21038_v23 = vld [vmem:[#allocation23 + $0x400] ss:$8 sps:$4 sm:$0xff]  }
0x1083   :  { %7097 = vmatpush1.bf16.msra.mxu1 %v21005_v39  ;;  %v21043_v39 = vld [vmem:[#allocation23 + $0x414] ss:$8 sps:$4 sm:$0xff]  }
0x1084   :  { %7098 = vmatprep.subr.bf16.mxu1 %v21010_v26  ;;  %v21041_v26 = vld [vmem:[#allocation23 + $0x410] ss:$8 sps:$4 sm:$0xff]  }
0x1087   :  { %7099 = vmatpush1.bf16.msra.mxu1 %v21008_v27  ;;  %v21046_v27 = vld [vmem:[#allocation23 + $0x424] ss:$8 sps:$4 sm:$0xff]  }
0x1088   :  { %7100 = vmatprep.subr.bf16.mxu1 %v21013_v30  ;;  %v21044_v30 = vld [vmem:[#allocation23 + $0x420] ss:$8 sps:$4 sm:$0xff]  }
0x108b   :  { %7101 = vmatpush1.bf16.msra.mxu1 %v21011_v7  ;;  %v21049_v7 = vld [vmem:[#allocation23 + $0x434] ss:$8 sps:$4 sm:$0xff]  }
0x108c   :  { %7102 = vmatprep.subr.bf16.mxu1 %v21016_v1  ;;  %v21047_v1 = vld [vmem:[#allocation23 + $0x430] ss:$8 sps:$4 sm:$0xff]  }
0x108f   :  { %7103 = vmatpush1.bf16.msra.mxu1 %v21014_v54  ;;  %v21052_v54 = vld [vmem:[#allocation23 + $0x444] ss:$8 sps:$4 sm:$0xff]  }
0x1090   :  { %7104 = vmatprep.subr.bf16.mxu1 %v21019_v29  ;;  %v21050_v29 = vld [vmem:[#allocation23 + $0x440] ss:$8 sps:$4 sm:$0xff]  }
0x1093   :  { %7105 = vmatpush1.bf16.msra.mxu1 %v21017_v19  ;;  %v21055_v19 = vld [vmem:[#allocation23 + $0x454] ss:$8 sps:$4 sm:$0xff]  }
0x1094   :  { %7106 = vmatprep.subr.bf16.mxu1 %v21022_v53  ;;  %v21053_v53 = vld [vmem:[#allocation23 + $0x450] ss:$8 sps:$4 sm:$0xff]  }
0x1097   :  { %7107 = vmatpush1.bf16.msra.mxu1 %v21020_v61  ;;  %v21058_v61 = vld [vmem:[#allocation23 + $0x464] ss:$8 sps:$4 sm:$0xff]  }
0x1098   :  { %7108 = vmatprep.subr.bf16.mxu1 %v21025_v41  ;;  %v21056_v41 = vld [vmem:[#allocation23 + $0x460] ss:$8 sps:$4 sm:$0xff]  }
0x109b   :  { %7109 = vmatpush1.bf16.msra.mxu1 %v21023_v49  ;;  %v21061_v49 = vld [vmem:[#allocation23 + $0x474] ss:$8 sps:$4 sm:$0xff]  }
0x109c   :  { %7110 = vmatprep.subr.bf16.mxu1 %v21028_v21  ;;  %v21059_v21 = vld [vmem:[#allocation23 + $0x470] ss:$8 sps:$4 sm:$0xff]  }
0x109f   :  { %7111 = vmatpush1.bf16.msra.mxu1 %v21026_v3  ;;  %v21064_v3 = vld [vmem:[#allocation23 + $0x484] ss:$8 sps:$4 sm:$0xff]  }
0x10a0   :  { %7112 = vmatprep.subr.bf16.mxu1 %v21031_v25  ;;  %v21062_v25 = vld [vmem:[#allocation23 + $0x480] ss:$8 sps:$4 sm:$0xff]  }
0x10a3   :  { %7113 = vmatpush1.bf16.msra.mxu1 %v21029_v36  ;;  %v21067_v36 = vld [vmem:[#allocation23 + $0x494] ss:$8 sps:$4 sm:$0xff]  }
0x10a4   :  { %7114 = vmatprep.subr.bf16.mxu1 %v21034_v22  ;;  %v21065_v22 = vld [vmem:[#allocation23 + $0x490] ss:$8 sps:$4 sm:$0xff]  }
0x10a7   :  { %7115 = vmatpush1.bf16.msra.mxu1 %v21032_v33  ;;  %v21070_v33 = vld [vmem:[#allocation23 + $0x4a4] ss:$8 sps:$4 sm:$0xff]  }
0x10a8   :  { %7116 = vmatprep.subr.bf16.mxu1 %v21037_v20  ;;  %v21068_v20 = vld [vmem:[#allocation23 + $0x4a0] ss:$8 sps:$4 sm:$0xff]  }
0x10ab   :  { %7117 = vmatpush1.bf16.msra.mxu1 %v21035_v0  ;;  %v21073_v0 = vld [vmem:[#allocation23 + $0x4b4] ss:$8 sps:$4 sm:$0xff]  }
0x10ac   :  { %7129 = vmatprep.subr.bf16.mxu1 %v21040_v9  ;;  %v21071_v9 = vld [vmem:[#allocation23 + $0x4b0] ss:$8 sps:$4 sm:$0xff]  }
0x10ae   :  { %7119 = vmatmul.mubr.bf16.vlgmr.msra.gmra.mrb[44].mxu1 %v24170_v24 }
0x10af   :  { %7130 = vmatpush1.bf16.msra.mxu1 %v21038_v23  ;;  %7161 = vmatprep.mubr.bf16.mxu1 %v24490_v43  ;;  %v21076_v23 = vld [vmem:[#allocation23 + $0x4c4] ss:$8 sps:$4 sm:$0xff]  }
0x10b0   :  { %7131 = vmatprep.subr.bf16.mxu1 %v21043_v39  ;;  %v21074_v39 = vld [vmem:[#allocation23 + $0x4c0] ss:$8 sps:$4 sm:$0xff]  }
0x10b3   :  { %7132 = vmatpush1.bf16.msra.mxu1 %v21041_v26  ;;  %v21079_v26 = vld [vmem:[#allocation23 + $0x4d4] ss:$8 sps:$4 sm:$0xff]  }
0x10b4   :  { %7133 = vmatprep.subr.bf16.mxu1 %v21046_v27  ;;  %v21077_v27 = vld [vmem:[#allocation23 + $0x4d0] ss:$8 sps:$4 sm:$0xff]  }
0x10b7   :  { %7134 = vmatpush1.bf16.msra.mxu1 %v21044_v30  ;;  %v21082_v30 = vld [vmem:[#allocation23 + $0x4e4] ss:$8 sps:$4 sm:$0xff]  }
0x10b8   :  { %7135 = vmatprep.subr.bf16.mxu1 %v21049_v7  ;;  %v21080_v7 = vld [vmem:[#allocation23 + $0x4e0] ss:$8 sps:$4 sm:$0xff]  }
0x10bb   :  { %7136 = vmatpush1.bf16.msra.mxu1 %v21047_v1  ;;  %v21085_v1 = vld [vmem:[#allocation23 + $0x4f4] ss:$8 sps:$4 sm:$0xff]  }
0x10bc   :  { %7137 = vmatprep.subr.bf16.mxu1 %v21052_v54  ;;  %v21083_v54 = vld [vmem:[#allocation23 + $0x4f0] ss:$8 sps:$4 sm:$0xff]  }
0x10bf   :  { %7138 = vmatpush1.bf16.msra.mxu1 %v21050_v29  ;;  %v21088_v29 = vld [vmem:[#allocation23 + $0x504] ss:$8 sps:$4 sm:$0xff]  }
0x10c0   :  { %7139 = vmatprep.subr.bf16.mxu1 %v21055_v19  ;;  %v21086_v19 = vld [vmem:[#allocation23 + $0x500] ss:$8 sps:$4 sm:$0xff]  }
0x10c3   :  { %7140 = vmatpush1.bf16.msra.mxu1 %v21053_v53  ;;  %v21091_v53 = vld [vmem:[#allocation23 + $0x514] ss:$8 sps:$4 sm:$0xff]  }
0x10c4   :  { %7141 = vmatprep.subr.bf16.mxu1 %v21058_v61  ;;  %v25250_v61 = vpack.c.bf16 %v24229_v5, %v24219_v50  ;;  %v21101_v50 = vld [vmem:[#allocation23 + $0x550] ss:$8 sps:$4 sm:$0xff]   ;;  %v21106_v5 = vld [vmem:[#allocation23 + $0x564] ss:$8 sps:$4 sm:$0xff]  }
0x10c7   :  { %7142 = vmatpush1.bf16.msra.mxu1 %v21056_v41  ;;  %v21089_v41 = vld [vmem:[#allocation23 + $0x510] ss:$8 sps:$4 sm:$0xff]  }
0x10c8   :  { %7143 = vmatprep.subr.bf16.mxu1 %v21061_v49  ;;  %v21094_v49 = vld [vmem:[#allocation23 + $0x524] ss:$8 sps:$4 sm:$0xff]  }
0x10cb   :  { %7144 = vmatpush1.bf16.msra.mxu1 %v21059_v21  ;;  %v21092_v21 = vld [vmem:[#allocation23 + $0x520] ss:$8 sps:$4 sm:$0xff]  }
0x10cc   :  { %7145 = vmatprep.subr.bf16.mxu1 %v21064_v3  ;;  %v21097_v3 = vld [vmem:[#allocation23 + $0x534] ss:$8 sps:$4 sm:$0xff]  }
0x10cf   :  { %7146 = vmatpush1.bf16.msra.mxu1 %v21062_v25  ;;  %v21095_v25 = vld [vmem:[#allocation23 + $0x530] ss:$8 sps:$4 sm:$0xff]  }
0x10d0   :  { %7147 = vmatprep.subr.bf16.mxu1 %v21067_v36  ;;  %v21100_v36 = vld [vmem:[#allocation23 + $0x544] ss:$8 sps:$4 sm:$0xff]  }
0x10d3   :  { %7148 = vmatpush1.bf16.msra.mxu1 %v21065_v22  ;;  %v21098_v22 = vld [vmem:[#allocation23 + $0x540] ss:$8 sps:$4 sm:$0xff]  }
0x10d4   :  { %7149 = vmatprep.subr.bf16.mxu1 %v21070_v33  ;;  %v21103_v33 = vld [vmem:[#allocation23 + $0x554] ss:$8 sps:$4 sm:$0xff]  }
0x10d7   :  { %7150 = vmatpush1.bf16.msra.mxu1 %v21068_v20  ;;  %v21104_v20 = vld [vmem:[#allocation23 + $0x560] ss:$8 sps:$4 sm:$0xff]  }
0x10d8   :  { %7151 = vmatprep.subr.bf16.mxu1 %v21073_v0  ;;  %v21109_v0 = vld [vmem:[#allocation23 + $0x574] ss:$8 sps:$4 sm:$0xff]  }
0x10db   :  { %7152 = vmatpush1.bf16.msra.mxu1 %v21071_v9  ;;  %v21107_v9 = vld [vmem:[#allocation23 + $0x570] ss:$8 sps:$4 sm:$0xff]  }
0x10dc   :  { %7153 = vmatprep.subr.bf16.mxu1 %v21076_v23  ;;  %v21112_v23 = vld [vmem:[#allocation23 + $0x584] ss:$8 sps:$4 sm:$0xff]  }
0x10df   :  { %7154 = vmatpush1.bf16.msra.mxu1 %v21074_v39  ;;  %v21110_v39 = vld [vmem:[#allocation23 + $0x580] ss:$8 sps:$4 sm:$0xff]  }
0x10e0   :  { %7155 = vmatprep.subr.bf16.mxu1 %v21079_v26  ;;  %v21115_v26 = vld [vmem:[#allocation23 + $0x594] ss:$8 sps:$4 sm:$0xff]  }
0x10e3   :  { %7156 = vmatpush1.bf16.msra.mxu1 %v21077_v27  ;;  %v21113_v27 = vld [vmem:[#allocation23 + $0x590] ss:$8 sps:$4 sm:$0xff]  }
0x10e4   :  { %7157 = vmatprep.subr.bf16.mxu1 %v21082_v30  ;;  %v21118_v30 = vld [vmem:[#allocation23 + $0x5a4] ss:$8 sps:$4 sm:$0xff]  }
0x10e7   :  { %7158 = vmatpush1.bf16.msra.mxu1 %v21080_v7  ;;  %v21116_v7 = vld [vmem:[#allocation23 + $0x5a0] ss:$8 sps:$4 sm:$0xff]  }
0x10e8   :  { %7159 = vmatprep.subr.bf16.mxu1 %v21085_v1  ;;  %v21121_v1 = vld [vmem:[#allocation23 + $0x5b4] ss:$8 sps:$4 sm:$0xff]  }
0x10eb   :  { %7160 = vmatpush1.bf16.msra.mxu1 %v21083_v54  ;;  %v21119_v54 = vld [vmem:[#allocation23 + $0x5b0] ss:$8 sps:$4 sm:$0xff]  }
0x10ec   :  { %7172 = vmatprep.subr.bf16.mxu1 %v21088_v29  ;;  %v21124_v29 = vld [vmem:[#allocation23 + $0x5c4] ss:$8 sps:$4 sm:$0xff]  }
0x10ee   :  { %7162 = vmatmul.mubr.bf16.vlgmr.msra.gmra.mrb[44].mxu1 %v24383_v11 }
0x10ef   :  { %7173 = vmatpush1.bf16.msra.mxu1 %v21086_v19  ;;  %18333 = vmatprep.mubr.msk.bf16.mxu1 %vm24054_vm6, %v25250_v61  ;;  %v21122_v19 = vld [vmem:[#allocation23 + $0x5c0] ss:$8 sps:$4 sm:$0xff]   ;;  %v21125_v61 = vld [vmem:[#allocation23 + $0x5d0] ss:$8 sps:$4 sm:$0xff]  }
0x10f0   :  { %7174 = vmatprep.subr.bf16.mxu1 %v21091_v53  ;;  %v21127_v53 = vld [vmem:[#allocation23 + $0x5d4] ss:$8 sps:$4 sm:$0xff]  }
0x10f3   :  { %7175 = vmatpush1.bf16.msra.mxu1 %v21089_v41  ;;  %v21130_v41 = vld [vmem:[#allocation23 + $0x5e4] ss:$8 sps:$4 sm:$0xff]  }
0x10f4   :  { %7176 = vmatprep.subr.bf16.mxu1 %v21094_v49  ;;  %v21128_v49 = vld [vmem:[#allocation23 + $0x5e0] ss:$8 sps:$4 sm:$0xff]  }
0x10f7   :  { %7177 = vmatpush1.bf16.msra.mxu1 %v21092_v21  ;;  %v21133_v21 = vld [vmem:[#allocation23 + $0x5f4] ss:$8 sps:$4 sm:$0xff]  }
0x10f8   :  { %7178 = vmatprep.subr.bf16.mxu1 %v21097_v3  ;;  %v21131_v3 = vld [vmem:[#allocation23 + $0x5f0] ss:$8 sps:$4 sm:$0xff]  }
0x10fb   :  { %7179 = vmatpush1.bf16.msra.mxu1 %v21095_v25  ;;  %v21136_v25 = vld [vmem:[#allocation23 + $0x604] ss:$8 sps:$4 sm:$0xff]  }
0x10fc   :  { %7180 = vmatprep.subr.bf16.mxu1 %v21100_v36  ;;  %v21134_v36 = vld [vmem:[#allocation23 + $0x600] ss:$8 sps:$4 sm:$0xff]  }
0x10ff   :  { %7181 = vmatpush1.bf16.msra.mxu1 %v21098_v22  ;;  %v21139_v22 = vld [vmem:[#allocation23 + $0x614] ss:$8 sps:$4 sm:$0xff]  }
0x1100   :  { %7182 = vmatprep.subr.bf16.mxu1 %v21103_v33  ;;  %v21137_v33 = vld [vmem:[#allocation23 + $0x610] ss:$8 sps:$4 sm:$0xff]  }
0x1103   :  { %7183 = vmatpush1.bf16.msra.mxu1 %v21101_v50  ;;  %v21142_v50 = vld [vmem:[#allocation23 + $0x624] ss:$8 sps:$4 sm:$0xff]  }
0x1104   :  { %7184 = vmatprep.subr.bf16.mxu1 %v21106_v5  ;;  %v21140_v5 = vld [vmem:[#allocation23 + $0x620] ss:$8 sps:$4 sm:$0xff]  }
0x1107   :  { %7185 = vmatpush1.bf16.msra.mxu1 %v21104_v20  ;;  %v21145_v20 = vld [vmem:[#allocation23 + $0x634] ss:$8 sps:$4 sm:$0xff]  }
0x1108   :  { %7186 = vmatprep.subr.bf16.mxu1 %v21109_v0  ;;  %v21143_v0 = vld [vmem:[#allocation23 + $0x630] ss:$8 sps:$4 sm:$0xff]  }
0x110b   :  { %7187 = vmatpush1.bf16.msra.mxu1 %v21107_v9  ;;  %v21148_v9 = vld [vmem:[#allocation23 + $0x644] ss:$8 sps:$4 sm:$0xff]  }
0x110c   :  { %7188 = vmatprep.subr.bf16.mxu1 %v21112_v23  ;;  %v21151_v23 = vld [vmem:[#allocation23 + $0x654] ss:$8 sps:$4 sm:$0xff]  }
0x110f   :  { %7189 = vmatpush1.bf16.msra.mxu1 %v21110_v39  ;;  %v21157_v39 = vld [vmem:[#allocation23 + $0x674] ss:$8 sps:$4 sm:$0xff]  }
0x1110   :  { %7190 = vmatprep.subr.bf16.mxu1 %v21115_v26  ;;  %v21155_v26 = vld [vmem:[#allocation23 + $0x670] ss:$8 sps:$4 sm:$0xff]  }
0x1113   :  { %7191 = vmatpush1.bf16.msra.mxu1 %v21113_v27  ;;  %v21160_v27 = vld [vmem:[#allocation23 + $0x684] ss:$8 sps:$4 sm:$0xff]  }
0x1114   :  { %7192 = vmatprep.subr.bf16.mxu1 %v21118_v30  ;;  %v21158_v30 = vld [vmem:[#allocation23 + $0x680] ss:$8 sps:$4 sm:$0xff]  }
0x1117   :  { %7193 = vmatpush1.bf16.msra.mxu1 %v21116_v7  ;;  %v21163_v7 = vld [vmem:[#allocation23 + $0x694] ss:$8 sps:$4 sm:$0xff]  }
0x1118   :  { %7194 = vmatprep.subr.bf16.mxu1 %v21121_v1  ;;  %v21161_v1 = vld [vmem:[#allocation23 + $0x690] ss:$8 sps:$4 sm:$0xff]  }
0x111b   :  { %7195 = vmatpush1.bf16.msra.mxu1 %v21119_v54  ;;  %v21166_v54 = vld [vmem:[#allocation23 + $0x6a4] ss:$8 sps:$4 sm:$0xff]  }
0x111c   :  { %7196 = vmatprep.subr.bf16.mxu1 %v21124_v29  ;;  %v21164_v29 = vld [vmem:[#allocation23 + $0x6a0] ss:$8 sps:$4 sm:$0xff]  }
0x111f   :  { %7197 = vmatpush1.bf16.msra.mxu1 %v21122_v19  ;;  %v21169_v19 = vld [vmem:[#allocation23 + $0x6b4] ss:$8 sps:$4 sm:$0xff]  }
0x1120   :  { %7198 = vmatprep.subr.bf16.mxu1 %v21127_v53  ;;  %v21167_v53 = vld [vmem:[#allocation23 + $0x6b0] ss:$8 sps:$4 sm:$0xff]  }
0x1123   :  { %7199 = vmatpush1.bf16.msra.mxu1 %v21125_v61  ;;  %v21172_v61 = vld [vmem:[#allocation23 + $0x6c4] ss:$8 sps:$4 sm:$0xff]  }
0x1124   :  { %7200 = vmatprep.subr.bf16.mxu1 %v21130_v41  ;;  %v21170_v41 = vld [vmem:[#allocation23 + $0x6c0] ss:$8 sps:$4 sm:$0xff]  }
0x1127   :  { %7201 = vmatpush1.bf16.msra.mxu1 %v21128_v49  ;;  %v21175_v49 = vld [vmem:[#allocation23 + $0x6d4] ss:$8 sps:$4 sm:$0xff]  }
0x1128   :  { %7202 = vmatprep.subr.bf16.mxu1 %v21133_v21  ;;  %v21173_v21 = vld [vmem:[#allocation23 + $0x6d0] ss:$8 sps:$4 sm:$0xff]  }
0x112b   :  { %7203 = vmatpush1.bf16.msra.mxu1 %v21131_v3  ;;  %v21178_v3 = vld [vmem:[#allocation23 + $0x6e4] ss:$8 sps:$4 sm:$0xff]  }
0x112c   :  { %7215 = vmatprep.subr.bf16.mxu1 %v21136_v25  ;;  %v21176_v25 = vld [vmem:[#allocation23 + $0x6e0] ss:$8 sps:$4 sm:$0xff]  }
0x112e   :  { %18336 = vmatmul.mubr.msk.bf16.vlgmr.msra.gmra.mrb[44].mxu1 %vm24054_vm6, %v24058_v59  ;;  %v21146_v59 = vld [vmem:[#allocation23 + $0x640] ss:$8 sps:$4 sm:$0xff]  }
0x112f   :  { %7216 = vmatpush1.bf16.msra.mxu1 %v21134_v36  ;;  %18339 = vmatprep.mubr.msk.bf16.mxu1 %vm24054_vm6, %v18338_v2  ;;  %v21152_v2 = vld [vmem:[#allocation23 + $0x660] ss:$8 sps:$4 sm:$0xff]   ;;  %v21181_v36 = vld [vmem:[#allocation23 + $0x6f4] ss:$8 sps:$4 sm:$0xff]  }
0x1130   :  { %7217 = vmatprep.subr.bf16.mxu1 %v21139_v22  ;;  %v21179_v22 = vld [vmem:[#allocation23 + $0x6f0] ss:$8 sps:$4 sm:$0xff]  }
0x1133   :  { %7218 = vmatpush1.bf16.msra.mxu1 %v21137_v33  ;;  %v21184_v33 = vld [vmem:[#allocation23 + $0x704] ss:$8 sps:$4 sm:$0xff]  }
0x1134   :  { %7219 = vmatprep.subr.bf16.mxu1 %v21142_v50  ;;  %v21182_v50 = vld [vmem:[#allocation23 + $0x700] ss:$8 sps:$4 sm:$0xff]  }
0x1137   :  { %7220 = vmatpush1.bf16.msra.mxu1 %v21140_v5  ;;  %v21187_v5 = vld [vmem:[#allocation23 + $0x714] ss:$8 sps:$4 sm:$0xff]  }
0x1138   :  { %7221 = vmatprep.subr.bf16.mxu1 %v21145_v20  ;;  %v21185_v20 = vld [vmem:[#allocation23 + $0x710] ss:$8 sps:$4 sm:$0xff]  }
0x113b   :  { %7222 = vmatpush1.bf16.msra.mxu1 %v21143_v0  ;;  %v21190_v0 = vld [vmem:[#allocation23 + $0x724] ss:$8 sps:$4 sm:$0xff]  }
0x113c   :  { %7223 = vmatprep.subr.bf16.mxu1 %v21148_v9  ;;  %v21188_v9 = vld [vmem:[#allocation23 + $0x720] ss:$8 sps:$4 sm:$0xff]  }
0x113f   :  { %7224 = vmatpush1.bf16.msra.mxu1 %v21146_v59  ;;  %v21193_v59 = vld [vmem:[#allocation23 + $0x734] ss:$8 sps:$4 sm:$0xff]  }
0x1140   :  { %7225 = vmatprep.subr.bf16.mxu1 %v21151_v23  ;;  %v21191_v23 = vld [vmem:[#allocation23 + $0x730] ss:$8 sps:$4 sm:$0xff]  }
0x1143   :  { %7226 = vmatpush1.bf16.msra.mxu1 %v21149_v57  ;;  %v21196_v57 = vld [vmem:[#allocation23 + $0x744] ss:$8 sps:$4 sm:$0xff]  }
0x1144   :  { %7227 = vmatprep.subr.bf16.mxu1 %v21154_v52  ;;  %v21194_v52 = vld [vmem:[#allocation23 + $0x740] ss:$8 sps:$4 sm:$0xff]  }
0x1147   :  { %7228 = vmatpush1.bf16.msra.mxu1 %v21152_v2  ;;  %v21200_v2 = vld [vmem:[#allocation23 + $0x760] ss:$8 sps:$4 sm:$0xff]  }
0x1148   :  { %7229 = vmatprep.subr.bf16.mxu1 %v21157_v39  ;;  %v21205_v39 = vld [vmem:[#allocation23 + $0x774] ss:$8 sps:$4 sm:$0xff]  }
0x114b   :  { %7230 = vmatpush1.bf16.msra.mxu1 %v21155_v26  ;;  %v21203_v26 = vld [vmem:[#allocation23 + $0x770] ss:$8 sps:$4 sm:$0xff]  }
0x114c   :  { %7231 = vmatprep.subr.bf16.mxu1 %v21160_v27  ;;  %v21208_v27 = vld [vmem:[#allocation29 + $0x4] ss:$60 sps:$4 sm:$0xff]  }
0x114f   :  { %7232 = vmatpush1.bf16.msra.mxu1 %v21158_v30  ;;  %v21206_v30 = vld [vmem:[#allocation29] ss:$60 sps:$4 sm:$0xff]  }
0x1150   :  { %7233 = vmatprep.subr.bf16.mxu1 %v21163_v7  ;;  %v21211_v7 = vld [vmem:[#allocation29 + $0x7c] ss:$60 sps:$4 sm:$0xff]  }
0x1153   :  { %7234 = vmatpush1.bf16.msra.mxu1 %v21161_v1  ;;  %v21209_v1 = vld [vmem:[#allocation29 + $0x78] ss:$60 sps:$4 sm:$0xff]  }
0x1154   :  { %7235 = vmatprep.subr.bf16.mxu1 %v21166_v54  ;;  %v21305_v54 = vld [vmem:[#allocation26 + $0x200] ss:$8 sps:$4 sm:$0xff]  }
0x1157   :  { %7236 = vmatpush1.bf16.msra.mxu1 %v21164_v29  ;;  %v21307_v29 = vld [vmem:[#allocation26 + $0x204] ss:$8 sps:$4 sm:$0xff]  }
0x1158   :  { %7237 = vmatprep.subr.bf16.mxu1 %v21169_v19  ;;  %v21214_v19 = vld [vmem:[#allocation29 + $0xf4] ss:$60 sps:$4 sm:$0xff]   ;;  %9202 = vmatprep.subr.bf16.mxu0 %v21307_v29 }
0x1159   :  { %9203 = vmatpush1.bf16.msra.mxu0 %v21305_v54  ;;  %v21247_v54 = vld [vmem:[#allocation29 + $0x61c] ss:$60 sps:$4 sm:$0xff]  }
0x115a   :  { %v21245_v29 = vld [vmem:[#allocation29 + $0x618] ss:$60 sps:$4 sm:$0xff]  }
0x115b   :  { %7238 = vmatpush1.bf16.msra.mxu1 %v21167_v53  ;;  %v21212_v53 = vld [vmem:[#allocation29 + $0xf0] ss:$60 sps:$4 sm:$0xff]  }
0x115c   :  { %7239 = vmatprep.subr.bf16.mxu1 %v21172_v61  ;;  %v21311_v61 = vld [vmem:[#allocation26 + $0x210] ss:$8 sps:$4 sm:$0xff]  }
0x115f   :  { %7240 = vmatpush1.bf16.msra.mxu1 %v21170_v41  ;;  %v21313_v41 = vld [vmem:[#allocation26 + $0x214] ss:$8 sps:$4 sm:$0xff]  }
0x1160   :  { %7241 = vmatprep.subr.bf16.mxu1 %v21175_v49  ;;  %v21217_v49 = vld [vmem:[#allocation29 + $0x16c] ss:$60 sps:$4 sm:$0xff]   ;;  %9204 = vmatprep.subr.bf16.mxu0 %v21313_v41 }
0x1161   :  { %9205 = vmatpush1.bf16.msra.mxu0 %v21311_v61  ;;  %v21253_v61 = vld [vmem:[#allocation29 + $0x70c] ss:$60 sps:$4 sm:$0xff]  }
0x1162   :  { %9206 = vmatprep.subr.bf16.mxu0 %v21319_v48  ;;  %v21251_v41 = vld [vmem:[#allocation29 + $0x708] ss:$60 sps:$4 sm:$0xff]   ;;  %v21257_v48 = vld [vmem:[#allocation29 + $0x7f8] ss:$60 sps:$4 sm:$0xff]  }
0x1163   :  { %7242 = vmatpush1.bf16.msra.mxu1 %v21173_v21  ;;  %v21218_v21 = vld [vmem:[#allocation29 + $0x1e0] ss:$60 sps:$4 sm:$0xff]  }
0x1164   :  { %7243 = vmatprep.subr.bf16.mxu1 %v21178_v3  ;;  %v21323_v3 = vld [vmem:[#allocation26 + $0x230] ss:$8 sps:$4 sm:$0xff]  }
0x1165   :  { %9207 = vmatpush1.bf16.msra.mxu0 %v21317_v47  ;;  %v21259_v47 = vld [vmem:[#allocation29 + $0x7fc] ss:$60 sps:$4 sm:$0xff]  }
0x1167   :  { %7244 = vmatpush1.bf16.msra.mxu1 %v21176_v25  ;;  %v21325_v25 = vld [vmem:[#allocation26 + $0x234] ss:$8 sps:$4 sm:$0xff]  }
0x1168   :  { %7245 = vmatprep.subr.bf16.mxu1 %v21181_v36  ;;  %v21223_v36 = vld [vmem:[#allocation29 + $0x25c] ss:$60 sps:$4 sm:$0xff]   ;;  %9208 = vmatprep.subr.bf16.mxu0 %v21325_v25  ;;  %v21263_v25 = vld [vmem:[#allocation29 + $0x8e8] ss:$60 sps:$4 sm:$0xff]  }
0x1169   :  { %9209 = vmatpush1.bf16.msra.mxu0 %v21323_v3  ;;  %v21265_v3 = vld [vmem:[#allocation29 + $0x8ec] ss:$60 sps:$4 sm:$0xff]  }
0x116b   :  { %7246 = vmatpush1.bf16.msra.mxu1 %v21179_v22  ;;  %v21221_v22 = vld [vmem:[#allocation29 + $0x258] ss:$60 sps:$4 sm:$0xff]  }
0x116c   :  { %7258 = vmatprep.subr.bf16.mxu1 %v21184_v33  ;;  %v21329_v33 = vld [vmem:[#allocation26 + $0x240] ss:$8 sps:$4 sm:$0xff]  }
0x116e   :  { %18342 = vmatmul.mubr.msk.bf16.vlgmr.msra.gmra.mrb[44].mxu1 %vm24054_vm6, %v18341_v13  ;;  %v21202_v13 = vld [vmem:[#allocation23 + $0x764] ss:$8 sps:$4 sm:$0xff]  }
0x116f   :  { %7259 = vmatpush1.bf16.msra.mxu1 %v21182_v50  ;;  %7290 = vmatprep.mubr.bf16.mxu1 %v25241_v18  ;;  %v21331_v50 = vld [vmem:[#allocation26 + $0x244] ss:$8 sps:$4 sm:$0xff]  }
0x1170   :  { %7260 = vmatprep.subr.bf16.mxu1 %v21187_v5  ;;  %v21226_v5 = vld [vmem:[#allocation29 + $0x2d4] ss:$60 sps:$4 sm:$0xff]   ;;  %9210 = vmatprep.subr.bf16.mxu0 %v21331_v50 }
0x1171   :  { %9211 = vmatpush1.bf16.msra.mxu0 %v21329_v33  ;;  %v21271_v33 = vld [vmem:[#allocation29 + $0x9dc] ss:$60 sps:$4 sm:$0xff]  }
0x1172   :  { %v21269_v50 = vld [vmem:[#allocation29 + $0x9d8] ss:$60 sps:$4 sm:$0xff]  }
0x1173   :  { %7261 = vmatpush1.bf16.msra.mxu1 %v21185_v20  ;;  %v21224_v20 = vld [vmem:[#allocation29 + $0x2d0] ss:$60 sps:$4 sm:$0xff]  }
0x1174   :  { %7262 = vmatprep.subr.bf16.mxu1 %v21190_v0  ;;  %v21335_v0 = vld [vmem:[#allocation26 + $0x250] ss:$8 sps:$4 sm:$0xff]  }
0x1177   :  { %7263 = vmatpush1.bf16.msra.mxu1 %v21188_v9  ;;  %v21337_v9 = vld [vmem:[#allocation26 + $0x254] ss:$8 sps:$4 sm:$0xff]  }
0x1178   :  { %7264 = vmatprep.subr.bf16.mxu1 %v21193_v59  ;;  %v21229_v59 = vld [vmem:[#allocation29 + $0x34c] ss:$60 sps:$4 sm:$0xff]   ;;  %9212 = vmatprep.subr.bf16.mxu0 %v21337_v9  ;;  %v21349_v9 = vld [vmem:[#allocation26 + $0x274] ss:$8 sps:$4 sm:$0xff]  }
0x1179   :  { %9213 = vmatpush1.bf16.msra.mxu0 %v21335_v0  ;;  %v21277_v0 = vld [vmem:[#allocation29 + $0xacc] ss:$60 sps:$4 sm:$0xff]  }
0x117b   :  { %7265 = vmatpush1.bf16.msra.mxu1 %v21191_v23  ;;  %v21227_v23 = vld [vmem:[#allocation29 + $0x348] ss:$60 sps:$4 sm:$0xff]  }
0x117c   :  { %7266 = vmatprep.subr.bf16.mxu1 %v21196_v57  ;;  %v21341_v57 = vld [vmem:[#allocation26 + $0x260] ss:$8 sps:$4 sm:$0xff]  }
0x117f   :  { %7267 = vmatpush1.bf16.msra.mxu1 %v21194_v52  ;;  %v21343_v52 = vld [vmem:[#allocation26 + $0x264] ss:$8 sps:$4 sm:$0xff]  }
0x1180   :  { %7268 = vmatprep.subr.bf16.mxu1 %v21199_v45  ;;  %v21232_v45 = vld [vmem:[#allocation29 + $0x3c4] ss:$60 sps:$4 sm:$0xff]   ;;  %9214 = vmatprep.subr.bf16.mxu0 %v21343_v52 }
0x1181   :  { %9215 = vmatpush1.bf16.msra.mxu0 %v21341_v57  ;;  %v21280_v57 = vld [vmem:[#allocation29 + $0xb44] ss:$60 sps:$4 sm:$0xff]  }
0x1182   :  { %9216 = vmatprep.subr.bf16.mxu0 %v21349_v9  ;;  %v21355_v52 = vld [vmem:[#allocation26 + $0x284] ss:$8 sps:$4 sm:$0xff]  }
0x1183   :  { %7269 = vmatpush1.bf16.msra.mxu1 %v21197_v35  ;;  %v21230_v35 = vld [vmem:[#allocation29 + $0x3c0] ss:$60 sps:$4 sm:$0xff]  }
0x1184   :  { %7270 = vmatprep.subr.bf16.mxu1 %v21202_v13  ;;  %v21235_v13 = vld [vmem:[#allocation29 + $0x43c] ss:$60 sps:$4 sm:$0xff]   ;;  %v21400_v9 = vld [vmem:[#allocation26 + $0x304] ss:$8 sps:$4 sm:$0xff]  }
0x1187   :  { %7271 = vmatpush1.bf16.msra.mxu1 %v21200_v2  ;;  %v21233_v2 = vld [vmem:[#allocation29 + $0x438] ss:$60 sps:$4 sm:$0xff]  }
0x1188   :  { %7272 = vmatprep.subr.bf16.mxu1 %v21205_v39  ;;  %v21238_v39 = vld [vmem:[#allocation29 + $0x4b4] ss:$60 sps:$4 sm:$0xff]  }
0x118b   :  { %7273 = vmatpush1.bf16.msra.mxu1 %v21203_v26  ;;  %v21236_v26 = vld [vmem:[#allocation29 + $0x4b0] ss:$60 sps:$4 sm:$0xff]  }
0x118c   :  { %14751 = vmatprep.subr.bf16.mxu1 %v21208_v27  ;;  %v21241_v27 = vld [vmem:[#allocation29 + $0x52c] ss:$60 sps:$4 sm:$0xff]  }
0x118e   :  { %18345 = vmatmul.mubr.msk.bf16.vlgmr.msra.gmra.mrb[44].mxu1 %vm24054_vm6, %v18344_v31  ;;  %v21220_v31 = vld [vmem:[#allocation29 + $0x1e4] ss:$60 sps:$4 sm:$0xff]  }
0x118f   :  { %14752 = vmatpush1.bf16.msra.mxu1 %v21206_v30  ;;  %14783 = vmatprep.mubr.bf16.mxu1 %v24170_v24  ;;  %v21239_v30 = vld [vmem:[#allocation29 + $0x528] ss:$60 sps:$4 sm:$0xff]  }
0x1190   :  { %14753 = vmatprep.subr.bf16.mxu1 %v21211_v7  ;;  %v21244_v7 = vld [vmem:[#allocation29 + $0x5a4] ss:$60 sps:$4 sm:$0xff]  }
0x1193   :  { %14754 = vmatpush1.bf16.msra.mxu1 %v21209_v1  ;;  %v21242_v1 = vld [vmem:[#allocation29 + $0x5a0] ss:$60 sps:$4 sm:$0xff]  }
0x1194   :  { %14755 = vmatprep.subr.bf16.mxu1 %v21214_v19  ;;  %v21250_v19 = vld [vmem:[#allocation29 + $0x694] ss:$60 sps:$4 sm:$0xff]  }
0x1197   :  { %14756 = vmatpush1.bf16.msra.mxu1 %v21212_v53  ;;  %v21248_v53 = vld [vmem:[#allocation29 + $0x690] ss:$60 sps:$4 sm:$0xff]  }
0x1198   :  { %14757 = vmatprep.subr.bf16.mxu1 %v21217_v49  ;;  %v21256_v49 = vld [vmem:[#allocation29 + $0x784] ss:$60 sps:$4 sm:$0xff]  }
0x119b   :  { %14758 = vmatpush1.bf16.msra.mxu1 %v21215_v58  ;;  %v21254_v58 = vld [vmem:[#allocation29 + $0x780] ss:$60 sps:$4 sm:$0xff]  }
0x119c   :  { %14759 = vmatprep.subr.bf16.mxu1 %v21220_v31  ;;  %v21262_v31 = vld [vmem:[#allocation29 + $0x874] ss:$60 sps:$4 sm:$0xff]  }
0x119f   :  { %14760 = vmatpush1.bf16.msra.mxu1 %v21218_v21  ;;  %v21260_v21 = vld [vmem:[#allocation29 + $0x870] ss:$60 sps:$4 sm:$0xff]  }
0x11a0   :  { %14761 = vmatprep.subr.bf16.mxu1 %v21223_v36  ;;  %v21268_v36 = vld [vmem:[#allocation29 + $0x964] ss:$60 sps:$4 sm:$0xff]  }
0x11a3   :  { %14762 = vmatpush1.bf16.msra.mxu1 %v21221_v22  ;;  %v21266_v22 = vld [vmem:[#allocation29 + $0x960] ss:$60 sps:$4 sm:$0xff]  }
0x11a4   :  { %14763 = vmatprep.subr.bf16.mxu1 %v21226_v5  ;;  %v21274_v5 = vld [vmem:[#allocation29 + $0xa54] ss:$60 sps:$4 sm:$0xff]  }
0x11a7   :  { %14764 = vmatpush1.bf16.msra.mxu1 %v21224_v20  ;;  %v21272_v20 = vld [vmem:[#allocation29 + $0xa50] ss:$60 sps:$4 sm:$0xff]  }
0x11a8   :  { %14765 = vmatprep.subr.bf16.mxu1 %v21229_v59  ;;  %v21347_v59 = vld [vmem:[#allocation26 + $0x270] ss:$8 sps:$4 sm:$0xff]  }
0x11a9   :  { %9217 = vmatpush1.bf16.msra.mxu0 %v21347_v59  ;;  %v21302_v59 = vld [vmem:[#allocation29 + $0xf00] ss:$60 sps:$4 sm:$0xff]  }
0x11aa   :  { %9218 = vmatprep.subr.bf16.mxu0 %v21355_v52  ;;  %v21316_v52 = vld [vmem:[#allocation29 + $0xff4] ss:$60 sps:$4 sm:$0xff]  }
0x11ab   :  { %14766 = vmatpush1.bf16.msra.mxu1 %v21227_v23  ;;  %v21275_v23 = vld [vmem:[#allocation29 + $0xac8] ss:$60 sps:$4 sm:$0xff]  }
0x11ac   :  { %14767 = vmatprep.subr.bf16.mxu1 %v21232_v45  ;;  %v21353_v45 = vld [vmem:[#allocation26 + $0x280] ss:$8 sps:$4 sm:$0xff]  }
0x11ad   :  { %9219 = vmatpush1.bf16.msra.mxu0 %v21353_v45  ;;  %v21314_v45 = vld [vmem:[#allocation29 + $0xff0] ss:$60 sps:$4 sm:$0xff]  }
0x11af   :  { %14768 = vmatpush1.bf16.msra.mxu1 %v21230_v35  ;;  %v21278_v35 = vld [vmem:[#allocation29 + $0xb40] ss:$60 sps:$4 sm:$0xff]  }
0x11b0   :  { %14769 = vmatprep.subr.bf16.mxu1 %v21235_v13  ;;  %v21283_v13 = vld [vmem:[#allocation29 + $0xbbc] ss:$60 sps:$4 sm:$0xff]  }
0x11b3   :  { %14770 = vmatpush1.bf16.msra.mxu1 %v21233_v2  ;;  %v21361_v2 = vld [vmem:[#allocation26 + $0x294] ss:$8 sps:$4 sm:$0xff]  }
0x11b4   :  { %14771 = vmatprep.subr.bf16.mxu1 %v21238_v39  ;;  %v21359_v39 = vld [vmem:[#allocation26 + $0x290] ss:$8 sps:$4 sm:$0xff]   ;;  %9220 = vmatprep.subr.bf16.mxu0 %v21361_v2  ;;  %v21328_v2 = vld [vmem:[#allocation29 + $0x10e4] ss:$60 sps:$4 sm:$0xff]  }
0x11b5   :  { %9221 = vmatpush1.bf16.msra.mxu0 %v21359_v39  ;;  %v21326_v39 = vld [vmem:[#allocation29 + $0x10e0] ss:$60 sps:$4 sm:$0xff]  }
0x11b7   :  { %14772 = vmatpush1.bf16.msra.mxu1 %v21236_v26  ;;  %v21281_v26 = vld [vmem:[#allocation29 + $0xbb8] ss:$60 sps:$4 sm:$0xff]  }
0x11b8   :  { %14773 = vmatprep.subr.bf16.mxu1 %v21241_v27  ;;  %v21286_v27 = vld [vmem:[#allocation29 + $0xc34] ss:$60 sps:$4 sm:$0xff]  }
0x11bb   :  { %14774 = vmatpush1.bf16.msra.mxu1 %v21239_v30  ;;  %v21367_v30 = vld [vmem:[#allocation26 + $0x2a4] ss:$8 sps:$4 sm:$0xff]  }
0x11bc   :  { %14775 = vmatprep.subr.bf16.mxu1 %v21244_v7  ;;  %v21365_v7 = vld [vmem:[#allocation26 + $0x2a0] ss:$8 sps:$4 sm:$0xff]   ;;  %9222 = vmatprep.subr.bf16.mxu0 %v21367_v30  ;;  %v21340_v30 = vld [vmem:[#allocation29 + $0x11d4] ss:$60 sps:$4 sm:$0xff]  }
0x11bd   :  { %9223 = vmatpush1.bf16.msra.mxu0 %v21365_v7  ;;  %v21338_v7 = vld [vmem:[#allocation29 + $0x11d0] ss:$60 sps:$4 sm:$0xff]  }
0x11bf   :  { %14776 = vmatpush1.bf16.msra.mxu1 %v21242_v1  ;;  %v21284_v1 = vld [vmem:[#allocation29 + $0xc30] ss:$60 sps:$4 sm:$0xff]  }
0x11c0   :  { %14777 = vmatprep.subr.bf16.mxu1 %v21247_v54  ;;  %v21289_v54 = vld [vmem:[#allocation29 + $0xcac] ss:$60 sps:$4 sm:$0xff]  }
0x11c3   :  { %14778 = vmatpush1.bf16.msra.mxu1 %v21245_v29  ;;  %v21373_v29 = vld [vmem:[#allocation26 + $0x2b4] ss:$8 sps:$4 sm:$0xff]  }
0x11c4   :  { %14779 = vmatprep.subr.bf16.mxu1 %v21250_v19  ;;  %v21371_v19 = vld [vmem:[#allocation26 + $0x2b0] ss:$8 sps:$4 sm:$0xff]   ;;  %9224 = vmatprep.subr.bf16.mxu0 %v21373_v29  ;;  %v21352_v29 = vld [vmem:[#allocation29 + $0x12c4] ss:$60 sps:$4 sm:$0xff]  }
0x11c5   :  { %9225 = vmatpush1.bf16.msra.mxu0 %v21371_v19  ;;  %v21350_v19 = vld [vmem:[#allocation29 + $0x12c0] ss:$60 sps:$4 sm:$0xff]  }
0x11c7   :  { %14780 = vmatpush1.bf16.msra.mxu1 %v21248_v53  ;;  %v21287_v53 = vld [vmem:[#allocation29 + $0xca8] ss:$60 sps:$4 sm:$0xff]  }
0x11c8   :  { %14781 = vmatprep.subr.bf16.mxu1 %v21253_v61  ;;  %v21292_v61 = vld [vmem:[#allocation29 + $0xd24] ss:$60 sps:$4 sm:$0xff]  }
0x11cb   :  { %14782 = vmatpush1.bf16.msra.mxu1 %v21251_v41  ;;  %v21379_v41 = vld [vmem:[#allocation26 + $0x2c4] ss:$8 sps:$4 sm:$0xff]  }
0x11cc   :  { %14794 = vmatprep.subr.bf16.mxu1 %v21256_v49  ;;  %v21377_v49 = vld [vmem:[#allocation26 + $0x2c0] ss:$8 sps:$4 sm:$0xff]   ;;  %9226 = vmatprep.subr.bf16.mxu0 %v21379_v41  ;;  %v21364_v41 = vld [vmem:[#allocation29 + $0x13b4] ss:$60 sps:$4 sm:$0xff]  }
0x11cd   :  { %9227 = vmatpush1.bf16.msra.mxu0 %v21377_v49  ;;  %v21362_v49 = vld [vmem:[#allocation29 + $0x13b0] ss:$60 sps:$4 sm:$0xff]  }
0x11ce   :  { %14784 = vmatmul.mubr.bf16.vlgmr.msra.gmra.mrb[48].mxu1 %v24016_v44 }
0x11cf   :  { %14795 = vmatpush1.bf16.msra.mxu1 %v21254_v58  ;;  %14826 = vmatprep.mubr.bf16.mxu1 %v24383_v11  ;;  %v21290_v58 = vld [vmem:[#allocation29 + $0xd20] ss:$60 sps:$4 sm:$0xff]  }
0x11d0   :  { %14796 = vmatprep.subr.bf16.mxu1 %v21259_v47  ;;  %v21295_v47 = vld [vmem:[#allocation29 + $0xd9c] ss:$60 sps:$4 sm:$0xff]  }
0x11d3   :  { %14797 = vmatpush1.bf16.msra.mxu1 %v21257_v48  ;;  %v21385_v48 = vld [vmem:[#allocation26 + $0x2d4] ss:$8 sps:$4 sm:$0xff]  }
0x11d4   :  { %14798 = vmatprep.subr.bf16.mxu1 %v21262_v31  ;;  %v21383_v31 = vld [vmem:[#allocation26 + $0x2d0] ss:$8 sps:$4 sm:$0xff]   ;;  %9228 = vmatprep.subr.bf16.mxu0 %v21385_v48  ;;  %v21376_v48 = vld [vmem:[#allocation29 + $0x14a4] ss:$60 sps:$4 sm:$0xff]  }
0x11d5   :  { %9229 = vmatpush1.bf16.msra.mxu0 %v21383_v31  ;;  %v21374_v31 = vld [vmem:[#allocation29 + $0x14a0] ss:$60 sps:$4 sm:$0xff]  }
0x11d7   :  { %14799 = vmatpush1.bf16.msra.mxu1 %v21260_v21  ;;  %v21293_v21 = vld [vmem:[#allocation29 + $0xd98] ss:$60 sps:$4 sm:$0xff]  }
0x11d8   :  { %14800 = vmatprep.subr.bf16.mxu1 %v21265_v3  ;;  %v21298_v3 = vld [vmem:[#allocation29 + $0xe14] ss:$60 sps:$4 sm:$0xff]  }
0x11db   :  { %14801 = vmatpush1.bf16.msra.mxu1 %v21263_v25  ;;  %v21391_v25 = vld [vmem:[#allocation26 + $0x2e4] ss:$8 sps:$4 sm:$0xff]  }
0x11dc   :  { %14802 = vmatprep.subr.bf16.mxu1 %v21268_v36  ;;  %v21389_v36 = vld [vmem:[#allocation26 + $0x2e0] ss:$8 sps:$4 sm:$0xff]   ;;  %9230 = vmatprep.subr.bf16.mxu0 %v21391_v25  ;;  %v21388_v25 = vld [vmem:[#allocation29 + $0x1594] ss:$60 sps:$4 sm:$0xff]  }
0x11dd   :  { %9231 = vmatpush1.bf16.msra.mxu0 %v21389_v36  ;;  %v21386_v36 = vld [vmem:[#allocation29 + $0x1590] ss:$60 sps:$4 sm:$0xff]  }
0x11df   :  { %14803 = vmatpush1.bf16.msra.mxu1 %v21266_v22  ;;  %v21296_v22 = vld [vmem:[#allocation29 + $0xe10] ss:$60 sps:$4 sm:$0xff]  }
0x11e0   :  { %14804 = vmatprep.subr.bf16.mxu1 %v21271_v33  ;;  %v21301_v33 = vld [vmem:[#allocation29 + $0xe8c] ss:$60 sps:$4 sm:$0xff]  }
0x11e3   :  { %14805 = vmatpush1.bf16.msra.mxu1 %v21269_v50  ;;  %v21395_v50 = vld [vmem:[#allocation26 + $0x2f0] ss:$8 sps:$4 sm:$0xff]  }
0x11e4   :  { %14806 = vmatprep.subr.bf16.mxu1 %v21274_v5  ;;  %v21397_v5 = vld [vmem:[#allocation26 + $0x2f4] ss:$8 sps:$4 sm:$0xff]  }
0x11e5   :  { %9232 = vmatprep.subr.bf16.mxu0 %v21397_v5 }
0x11e6   :  { %9233 = vmatpush1.bf16.msra.mxu0 %v21395_v50  ;;  %v5745_v50 = vld [vmem:[#allocation25] sm:$0x3] }
0x11e7   :  { %14807 = vmatpush1.bf16.msra.mxu1 %v21272_v20  ;;  %v21299_v20 = vld [vmem:[#allocation29 + $0xe88] ss:$60 sps:$4 sm:$0xff]   ;;  %9245 = vmatprep.subr.bf16.mxu0 %v21400_v9  ;;  %v5754_v5 = vrot.slane %v5745_v50, %v23926_v16 }
0x11e8   :  { %14808 = vmatprep.subr.bf16.mxu1 %v21277_v0  ;;  %v21304_v0 = vld [vmem:[#allocation29 + $0xf04] ss:$60 sps:$4 sm:$0xff]  }
0x11eb   :  { %14809 = vmatpush1.bf16.msra.mxu1 %v21275_v23  ;;  %v21310_v23 = vld [vmem:[#allocation29 + $0xf7c] ss:$60 sps:$4 sm:$0xff]  }
0x11ec   :  { %14810 = vmatprep.subr.bf16.mxu1 %v21280_v57  ;;  %v21308_v57 = vld [vmem:[#allocation29 + $0xf78] ss:$60 sps:$4 sm:$0xff]  }
0x11ef   :  { %14811 = vmatpush1.bf16.msra.mxu1 %v21278_v35  ;;  %v21322_v35 = vld [vmem:[#allocation29 + $0x106c] ss:$60 sps:$4 sm:$0xff]  }
0x11f0   :  { %14812 = vmatprep.subr.bf16.mxu1 %v21283_v13  ;;  %v21320_v13 = vld [vmem:[#allocation29 + $0x1068] ss:$60 sps:$4 sm:$0xff]  }
0x11f3   :  { %14813 = vmatpush1.bf16.msra.mxu1 %v21281_v26  ;;  %v21334_v26 = vld [vmem:[#allocation29 + $0x115c] ss:$60 sps:$4 sm:$0xff]  }
0x11f4   :  { %14814 = vmatprep.subr.bf16.mxu1 %v21286_v27  ;;  %v21332_v27 = vld [vmem:[#allocation29 + $0x1158] ss:$60 sps:$4 sm:$0xff]  }
0x11f7   :  { %14815 = vmatpush1.bf16.msra.mxu1 %v21284_v1  ;;  %v21346_v1 = vld [vmem:[#allocation29 + $0x124c] ss:$60 sps:$4 sm:$0xff]  }
0x11f8   :  { %14816 = vmatprep.subr.bf16.mxu1 %v21289_v54  ;;  %v21344_v54 = vld [vmem:[#allocation29 + $0x1248] ss:$60 sps:$4 sm:$0xff]  }
0x11fb   :  { %14817 = vmatpush1.bf16.msra.mxu1 %v21287_v53  ;;  %v21358_v53 = vld [vmem:[#allocation29 + $0x133c] ss:$60 sps:$4 sm:$0xff]  }
0x11fc   :  { %14818 = vmatprep.subr.bf16.mxu1 %v21292_v61  ;;  %v21356_v61 = vld [vmem:[#allocation29 + $0x1338] ss:$60 sps:$4 sm:$0xff]  }
0x11ff   :  { %14819 = vmatpush1.bf16.msra.mxu1 %v21290_v58  ;;  %v21370_v58 = vld [vmem:[#allocation29 + $0x142c] ss:$60 sps:$4 sm:$0xff]  }
0x1200   :  { %14820 = vmatprep.subr.bf16.mxu1 %v21295_v47  ;;  %v21368_v47 = vld [vmem:[#allocation29 + $0x1428] ss:$60 sps:$4 sm:$0xff]  }
0x1203   :  { %14821 = vmatpush1.bf16.msra.mxu1 %v21293_v21  ;;  %v21382_v21 = vld [vmem:[#allocation29 + $0x151c] ss:$60 sps:$4 sm:$0xff]  }
0x1204   :  { %14822 = vmatprep.subr.bf16.mxu1 %v21298_v3  ;;  %v21380_v3 = vld [vmem:[#allocation29 + $0x1518] ss:$60 sps:$4 sm:$0xff]  }
0x1207   :  { %14823 = vmatpush1.bf16.msra.mxu1 %v21296_v22  ;;  %v21394_v22 = vld [vmem:[#allocation29 + $0x160c] ss:$60 sps:$4 sm:$0xff]  }
0x1208   :  { %14824 = vmatprep.subr.bf16.mxu1 %v21301_v33  ;;  %v21392_v33 = vld [vmem:[#allocation29 + $0x1608] ss:$60 sps:$4 sm:$0xff]  }
0x120b   :  { %14825 = vmatpush1.bf16.msra.mxu1 %v21299_v20 }
0x120c   :  { %14837 = vmatprep.subr.bf16.mxu1 %v21304_v0 }
0x120e   :  { %14827 = vmatmul.mubr.bf16.vlgmr.msra.gmra.mrb[48].mxu1 %v24376_v40 }
0x120f   :  { %14838 = vmatpush1.bf16.msra.mxu1 %v21302_v59 }
0x1210   :  { %14839 = vmatprep.subr.bf16.mxu1 %v21310_v23 }
0x1213   :  { %14840 = vmatpush1.bf16.msra.mxu1 %v21308_v57 }
0x1214   :  { %14841 = vmatprep.subr.bf16.mxu1 %v21316_v52 }
0x1217   :  { %14842 = vmatpush1.bf16.msra.mxu1 %v21314_v45 }
0x1218   :  { %14843 = vmatprep.subr.bf16.mxu1 %v21322_v35  ;;  %v5750_v35 = vrot.slane %v5745_v50, %v23947_v42  ;;  %v21409_v50 = vld [vmem:[#allocation26 + $0x334] ss:$8 sps:$4 sm:$0xff]  }
0x121b   :  { %14844 = vmatpush1.bf16.msra.mxu1 %v21320_v13 }
0x121c   :  { %14845 = vmatprep.subr.bf16.mxu1 %v21328_v2 }
0x121f   :  { %14846 = vmatpush1.bf16.msra.mxu1 %v21326_v39 }
0x1220   :  { %14847 = vmatprep.subr.bf16.mxu1 %v21334_v26 }
0x1223   :  { %14848 = vmatpush1.bf16.msra.mxu1 %v21332_v27 }
0x1224   :  { %14849 = vmatprep.subr.bf16.mxu1 %v21340_v30 }
0x1227   :  { %14850 = vmatpush1.bf16.msra.mxu1 %v21338_v7 }
0x1228   :  { %14851 = vmatprep.subr.bf16.mxu1 %v21346_v1 }
0x122b   :  { %14852 = vmatpush1.bf16.msra.mxu1 %v21344_v54 }
0x122c   :  { %14853 = vmatprep.subr.bf16.mxu1 %v21352_v29 }
0x122f   :  { %14854 = vmatpush1.bf16.msra.mxu1 %v21350_v19 }
0x1230   :  { %14855 = vmatprep.subr.bf16.mxu1 %v21358_v53 }
0x1233   :  { %14856 = vmatpush1.bf16.msra.mxu1 %v21356_v61 }
0x1234   :  { %14857 = vmatprep.subr.bf16.mxu1 %v21364_v41 }
0x1237   :  { %14858 = vmatpush1.bf16.msra.mxu1 %v21362_v49 }
0x1238   :  { %14859 = vmatprep.subr.bf16.mxu1 %v21370_v58 }
0x123b   :  { %14860 = vmatpush1.bf16.msra.mxu1 %v21368_v47 }
0x123c   :  { %14861 = vmatprep.subr.bf16.mxu1 %v21376_v48 }
0x123f   :  { %14862 = vmatpush1.bf16.msra.mxu1 %v21374_v31 }
0x1240   :  { %14863 = vmatprep.subr.bf16.mxu1 %v21382_v21  ;;  %v21398_v21 = vld [vmem:[#allocation26 + $0x300] ss:$8 sps:$4 sm:$0xff]  }
0x1243   :  { %14864 = vmatpush1.bf16.msra.mxu1 %v21380_v3 }
0x1244   :  { %14865 = vmatprep.subr.bf16.mxu1 %v21388_v25  ;;  %v21403_v25 = vld [vmem:[#allocation26 + $0x314] ss:$8 sps:$4 sm:$0xff]  }
0x1247   :  { %14866 = vmatpush1.bf16.msra.mxu1 %v21386_v36  ;;  %v21401_v36 = vld [vmem:[#allocation26 + $0x310] ss:$8 sps:$4 sm:$0xff]  }
0x1248   :  { %14867 = vmatprep.subr.bf16.mxu1 %v21394_v22  ;;  %v21406_v22 = vld [vmem:[#allocation26 + $0x324] ss:$8 sps:$4 sm:$0xff]  }
0x124b   :  { %14868 = vmatpush1.bf16.msra.mxu1 %v21392_v33  ;;  %v21404_v33 = vld [vmem:[#allocation26 + $0x320] ss:$8 sps:$4 sm:$0xff]  }
0x1261   :  { %v7292_v20 = vpop.f32.mrb[44].mxu1 }
0x1262   :  { %v7294_v0 = vpop.f32.mrb[45].mxu1  ;;  %v20054_v13 = vadd.f32 %v7292_v20, %v5750_v35  ;;  %v21412_v20 = vld [vmem:[#allocation26 + $0x344] ss:$8 sps:$4 sm:$0xff]  }
0x1263   :  { %v20055_v9 = vadd.f32 %v7294_v0, %v5754_v5  ;;  %v7296_v59 = vpop.f32.mrb[46].mxu1  ;;  %v21410_v0 = vld [vmem:[#allocation26 + $0x340] ss:$8 sps:$4 sm:$0xff]  }
0x1264   :  { %v7298_v23 = vpop.f32.mrb[47].mxu1  ;;  %v20056_v39 = vadd.f32 %v7296_v59, %v5750_v35  ;;  %v21421_v59 = vld [vmem:[#allocation26 + $0x374] ss:$8 sps:$4 sm:$0xff]   ;;  %v21425_v35 = vld [vmem:[#allocation26 + $0x390] ss:$8 sps:$4 sm:$0xff]  }
0x1265   :  { %v18346_v57 = vmul.f32 -1.442695, %v20055_v9  ;;  %v20057_v52 = vadd.f32 %v7298_v23, %v5754_v5  ;;  %v21407_v5 = vld [vmem:[#allocation26 + $0x330] ss:$8 sps:$4 sm:$0xff]   ;;  %v21416_v9 = vld [vmem:[#allocation26 + $0x360] ss:$8 sps:$4 sm:$0xff]  }
0x1266   :  { %v21419_v23 = vld [vmem:[#allocation26 + $0x370] ss:$8 sps:$4 sm:$0xff]  }
0x1267   :  { %22918 = vpow2.f32 %v18346_v57  ;;  %v18347_v45 = vmul.f32 -1.442695, %v20057_v52  ;;  %v21424_v57 = vld [vmem:[#allocation26 + $0x384] ss:$8 sps:$4 sm:$0xff]   ;;  %v21422_v52 = vld [vmem:[#allocation26 + $0x380] ss:$8 sps:$4 sm:$0xff]  }
0x1269   :  { %22920 = vpow2.f32 %v18347_v45  ;;  %v21427_v45 = vld [vmem:[#allocation26 + $0x394] ss:$8 sps:$4 sm:$0xff]  }
0x126a   :  { %22922 = vtanh.f32 %v20054_v13  ;;  %v21430_v13 = vld [vmem:[#allocation26 + $0x3a4] ss:$8 sps:$4 sm:$0xff]  }
0x1271   :  { %v22919_v2 = vpop.eup %22918 }
0x1272   :  { %v7309_v26 = vadd.f32 1.0, %v22919_v2  ;;  %v21428_v2 = vld [vmem:[#allocation26 + $0x3a0] ss:$8 sps:$4 sm:$0xff]  }
0x1273   :  { %v22921_v27 = vpop.eup %22920 }
0x1274   :  { %22924 = vrcp.f32 %v7309_v26  ;;  %v7310_v30 = vadd.f32 1.0, %v22921_v27  ;;  %v22923_v7 = vpop.eup %22922  ;;  %v21431_v26 = vld [vmem:[#allocation26 + $0x3b0] ss:$8 sps:$4 sm:$0xff]   ;;  %v21436_v27 = vld [vmem:[#allocation26 + $0x3c4] ss:$8 sps:$4 sm:$0xff]  }
0x1275   :  { %22926 = vtanh.f32 %v20056_v39  ;;  %v21433_v39 = vld [vmem:[#allocation26 + $0x3b4] ss:$8 sps:$4 sm:$0xff]  }
0x1276   :  { %22928 = vrcp.f32 %v7310_v30  ;;  %v21434_v30 = vld [vmem:[#allocation26 + $0x3c0] ss:$8 sps:$4 sm:$0xff]  }
0x127e   :  { %v22925_v1 = vpop.eup %22924 }
0x127f   :  { %v22927_v54 = vpop.eup %22926  ;;  %v7315_v29 = vmul.f32 %v22925_v1, %v22923_v7  ;;  %v21439_v7 = vld [vmem:[#allocation26 + $0x3d4] ss:$8 sps:$4 sm:$0xff]   ;;  %v21437_v1 = vld [vmem:[#allocation26 + $0x3d0] ss:$8 sps:$4 sm:$0xff]  }
0x1280   :  { %v22929_v19 = vpop.eup %22928 }
0x1281   :  { %v7316_v53 = vmul.f32 %v22929_v19, %v22927_v54  ;;  %v7322_v61 = vrot.slane %v7315_v29, 4  ;;  %v21442_v54 = vld [vmem:[#allocation26 + $0x3e4] ss:$8 sps:$4 sm:$0xff]   ;;  %v21445_v19 = vld [vmem:[#allocation26 + $0x3f4] ss:$8 sps:$4 sm:$0xff]  }
0x1283   :  { %v24551_v41 = vpack.c.bf16 %v7316_v53, %v7315_v29  ;;  %v7329_v49 = vrot.slane %v7316_v53, 4  ;;  %v7342_v47 = vsel %vm608_vm2, 0.0, %v7322_v61  ;;  %v21440_v29 = vld [vmem:[#allocation26 + $0x3e0] ss:$8 sps:$4 sm:$0xff]   ;;  %v21443_v53 = vld [vmem:[#allocation26 + $0x3f0] ss:$8 sps:$4 sm:$0xff]  }
0x1285   :  { %14869 = vmatprep.mubr.bf16.mxu1 %v24551_v41  ;;  %v24555_v58 = vsel %vm608_vm2, %v7322_v61, %v7329_v49  ;;  %v24559_v48 = vsel %vm608_vm2, %v7329_v49, 0.0  ;;  %v21448_v61 = vld [vmem:[#allocation26 + $0x404] ss:$8 sps:$4 sm:$0xff]   ;;  %v21446_v49 = vld [vmem:[#allocation26 + $0x400] ss:$8 sps:$4 sm:$0xff]  }
0x1286   :  { %14870 = vmatmul.mubr.bf16.vlgmr.msra.gmra.mrb[48].mxu1 %v24490_v43  ;;  %v18649_v31 = vpack.c.bf16 %v24555_v58, %v7342_v47  ;;  %v18667_v3 = vpack.c.bf16 %v24559_v48, %v24555_v58  ;;  %v21451_v47 = vld [vmem:[#allocation26 + $0x414] ss:$8 sps:$4 sm:$0xff]   ;;  %v21653_v58 = vld [vmem:[#allocation26 + $0x850] ss:$8 sps:$4 sm:$0xff]   ;;  %v21658_v48 = vld [vmem:[#allocation26 + $0x864] ss:$8 sps:$4 sm:$0xff]  }
0x1287   :  { %14912 = vmatprep.mubr.bf16.mxu1 %v25241_v18 }
0x1288   :  { %18650 = vmatprep.mubr.msk.bf16.mxu0 %vm24182_vm4, %v18649_v31  ;;  %v21449_v31 = vld [vmem:[#allocation26 + $0x410] ss:$8 sps:$4 sm:$0xff]  }
0x1289   :  { %18653 = vmatmul.mubr.msk.bf16.vlgmr.msra.gmra.mrb[48].mxu0 %vm24182_vm4, %v18652_v4  ;;  %v21418_v4 = vld [vmem:[#allocation26 + $0x364] ss:$8 sps:$4 sm:$0xff]   ;;  %vm25258_vm4 = vmmov %vm25256_vm0 }
0x128a   :  { %9246 = vmatpush1.bf16.msra.mxu0 %v21398_v21  ;;  %9277 = vmatprep.mubr.bf16.mxu0 %v24170_v24  ;;  %v21454_v21 = vld [vmem:[#allocation26 + $0x424] ss:$8 sps:$4 sm:$0xff]  }
0x128b   :  { %9247 = vmatprep.subr.bf16.mxu0 %v21403_v25  ;;  %v21452_v25 = vld [vmem:[#allocation26 + $0x420] ss:$8 sps:$4 sm:$0xff]  }
0x128e   :  { %9248 = vmatpush1.bf16.msra.mxu0 %v21401_v36  ;;  %v21457_v36 = vld [vmem:[#allocation26 + $0x434] ss:$8 sps:$4 sm:$0xff]  }
0x128f   :  { %9249 = vmatprep.subr.bf16.mxu0 %v21406_v22  ;;  %v21455_v22 = vld [vmem:[#allocation26 + $0x430] ss:$8 sps:$4 sm:$0xff]  }
0x1292   :  { %9250 = vmatpush1.bf16.msra.mxu0 %v21404_v33  ;;  %v21460_v33 = vld [vmem:[#allocation26 + $0x444] ss:$8 sps:$4 sm:$0xff]  }
0x1293   :  { %9251 = vmatprep.subr.bf16.mxu0 %v21409_v50  ;;  %v21458_v50 = vld [vmem:[#allocation26 + $0x440] ss:$8 sps:$4 sm:$0xff]  }
0x1296   :  { %9252 = vmatpush1.bf16.msra.mxu0 %v21407_v5  ;;  %v21463_v5 = vld [vmem:[#allocation26 + $0x454] ss:$8 sps:$4 sm:$0xff]  }
0x1297   :  { %9253 = vmatprep.subr.bf16.mxu0 %v21412_v20  ;;  %v21461_v20 = vld [vmem:[#allocation26 + $0x450] ss:$8 sps:$4 sm:$0xff]  }
0x129a   :  { %9254 = vmatpush1.bf16.msra.mxu0 %v21410_v0  ;;  %v21466_v0 = vld [vmem:[#allocation26 + $0x464] ss:$8 sps:$4 sm:$0xff]  }
0x129b   :  { %9255 = vmatprep.subr.bf16.mxu0 %v21415_v51  ;;  %v21464_v51 = vld [vmem:[#allocation26 + $0x460] ss:$8 sps:$4 sm:$0xff]  }
0x129e   :  { %9256 = vmatpush1.bf16.msra.mxu0 %v21413_v32  ;;  %v21469_v32 = vld [vmem:[#allocation26 + $0x474] ss:$8 sps:$4 sm:$0xff]  }
0x129f   :  { %9257 = vmatprep.subr.bf16.mxu0 %v21418_v4  ;;  %v21467_v4 = vld [vmem:[#allocation26 + $0x470] ss:$8 sps:$4 sm:$0xff]  }
0x12a2   :  { %9258 = vmatpush1.bf16.msra.mxu0 %v21416_v9  ;;  %v21472_v9 = vld [vmem:[#allocation26 + $0x484] ss:$8 sps:$4 sm:$0xff]  }
0x12a3   :  { %9259 = vmatprep.subr.bf16.mxu0 %v21421_v59  ;;  %v21470_v59 = vld [vmem:[#allocation26 + $0x480] ss:$8 sps:$4 sm:$0xff]  }
0x12a6   :  { %9260 = vmatpush1.bf16.msra.mxu0 %v21419_v23  ;;  %v21475_v23 = vld [vmem:[#allocation26 + $0x494] ss:$8 sps:$4 sm:$0xff]  }
0x12a7   :  { %9261 = vmatprep.subr.bf16.mxu0 %v21424_v57  ;;  %v21473_v57 = vld [vmem:[#allocation26 + $0x490] ss:$8 sps:$4 sm:$0xff]  }
0x12aa   :  { %9262 = vmatpush1.bf16.msra.mxu0 %v21422_v52  ;;  %v21478_v52 = vld [vmem:[#allocation26 + $0x4a4] ss:$8 sps:$4 sm:$0xff]  }
0x12ab   :  { %9263 = vmatprep.subr.bf16.mxu0 %v21427_v45  ;;  %v21476_v45 = vld [vmem:[#allocation26 + $0x4a0] ss:$8 sps:$4 sm:$0xff]  }
0x12ae   :  { %9264 = vmatpush1.bf16.msra.mxu0 %v21425_v35  ;;  %v21481_v35 = vld [vmem:[#allocation26 + $0x4b4] ss:$8 sps:$4 sm:$0xff]  }
0x12af   :  { %9265 = vmatprep.subr.bf16.mxu0 %v21430_v13  ;;  %v21479_v13 = vld [vmem:[#allocation26 + $0x4b0] ss:$8 sps:$4 sm:$0xff]  }
0x12b2   :  { %9266 = vmatpush1.bf16.msra.mxu0 %v21428_v2  ;;  %v21484_v2 = vld [vmem:[#allocation26 + $0x4c4] ss:$8 sps:$4 sm:$0xff]  }
0x12b3   :  { %9267 = vmatprep.subr.bf16.mxu0 %v21433_v39  ;;  %v21482_v39 = vld [vmem:[#allocation26 + $0x4c0] ss:$8 sps:$4 sm:$0xff]  }
0x12b6   :  { %9268 = vmatpush1.bf16.msra.mxu0 %v21431_v26  ;;  %v21487_v26 = vld [vmem:[#allocation26 + $0x4d4] ss:$8 sps:$4 sm:$0xff]  }
0x12b7   :  { %9269 = vmatprep.subr.bf16.mxu0 %v21436_v27  ;;  %v21485_v27 = vld [vmem:[#allocation26 + $0x4d0] ss:$8 sps:$4 sm:$0xff]  }
0x12ba   :  { %9270 = vmatpush1.bf16.msra.mxu0 %v21434_v30  ;;  %v21490_v30 = vld [vmem:[#allocation26 + $0x4e4] ss:$8 sps:$4 sm:$0xff]  }
0x12bb   :  { %9271 = vmatprep.subr.bf16.mxu0 %v21439_v7  ;;  %v21488_v7 = vld [vmem:[#allocation26 + $0x4e0] ss:$8 sps:$4 sm:$0xff]  }
0x12be   :  { %9272 = vmatpush1.bf16.msra.mxu0 %v21437_v1  ;;  %v21493_v1 = vld [vmem:[#allocation26 + $0x4f4] ss:$8 sps:$4 sm:$0xff]  }
0x12bf   :  { %9273 = vmatprep.subr.bf16.mxu0 %v21442_v54  ;;  %v21491_v54 = vld [vmem:[#allocation26 + $0x4f0] ss:$8 sps:$4 sm:$0xff]  }
0x12c2   :  { %9274 = vmatpush1.bf16.msra.mxu0 %v21440_v29  ;;  %v21496_v29 = vld [vmem:[#allocation26 + $0x504] ss:$8 sps:$4 sm:$0xff]  }
0x12c3   :  { %9275 = vmatprep.subr.bf16.mxu0 %v21445_v19  ;;  %v21494_v19 = vld [vmem:[#allocation26 + $0x500] ss:$8 sps:$4 sm:$0xff]  }
0x12c6   :  { %9276 = vmatpush1.bf16.msra.mxu0 %v21443_v53  ;;  %v21499_v53 = vld [vmem:[#allocation26 + $0x514] ss:$8 sps:$4 sm:$0xff]  }
0x12c7   :  { %9288 = vmatprep.subr.bf16.mxu0 %v21448_v61  ;;  %v21497_v61 = vld [vmem:[#allocation26 + $0x510] ss:$8 sps:$4 sm:$0xff]  }
0x12c9   :  { %9278 = vmatmul.mubr.bf16.vlgmr.msra.gmra.mrb[48].mxu0 %v24016_v44 }
0x12ca   :  { %9289 = vmatpush1.bf16.msra.mxu0 %v21446_v49  ;;  %9320 = vmatprep.mubr.bf16.mxu0 %v24383_v11  ;;  %v21502_v49 = vld [vmem:[#allocation26 + $0x524] ss:$8 sps:$4 sm:$0xff]  }
0x12cb   :  { %9290 = vmatprep.subr.bf16.mxu0 %v21451_v47  ;;  %v21500_v47 = vld [vmem:[#allocation26 + $0x520] ss:$8 sps:$4 sm:$0xff]  }
0x12ce   :  { %9291 = vmatpush1.bf16.msra.mxu0 %v21449_v31  ;;  %v21505_v31 = vld [vmem:[#allocation26 + $0x534] ss:$8 sps:$4 sm:$0xff]  }
0x12cf   :  { %9292 = vmatprep.subr.bf16.mxu0 %v21454_v21  ;;  %v21503_v21 = vld [vmem:[#allocation26 + $0x530] ss:$8 sps:$4 sm:$0xff]  }
0x12d2   :  { %9293 = vmatpush1.bf16.msra.mxu0 %v21452_v25  ;;  %v21508_v25 = vld [vmem:[#allocation26 + $0x544] ss:$8 sps:$4 sm:$0xff]  }
0x12d3   :  { %9294 = vmatprep.subr.bf16.mxu0 %v21457_v36  ;;  %v21506_v36 = vld [vmem:[#allocation26 + $0x540] ss:$8 sps:$4 sm:$0xff]  }
0x12d6   :  { %9295 = vmatpush1.bf16.msra.mxu0 %v21455_v22  ;;  %v21511_v22 = vld [vmem:[#allocation26 + $0x554] ss:$8 sps:$4 sm:$0xff]  }
0x12d7   :  { %9296 = vmatprep.subr.bf16.mxu0 %v21460_v33  ;;  %v21509_v33 = vld [vmem:[#allocation26 + $0x550] ss:$8 sps:$4 sm:$0xff]  }
0x12da   :  { %9297 = vmatpush1.bf16.msra.mxu0 %v21458_v50  ;;  %v21514_v50 = vld [vmem:[#allocation26 + $0x564] ss:$8 sps:$4 sm:$0xff]  }
0x12db   :  { %9298 = vmatprep.subr.bf16.mxu0 %v21463_v5  ;;  %v21512_v5 = vld [vmem:[#allocation26 + $0x560] ss:$8 sps:$4 sm:$0xff]  }
0x12de   :  { %9299 = vmatpush1.bf16.msra.mxu0 %v21461_v20  ;;  %v21517_v20 = vld [vmem:[#allocation26 + $0x574] ss:$8 sps:$4 sm:$0xff]  }
0x12df   :  { %9300 = vmatprep.subr.bf16.mxu0 %v21466_v0  ;;  %v21515_v0 = vld [vmem:[#allocation26 + $0x570] ss:$8 sps:$4 sm:$0xff]  }
0x12e2   :  { %9301 = vmatpush1.bf16.msra.mxu0 %v21464_v51  ;;  %v21520_v51 = vld [vmem:[#allocation26 + $0x584] ss:$8 sps:$4 sm:$0xff]  }
0x12e3   :  { %9302 = vmatprep.subr.bf16.mxu0 %v21469_v32  ;;  %v21518_v32 = vld [vmem:[#allocation26 + $0x580] ss:$8 sps:$4 sm:$0xff]  }
0x12e6   :  { %9303 = vmatpush1.bf16.msra.mxu0 %v21467_v4  ;;  %v21523_v4 = vld [vmem:[#allocation26 + $0x594] ss:$8 sps:$4 sm:$0xff]  }
0x12e7   :  { %9304 = vmatprep.subr.bf16.mxu0 %v21472_v9  ;;  %v21521_v9 = vld [vmem:[#allocation26 + $0x590] ss:$8 sps:$4 sm:$0xff]  }
0x12ea   :  { %9305 = vmatpush1.bf16.msra.mxu0 %v21470_v59  ;;  %v21526_v59 = vld [vmem:[#allocation26 + $0x5a4] ss:$8 sps:$4 sm:$0xff]  }
0x12eb   :  { %9306 = vmatprep.subr.bf16.mxu0 %v21475_v23  ;;  %v21524_v23 = vld [vmem:[#allocation26 + $0x5a0] ss:$8 sps:$4 sm:$0xff]  }
0x12ee   :  { %9307 = vmatpush1.bf16.msra.mxu0 %v21473_v57  ;;  %v21529_v57 = vld [vmem:[#allocation26 + $0x5b4] ss:$8 sps:$4 sm:$0xff]  }
0x12ef   :  { %9308 = vmatprep.subr.bf16.mxu0 %v21478_v52  ;;  %v21527_v52 = vld [vmem:[#allocation26 + $0x5b0] ss:$8 sps:$4 sm:$0xff]  }
0x12f2   :  { %9309 = vmatpush1.bf16.msra.mxu0 %v21476_v45  ;;  %v21532_v45 = vld [vmem:[#allocation26 + $0x5c4] ss:$8 sps:$4 sm:$0xff]  }
0x12f3   :  { %9310 = vmatprep.subr.bf16.mxu0 %v21481_v35  ;;  %v21530_v35 = vld [vmem:[#allocation26 + $0x5c0] ss:$8 sps:$4 sm:$0xff]  }
0x12f6   :  { %9311 = vmatpush1.bf16.msra.mxu0 %v21479_v13  ;;  %v21535_v13 = vld [vmem:[#allocation26 + $0x5d4] ss:$8 sps:$4 sm:$0xff]  }
0x12f7   :  { %9312 = vmatprep.subr.bf16.mxu0 %v21484_v2  ;;  %v21533_v2 = vld [vmem:[#allocation26 + $0x5d0] ss:$8 sps:$4 sm:$0xff]  }
0x12fa   :  { %9313 = vmatpush1.bf16.msra.mxu0 %v21482_v39  ;;  %v21538_v39 = vld [vmem:[#allocation26 + $0x5e4] ss:$8 sps:$4 sm:$0xff]  }
0x12fb   :  { %9314 = vmatprep.subr.bf16.mxu0 %v21487_v26  ;;  %v21536_v26 = vld [vmem:[#allocation26 + $0x5e0] ss:$8 sps:$4 sm:$0xff]  }
0x12fe   :  { %9315 = vmatpush1.bf16.msra.mxu0 %v21485_v27  ;;  %v21541_v27 = vld [vmem:[#allocation26 + $0x5f4] ss:$8 sps:$4 sm:$0xff]  }
0x12ff   :  { %9316 = vmatprep.subr.bf16.mxu0 %v21490_v30  ;;  %v21539_v30 = vld [vmem:[#allocation26 + $0x5f0] ss:$8 sps:$4 sm:$0xff]  }
0x1302   :  { %9317 = vmatpush1.bf16.msra.mxu0 %v21488_v7  ;;  %v21544_v7 = vld [vmem:[#allocation26 + $0x604] ss:$8 sps:$4 sm:$0xff]  }
0x1303   :  { %9318 = vmatprep.subr.bf16.mxu0 %v21493_v1  ;;  %v21542_v1 = vld [vmem:[#allocation26 + $0x600] ss:$8 sps:$4 sm:$0xff]  }
0x1306   :  { %9319 = vmatpush1.bf16.msra.mxu0 %v21491_v54  ;;  %v21547_v54 = vld [vmem:[#allocation26 + $0x614] ss:$8 sps:$4 sm:$0xff]  }
0x1307   :  { %9331 = vmatprep.subr.bf16.mxu0 %v21496_v29  ;;  %v21545_v29 = vld [vmem:[#allocation26 + $0x610] ss:$8 sps:$4 sm:$0xff]  }
0x1309   :  { %9321 = vmatmul.mubr.bf16.vlgmr.msra.gmra.mrb[48].mxu0 %v24376_v40 }
0x130a   :  { %9332 = vmatpush1.bf16.msra.mxu0 %v21494_v19  ;;  %9363 = vmatprep.mubr.bf16.mxu0 %v24551_v41  ;;  %v21550_v19 = vld [vmem:[#allocation26 + $0x624] ss:$8 sps:$4 sm:$0xff]  }
0x130b   :  { %9333 = vmatprep.subr.bf16.mxu0 %v21499_v53  ;;  %v21548_v53 = vld [vmem:[#allocation26 + $0x620] ss:$8 sps:$4 sm:$0xff]  }
0x130e   :  { %9334 = vmatpush1.bf16.msra.mxu0 %v21497_v61  ;;  %v21553_v61 = vld [vmem:[#allocation26 + $0x634] ss:$8 sps:$4 sm:$0xff]  }
0x130f   :  { %9335 = vmatprep.subr.bf16.mxu0 %v21502_v49  ;;  %v21551_v49 = vld [vmem:[#allocation26 + $0x630] ss:$8 sps:$4 sm:$0xff]  }
0x1312   :  { %9336 = vmatpush1.bf16.msra.mxu0 %v21500_v47  ;;  %v21556_v47 = vld [vmem:[#allocation26 + $0x644] ss:$8 sps:$4 sm:$0xff]  }
0x1313   :  { %9337 = vmatprep.subr.bf16.mxu0 %v21505_v31  ;;  %v21554_v31 = vld [vmem:[#allocation26 + $0x640] ss:$8 sps:$4 sm:$0xff]  }
0x1316   :  { %9338 = vmatpush1.bf16.msra.mxu0 %v21503_v21  ;;  %v21559_v21 = vld [vmem:[#allocation26 + $0x654] ss:$8 sps:$4 sm:$0xff]  }
0x1317   :  { %9339 = vmatprep.subr.bf16.mxu0 %v21508_v25  ;;  %v21557_v25 = vld [vmem:[#allocation26 + $0x650] ss:$8 sps:$4 sm:$0xff]  }
0x131a   :  { %9340 = vmatpush1.bf16.msra.mxu0 %v21506_v36  ;;  %v21562_v36 = vld [vmem:[#allocation26 + $0x664] ss:$8 sps:$4 sm:$0xff]  }
0x131b   :  { %9341 = vmatprep.subr.bf16.mxu0 %v21511_v22  ;;  %v21565_v22 = vld [vmem:[#allocation26 + $0x674] ss:$8 sps:$4 sm:$0xff]  }
0x131e   :  { %9342 = vmatpush1.bf16.msra.mxu0 %v21509_v33  ;;  %v21563_v33 = vld [vmem:[#allocation26 + $0x670] ss:$8 sps:$4 sm:$0xff]  }
0x131f   :  { %9343 = vmatprep.subr.bf16.mxu0 %v21514_v50  ;;  %v21568_v50 = vld [vmem:[#allocation26 + $0x684] ss:$8 sps:$4 sm:$0xff]  }
0x1322   :  { %9344 = vmatpush1.bf16.msra.mxu0 %v21512_v5  ;;  %v21566_v5 = vld [vmem:[#allocation26 + $0x680] ss:$8 sps:$4 sm:$0xff]  }
0x1323   :  { %9345 = vmatprep.subr.bf16.mxu0 %v21517_v20  ;;  %v21571_v20 = vld [vmem:[#allocation26 + $0x694] ss:$8 sps:$4 sm:$0xff]  }
0x1326   :  { %9346 = vmatpush1.bf16.msra.mxu0 %v21515_v0  ;;  %v21569_v0 = vld [vmem:[#allocation26 + $0x690] ss:$8 sps:$4 sm:$0xff]  }
0x1327   :  { %9347 = vmatprep.subr.bf16.mxu0 %v21520_v51  ;;  %v21574_v51 = vld [vmem:[#allocation26 + $0x6a4] ss:$8 sps:$4 sm:$0xff]  }
0x132a   :  { %9348 = vmatpush1.bf16.msra.mxu0 %v21518_v32  ;;  %v21572_v32 = vld [vmem:[#allocation26 + $0x6a0] ss:$8 sps:$4 sm:$0xff]  }
0x132b   :  { %9349 = vmatprep.subr.bf16.mxu0 %v21523_v4  ;;  %v21577_v4 = vld [vmem:[#allocation26 + $0x6b4] ss:$8 sps:$4 sm:$0xff]  }
0x132e   :  { %9350 = vmatpush1.bf16.msra.mxu0 %v21521_v9  ;;  %v21575_v9 = vld [vmem:[#allocation26 + $0x6b0] ss:$8 sps:$4 sm:$0xff]  }
0x132f   :  { %9351 = vmatprep.subr.bf16.mxu0 %v21526_v59  ;;  %v21580_v59 = vld [vmem:[#allocation26 + $0x6c4] ss:$8 sps:$4 sm:$0xff]  }
0x1332   :  { %9352 = vmatpush1.bf16.msra.mxu0 %v21524_v23  ;;  %v21578_v23 = vld [vmem:[#allocation26 + $0x6c0] ss:$8 sps:$4 sm:$0xff]  }
0x1333   :  { %9353 = vmatprep.subr.bf16.mxu0 %v21529_v57  ;;  %v21583_v57 = vld [vmem:[#allocation26 + $0x6d4] ss:$8 sps:$4 sm:$0xff]  }
0x1336   :  { %9354 = vmatpush1.bf16.msra.mxu0 %v21527_v52  ;;  %v21581_v52 = vld [vmem:[#allocation26 + $0x6d0] ss:$8 sps:$4 sm:$0xff]  }
0x1337   :  { %9355 = vmatprep.subr.bf16.mxu0 %v21532_v45  ;;  %v21586_v45 = vld [vmem:[#allocation26 + $0x6e4] ss:$8 sps:$4 sm:$0xff]  }
0x133a   :  { %9356 = vmatpush1.bf16.msra.mxu0 %v21530_v35  ;;  %v21584_v35 = vld [vmem:[#allocation26 + $0x6e0] ss:$8 sps:$4 sm:$0xff]  }
0x133b   :  { %9357 = vmatprep.subr.bf16.mxu0 %v21535_v13  ;;  %v21589_v13 = vld [vmem:[#allocation26 + $0x6f4] ss:$8 sps:$4 sm:$0xff]  }
0x133e   :  { %9358 = vmatpush1.bf16.msra.mxu0 %v21533_v2  ;;  %v21587_v2 = vld [vmem:[#allocation26 + $0x6f0] ss:$8 sps:$4 sm:$0xff]  }
0x133f   :  { %9359 = vmatprep.subr.bf16.mxu0 %v21538_v39  ;;  %v21592_v39 = vld [vmem:[#allocation26 + $0x704] ss:$8 sps:$4 sm:$0xff]  }
0x1342   :  { %9360 = vmatpush1.bf16.msra.mxu0 %v21536_v26  ;;  %v21590_v26 = vld [vmem:[#allocation26 + $0x700] ss:$8 sps:$4 sm:$0xff]  }
0x1343   :  { %9361 = vmatprep.subr.bf16.mxu0 %v21541_v27  ;;  %v21595_v27 = vld [vmem:[#allocation26 + $0x714] ss:$8 sps:$4 sm:$0xff]  }
0x1346   :  { %9362 = vmatpush1.bf16.msra.mxu0 %v21539_v30  ;;  %v21593_v30 = vld [vmem:[#allocation26 + $0x710] ss:$8 sps:$4 sm:$0xff]  }
0x1347   :  { %9374 = vmatprep.subr.bf16.mxu0 %v21544_v7  ;;  %v21598_v7 = vld [vmem:[#allocation26 + $0x724] ss:$8 sps:$4 sm:$0xff]  }
0x1349   :  { %9364 = vmatmul.mubr.bf16.vlgmr.msra.gmra.mrb[48].mxu0 %v24490_v43 }
0x134a   :  { %9375 = vmatpush1.bf16.msra.mxu0 %v21542_v1  ;;  %18656 = vmatprep.mubr.msk.bf16.mxu0 %vm24206_vm12, %v24224_v34  ;;  %v21560_v34 = vld [vmem:[#allocation26 + $0x660] ss:$8 sps:$4 sm:$0xff]  }
0x134b   :  { %9376 = vmatprep.subr.bf16.mxu0 %v21547_v54  ;;  %v21596_v1 = vld [vmem:[#allocation26 + $0x720] ss:$8 sps:$4 sm:$0xff]   ;;  %v21601_v54 = vld [vmem:[#allocation26 + $0x734] ss:$8 sps:$4 sm:$0xff]  }
0x134e   :  { %9377 = vmatpush1.bf16.msra.mxu0 %v21545_v29  ;;  %v21599_v29 = vld [vmem:[#allocation26 + $0x730] ss:$8 sps:$4 sm:$0xff]  }
0x134f   :  { %9378 = vmatprep.subr.bf16.mxu0 %v21550_v19  ;;  %v21604_v19 = vld [vmem:[#allocation26 + $0x744] ss:$8 sps:$4 sm:$0xff]  }
0x1352   :  { %9379 = vmatpush1.bf16.msra.mxu0 %v21548_v53  ;;  %v21607_v53 = vld [vmem:[#allocation26 + $0x754] ss:$8 sps:$4 sm:$0xff]  }
0x1353   :  { %9380 = vmatprep.subr.bf16.mxu0 %v21553_v61  ;;  %v21613_v61 = vld [vmem:[#allocation26 + $0x774] ss:$8 sps:$4 sm:$0xff]  }
0x1356   :  { %9381 = vmatpush1.bf16.msra.mxu0 %v21551_v49  ;;  %v21611_v49 = vld [vmem:[#allocation26 + $0x770] ss:$8 sps:$4 sm:$0xff]  }
0x1357   :  { %9382 = vmatprep.subr.bf16.mxu0 %v21556_v47  ;;  %v21616_v47 = vld [vmem:[#allocation26 + $0x784] ss:$8 sps:$4 sm:$0xff]  }
0x135a   :  { %9383 = vmatpush1.bf16.msra.mxu0 %v21554_v31  ;;  %v21614_v31 = vld [vmem:[#allocation26 + $0x780] ss:$8 sps:$4 sm:$0xff]  }
0x135b   :  { %9384 = vmatprep.subr.bf16.mxu0 %v21559_v21  ;;  %v21619_v21 = vld [vmem:[#allocation26 + $0x794] ss:$8 sps:$4 sm:$0xff]  }
0x135e   :  { %9385 = vmatpush1.bf16.msra.mxu0 %v21557_v25  ;;  %v21617_v25 = vld [vmem:[#allocation26 + $0x790] ss:$8 sps:$4 sm:$0xff]  }
0x135f   :  { %9386 = vmatprep.subr.bf16.mxu0 %v21562_v36  ;;  %v21622_v36 = vld [vmem:[#allocation26 + $0x7a4] ss:$8 sps:$4 sm:$0xff]  }
0x1362   :  { %9387 = vmatpush1.bf16.msra.mxu0 %v21560_v34  ;;  %v21620_v34 = vld [vmem:[#allocation26 + $0x7a0] ss:$8 sps:$4 sm:$0xff]  }
0x1363   :  { %9388 = vmatprep.subr.bf16.mxu0 %v21565_v22  ;;  %v21625_v22 = vld [vmem:[#allocation26 + $0x7b4] ss:$8 sps:$4 sm:$0xff]  }
0x1366   :  { %9389 = vmatpush1.bf16.msra.mxu0 %v21563_v33  ;;  %v21623_v33 = vld [vmem:[#allocation26 + $0x7b0] ss:$8 sps:$4 sm:$0xff]  }
0x1367   :  { %9390 = vmatprep.subr.bf16.mxu0 %v21568_v50  ;;  %v21628_v50 = vld [vmem:[#allocation26 + $0x7c4] ss:$8 sps:$4 sm:$0xff]  }
0x136a   :  { %9391 = vmatpush1.bf16.msra.mxu0 %v21566_v5  ;;  %v21626_v5 = vld [vmem:[#allocation26 + $0x7c0] ss:$8 sps:$4 sm:$0xff]  }
0x136b   :  { %9392 = vmatprep.subr.bf16.mxu0 %v21571_v20  ;;  %v21631_v20 = vld [vmem:[#allocation26 + $0x7d4] ss:$8 sps:$4 sm:$0xff]  }
0x136e   :  { %9393 = vmatpush1.bf16.msra.mxu0 %v21569_v0  ;;  %v21629_v0 = vld [vmem:[#allocation26 + $0x7d0] ss:$8 sps:$4 sm:$0xff]  }
0x136f   :  { %9394 = vmatprep.subr.bf16.mxu0 %v21574_v51  ;;  %v21634_v51 = vld [vmem:[#allocation26 + $0x7e4] ss:$8 sps:$4 sm:$0xff]  }
0x1372   :  { %9395 = vmatpush1.bf16.msra.mxu0 %v21572_v32  ;;  %v21632_v32 = vld [vmem:[#allocation26 + $0x7e0] ss:$8 sps:$4 sm:$0xff]  }
0x1373   :  { %9396 = vmatprep.subr.bf16.mxu0 %v21577_v4  ;;  %v21637_v4 = vld [vmem:[#allocation26 + $0x7f4] ss:$8 sps:$4 sm:$0xff]  }
0x1376   :  { %9397 = vmatpush1.bf16.msra.mxu0 %v21575_v9  ;;  %v21635_v9 = vld [vmem:[#allocation26 + $0x7f0] ss:$8 sps:$4 sm:$0xff]  }
0x1377   :  { %9398 = vmatprep.subr.bf16.mxu0 %v21580_v59  ;;  %v21640_v59 = vld [vmem:[#allocation26 + $0x804] ss:$8 sps:$4 sm:$0xff]  }
0x137a   :  { %9399 = vmatpush1.bf16.msra.mxu0 %v21578_v23  ;;  %v21638_v23 = vld [vmem:[#allocation26 + $0x800] ss:$8 sps:$4 sm:$0xff]  }
0x137b   :  { %9400 = vmatprep.subr.bf16.mxu0 %v21583_v57  ;;  %v21643_v57 = vld [vmem:[#allocation26 + $0x814] ss:$8 sps:$4 sm:$0xff]  }
0x137e   :  { %9401 = vmatpush1.bf16.msra.mxu0 %v21581_v52  ;;  %v21641_v52 = vld [vmem:[#allocation26 + $0x810] ss:$8 sps:$4 sm:$0xff]  }
0x137f   :  { %9402 = vmatprep.subr.bf16.mxu0 %v21586_v45  ;;  %v21646_v45 = vld [vmem:[#allocation26 + $0x824] ss:$8 sps:$4 sm:$0xff]  }
0x1382   :  { %9403 = vmatpush1.bf16.msra.mxu0 %v21584_v35  ;;  %v21644_v35 = vld [vmem:[#allocation26 + $0x820] ss:$8 sps:$4 sm:$0xff]  }
0x1383   :  { %9404 = vmatprep.subr.bf16.mxu0 %v21589_v13  ;;  %v21649_v13 = vld [vmem:[#allocation26 + $0x834] ss:$8 sps:$4 sm:$0xff]  }
0x1386   :  { %9405 = vmatpush1.bf16.msra.mxu0 %v21587_v2  ;;  %v21647_v2 = vld [vmem:[#allocation26 + $0x830] ss:$8 sps:$4 sm:$0xff]  }
0x1387   :  { %9417 = vmatprep.subr.bf16.mxu0 %v21592_v39  ;;  %v21661_v39 = vld [vmem:[#allocation26 + $0x874] ss:$8 sps:$4 sm:$0xff]  }
0x1389   :  { %18659 = vmatmul.mubr.msk.bf16.vlgmr.msra.gmra.mrb[48].mxu0 %vm24206_vm12, %v24243_v6  ;;  %v21602_v6 = vld [vmem:[#allocation26 + $0x740] ss:$8 sps:$4 sm:$0xff]  }
0x138a   :  { %9418 = vmatpush1.bf16.msra.mxu0 %v21590_v26  ;;  %18662 = vmatprep.mubr.msk.bf16.mxu0 %vm24206_vm12, %v18661_v28  ;;  %v21608_v28 = vld [vmem:[#allocation26 + $0x760] ss:$8 sps:$4 sm:$0xff]   ;;  %v21659_v26 = vld [vmem:[#allocation26 + $0x870] ss:$8 sps:$4 sm:$0xff]  }
0x138b   :  { %9419 = vmatprep.subr.bf16.mxu0 %v21595_v27  ;;  %v21664_v27 = vld [vmem:[#allocation26 + $0x884] ss:$8 sps:$4 sm:$0xff]  }
0x138e   :  { %9420 = vmatpush1.bf16.msra.mxu0 %v21593_v30  ;;  %v21662_v30 = vld [vmem:[#allocation26 + $0x880] ss:$8 sps:$4 sm:$0xff]  }
0x138f   :  { %9421 = vmatprep.subr.bf16.mxu0 %v21598_v7  ;;  %v21667_v7 = vld [vmem:[#allocation26 + $0x894] ss:$8 sps:$4 sm:$0xff]  }
0x1392   :  { %9422 = vmatpush1.bf16.msra.mxu0 %v21596_v1  ;;  %v21665_v1 = vld [vmem:[#allocation26 + $0x890] ss:$8 sps:$4 sm:$0xff]  }
0x1393   :  { %9423 = vmatprep.subr.bf16.mxu0 %v21601_v54  ;;  %v21670_v54 = vld [vmem:[#allocation26 + $0x8a4] ss:$8 sps:$4 sm:$0xff]  }
0x1396   :  { %9424 = vmatpush1.bf16.msra.mxu0 %v21599_v29  ;;  %v21668_v29 = vld [vmem:[#allocation26 + $0x8a0] ss:$8 sps:$4 sm:$0xff]  }
0x1397   :  { %9425 = vmatprep.subr.bf16.mxu0 %v21604_v19  ;;  %v21673_v19 = vld [vmem:[#allocation26 + $0x8b4] ss:$8 sps:$4 sm:$0xff]  }
0x139a   :  { %9426 = vmatpush1.bf16.msra.mxu0 %v21602_v6  ;;  %v21671_v6 = vld [vmem:[#allocation26 + $0x8b0] ss:$8 sps:$4 sm:$0xff]  }
0x139b   :  { %9427 = vmatprep.subr.bf16.mxu0 %v21607_v53  ;;  %v21676_v53 = vld [vmem:[#allocation26 + $0x8c4] ss:$8 sps:$4 sm:$0xff]  }
0x139e   :  { %9428 = vmatpush1.bf16.msra.mxu0 %v21605_v14  ;;  %v21674_v14 = vld [vmem:[#allocation26 + $0x8c0] ss:$8 sps:$4 sm:$0xff]  }
0x139f   :  { %9429 = vmatprep.subr.bf16.mxu0 %v21610_v38  ;;  %v21679_v38 = vld [vmem:[#allocation26 + $0x8d4] ss:$8 sps:$4 sm:$0xff]  }
0x13a2   :  { %9430 = vmatpush1.bf16.msra.mxu0 %v21608_v28  ;;  %v21677_v28 = vld [vmem:[#allocation26 + $0x8d0] ss:$8 sps:$4 sm:$0xff]  }
0x13a3   :  { %9431 = vmatprep.subr.bf16.mxu0 %v21613_v61  ;;  %v21682_v61 = vld [vmem:[#allocation26 + $0x8e4] ss:$8 sps:$4 sm:$0xff]  }
0x13a6   :  { %9432 = vmatpush1.bf16.msra.mxu0 %v21611_v49  ;;  %v21680_v49 = vld [vmem:[#allocation26 + $0x8e0] ss:$8 sps:$4 sm:$0xff]  }
0x13a7   :  { %9433 = vmatprep.subr.bf16.mxu0 %v21616_v47  ;;  %v21685_v47 = vld [vmem:[#allocation26 + $0x8f4] ss:$8 sps:$4 sm:$0xff]  }
0x13aa   :  { %9434 = vmatpush1.bf16.msra.mxu0 %v21614_v31  ;;  %v21683_v31 = vld [vmem:[#allocation26 + $0x8f0] ss:$8 sps:$4 sm:$0xff]  }
0x13ab   :  { %9435 = vmatprep.subr.bf16.mxu0 %v21619_v21  ;;  %v21688_v21 = vld [vmem:[#allocation29 + $0x1c] ss:$60 sps:$4 sm:$0xff]  }
0x13ae   :  { %9436 = vmatpush1.bf16.msra.mxu0 %v21617_v25  ;;  %v21686_v25 = vld [vmem:[#allocation29 + $0x18] ss:$60 sps:$4 sm:$0xff]  }
0x13af   :  { %9437 = vmatprep.subr.bf16.mxu0 %v21622_v36  ;;  %v21691_v36 = vld [vmem:[#allocation29 + $0x94] ss:$60 sps:$4 sm:$0xff]  }
0x13b2   :  { %9438 = vmatpush1.bf16.msra.mxu0 %v21620_v34  ;;  %v21689_v34 = vld [vmem:[#allocation29 + $0x90] ss:$60 sps:$4 sm:$0xff]  }
0x13b3   :  { %9439 = vmatprep.subr.bf16.mxu0 %v21625_v22  ;;  %v21694_v22 = vld [vmem:[#allocation29 + $0x10c] ss:$60 sps:$4 sm:$0xff]  }
0x13b6   :  { %9440 = vmatpush1.bf16.msra.mxu0 %v21623_v33  ;;  %v21692_v33 = vld [vmem:[#allocation29 + $0x108] ss:$60 sps:$4 sm:$0xff]  }
0x13b7   :  { %9441 = vmatprep.subr.bf16.mxu0 %v21628_v50  ;;  %v21697_v50 = vld [vmem:[#allocation29 + $0x184] ss:$60 sps:$4 sm:$0xff]  }
0x13ba   :  { %9442 = vmatpush1.bf16.msra.mxu0 %v21626_v5  ;;  %v21695_v5 = vld [vmem:[#allocation29 + $0x180] ss:$60 sps:$4 sm:$0xff]  }
0x13bb   :  { %9443 = vmatprep.subr.bf16.mxu0 %v21631_v20  ;;  %v21700_v20 = vld [vmem:[#allocation29 + $0x1fc] ss:$60 sps:$4 sm:$0xff]  }
0x13be   :  { %9444 = vmatpush1.bf16.msra.mxu0 %v21629_v0  ;;  %v21698_v0 = vld [vmem:[#allocation29 + $0x1f8] ss:$60 sps:$4 sm:$0xff]  }
0x13bf   :  { %9445 = vmatprep.subr.bf16.mxu0 %v21634_v51  ;;  %v21709_v51 = vld [vmem:[#allocation29 + $0x364] ss:$60 sps:$4 sm:$0xff]  }
0x13c2   :  { %9446 = vmatpush1.bf16.msra.mxu0 %v21632_v32  ;;  %v21707_v32 = vld [vmem:[#allocation29 + $0x360] ss:$60 sps:$4 sm:$0xff]  }
0x13c3   :  { %9447 = vmatprep.subr.bf16.mxu0 %v21637_v4  ;;  %v21712_v4 = vld [vmem:[#allocation29 + $0x3dc] ss:$60 sps:$4 sm:$0xff]  }
0x13c6   :  { %9448 = vmatpush1.bf16.msra.mxu0 %v21635_v9  ;;  %v21710_v9 = vld [vmem:[#allocation29 + $0x3d8] ss:$60 sps:$4 sm:$0xff]  }
0x13c7   :  { %9460 = vmatprep.subr.bf16.mxu0 %v21640_v59  ;;  %v21715_v59 = vld [vmem:[#allocation29 + $0x454] ss:$60 sps:$4 sm:$0xff]  }
0x13c9   :  { %18665 = vmatmul.mubr.msk.bf16.vlgmr.msra.gmra.mrb[48].mxu0 %vm24206_vm12, %v18664_v12  ;;  %v21655_v12 = vld [vmem:[#allocation26 + $0x854] ss:$8 sps:$4 sm:$0xff]  }
0x13ca   :  { %9461 = vmatpush1.bf16.msra.mxu0 %v21638_v23  ;;  %18668 = vmatprep.mubr.msk.bf16.mxu0 %vm24206_vm12, %v18667_v3  ;;  %v21656_v3 = vld [vmem:[#allocation26 + $0x860] ss:$8 sps:$4 sm:$0xff]   ;;  %v21713_v23 = vld [vmem:[#allocation29 + $0x450] ss:$60 sps:$4 sm:$0xff]  }
0x13cb   :  { %9462 = vmatprep.subr.bf16.mxu0 %v21643_v57  ;;  %v21718_v57 = vld [vmem:[#allocation29 + $0x4cc] ss:$60 sps:$4 sm:$0xff]  }
0x13ce   :  { %9463 = vmatpush1.bf16.msra.mxu0 %v21641_v52  ;;  %v21716_v52 = vld [vmem:[#allocation29 + $0x4c8] ss:$60 sps:$4 sm:$0xff]  }
0x13cf   :  { %9464 = vmatprep.subr.bf16.mxu0 %v21646_v45  ;;  %v21721_v45 = vld [vmem:[#allocation29 + $0x544] ss:$60 sps:$4 sm:$0xff]  }
0x13d2   :  { %9465 = vmatpush1.bf16.msra.mxu0 %v21644_v35  ;;  %v21719_v35 = vld [vmem:[#allocation29 + $0x540] ss:$60 sps:$4 sm:$0xff]  }
0x13d3   :  { %9466 = vmatprep.subr.bf16.mxu0 %v21649_v13  ;;  %v21724_v13 = vld [vmem:[#allocation29 + $0x5bc] ss:$60 sps:$4 sm:$0xff]  }
0x13d6   :  { %9467 = vmatpush1.bf16.msra.mxu0 %v21647_v2  ;;  %v21722_v2 = vld [vmem:[#allocation29 + $0x5b8] ss:$60 sps:$4 sm:$0xff]  }
0x13d7   :  { %9468 = vmatprep.subr.bf16.mxu0 %v21652_v37  ;;  %v21727_v37 = vld [vmem:[#allocation29 + $0x634] ss:$60 sps:$4 sm:$0xff]  }
0x13da   :  { %9469 = vmatpush1.bf16.msra.mxu0 %v21650_v62  ;;  %v21725_v62 = vld [vmem:[#allocation29 + $0x630] ss:$60 sps:$4 sm:$0xff]  }
0x13db   :  { %9470 = vmatprep.subr.bf16.mxu0 %v21655_v12  ;;  %v21730_v12 = vld [vmem:[#allocation29 + $0x6ac] ss:$60 sps:$4 sm:$0xff]  }
0x13de   :  { %9471 = vmatpush1.bf16.msra.mxu0 %v21653_v58  ;;  %v21728_v58 = vld [vmem:[#allocation29 + $0x6a8] ss:$60 sps:$4 sm:$0xff]  }
0x13df   :  { %9472 = vmatprep.subr.bf16.mxu0 %v21658_v48  ;;  %v21733_v48 = vld [vmem:[#allocation29 + $0x724] ss:$60 sps:$4 sm:$0xff]  }
0x13e2   :  { %9473 = vmatpush1.bf16.msra.mxu0 %v21656_v3  ;;  %v21731_v3 = vld [vmem:[#allocation29 + $0x720] ss:$60 sps:$4 sm:$0xff]  }
0x13e3   :  { %9474 = vmatprep.subr.bf16.mxu0 %v21661_v39  ;;  %v21736_v39 = vld [vmem:[#allocation29 + $0x79c] ss:$60 sps:$4 sm:$0xff]  }
0x13e6   :  { %9475 = vmatpush1.bf16.msra.mxu0 %v21659_v26  ;;  %v21734_v26 = vld [vmem:[#allocation29 + $0x798] ss:$60 sps:$4 sm:$0xff]  }
0x13e7   :  { %9476 = vmatprep.subr.bf16.mxu0 %v21664_v27  ;;  %v21739_v27 = vld [vmem:[#allocation29 + $0x814] ss:$60 sps:$4 sm:$0xff]  }
0x13ea   :  { %9477 = vmatpush1.bf16.msra.mxu0 %v21662_v30  ;;  %v21737_v30 = vld [vmem:[#allocation29 + $0x810] ss:$60 sps:$4 sm:$0xff]  }
0x13eb   :  { %9478 = vmatprep.subr.bf16.mxu0 %v21667_v7  ;;  %v21742_v7 = vld [vmem:[#allocation29 + $0x88c] ss:$60 sps:$4 sm:$0xff]  }
0x13ee   :  { %9479 = vmatpush1.bf16.msra.mxu0 %v21665_v1  ;;  %v21740_v1 = vld [vmem:[#allocation29 + $0x888] ss:$60 sps:$4 sm:$0xff]  }
0x13ef   :  { %9480 = vmatprep.subr.bf16.mxu0 %v21670_v54  ;;  %v21745_v54 = vld [vmem:[#allocation29 + $0x904] ss:$60 sps:$4 sm:$0xff]  }
0x13f2   :  { %9481 = vmatpush1.bf16.msra.mxu0 %v21668_v29  ;;  %v21743_v29 = vld [vmem:[#allocation29 + $0x900] ss:$60 sps:$4 sm:$0xff]  }
0x13f3   :  { %9482 = vmatprep.subr.bf16.mxu0 %v21673_v19  ;;  %v21748_v19 = vld [vmem:[#allocation29 + $0x97c] ss:$60 sps:$4 sm:$0xff]  }
0x13f6   :  { %9483 = vmatpush1.bf16.msra.mxu0 %v21671_v6  ;;  %v21746_v6 = vld [vmem:[#allocation29 + $0x978] ss:$60 sps:$4 sm:$0xff]  }
0x13f7   :  { %9484 = vmatprep.subr.bf16.mxu0 %v21676_v53  ;;  %v21751_v53 = vld [vmem:[#allocation29 + $0x9f4] ss:$60 sps:$4 sm:$0xff]  }
0x13fa   :  { %9485 = vmatpush1.bf16.msra.mxu0 %v21674_v14  ;;  %v21749_v14 = vld [vmem:[#allocation29 + $0x9f0] ss:$60 sps:$4 sm:$0xff]  }
0x13fb   :  { %9486 = vmatprep.subr.bf16.mxu0 %v21679_v38  ;;  %v21754_v38 = vld [vmem:[#allocation29 + $0xa6c] ss:$60 sps:$4 sm:$0xff]  }
0x13fe   :  { %9487 = vmatpush1.bf16.msra.mxu0 %v21677_v28  ;;  %v21752_v28 = vld [vmem:[#allocation29 + $0xa68] ss:$60 sps:$4 sm:$0xff]  }
0x13ff   :  { %9488 = vmatprep.subr.bf16.mxu0 %v21682_v61  ;;  %v21757_v61 = vld [vmem:[#allocation29 + $0xae4] ss:$60 sps:$4 sm:$0xff]  }
0x1402   :  { %9489 = vmatpush1.bf16.msra.mxu0 %v21680_v49  ;;  %v21832_v49 = vld [vmem:[#allocation29 + $0x1684] ss:$60 sps:$4 sm:$0xff]  }
0x1403   :  { %9490 = vmatprep.subr.bf16.mxu0 %v21685_v47  ;;  %v21830_v47 = vld [vmem:[#allocation29 + $0x1680] ss:$60 sps:$4 sm:$0xff]   ;;  %14880 = vmatprep.subr.bf16.mxu1 %v21832_v49 }
0x1404   :  { %14881 = vmatpush1.bf16.msra.mxu1 %v21830_v47  ;;  %v21808_v49 = vld [vmem:[#allocation29 + $0x12dc] ss:$60 sps:$4 sm:$0xff]  }
0x1405   :  { %v21806_v47 = vld [vmem:[#allocation29 + $0x12d8] ss:$60 sps:$4 sm:$0xff]  }
0x1406   :  { %9491 = vmatpush1.bf16.msra.mxu0 %v21683_v31  ;;  %v21755_v31 = vld [vmem:[#allocation29 + $0xae0] ss:$60 sps:$4 sm:$0xff]  }
0x1407   :  { %15267 = vmatprep.subr.bf16.mxu0 %v21688_v21  ;;  %v21760_v21 = vld [vmem:[#allocation29 + $0xb5c] ss:$60 sps:$4 sm:$0xff]  }
0x1409   :  { %18671 = vmatmul.mubr.msk.bf16.vlgmr.msra.gmra.mrb[48].mxu0 %vm24206_vm12, %v18670_v56  ;;  %v21704_v56 = vld [vmem:[#allocation29 + $0x2e8] ss:$60 sps:$4 sm:$0xff]  }
0x140a   :  { %15268 = vmatpush1.bf16.msra.mxu0 %v21686_v25  ;;  %15299 = vmatprep.mubr.bf16.mxu0 %v24170_v24  ;;  %v21838_v25 = vld [vmem:[#allocation29 + $0x16fc] ss:$60 sps:$4 sm:$0xff]  }
0x140b   :  { %15269 = vmatprep.subr.bf16.mxu0 %v21691_v36  ;;  %v21836_v36 = vld [vmem:[#allocation29 + $0x16f8] ss:$60 sps:$4 sm:$0xff]   ;;  %14882 = vmatprep.subr.bf16.mxu1 %v21838_v25  ;;  %v21814_v25 = vld [vmem:[#allocation29 + $0x13cc] ss:$60 sps:$4 sm:$0xff]  }
0x140c   :  { %14883 = vmatpush1.bf16.msra.mxu1 %v21836_v36  ;;  %v21812_v36 = vld [vmem:[#allocation29 + $0x13c8] ss:$60 sps:$4 sm:$0xff]  }
0x140e   :  { %15270 = vmatpush1.bf16.msra.mxu0 %v21689_v34  ;;  %v21758_v34 = vld [vmem:[#allocation29 + $0xb58] ss:$60 sps:$4 sm:$0xff]  }
0x140f   :  { %15271 = vmatprep.subr.bf16.mxu0 %v21694_v22  ;;  %v21763_v22 = vld [vmem:[#allocation29 + $0xbd4] ss:$60 sps:$4 sm:$0xff]  }
0x1412   :  { %15272 = vmatpush1.bf16.msra.mxu0 %v21692_v33  ;;  %v21844_v33 = vld [vmem:[#allocation29 + $0x1774] ss:$60 sps:$4 sm:$0xff]  }
0x1413   :  { %15273 = vmatprep.subr.bf16.mxu0 %v21697_v50  ;;  %v21842_v50 = vld [vmem:[#allocation29 + $0x1770] ss:$60 sps:$4 sm:$0xff]   ;;  %14884 = vmatprep.subr.bf16.mxu1 %v21844_v33  ;;  %v21820_v33 = vld [vmem:[#allocation29 + $0x14bc] ss:$60 sps:$4 sm:$0xff]  }
0x1414   :  { %14885 = vmatpush1.bf16.msra.mxu1 %v21842_v50  ;;  %v21818_v50 = vld [vmem:[#allocation29 + $0x14b8] ss:$60 sps:$4 sm:$0xff]  }
0x1416   :  { %15274 = vmatpush1.bf16.msra.mxu0 %v21695_v5  ;;  %v21761_v5 = vld [vmem:[#allocation29 + $0xbd0] ss:$60 sps:$4 sm:$0xff]  }
0x1417   :  { %15275 = vmatprep.subr.bf16.mxu0 %v21700_v20  ;;  %v21766_v20 = vld [vmem:[#allocation29 + $0xc4c] ss:$60 sps:$4 sm:$0xff]  }
0x141a   :  { %15276 = vmatpush1.bf16.msra.mxu0 %v21698_v0  ;;  %v21850_v0 = vld [vmem:[#allocation29 + $0x17ec] ss:$60 sps:$4 sm:$0xff]  }
0x141b   :  { %15277 = vmatprep.subr.bf16.mxu0 %v21703_v10  ;;  %v21848_v10 = vld [vmem:[#allocation29 + $0x17e8] ss:$60 sps:$4 sm:$0xff]   ;;  %14886 = vmatprep.subr.bf16.mxu1 %v21850_v0 }
0x141c   :  { %14887 = vmatpush1.bf16.msra.mxu1 %v21848_v10  ;;  %v21826_v0 = vld [vmem:[#allocation29 + $0x15ac] ss:$60 sps:$4 sm:$0xff]  }
0x141d   :  { %v21824_v10 = vld [vmem:[#allocation29 + $0x15a8] ss:$60 sps:$4 sm:$0xff]  }
0x141e   :  { %15278 = vmatpush1.bf16.msra.mxu0 %v21701_v60  ;;  %v21764_v60 = vld [vmem:[#allocation29 + $0xc48] ss:$60 sps:$4 sm:$0xff]  }
0x141f   :  { %15279 = vmatprep.subr.bf16.mxu0 %v21706_v8  ;;  %v21769_v8 = vld [vmem:[#allocation29 + $0xcc4] ss:$60 sps:$4 sm:$0xff]  }
0x1422   :  { %15280 = vmatpush1.bf16.msra.mxu0 %v21704_v56  ;;  %v21856_v56 = vld [vmem:[#allocation29 + $0x1864] ss:$60 sps:$4 sm:$0xff]  }
0x1423   :  { %15281 = vmatprep.subr.bf16.mxu0 %v21709_v51  ;;  %v21854_v51 = vld [vmem:[#allocation29 + $0x1860] ss:$60 sps:$4 sm:$0xff]   ;;  %14888 = vmatprep.subr.bf16.mxu1 %v21856_v56 }
0x1424   :  { %14889 = vmatpush1.bf16.msra.mxu1 %v21854_v51  ;;  %v21835_v56 = vld [vmem:[#allocation29 + $0x169c] ss:$60 sps:$4 sm:$0xff]  }
0x1425   :  { %v21833_v51 = vld [vmem:[#allocation29 + $0x1698] ss:$60 sps:$4 sm:$0xff]  }
0x1426   :  { %15282 = vmatpush1.bf16.msra.mxu0 %v21707_v32  ;;  %v21767_v32 = vld [vmem:[#allocation29 + $0xcc0] ss:$60 sps:$4 sm:$0xff]  }
0x1427   :  { %15283 = vmatprep.subr.bf16.mxu0 %v21712_v4  ;;  %v21772_v4 = vld [vmem:[#allocation29 + $0xd3c] ss:$60 sps:$4 sm:$0xff]  }
0x142a   :  { %15284 = vmatpush1.bf16.msra.mxu0 %v21710_v9  ;;  %v21862_v9 = vld [vmem:[#allocation29 + $0x18dc] ss:$60 sps:$4 sm:$0xff]  }
0x142b   :  { %15285 = vmatprep.subr.bf16.mxu0 %v21715_v59  ;;  %v21860_v59 = vld [vmem:[#allocation29 + $0x18d8] ss:$60 sps:$4 sm:$0xff]   ;;  %14890 = vmatprep.subr.bf16.mxu1 %v21862_v9  ;;  %v21847_v9 = vld [vmem:[#allocation29 + $0x178c] ss:$60 sps:$4 sm:$0xff]  }
0x142c   :  { %14891 = vmatpush1.bf16.msra.mxu1 %v21860_v59  ;;  %v21845_v59 = vld [vmem:[#allocation29 + $0x1788] ss:$60 sps:$4 sm:$0xff]  }
0x142e   :  { %15286 = vmatpush1.bf16.msra.mxu0 %v21713_v23  ;;  %v21770_v23 = vld [vmem:[#allocation29 + $0xd38] ss:$60 sps:$4 sm:$0xff]  }
0x142f   :  { %15287 = vmatprep.subr.bf16.mxu0 %v21718_v57  ;;  %v21775_v57 = vld [vmem:[#allocation29 + $0xdb4] ss:$60 sps:$4 sm:$0xff]  }
0x1432   :  { %15288 = vmatpush1.bf16.msra.mxu0 %v21716_v52  ;;  %v21868_v52 = vld [vmem:[#allocation29 + $0x1954] ss:$60 sps:$4 sm:$0xff]  }
0x1433   :  { %15289 = vmatprep.subr.bf16.mxu0 %v21721_v45  ;;  %v21866_v45 = vld [vmem:[#allocation29 + $0x1950] ss:$60 sps:$4 sm:$0xff]   ;;  %14892 = vmatprep.subr.bf16.mxu1 %v21868_v52  ;;  %v21859_v52 = vld [vmem:[#allocation29 + $0x187c] ss:$60 sps:$4 sm:$0xff]  }
0x1434   :  { %14893 = vmatpush1.bf16.msra.mxu1 %v21866_v45  ;;  %v21857_v45 = vld [vmem:[#allocation29 + $0x1878] ss:$60 sps:$4 sm:$0xff]  }
0x1436   :  { %15290 = vmatpush1.bf16.msra.mxu0 %v21719_v35  ;;  %v21773_v35 = vld [vmem:[#allocation29 + $0xdb0] ss:$60 sps:$4 sm:$0xff]  }
0x1437   :  { %15291 = vmatprep.subr.bf16.mxu0 %v21724_v13  ;;  %v21778_v13 = vld [vmem:[#allocation29 + $0xe2c] ss:$60 sps:$4 sm:$0xff]  }
0x143a   :  { %15292 = vmatpush1.bf16.msra.mxu0 %v21722_v2  ;;  %v21874_v2 = vld [vmem:[#allocation29 + $0x19cc] ss:$60 sps:$4 sm:$0xff]  }
0x143b   :  { %15293 = vmatprep.subr.bf16.mxu0 %v21727_v37  ;;  %v21872_v37 = vld [vmem:[#allocation29 + $0x19c8] ss:$60 sps:$4 sm:$0xff]   ;;  %14894 = vmatprep.subr.bf16.mxu1 %v21874_v2 }
0x143c   :  { %14895 = vmatpush1.bf16.msra.mxu1 %v21872_v37  ;;  %v21863_v37 = vld [vmem:[#allocation29 + $0x18f0] ss:$60 sps:$4 sm:$0xff]  }
0x143e   :  { %15294 = vmatpush1.bf16.msra.mxu0 %v21725_v62  ;;  %v21776_v62 = vld [vmem:[#allocation29 + $0xe28] ss:$60 sps:$4 sm:$0xff]  }
0x143f   :  { %15295 = vmatprep.subr.bf16.mxu0 %v21730_v12  ;;  %v21880_v12 = vld [vmem:[#allocation29 + $0xc] ss:$60 sps:$4 sm:$0xff]  }
0x1440   :  { %14923 = vmatprep.subr.bf16.mxu1 %v21880_v12 }
0x1442   :  { %15296 = vmatpush1.bf16.msra.mxu0 %v21728_v58  ;;  %v21781_v58 = vld [vmem:[#allocation29 + $0xea4] ss:$60 sps:$4 sm:$0xff]  }
0x1443   :  { %15297 = vmatprep.subr.bf16.mxu0 %v21733_v48  ;;  %v21779_v48 = vld [vmem:[#allocation29 + $0xea0] ss:$60 sps:$4 sm:$0xff]  }
0x1446   :  { %15298 = vmatpush1.bf16.msra.mxu0 %v21731_v3  ;;  %v21784_v3 = vld [vmem:[#allocation29 + $0xf1c] ss:$60 sps:$4 sm:$0xff]  }
0x1447   :  { %15310 = vmatprep.subr.bf16.mxu0 %v21736_v39  ;;  %v21782_v39 = vld [vmem:[#allocation29 + $0xf18] ss:$60 sps:$4 sm:$0xff]  }
0x1449   :  { %15300 = vmatmul.mubr.bf16.vlgmr.msra.gmra.mrb[52].mxu0 %v24016_v44 }
0x144a   :  { %15311 = vmatpush1.bf16.msra.mxu0 %v21734_v26  ;;  %15342 = vmatprep.mubr.bf16.mxu0 %v24383_v11  ;;  %v21787_v26 = vld [vmem:[#allocation29 + $0xf94] ss:$60 sps:$4 sm:$0xff]  }
0x144b   :  { %15312 = vmatprep.subr.bf16.mxu0 %v21739_v27  ;;  %v21785_v27 = vld [vmem:[#allocation29 + $0xf90] ss:$60 sps:$4 sm:$0xff]  }
0x144e   :  { %15313 = vmatpush1.bf16.msra.mxu0 %v21737_v30  ;;  %v21790_v30 = vld [vmem:[#allocation29 + $0x100c] ss:$60 sps:$4 sm:$0xff]  }
0x144f   :  { %15314 = vmatprep.subr.bf16.mxu0 %v21742_v7  ;;  %v21788_v7 = vld [vmem:[#allocation29 + $0x1008] ss:$60 sps:$4 sm:$0xff]  }
0x1452   :  { %15315 = vmatpush1.bf16.msra.mxu0 %v21740_v1  ;;  %v21793_v1 = vld [vmem:[#allocation29 + $0x1084] ss:$60 sps:$4 sm:$0xff]  }
0x1453   :  { %15316 = vmatprep.subr.bf16.mxu0 %v21745_v54  ;;  %v21791_v54 = vld [vmem:[#allocation29 + $0x1080] ss:$60 sps:$4 sm:$0xff]  }
0x1456   :  { %15317 = vmatpush1.bf16.msra.mxu0 %v21743_v29  ;;  %v21796_v29 = vld [vmem:[#allocation29 + $0x10fc] ss:$60 sps:$4 sm:$0xff]  }
0x1457   :  { %15318 = vmatprep.subr.bf16.mxu0 %v21748_v19  ;;  %v21794_v19 = vld [vmem:[#allocation29 + $0x10f8] ss:$60 sps:$4 sm:$0xff]  }
0x145a   :  { %15319 = vmatpush1.bf16.msra.mxu0 %v21746_v6  ;;  %v21799_v6 = vld [vmem:[#allocation29 + $0x1174] ss:$60 sps:$4 sm:$0xff]  }
0x145b   :  { %15320 = vmatprep.subr.bf16.mxu0 %v21751_v53  ;;  %v21797_v53 = vld [vmem:[#allocation29 + $0x1170] ss:$60 sps:$4 sm:$0xff]  }
0x145e   :  { %15321 = vmatpush1.bf16.msra.mxu0 %v21749_v14  ;;  %v21802_v14 = vld [vmem:[#allocation29 + $0x11ec] ss:$60 sps:$4 sm:$0xff]  }
0x145f   :  { %15322 = vmatprep.subr.bf16.mxu0 %v21754_v38  ;;  %v21800_v38 = vld [vmem:[#allocation29 + $0x11e8] ss:$60 sps:$4 sm:$0xff]  }
0x1462   :  { %15323 = vmatpush1.bf16.msra.mxu0 %v21752_v28  ;;  %v21805_v28 = vld [vmem:[#allocation29 + $0x1264] ss:$60 sps:$4 sm:$0xff]  }
0x1463   :  { %15324 = vmatprep.subr.bf16.mxu0 %v21757_v61  ;;  %v21803_v61 = vld [vmem:[#allocation29 + $0x1260] ss:$60 sps:$4 sm:$0xff]  }
0x1466   :  { %15325 = vmatpush1.bf16.msra.mxu0 %v21755_v31  ;;  %v21811_v31 = vld [vmem:[#allocation29 + $0x1354] ss:$60 sps:$4 sm:$0xff]  }
0x1467   :  { %15326 = vmatprep.subr.bf16.mxu0 %v21760_v21  ;;  %v21809_v21 = vld [vmem:[#allocation29 + $0x1350] ss:$60 sps:$4 sm:$0xff]  }
0x146a   :  { %15327 = vmatpush1.bf16.msra.mxu0 %v21758_v34  ;;  %v21817_v34 = vld [vmem:[#allocation29 + $0x1444] ss:$60 sps:$4 sm:$0xff]  }
0x146b   :  { %15328 = vmatprep.subr.bf16.mxu0 %v21763_v22  ;;  %v21815_v22 = vld [vmem:[#allocation29 + $0x1440] ss:$60 sps:$4 sm:$0xff]  }
0x146e   :  { %15329 = vmatpush1.bf16.msra.mxu0 %v21761_v5  ;;  %v21823_v5 = vld [vmem:[#allocation29 + $0x1534] ss:$60 sps:$4 sm:$0xff]  }
0x146f   :  { %15330 = vmatprep.subr.bf16.mxu0 %v21766_v20  ;;  %v21821_v20 = vld [vmem:[#allocation29 + $0x1530] ss:$60 sps:$4 sm:$0xff]  }
0x1472   :  { %15331 = vmatpush1.bf16.msra.mxu0 %v21764_v60  ;;  %v21829_v60 = vld [vmem:[#allocation29 + $0x1624] ss:$60 sps:$4 sm:$0xff]  }
0x1473   :  { %15332 = vmatprep.subr.bf16.mxu0 %v21769_v8  ;;  %v21827_v8 = vld [vmem:[#allocation29 + $0x1620] ss:$60 sps:$4 sm:$0xff]  }
0x1476   :  { %15333 = vmatpush1.bf16.msra.mxu0 %v21767_v32  ;;  %v21841_v32 = vld [vmem:[#allocation29 + $0x1714] ss:$60 sps:$4 sm:$0xff]  }
0x1477   :  { %15334 = vmatprep.subr.bf16.mxu0 %v21772_v4  ;;  %v21839_v4 = vld [vmem:[#allocation29 + $0x1710] ss:$60 sps:$4 sm:$0xff]  }
0x147a   :  { %15335 = vmatpush1.bf16.msra.mxu0 %v21770_v23  ;;  %v21853_v23 = vld [vmem:[#allocation29 + $0x1804] ss:$60 sps:$4 sm:$0xff]  }
0x147b   :  { %15336 = vmatprep.subr.bf16.mxu0 %v21775_v57  ;;  %v21851_v57 = vld [vmem:[#allocation29 + $0x1800] ss:$60 sps:$4 sm:$0xff]  }
0x147e   :  { %15337 = vmatpush1.bf16.msra.mxu0 %v21773_v35  ;;  %v7664_v35 = vld [vmem:[#allocation28] sm:$0x3] }
0x147f   :  { %15338 = vmatprep.subr.bf16.mxu0 %v21778_v13  ;;  %v21865_v13 = vld [vmem:[#allocation29 + $0x18f4] ss:$60 sps:$4 sm:$0xff]   ;;  %v7673_v2 = vrot.slane %v7664_v35, %v23926_v16 }
0x1482   :  { %15339 = vmatpush1.bf16.msra.mxu0 %v21776_v62  ;;  %v21871_v62 = vld [vmem:[#allocation29 + $0x196c] ss:$60 sps:$4 sm:$0xff]  }
0x1483   :  { %15340 = vmatprep.subr.bf16.mxu0 %v21781_v58 }
0x1486   :  { %15341 = vmatpush1.bf16.msra.mxu0 %v21779_v48 }
0x1487   :  { %15353 = vmatprep.subr.bf16.mxu0 %v21784_v3 }
0x1489   :  { %15343 = vmatmul.mubr.bf16.vlgmr.msra.gmra.mrb[52].mxu0 %v24376_v40 }
0x148a   :  { %15354 = vmatpush1.bf16.msra.mxu0 %v21782_v39  ;;  %15385 = vmatprep.mubr.bf16.mxu0 %v24551_v41  ;;  %v21869_v39 = vld [vmem:[#allocation29 + $0x1968] ss:$60 sps:$4 sm:$0xff]  }
0x148b   :  { %15355 = vmatprep.subr.bf16.mxu0 %v21787_v26 }
0x148e   :  { %15356 = vmatpush1.bf16.msra.mxu0 %v21785_v27  ;;  %v21877_v27 = vld [vmem:[#allocation29 + $0x19e4] ss:$60 sps:$4 sm:$0xff]  }
0x148f   :  { %15357 = vmatprep.subr.bf16.mxu0 %v21790_v30 }
0x1492   :  { %15358 = vmatpush1.bf16.msra.mxu0 %v21788_v7 }
0x1493   :  { %15359 = vmatprep.subr.bf16.mxu0 %v21793_v1 }
0x1496   :  { %15360 = vmatpush1.bf16.msra.mxu0 %v21791_v54  ;;  %v21875_v54 = vld [vmem:[#allocation29 + $0x19e0] ss:$60 sps:$4 sm:$0xff]  }
0x1497   :  { %15361 = vmatprep.subr.bf16.mxu0 %v21796_v29  ;;  %v21883_v29 = vld [vmem:[#allocation29 + $0x2c] ss:$60 sps:$4 sm:$0xff]  }
0x149a   :  { %15362 = vmatpush1.bf16.msra.mxu0 %v21794_v19  ;;  %v7669_v19 = vrot.slane %v7664_v35, %v23947_v42  ;;  %v21913_v35 = vld [vmem:[#allocation29 + $0x284] ss:$60 sps:$4 sm:$0xff]  }
0x149b   :  { %15363 = vmatprep.subr.bf16.mxu0 %v21799_v6 }
0x149e   :  { %15364 = vmatpush1.bf16.msra.mxu0 %v21797_v53 }
0x149f   :  { %15365 = vmatprep.subr.bf16.mxu0 %v21802_v14 }
0x14a2   :  { %15366 = vmatpush1.bf16.msra.mxu0 %v21800_v38 }
0x14a3   :  { %15367 = vmatprep.subr.bf16.mxu0 %v21805_v28 }
0x14a6   :  { %15368 = vmatpush1.bf16.msra.mxu0 %v21803_v61 }
0x14a7   :  { %15369 = vmatprep.subr.bf16.mxu0 %v21808_v49 }
0x14aa   :  { %15370 = vmatpush1.bf16.msra.mxu0 %v21806_v47 }
0x14ab   :  { %15371 = vmatprep.subr.bf16.mxu0 %v21811_v31 }
0x14ae   :  { %15372 = vmatpush1.bf16.msra.mxu0 %v21809_v21 }
0x14af   :  { %15373 = vmatprep.subr.bf16.mxu0 %v21814_v25 }
0x14b2   :  { %15374 = vmatpush1.bf16.msra.mxu0 %v21812_v36 }
0x14b3   :  { %15375 = vmatprep.subr.bf16.mxu0 %v21817_v34  ;;  %v21878_v34 = vld [vmem:[#allocation29 + $0x8] ss:$60 sps:$4 sm:$0xff]  }
0x14b6   :  { %15376 = vmatpush1.bf16.msra.mxu0 %v21815_v22  ;;  %v21881_v22 = vld [vmem:[#allocation29 + $0x28] ss:$60 sps:$4 sm:$0xff]  }
0x14b7   :  { %15377 = vmatprep.subr.bf16.mxu0 %v21820_v33 }
0x14ba   :  { %15378 = vmatpush1.bf16.msra.mxu0 %v21818_v50  ;;  %v21886_v50 = vld [vmem:[#allocation29 + $0x84] ss:$60 sps:$4 sm:$0xff]  }
0x14bb   :  { %15379 = vmatprep.subr.bf16.mxu0 %v21823_v5  ;;  %v21889_v5 = vld [vmem:[#allocation29 + $0xa4] ss:$60 sps:$4 sm:$0xff]  }
0x14be   :  { %15380 = vmatpush1.bf16.msra.mxu0 %v21821_v20  ;;  %v21884_v20 = vld [vmem:[#allocation29 + $0x80] ss:$60 sps:$4 sm:$0xff]  }
0x14bf   :  { %15381 = vmatprep.subr.bf16.mxu0 %v21826_v0  ;;  %v21887_v0 = vld [vmem:[#allocation29 + $0xa0] ss:$60 sps:$4 sm:$0xff]  }
0x14c2   :  { %15382 = vmatpush1.bf16.msra.mxu0 %v21824_v10  ;;  %v21892_v10 = vld [vmem:[#allocation29 + $0xfc] ss:$60 sps:$4 sm:$0xff]  }
0x14c3   :  { %15383 = vmatprep.subr.bf16.mxu0 %v21829_v60  ;;  %v21895_v60 = vld [vmem:[#allocation29 + $0x11c] ss:$60 sps:$4 sm:$0xff]  }
0x14c6   :  { %15384 = vmatpush1.bf16.msra.mxu0 %v21827_v8  ;;  %v21890_v8 = vld [vmem:[#allocation29 + $0xf8] ss:$60 sps:$4 sm:$0xff]  }
0x14c7   :  { %15396 = vmatprep.subr.bf16.mxu0 %v21835_v56  ;;  %v21893_v56 = vld [vmem:[#allocation29 + $0x118] ss:$60 sps:$4 sm:$0xff]  }
0x14c9   :  { %15386 = vmatmul.mubr.bf16.vlgmr.msra.gmra.mrb[52].mxu0 %v24490_v43 }
0x14ca   :  { %15397 = vmatpush1.bf16.msra.mxu0 %v21833_v51  ;;  %15428 = vmatprep.mubr.bf16.mxu0 %v25241_v18  ;;  %v21898_v51 = vld [vmem:[#allocation29 + $0x174] ss:$60 sps:$4 sm:$0xff]  }
0x14cb   :  { %15398 = vmatprep.subr.bf16.mxu0 %v21841_v32  ;;  %v21901_v32 = vld [vmem:[#allocation29 + $0x194] ss:$60 sps:$4 sm:$0xff]  }
0x14ce   :  { %15399 = vmatpush1.bf16.msra.mxu0 %v21839_v4  ;;  %v21896_v4 = vld [vmem:[#allocation29 + $0x170] ss:$60 sps:$4 sm:$0xff]  }
0x14cf   :  { %15400 = vmatprep.subr.bf16.mxu0 %v21847_v9  ;;  %v21899_v9 = vld [vmem:[#allocation29 + $0x190] ss:$60 sps:$4 sm:$0xff]  }
0x14d2   :  { %15401 = vmatpush1.bf16.msra.mxu0 %v21845_v59  ;;  %v21904_v59 = vld [vmem:[#allocation29 + $0x1ec] ss:$60 sps:$4 sm:$0xff]  }
0x14d3   :  { %15402 = vmatprep.subr.bf16.mxu0 %v21853_v23  ;;  %v21907_v23 = vld [vmem:[#allocation29 + $0x20c] ss:$60 sps:$4 sm:$0xff]  }
0x14d6   :  { %15403 = vmatpush1.bf16.msra.mxu0 %v21851_v57  ;;  %v21902_v57 = vld [vmem:[#allocation29 + $0x1e8] ss:$60 sps:$4 sm:$0xff]  }
0x14d7   :  { %15404 = vmatprep.subr.bf16.mxu0 %v21859_v52  ;;  %v21905_v52 = vld [vmem:[#allocation29 + $0x208] ss:$60 sps:$4 sm:$0xff]  }
0x14da   :  { %15405 = vmatpush1.bf16.msra.mxu0 %v21857_v45  ;;  %v21910_v45 = vld [vmem:[#allocation29 + $0x264] ss:$60 sps:$4 sm:$0xff]  }
0x14db   :  { %15406 = vmatprep.subr.bf16.mxu0 %v21865_v13  ;;  %v21908_v13 = vld [vmem:[#allocation29 + $0x260] ss:$60 sps:$4 sm:$0xff]  }
0x14dc   :  { %v9494_v12 = vpop.f32.mrb[48].mxu0 }
0x14dd   :  { %v9496_v58 = vpop.f32.mrb[49].mxu0  ;;  %v20058_v6 = vadd.f32 %v9494_v12, %v7669_v19  ;;  %v21914_v12 = vld [vmem:[#allocation29 + $0x2d8] ss:$60 sps:$4 sm:$0xff]  }
0x14de   :  { %v20059_v48 = vadd.f32 %v9496_v58, %v7673_v2  ;;  %v9498_v3 = vpop.f32.mrb[50].mxu0  ;;  %15407 = vmatpush1.bf16.msra.mxu0 %v21863_v37  ;;  %v21916_v37 = vld [vmem:[#allocation29 + $0x2dc] ss:$60 sps:$4 sm:$0xff]  }
0x14df   :  { %v9500_v26 = vpop.f32.mrb[51].mxu0  ;;  %15408 = vmatprep.subr.bf16.mxu0 %v21871_v62  ;;  %v20060_v14 = vadd.f32 %v9498_v3, %v7669_v19  ;;  %v21919_v62 = vld [vmem:[#allocation29 + $0x2fc] ss:$60 sps:$4 sm:$0xff]   ;;  %v21925_v3 = vld [vmem:[#allocation29 + $0x374] ss:$60 sps:$4 sm:$0xff]  }
0x14e0   :  { %v18672_v30 = vmul.f32 -1.442695, %v20059_v48  ;;  %v20061_v7 = vadd.f32 %v9500_v26, %v7673_v2  ;;  %v21911_v2 = vld [vmem:[#allocation29 + $0x280] ss:$60 sps:$4 sm:$0xff]   ;;  %v21917_v58 = vld [vmem:[#allocation29 + $0x2f8] ss:$60 sps:$4 sm:$0xff]  }
0x14e1   :  { %v21922_v48 = vld [vmem:[#allocation29 + $0x354] ss:$60 sps:$4 sm:$0xff]   ;;  %v21932_v19 = vld [vmem:[#allocation29 + $0x440] ss:$60 sps:$4 sm:$0xff]  }
0x14e2   :  { %22930 = vpow2.f32 %v18672_v30  ;;  %v18673_v1 = vmul.f32 -1.442695, %v20061_v7  ;;  %15409 = vmatpush1.bf16.msra.mxu0 %v21869_v39  ;;  %v21920_v39 = vld [vmem:[#allocation29 + $0x350] ss:$60 sps:$4 sm:$0xff]   ;;  %v21926_v7 = vld [vmem:[#allocation29 + $0x3c8] ss:$60 sps:$4 sm:$0xff]  }
0x14e3   :  { %15410 = vmatprep.subr.bf16.mxu0 %v21877_v27  ;;  %v21923_v26 = vld [vmem:[#allocation29 + $0x370] ss:$60 sps:$4 sm:$0xff]  }
0x14e4   :  { %22932 = vpow2.f32 %v18673_v1  ;;  %v21928_v27 = vld [vmem:[#allocation29 + $0x3cc] ss:$60 sps:$4 sm:$0xff]  }
0x14e5   :  { %22934 = vtanh.f32 %v20058_v6  ;;  %v21931_v30 = vld [vmem:[#allocation29 + $0x3ec] ss:$60 sps:$4 sm:$0xff]   ;;  %v21935_v6 = vld [vmem:[#allocation29 + $0x460] ss:$60 sps:$4 sm:$0xff]  }
0x14e6   :  { %15411 = vmatpush1.bf16.msra.mxu0 %v21875_v54  ;;  %v21929_v1 = vld [vmem:[#allocation29 + $0x3e8] ss:$60 sps:$4 sm:$0xff]  }
0x14e7   :  { %15611 = vmatprep.subr.bf16.mxu0 %v21883_v29  ;;  %v21934_v54 = vld [vmem:[#allocation29 + $0x444] ss:$60 sps:$4 sm:$0xff]  }
0x14e8   :  { %v21937_v29 = vld [vmem:[#allocation29 + $0x464] ss:$60 sps:$4 sm:$0xff]  }
0x14ec   :  { %v22931_v53 = vpop.eup %22930 }
0x14ed   :  { %v9511_v38 = vadd.f32 1.0, %v22931_v53  ;;  %v21940_v53 = vld [vmem:[#allocation29 + $0x4bc] ss:$60 sps:$4 sm:$0xff]  }
0x14ee   :  { %v22933_v28 = vpop.eup %22932 }
0x14ef   :  { %22936 = vrcp.f32 %v9511_v38  ;;  %v9512_v61 = vadd.f32 1.0, %v22933_v28  ;;  %v22935_v49 = vpop.eup %22934  ;;  %v21938_v38 = vld [vmem:[#allocation29 + $0x4b8] ss:$60 sps:$4 sm:$0xff]  }
0x14f0   :  { %22938 = vtanh.f32 %v20060_v14  ;;  %v21943_v14 = vld [vmem:[#allocation29 + $0x4dc] ss:$60 sps:$4 sm:$0xff]  }
0x14f1   :  { %22940 = vrcp.f32 %v9512_v61  ;;  %v21941_v28 = vld [vmem:[#allocation29 + $0x4d8] ss:$60 sps:$4 sm:$0xff]  }
0x14f2   :  { %v21946_v61 = vld [vmem:[#allocation29 + $0x534] ss:$60 sps:$4 sm:$0xff]  }
0x14f9   :  { %v22937_v47 = vpop.eup %22936 }
0x14fa   :  { %v22939_v31 = vpop.eup %22938  ;;  %v9517_v21 = vmul.f32 %v22937_v47, %v22935_v49  ;;  %v21949_v49 = vld [vmem:[#allocation29 + $0x554] ss:$60 sps:$4 sm:$0xff]  }
0x14fb   :  { %v22941_v25 = vpop.eup %22940  ;;  %v21944_v47 = vld [vmem:[#allocation29 + $0x530] ss:$60 sps:$4 sm:$0xff]  }
0x14fc   :  { %v9518_v36 = vmul.f32 %v22941_v25, %v22939_v31  ;;  %v21947_v31 = vld [vmem:[#allocation29 + $0x550] ss:$60 sps:$4 sm:$0xff]  }
0x14fd   :  { %v21955_v25 = vld [vmem:[#allocation29 + $0x5cc] ss:$60 sps:$4 sm:$0xff]  }
0x14fe   :  { %v24614_v33 = vpack.c.bf16 %v9518_v36, %v9517_v21  ;;  %v21952_v21 = vld [vmem:[#allocation29 + $0x5ac] ss:$60 sps:$4 sm:$0xff]  }
0x14ff   :  { %v21950_v36 = vld [vmem:[#allocation29 + $0x5a8] ss:$60 sps:$4 sm:$0xff]  }
0x1500   :  { %14913 = vmatmul.mubr.bf16.vlgmr.msra.gmra.mrb[48].mxu1 %v24614_v33  ;;  %15429 = vmatmul.mubr.bf16.vlgmr.msra.gmra.mrb[52].mxu0 %v24614_v33 }
0x1501   :  { %14924 = vmatpush1.bf16.msra.mxu1 %v21878_v34  ;;  %15612 = vmatpush1.bf16.msra.mxu0 %v21881_v22  ;;  %v21953_v34 = vld [vmem:[#allocation29 + $0x5c8] ss:$60 sps:$4 sm:$0xff]  }
0x1502   :  { %14955 = vmatprep.mubr.bf16.mxu1 %v24170_v24  ;;  %15643 = vmatprep.mubr.bf16.mxu0 %v24170_v24  ;;  %v21958_v22 = vld [vmem:[#allocation29 + $0x624] ss:$60 sps:$4 sm:$0xff]  }
0x1503   :  { %14925 = vmatprep.subr.bf16.mxu1 %v21886_v50  ;;  %15613 = vmatprep.subr.bf16.mxu0 %v21889_v5  ;;  %v21961_v50 = vld [vmem:[#allocation29 + $0x644] ss:$60 sps:$4 sm:$0xff]  }
0x1504   :  { %v21956_v5 = vld [vmem:[#allocation29 + $0x620] ss:$60 sps:$4 sm:$0xff]  }
0x1505   :  { %14926 = vmatpush1.bf16.msra.mxu1 %v21884_v20  ;;  %15614 = vmatpush1.bf16.msra.mxu0 %v21887_v0  ;;  %v21959_v20 = vld [vmem:[#allocation29 + $0x640] ss:$60 sps:$4 sm:$0xff]  }
0x1506   :  { %14927 = vmatprep.subr.bf16.mxu1 %v21892_v10  ;;  %15615 = vmatprep.subr.bf16.mxu0 %v21895_v60  ;;  %v21964_v0 = vld [vmem:[#allocation29 + $0x69c] ss:$60 sps:$4 sm:$0xff]  }
0x1507   :  { %v21967_v10 = vld [vmem:[#allocation29 + $0x6bc] ss:$60 sps:$4 sm:$0xff]  }
0x1508   :  { %v21962_v60 = vld [vmem:[#allocation29 + $0x698] ss:$60 sps:$4 sm:$0xff]  }
0x1509   :  { %14928 = vmatpush1.bf16.msra.mxu1 %v21890_v8  ;;  %15616 = vmatpush1.bf16.msra.mxu0 %v21893_v56  ;;  %v21965_v8 = vld [vmem:[#allocation29 + $0x6b8] ss:$60 sps:$4 sm:$0xff]  }
0x150a   :  { %14929 = vmatprep.subr.bf16.mxu1 %v21898_v51  ;;  %15617 = vmatprep.subr.bf16.mxu0 %v21901_v32  ;;  %v21970_v56 = vld [vmem:[#allocation29 + $0x714] ss:$60 sps:$4 sm:$0xff]  }
0x150b   :  { %v21973_v51 = vld [vmem:[#allocation29 + $0x734] ss:$60 sps:$4 sm:$0xff]  }
0x150c   :  { %v21968_v32 = vld [vmem:[#allocation29 + $0x710] ss:$60 sps:$4 sm:$0xff]  }
0x150d   :  { %14930 = vmatpush1.bf16.msra.mxu1 %v21896_v4  ;;  %15618 = vmatpush1.bf16.msra.mxu0 %v21899_v9  ;;  %v21971_v4 = vld [vmem:[#allocation29 + $0x730] ss:$60 sps:$4 sm:$0xff]  }
0x150e   :  { %14931 = vmatprep.subr.bf16.mxu1 %v21904_v59  ;;  %15619 = vmatprep.subr.bf16.mxu0 %v21907_v23  ;;  %v21976_v9 = vld [vmem:[#allocation29 + $0x78c] ss:$60 sps:$4 sm:$0xff]  }
0x150f   :  { %v21979_v59 = vld [vmem:[#allocation29 + $0x7ac] ss:$60 sps:$4 sm:$0xff]  }
0x1510   :  { %v21974_v23 = vld [vmem:[#allocation29 + $0x788] ss:$60 sps:$4 sm:$0xff]  }
0x1511   :  { %14932 = vmatpush1.bf16.msra.mxu1 %v21902_v57  ;;  %15620 = vmatpush1.bf16.msra.mxu0 %v21905_v52  ;;  %v21977_v57 = vld [vmem:[#allocation29 + $0x7a8] ss:$60 sps:$4 sm:$0xff]  }
0x1512   :  { %14933 = vmatprep.subr.bf16.mxu1 %v21910_v45  ;;  %15621 = vmatprep.subr.bf16.mxu0 %v21913_v35  ;;  %v21982_v52 = vld [vmem:[#allocation29 + $0x804] ss:$60 sps:$4 sm:$0xff]  }
0x1513   :  { %v21985_v45 = vld [vmem:[#allocation29 + $0x824] ss:$60 sps:$4 sm:$0xff]  }
0x1514   :  { %v21980_v35 = vld [vmem:[#allocation29 + $0x800] ss:$60 sps:$4 sm:$0xff]  }
0x1515   :  { %14934 = vmatpush1.bf16.msra.mxu1 %v21908_v13  ;;  %15622 = vmatpush1.bf16.msra.mxu0 %v21911_v2  ;;  %v21983_v13 = vld [vmem:[#allocation29 + $0x820] ss:$60 sps:$4 sm:$0xff]  }
0x1516   :  { %14935 = vmatprep.subr.bf16.mxu1 %v21916_v37  ;;  %15623 = vmatprep.subr.bf16.mxu0 %v21919_v62  ;;  %v21988_v2 = vld [vmem:[#allocation29 + $0x87c] ss:$60 sps:$4 sm:$0xff]  }
0x1517   :  { %v21991_v37 = vld [vmem:[#allocation29 + $0x89c] ss:$60 sps:$4 sm:$0xff]  }
0x1518   :  { %v21986_v62 = vld [vmem:[#allocation29 + $0x878] ss:$60 sps:$4 sm:$0xff]  }
0x1519   :  { %14936 = vmatpush1.bf16.msra.mxu1 %v21914_v12  ;;  %15624 = vmatpush1.bf16.msra.mxu0 %v21917_v58  ;;  %v21989_v12 = vld [vmem:[#allocation29 + $0x898] ss:$60 sps:$4 sm:$0xff]  }
0x151a   :  { %14937 = vmatprep.subr.bf16.mxu1 %v21922_v48  ;;  %15625 = vmatprep.subr.bf16.mxu0 %v21925_v3  ;;  %v21994_v58 = vld [vmem:[#allocation29 + $0x8f4] ss:$60 sps:$4 sm:$0xff]  }
0x151b   :  { %v21997_v48 = vld [vmem:[#allocation29 + $0x914] ss:$60 sps:$4 sm:$0xff]  }
0x151c   :  { %v21992_v3 = vld [vmem:[#allocation29 + $0x8f0] ss:$60 sps:$4 sm:$0xff]  }
0x151d   :  { %14938 = vmatpush1.bf16.msra.mxu1 %v21920_v39  ;;  %15626 = vmatpush1.bf16.msra.mxu0 %v21923_v26  ;;  %v21995_v39 = vld [vmem:[#allocation29 + $0x910] ss:$60 sps:$4 sm:$0xff]  }
0x151e   :  { %14939 = vmatprep.subr.bf16.mxu1 %v21928_v27  ;;  %15627 = vmatprep.subr.bf16.mxu0 %v21931_v30  ;;  %v22000_v26 = vld [vmem:[#allocation29 + $0x96c] ss:$60 sps:$4 sm:$0xff]  }
0x151f   :  { %v22003_v27 = vld [vmem:[#allocation29 + $0x98c] ss:$60 sps:$4 sm:$0xff]  }
0x1520   :  { %v21998_v30 = vld [vmem:[#allocation29 + $0x968] ss:$60 sps:$4 sm:$0xff]  }
0x1521   :  { %14940 = vmatpush1.bf16.msra.mxu1 %v21926_v7  ;;  %15628 = vmatpush1.bf16.msra.mxu0 %v21929_v1  ;;  %v22001_v7 = vld [vmem:[#allocation29 + $0x988] ss:$60 sps:$4 sm:$0xff]  }
0x1522   :  { %14941 = vmatprep.subr.bf16.mxu1 %v21934_v54  ;;  %15629 = vmatprep.subr.bf16.mxu0 %v21937_v29  ;;  %v22006_v1 = vld [vmem:[#allocation29 + $0x9e4] ss:$60 sps:$4 sm:$0xff]  }
0x1523   :  { %v22009_v54 = vld [vmem:[#allocation29 + $0xa04] ss:$60 sps:$4 sm:$0xff]  }
0x1524   :  { %v22004_v29 = vld [vmem:[#allocation29 + $0x9e0] ss:$60 sps:$4 sm:$0xff]  }
0x1525   :  { %14942 = vmatpush1.bf16.msra.mxu1 %v21932_v19  ;;  %15630 = vmatpush1.bf16.msra.mxu0 %v21935_v6  ;;  %v22007_v19 = vld [vmem:[#allocation29 + $0xa00] ss:$60 sps:$4 sm:$0xff]  }
0x1526   :  { %14943 = vmatprep.subr.bf16.mxu1 %v21940_v53  ;;  %15631 = vmatprep.subr.bf16.mxu0 %v21943_v14  ;;  %v22012_v6 = vld [vmem:[#allocation29 + $0xa5c] ss:$60 sps:$4 sm:$0xff]  }
0x1527   :  { %v22015_v53 = vld [vmem:[#allocation29 + $0xa7c] ss:$60 sps:$4 sm:$0xff]  }
0x1528   :  { %v22010_v14 = vld [vmem:[#allocation29 + $0xa58] ss:$60 sps:$4 sm:$0xff]  }
0x1529   :  { %14944 = vmatpush1.bf16.msra.mxu1 %v21938_v38  ;;  %15632 = vmatpush1.bf16.msra.mxu0 %v21941_v28  ;;  %v22013_v38 = vld [vmem:[#allocation29 + $0xa78] ss:$60 sps:$4 sm:$0xff]  }
0x152a   :  { %14945 = vmatprep.subr.bf16.mxu1 %v21946_v61  ;;  %15633 = vmatprep.subr.bf16.mxu0 %v21949_v49  ;;  %v22018_v28 = vld [vmem:[#allocation29 + $0xad4] ss:$60 sps:$4 sm:$0xff]  }
0x152b   :  { %v22021_v61 = vld [vmem:[#allocation29 + $0xaf4] ss:$60 sps:$4 sm:$0xff]  }
0x152c   :  { %v22016_v49 = vld [vmem:[#allocation29 + $0xad0] ss:$60 sps:$4 sm:$0xff]  }
0x152d   :  { %14946 = vmatpush1.bf16.msra.mxu1 %v21944_v47  ;;  %15634 = vmatpush1.bf16.msra.mxu0 %v21947_v31  ;;  %v22019_v47 = vld [vmem:[#allocation29 + $0xaf0] ss:$60 sps:$4 sm:$0xff]  }
0x152e   :  { %14947 = vmatprep.subr.bf16.mxu1 %v21952_v21  ;;  %15635 = vmatprep.subr.bf16.mxu0 %v21955_v25  ;;  %v22024_v31 = vld [vmem:[#allocation29 + $0xb4c] ss:$60 sps:$4 sm:$0xff]  }
0x152f   :  { %v22027_v21 = vld [vmem:[#allocation29 + $0xb6c] ss:$60 sps:$4 sm:$0xff]  }
0x1530   :  { %v22022_v25 = vld [vmem:[#allocation29 + $0xb48] ss:$60 sps:$4 sm:$0xff]  }
0x1531   :  { %14948 = vmatpush1.bf16.msra.mxu1 %v21950_v36  ;;  %15636 = vmatpush1.bf16.msra.mxu0 %v21953_v34  ;;  %v22025_v36 = vld [vmem:[#allocation29 + $0xb68] ss:$60 sps:$4 sm:$0xff]  }
0x1532   :  { %14949 = vmatprep.subr.bf16.mxu1 %v21958_v22  ;;  %15637 = vmatprep.subr.bf16.mxu0 %v21961_v50  ;;  %v22030_v34 = vld [vmem:[#allocation29 + $0xbc4] ss:$60 sps:$4 sm:$0xff]  }
0x1533   :  { %v22033_v22 = vld [vmem:[#allocation29 + $0xbe4] ss:$60 sps:$4 sm:$0xff]  }
0x1534   :  { %v22028_v50 = vld [vmem:[#allocation29 + $0xbc0] ss:$60 sps:$4 sm:$0xff]  }
0x1535   :  { %14950 = vmatpush1.bf16.msra.mxu1 %v21956_v5  ;;  %15638 = vmatpush1.bf16.msra.mxu0 %v21959_v20  ;;  %v22031_v5 = vld [vmem:[#allocation29 + $0xbe0] ss:$60 sps:$4 sm:$0xff]  }
0x1536   :  { %14951 = vmatprep.subr.bf16.mxu1 %v21964_v0  ;;  %15639 = vmatprep.subr.bf16.mxu0 %v21967_v10  ;;  %v22036_v20 = vld [vmem:[#allocation29 + $0xc3c] ss:$60 sps:$4 sm:$0xff]  }
0x1537   :  { %v22039_v0 = vld [vmem:[#allocation29 + $0xc5c] ss:$60 sps:$4 sm:$0xff]  }
0x1538   :  { %v22034_v10 = vld [vmem:[#allocation29 + $0xc38] ss:$60 sps:$4 sm:$0xff]  }
0x1539   :  { %14952 = vmatpush1.bf16.msra.mxu1 %v21962_v60  ;;  %15640 = vmatpush1.bf16.msra.mxu0 %v21965_v8  ;;  %v22037_v60 = vld [vmem:[#allocation29 + $0xc58] ss:$60 sps:$4 sm:$0xff]  }
0x153a   :  { %14953 = vmatprep.subr.bf16.mxu1 %v21970_v56  ;;  %15641 = vmatprep.subr.bf16.mxu0 %v21973_v51  ;;  %v22042_v8 = vld [vmem:[#allocation29 + $0xcb4] ss:$60 sps:$4 sm:$0xff]  }
0x153b   :  { %v22045_v56 = vld [vmem:[#allocation29 + $0xcd4] ss:$60 sps:$4 sm:$0xff]  }
0x153c   :  { %v22040_v51 = vld [vmem:[#allocation29 + $0xcb0] ss:$60 sps:$4 sm:$0xff]  }
0x153d   :  { %14954 = vmatpush1.bf16.msra.mxu1 %v21968_v32  ;;  %15642 = vmatpush1.bf16.msra.mxu0 %v21971_v4  ;;  %v22043_v32 = vld [vmem:[#allocation29 + $0xcd0] ss:$60 sps:$4 sm:$0xff]  }
0x153e   :  { %14966 = vmatprep.subr.bf16.mxu1 %v21976_v9  ;;  %15654 = vmatprep.subr.bf16.mxu0 %v21979_v59  ;;  %v22048_v4 = vld [vmem:[#allocation29 + $0xd2c] ss:$60 sps:$4 sm:$0xff]  }
0x153f   :  { %v22051_v9 = vld [vmem:[#allocation29 + $0xd4c] ss:$60 sps:$4 sm:$0xff]  }
0x1540   :  { %14956 = vmatmul.mubr.bf16.vlgmr.msra.gmra.mrb[52].mxu1 %v24016_v44  ;;  %15644 = vmatmul.mubr.bf16.vlgmr.msra.gmra.mrb[56].mxu0 %v24016_v44  ;;  %v22046_v59 = vld [vmem:[#allocation29 + $0xd28] ss:$60 sps:$4 sm:$0xff]  }
0x1541   :  { %14967 = vmatpush1.bf16.msra.mxu1 %v21974_v23  ;;  %14998 = vmatprep.mubr.bf16.mxu1 %v24383_v11  ;;  %v22049_v23 = vld [vmem:[#allocation29 + $0xd48] ss:$60 sps:$4 sm:$0xff]  }
0x1542   :  { %15655 = vmatpush1.bf16.msra.mxu0 %v21977_v57  ;;  %15686 = vmatprep.mubr.bf16.mxu0 %v24383_v11  ;;  %v22054_v57 = vld [vmem:[#allocation29 + $0xda4] ss:$60 sps:$4 sm:$0xff]  }
0x1543   :  { %14968 = vmatprep.subr.bf16.mxu1 %v21982_v52  ;;  %15656 = vmatprep.subr.bf16.mxu0 %v21985_v45  ;;  %v22057_v52 = vld [vmem:[#allocation29 + $0xdc4] ss:$60 sps:$4 sm:$0xff]  }
0x1544   :  { %v22052_v45 = vld [vmem:[#allocation29 + $0xda0] ss:$60 sps:$4 sm:$0xff]  }
0x1545   :  { %14969 = vmatpush1.bf16.msra.mxu1 %v21980_v35  ;;  %v22055_v35 = vld [vmem:[#allocation29 + $0xdc0] ss:$60 sps:$4 sm:$0xff]  }
0x1546   :  { %15657 = vmatpush1.bf16.msra.mxu0 %v21983_v13  ;;  %14970 = vmatprep.subr.bf16.mxu1 %v21988_v2  ;;  %v22060_v13 = vld [vmem:[#allocation29 + $0xe1c] ss:$60 sps:$4 sm:$0xff]  }
0x1547   :  { %15658 = vmatprep.subr.bf16.mxu0 %v21991_v37  ;;  %v22063_v2 = vld [vmem:[#allocation29 + $0xe3c] ss:$60 sps:$4 sm:$0xff]  }
0x1548   :  { %v22058_v37 = vld [vmem:[#allocation29 + $0xe18] ss:$60 sps:$4 sm:$0xff]  }
0x1549   :  { %14971 = vmatpush1.bf16.msra.mxu1 %v21986_v62  ;;  %v22061_v62 = vld [vmem:[#allocation29 + $0xe38] ss:$60 sps:$4 sm:$0xff]  }
0x154a   :  { %15659 = vmatpush1.bf16.msra.mxu0 %v21989_v12  ;;  %14972 = vmatprep.subr.bf16.mxu1 %v21994_v58  ;;  %v22066_v12 = vld [vmem:[#allocation29 + $0xe94] ss:$60 sps:$4 sm:$0xff]  }
0x154b   :  { %15660 = vmatprep.subr.bf16.mxu0 %v21997_v48  ;;  %v22069_v58 = vld [vmem:[#allocation29 + $0xeb4] ss:$60 sps:$4 sm:$0xff]  }
0x154c   :  { %v22064_v48 = vld [vmem:[#allocation29 + $0xe90] ss:$60 sps:$4 sm:$0xff]  }
0x154d   :  { %14973 = vmatpush1.bf16.msra.mxu1 %v21992_v3  ;;  %v22067_v3 = vld [vmem:[#allocation29 + $0xeb0] ss:$60 sps:$4 sm:$0xff]  }
0x154e   :  { %15661 = vmatpush1.bf16.msra.mxu0 %v21995_v39  ;;  %14974 = vmatprep.subr.bf16.mxu1 %v22000_v26  ;;  %v22072_v39 = vld [vmem:[#allocation29 + $0xf0c] ss:$60 sps:$4 sm:$0xff]  }
0x154f   :  { %15662 = vmatprep.subr.bf16.mxu0 %v22003_v27  ;;  %v22075_v26 = vld [vmem:[#allocation29 + $0xf2c] ss:$60 sps:$4 sm:$0xff]  }
0x1550   :  { %v22070_v27 = vld [vmem:[#allocation29 + $0xf08] ss:$60 sps:$4 sm:$0xff]  }
0x1551   :  { %14975 = vmatpush1.bf16.msra.mxu1 %v21998_v30  ;;  %v22073_v30 = vld [vmem:[#allocation29 + $0xf28] ss:$60 sps:$4 sm:$0xff]  }
0x1552   :  { %15663 = vmatpush1.bf16.msra.mxu0 %v22001_v7  ;;  %14976 = vmatprep.subr.bf16.mxu1 %v22006_v1  ;;  %v22078_v7 = vld [vmem:[#allocation29 + $0xf84] ss:$60 sps:$4 sm:$0xff]  }
0x1553   :  { %15664 = vmatprep.subr.bf16.mxu0 %v22009_v54  ;;  %v22081_v1 = vld [vmem:[#allocation29 + $0xfa4] ss:$60 sps:$4 sm:$0xff]  }
0x1554   :  { %v22076_v54 = vld [vmem:[#allocation29 + $0xf80] ss:$60 sps:$4 sm:$0xff]  }
0x1555   :  { %14977 = vmatpush1.bf16.msra.mxu1 %v22004_v29  ;;  %v22079_v29 = vld [vmem:[#allocation29 + $0xfa0] ss:$60 sps:$4 sm:$0xff]  }
0x1556   :  { %15665 = vmatpush1.bf16.msra.mxu0 %v22007_v19  ;;  %14978 = vmatprep.subr.bf16.mxu1 %v22012_v6  ;;  %v22084_v19 = vld [vmem:[#allocation29 + $0xffc] ss:$60 sps:$4 sm:$0xff]  }
0x1557   :  { %15666 = vmatprep.subr.bf16.mxu0 %v22015_v53  ;;  %v22087_v6 = vld [vmem:[#allocation29 + $0x101c] ss:$60 sps:$4 sm:$0xff]  }
0x1558   :  { %v22082_v53 = vld [vmem:[#allocation29 + $0xff8] ss:$60 sps:$4 sm:$0xff]  }
0x1559   :  { %14979 = vmatpush1.bf16.msra.mxu1 %v22010_v14  ;;  %v22085_v14 = vld [vmem:[#allocation29 + $0x1018] ss:$60 sps:$4 sm:$0xff]  }
0x155a   :  { %15667 = vmatpush1.bf16.msra.mxu0 %v22013_v38  ;;  %14980 = vmatprep.subr.bf16.mxu1 %v22018_v28  ;;  %v22090_v38 = vld [vmem:[#allocation29 + $0x1074] ss:$60 sps:$4 sm:$0xff]  }
0x155b   :  { %15668 = vmatprep.subr.bf16.mxu0 %v22021_v61  ;;  %v22093_v28 = vld [vmem:[#allocation29 + $0x1094] ss:$60 sps:$4 sm:$0xff]  }
0x155c   :  { %v22088_v61 = vld [vmem:[#allocation29 + $0x1070] ss:$60 sps:$4 sm:$0xff]  }
0x155d   :  { %14981 = vmatpush1.bf16.msra.mxu1 %v22016_v49  ;;  %v22091_v49 = vld [vmem:[#allocation29 + $0x1090] ss:$60 sps:$4 sm:$0xff]  }
0x155e   :  { %15669 = vmatpush1.bf16.msra.mxu0 %v22019_v47  ;;  %14982 = vmatprep.subr.bf16.mxu1 %v22024_v31  ;;  %v22096_v47 = vld [vmem:[#allocation29 + $0x10ec] ss:$60 sps:$4 sm:$0xff]  }
0x155f   :  { %15670 = vmatprep.subr.bf16.mxu0 %v22027_v21  ;;  %v22099_v31 = vld [vmem:[#allocation29 + $0x110c] ss:$60 sps:$4 sm:$0xff]  }
0x1560   :  { %v22094_v21 = vld [vmem:[#allocation29 + $0x10e8] ss:$60 sps:$4 sm:$0xff]  }
0x1561   :  { %14983 = vmatpush1.bf16.msra.mxu1 %v22022_v25  ;;  %v22097_v25 = vld [vmem:[#allocation29 + $0x1108] ss:$60 sps:$4 sm:$0xff]  }
0x1562   :  { %15671 = vmatpush1.bf16.msra.mxu0 %v22025_v36  ;;  %14984 = vmatprep.subr.bf16.mxu1 %v22030_v34  ;;  %v22102_v36 = vld [vmem:[#allocation29 + $0x1164] ss:$60 sps:$4 sm:$0xff]  }
0x1563   :  { %15672 = vmatprep.subr.bf16.mxu0 %v22033_v22  ;;  %v22105_v34 = vld [vmem:[#allocation29 + $0x1184] ss:$60 sps:$4 sm:$0xff]  }
0x1564   :  { %v22100_v22 = vld [vmem:[#allocation29 + $0x1160] ss:$60 sps:$4 sm:$0xff]  }
0x1565   :  { %14985 = vmatpush1.bf16.msra.mxu1 %v22028_v50  ;;  %v22103_v50 = vld [vmem:[#allocation29 + $0x1180] ss:$60 sps:$4 sm:$0xff]  }
0x1566   :  { %15673 = vmatpush1.bf16.msra.mxu0 %v22031_v5  ;;  %14986 = vmatprep.subr.bf16.mxu1 %v22036_v20  ;;  %v22108_v5 = vld [vmem:[#allocation29 + $0x11dc] ss:$60 sps:$4 sm:$0xff]  }
0x1567   :  { %15674 = vmatprep.subr.bf16.mxu0 %v22039_v0  ;;  %v22111_v20 = vld [vmem:[#allocation29 + $0x11fc] ss:$60 sps:$4 sm:$0xff]  }
0x1568   :  { %v22106_v0 = vld [vmem:[#allocation29 + $0x11d8] ss:$60 sps:$4 sm:$0xff]  }
0x1569   :  { %14987 = vmatpush1.bf16.msra.mxu1 %v22034_v10  ;;  %v22109_v10 = vld [vmem:[#allocation29 + $0x11f8] ss:$60 sps:$4 sm:$0xff]  }
0x156a   :  { %15675 = vmatpush1.bf16.msra.mxu0 %v22037_v60  ;;  %14988 = vmatprep.subr.bf16.mxu1 %v22042_v8  ;;  %v22114_v60 = vld [vmem:[#allocation29 + $0x1254] ss:$60 sps:$4 sm:$0xff]  }
0x156b   :  { %15676 = vmatprep.subr.bf16.mxu0 %v22045_v56  ;;  %v22117_v8 = vld [vmem:[#allocation29 + $0x1274] ss:$60 sps:$4 sm:$0xff]  }
0x156c   :  { %v22112_v56 = vld [vmem:[#allocation29 + $0x1250] ss:$60 sps:$4 sm:$0xff]  }
0x156d   :  { %14989 = vmatpush1.bf16.msra.mxu1 %v22040_v51  ;;  %v22115_v51 = vld [vmem:[#allocation29 + $0x1270] ss:$60 sps:$4 sm:$0xff]  }
0x156e   :  { %15677 = vmatpush1.bf16.msra.mxu0 %v22043_v32  ;;  %14990 = vmatprep.subr.bf16.mxu1 %v22048_v4  ;;  %v22120_v32 = vld [vmem:[#allocation29 + $0x12cc] ss:$60 sps:$4 sm:$0xff]  }
0x156f   :  { %15678 = vmatprep.subr.bf16.mxu0 %v22051_v9  ;;  %v22123_v4 = vld [vmem:[#allocation29 + $0x12ec] ss:$60 sps:$4 sm:$0xff]  }
0x1570   :  { %v22118_v9 = vld [vmem:[#allocation29 + $0x12c8] ss:$60 sps:$4 sm:$0xff]  }
0x1571   :  { %14991 = vmatpush1.bf16.msra.mxu1 %v22046_v59  ;;  %v22121_v59 = vld [vmem:[#allocation29 + $0x12e8] ss:$60 sps:$4 sm:$0xff]  }
0x1572   :  { %15679 = vmatpush1.bf16.msra.mxu0 %v22049_v23  ;;  %14992 = vmatprep.subr.bf16.mxu1 %v22054_v57  ;;  %v22126_v23 = vld [vmem:[#allocation29 + $0x1344] ss:$60 sps:$4 sm:$0xff]  }
0x1573   :  { %15680 = vmatprep.subr.bf16.mxu0 %v22057_v52  ;;  %v22129_v57 = vld [vmem:[#allocation29 + $0x1364] ss:$60 sps:$4 sm:$0xff]  }
0x1574   :  { %v22124_v52 = vld [vmem:[#allocation29 + $0x1340] ss:$60 sps:$4 sm:$0xff]  }
0x1575   :  { %14993 = vmatpush1.bf16.msra.mxu1 %v22052_v45  ;;  %v22127_v45 = vld [vmem:[#allocation29 + $0x1360] ss:$60 sps:$4 sm:$0xff]  }
0x1576   :  { %15681 = vmatpush1.bf16.msra.mxu0 %v22055_v35  ;;  %14994 = vmatprep.subr.bf16.mxu1 %v22060_v13  ;;  %v22132_v35 = vld [vmem:[#allocation29 + $0x13bc] ss:$60 sps:$4 sm:$0xff]  }
0x1577   :  { %15682 = vmatprep.subr.bf16.mxu0 %v22063_v2  ;;  %v22135_v13 = vld [vmem:[#allocation29 + $0x13dc] ss:$60 sps:$4 sm:$0xff]  }
0x1578   :  { %v22130_v2 = vld [vmem:[#allocation29 + $0x13b8] ss:$60 sps:$4 sm:$0xff]  }
0x1579   :  { %14995 = vmatpush1.bf16.msra.mxu1 %v22058_v37  ;;  %v22133_v37 = vld [vmem:[#allocation29 + $0x13d8] ss:$60 sps:$4 sm:$0xff]  }
0x157a   :  { %15683 = vmatpush1.bf16.msra.mxu0 %v22061_v62  ;;  %14996 = vmatprep.subr.bf16.mxu1 %v22066_v12  ;;  %v22138_v62 = vld [vmem:[#allocation29 + $0x1434] ss:$60 sps:$4 sm:$0xff]  }
0x157b   :  { %15684 = vmatprep.subr.bf16.mxu0 %v22069_v58  ;;  %v22141_v12 = vld [vmem:[#allocation29 + $0x1454] ss:$60 sps:$4 sm:$0xff]  }
0x157c   :  { %v22136_v58 = vld [vmem:[#allocation29 + $0x1430] ss:$60 sps:$4 sm:$0xff]  }
0x157d   :  { %14997 = vmatpush1.bf16.msra.mxu1 %v22064_v48  ;;  %v22139_v48 = vld [vmem:[#allocation29 + $0x1450] ss:$60 sps:$4 sm:$0xff]  }
0x157e   :  { %15685 = vmatpush1.bf16.msra.mxu0 %v22067_v3  ;;  %15009 = vmatprep.subr.bf16.mxu1 %v22072_v39  ;;  %v22144_v3 = vld [vmem:[#allocation29 + $0x14ac] ss:$60 sps:$4 sm:$0xff]  }
0x157f   :  { %15697 = vmatprep.subr.bf16.mxu0 %v22075_v26  ;;  %v22147_v39 = vld [vmem:[#allocation29 + $0x14cc] ss:$60 sps:$4 sm:$0xff]  }
0x1580   :  { %14999 = vmatmul.mubr.bf16.vlgmr.msra.gmra.mrb[52].mxu1 %v24376_v40  ;;  %v22142_v26 = vld [vmem:[#allocation29 + $0x14a8] ss:$60 sps:$4 sm:$0xff]  }
0x1581   :  { %15687 = vmatmul.mubr.bf16.vlgmr.msra.gmra.mrb[56].mxu0 %v24376_v40  ;;  %15010 = vmatpush1.bf16.msra.mxu1 %v22070_v27  ;;  %v22145_v27 = vld [vmem:[#allocation29 + $0x14c8] ss:$60 sps:$4 sm:$0xff]  }
0x1582   :  { %15041 = vmatprep.mubr.bf16.mxu1 %v24551_v41  ;;  %15698 = vmatpush1.bf16.msra.mxu0 %v22073_v30  ;;  %v22150_v30 = vld [vmem:[#allocation29 + $0x1524] ss:$60 sps:$4 sm:$0xff]  }
0x1583   :  { %15729 = vmatprep.mubr.bf16.mxu0 %v24551_v41  ;;  %15011 = vmatprep.subr.bf16.mxu1 %v22078_v7  ;;  %v22153_v7 = vld [vmem:[#allocation29 + $0x1544] ss:$60 sps:$4 sm:$0xff]  }
0x1584   :  { %15699 = vmatprep.subr.bf16.mxu0 %v22081_v1  ;;  %v22148_v1 = vld [vmem:[#allocation29 + $0x1520] ss:$60 sps:$4 sm:$0xff]  }
0x1585   :  { %15012 = vmatpush1.bf16.msra.mxu1 %v22076_v54  ;;  %v22151_v54 = vld [vmem:[#allocation29 + $0x1540] ss:$60 sps:$4 sm:$0xff]  }
0x1586   :  { %15700 = vmatpush1.bf16.msra.mxu0 %v22079_v29  ;;  %15013 = vmatprep.subr.bf16.mxu1 %v22084_v19  ;;  %v22156_v29 = vld [vmem:[#allocation29 + $0x159c] ss:$60 sps:$4 sm:$0xff]  }
0x1587   :  { %15701 = vmatprep.subr.bf16.mxu0 %v22087_v6  ;;  %v22159_v19 = vld [vmem:[#allocation29 + $0x15bc] ss:$60 sps:$4 sm:$0xff]  }
0x1588   :  { %v22154_v6 = vld [vmem:[#allocation29 + $0x1598] ss:$60 sps:$4 sm:$0xff]  }
0x1589   :  { %15014 = vmatpush1.bf16.msra.mxu1 %v22082_v53  ;;  %v22157_v53 = vld [vmem:[#allocation29 + $0x15b8] ss:$60 sps:$4 sm:$0xff]  }
0x158a   :  { %15702 = vmatpush1.bf16.msra.mxu0 %v22085_v14  ;;  %15015 = vmatprep.subr.bf16.mxu1 %v22090_v38  ;;  %v22162_v14 = vld [vmem:[#allocation29 + $0x1614] ss:$60 sps:$4 sm:$0xff]  }
0x158b   :  { %15703 = vmatprep.subr.bf16.mxu0 %v22093_v28  ;;  %v22165_v38 = vld [vmem:[#allocation29 + $0x1634] ss:$60 sps:$4 sm:$0xff]  }
0x158c   :  { %v22160_v28 = vld [vmem:[#allocation29 + $0x1610] ss:$60 sps:$4 sm:$0xff]  }
0x158d   :  { %15016 = vmatpush1.bf16.msra.mxu1 %v22088_v61  ;;  %v22163_v61 = vld [vmem:[#allocation29 + $0x1630] ss:$60 sps:$4 sm:$0xff]  }
0x158e   :  { %15704 = vmatpush1.bf16.msra.mxu0 %v22091_v49  ;;  %15017 = vmatprep.subr.bf16.mxu1 %v22096_v47  ;;  %v22168_v49 = vld [vmem:[#allocation29 + $0x168c] ss:$60 sps:$4 sm:$0xff]  }
0x158f   :  { %15705 = vmatprep.subr.bf16.mxu0 %v22099_v31  ;;  %v22171_v47 = vld [vmem:[#allocation29 + $0x16ac] ss:$60 sps:$4 sm:$0xff]  }
0x1590   :  { %v22166_v31 = vld [vmem:[#allocation29 + $0x1688] ss:$60 sps:$4 sm:$0xff]  }
0x1591   :  { %15018 = vmatpush1.bf16.msra.mxu1 %v22094_v21  ;;  %v22169_v21 = vld [vmem:[#allocation29 + $0x16a8] ss:$60 sps:$4 sm:$0xff]  }
0x1592   :  { %15706 = vmatpush1.bf16.msra.mxu0 %v22097_v25  ;;  %15019 = vmatprep.subr.bf16.mxu1 %v22102_v36  ;;  %v22174_v25 = vld [vmem:[#allocation29 + $0x1704] ss:$60 sps:$4 sm:$0xff]  }
0x1593   :  { %15707 = vmatprep.subr.bf16.mxu0 %v22105_v34  ;;  %v22177_v36 = vld [vmem:[#allocation29 + $0x1724] ss:$60 sps:$4 sm:$0xff]  }
0x1594   :  { %v22172_v34 = vld [vmem:[#allocation29 + $0x1700] ss:$60 sps:$4 sm:$0xff]  }
0x1595   :  { %15020 = vmatpush1.bf16.msra.mxu1 %v22100_v22  ;;  %v22175_v22 = vld [vmem:[#allocation29 + $0x1720] ss:$60 sps:$4 sm:$0xff]  }
0x1596   :  { %15708 = vmatpush1.bf16.msra.mxu0 %v22103_v50  ;;  %15021 = vmatprep.subr.bf16.mxu1 %v22108_v5  ;;  %v22180_v50 = vld [vmem:[#allocation29 + $0x177c] ss:$60 sps:$4 sm:$0xff]  }
0x1597   :  { %15709 = vmatprep.subr.bf16.mxu0 %v22111_v20  ;;  %v22183_v5 = vld [vmem:[#allocation29 + $0x179c] ss:$60 sps:$4 sm:$0xff]  }
0x1598   :  { %v22178_v20 = vld [vmem:[#allocation29 + $0x1778] ss:$60 sps:$4 sm:$0xff]  }
0x1599   :  { %15022 = vmatpush1.bf16.msra.mxu1 %v22106_v0  ;;  %v22181_v0 = vld [vmem:[#allocation29 + $0x1798] ss:$60 sps:$4 sm:$0xff]  }
0x159a   :  { %15710 = vmatpush1.bf16.msra.mxu0 %v22109_v10  ;;  %15023 = vmatprep.subr.bf16.mxu1 %v22114_v60  ;;  %v22186_v10 = vld [vmem:[#allocation29 + $0x17f4] ss:$60 sps:$4 sm:$0xff]  }
0x159b   :  { %15711 = vmatprep.subr.bf16.mxu0 %v22117_v8  ;;  %v22189_v60 = vld [vmem:[#allocation29 + $0x1814] ss:$60 sps:$4 sm:$0xff]  }
0x159c   :  { %v22184_v8 = vld [vmem:[#allocation29 + $0x17f0] ss:$60 sps:$4 sm:$0xff]  }
0x159d   :  { %15024 = vmatpush1.bf16.msra.mxu1 %v22112_v56  ;;  %v22187_v56 = vld [vmem:[#allocation29 + $0x1810] ss:$60 sps:$4 sm:$0xff]  }
0x159e   :  { %15712 = vmatpush1.bf16.msra.mxu0 %v22115_v51  ;;  %15025 = vmatprep.subr.bf16.mxu1 %v22120_v32  ;;  %v22192_v51 = vld [vmem:[#allocation29 + $0x186c] ss:$60 sps:$4 sm:$0xff]  }
0x159f   :  { %15713 = vmatprep.subr.bf16.mxu0 %v22123_v4  ;;  %v22195_v32 = vld [vmem:[#allocation29 + $0x188c] ss:$60 sps:$4 sm:$0xff]  }
0x15a0   :  { %v22190_v4 = vld [vmem:[#allocation29 + $0x1868] ss:$60 sps:$4 sm:$0xff]  }
0x15a1   :  { %15026 = vmatpush1.bf16.msra.mxu1 %v22118_v9  ;;  %v22193_v9 = vld [vmem:[#allocation29 + $0x1888] ss:$60 sps:$4 sm:$0xff]  }
0x15a2   :  { %15714 = vmatpush1.bf16.msra.mxu0 %v22121_v59  ;;  %15027 = vmatprep.subr.bf16.mxu1 %v22126_v23  ;;  %v22198_v59 = vld [vmem:[#allocation29 + $0x18e4] ss:$60 sps:$4 sm:$0xff]  }
0x15a3   :  { %15715 = vmatprep.subr.bf16.mxu0 %v22129_v57  ;;  %v22201_v23 = vld [vmem:[#allocation29 + $0x1904] ss:$60 sps:$4 sm:$0xff]  }
0x15a4   :  { %v24632_v57 = vld [vmem:[#allocation31] sm:$0xff] }
0x15a5   :  { %15028 = vmatpush1.bf16.msra.mxu1 %v22124_v52  ;;  %v22196_v52 = vld [vmem:[#allocation29 + $0x18e0] ss:$60 sps:$4 sm:$0xff]  }
0x15a6   :  { %15716 = vmatpush1.bf16.msra.mxu0 %v22127_v45  ;;  %15029 = vmatprep.subr.bf16.mxu1 %v22132_v35  ;;  %v22199_v45 = vld [vmem:[#allocation29 + $0x1900] ss:$60 sps:$4 sm:$0xff]  }
0x15a7   :  { %15717 = vmatprep.subr.bf16.mxu0 %v22135_v13 }
0x15a9   :  { %15030 = vmatpush1.bf16.msra.mxu1 %v22130_v2  ;;  %v22204_v2 = vld [vmem:[#allocation29 + $0x195c] ss:$60 sps:$4 sm:$0xff]  }
0x15aa   :  { %15718 = vmatpush1.bf16.msra.mxu0 %v22133_v37  ;;  %15031 = vmatprep.subr.bf16.mxu1 %v22138_v62  ;;  %v24640_v37 = vrot.slane %v24632_v57, %v23947_v42  ;;  %v24644_v62 = vrot.slane %v24632_v57, %v24293_v46 }
0x15ab   :  { %15719 = vmatprep.subr.bf16.mxu0 %v22141_v12 }
0x15ad   :  { %15032 = vmatpush1.bf16.msra.mxu1 %v22136_v58 }
0x15ae   :  { %15720 = vmatpush1.bf16.msra.mxu0 %v22139_v48  ;;  %15033 = vmatprep.subr.bf16.mxu1 %v22144_v3  ;;  %v22207_v48 = vld [vmem:[#allocation29 + $0x197c] ss:$60 sps:$4 sm:$0xff]   ;;  %v24652_v3 = vrot.slane %v24632_v57, %v23926_v16 }
0x15af   :  { %15721 = vmatprep.subr.bf16.mxu0 %v22147_v39  ;;  %v25251_v39 = vld [vmem:[#allocation51_spill] sm:$0xff] }
0x15b1   :  { %15034 = vmatpush1.bf16.msra.mxu1 %v22142_v26  ;;  %v25252_v26 = vsub.s32 7, %v25251_v39  ;;  %v22246_v39 = vld [vmem:[#allocation29 + $0x2e4] ss:$60 sps:$4 sm:$0xff]  }
0x15b2   :  { %15722 = vmatpush1.bf16.msra.mxu0 %v22145_v27  ;;  %15035 = vmatprep.subr.bf16.mxu1 %v22150_v30 }
0x15b3   :  { %15723 = vmatprep.subr.bf16.mxu0 %v22153_v7  ;;  %v24657_v27 = vrot.slane %v24632_v57, %v25252_v26  ;;  %v22247_v26 = vld [vmem:[#allocation29 + $0x6c8] ss:$60 sps:$4 sm:$0xff]  }
0x15b5   :  { %15036 = vmatpush1.bf16.msra.mxu1 %v22148_v1  ;;  %v22202_v1 = vld [vmem:[#allocation29 + $0x1958] ss:$60 sps:$4 sm:$0xff]  }
0x15b6   :  { %15724 = vmatpush1.bf16.msra.mxu0 %v22151_v54  ;;  %15037 = vmatprep.subr.bf16.mxu1 %v22156_v29 }
0x15b7   :  { %15725 = vmatprep.subr.bf16.mxu0 %v22159_v19 }
0x15b9   :  { %15038 = vmatpush1.bf16.msra.mxu1 %v22154_v6 }
0x15ba   :  { %15726 = vmatpush1.bf16.msra.mxu0 %v22157_v53  ;;  %15039 = vmatprep.subr.bf16.mxu1 %v22162_v14  ;;  %v22205_v53 = vld [vmem:[#allocation29 + $0x1978] ss:$60 sps:$4 sm:$0xff]  }
0x15bb   :  { %15727 = vmatprep.subr.bf16.mxu0 %v22165_v38  ;;  %v22210_v14 = vld [vmem:[#allocation29 + $0x19d4] ss:$60 sps:$4 sm:$0xff]  }
0x15bd   :  { %15040 = vmatpush1.bf16.msra.mxu1 %v22160_v28 }
0x15be   :  { %15728 = vmatpush1.bf16.msra.mxu0 %v22163_v61  ;;  %15052 = vmatprep.subr.bf16.mxu1 %v22168_v49  ;;  %v22213_v61 = vld [vmem:[#allocation29 + $0x19f4] ss:$60 sps:$4 sm:$0xff]  }
0x15bf   :  { %15740 = vmatprep.subr.bf16.mxu0 %v22171_v47  ;;  %v22208_v49 = vld [vmem:[#allocation29 + $0x19d0] ss:$60 sps:$4 sm:$0xff]  }
0x15c0   :  { %15042 = vmatmul.mubr.bf16.vlgmr.msra.gmra.mrb[52].mxu1 %v24490_v43  ;;  %v22211_v47 = vld [vmem:[#allocation29 + $0x19f0] ss:$60 sps:$4 sm:$0xff]  }
0x15c1   :  { %15730 = vmatmul.mubr.bf16.vlgmr.msra.gmra.mrb[56].mxu0 %v24490_v43  ;;  %15053 = vmatpush1.bf16.msra.mxu1 %v22166_v31  ;;  %v22216_v31 = vld [vmem:[#allocation29 + $0x14] ss:$60 sps:$4 sm:$0xff]  }
0x15c2   :  { %15741 = vmatpush1.bf16.msra.mxu0 %v22169_v21  ;;  %15054 = vmatprep.subr.bf16.mxu1 %v22174_v25  ;;  %v22217_v21 = vld [vmem:[#allocation29 + $0x3f8] ss:$60 sps:$4 sm:$0xff]   ;;  %v22214_v25 = vld [vmem:[#allocation29 + $0x10] ss:$60 sps:$4 sm:$0xff]  }
0x15c3   :  { %15742 = vmatprep.subr.bf16.mxu0 %v22177_v36  ;;  %15084 = vmatprep.mubr.bf16.mxu1 %v25241_v18  ;;  %v22218_v36 = vld [vmem:[#allocation29 + $0x38] ss:$60 sps:$4 sm:$0xff]  }
0x15c4   :  { %15772 = vmatprep.mubr.bf16.mxu0 %v25241_v18 }
0x15c5   :  { %15055 = vmatpush1.bf16.msra.mxu1 %v22172_v34  ;;  %v22221_v34 = vld [vmem:[#allocation29 + $0x8c] ss:$60 sps:$4 sm:$0xff]  }
0x15c6   :  { %15743 = vmatpush1.bf16.msra.mxu0 %v22175_v22  ;;  %15056 = vmatprep.subr.bf16.mxu1 %v22180_v50  ;;  %v22222_v22 = vld [vmem:[#allocation29 + $0x470] ss:$60 sps:$4 sm:$0xff]   ;;  %v22219_v50 = vld [vmem:[#allocation29 + $0x88] ss:$60 sps:$4 sm:$0xff]  }
0x15c7   :  { %15744 = vmatprep.subr.bf16.mxu0 %v22183_v5  ;;  %v22223_v5 = vld [vmem:[#allocation29 + $0xb0] ss:$60 sps:$4 sm:$0xff]  }
0x15c9   :  { %15057 = vmatpush1.bf16.msra.mxu1 %v22178_v20  ;;  %v22226_v20 = vld [vmem:[#allocation29 + $0x104] ss:$60 sps:$4 sm:$0xff]  }
0x15ca   :  { %15745 = vmatpush1.bf16.msra.mxu0 %v22181_v0  ;;  %15058 = vmatprep.subr.bf16.mxu1 %v22186_v10  ;;  %v22227_v0 = vld [vmem:[#allocation29 + $0x4e8] ss:$60 sps:$4 sm:$0xff]   ;;  %v22224_v10 = vld [vmem:[#allocation29 + $0x100] ss:$60 sps:$4 sm:$0xff]  }
0x15cb   :  { %15746 = vmatprep.subr.bf16.mxu0 %v22189_v60  ;;  %v22228_v60 = vld [vmem:[#allocation29 + $0x128] ss:$60 sps:$4 sm:$0xff]  }
0x15cd   :  { %15059 = vmatpush1.bf16.msra.mxu1 %v22184_v8  ;;  %v22231_v8 = vld [vmem:[#allocation29 + $0x17c] ss:$60 sps:$4 sm:$0xff]  }
0x15ce   :  { %15747 = vmatpush1.bf16.msra.mxu0 %v22187_v56  ;;  %15060 = vmatprep.subr.bf16.mxu1 %v22192_v51  ;;  %v22232_v56 = vld [vmem:[#allocation29 + $0x560] ss:$60 sps:$4 sm:$0xff]   ;;  %v22229_v51 = vld [vmem:[#allocation29 + $0x178] ss:$60 sps:$4 sm:$0xff]  }
0x15cf   :  { %15748 = vmatprep.subr.bf16.mxu0 %v22195_v32  ;;  %v22233_v32 = vld [vmem:[#allocation29 + $0x1a0] ss:$60 sps:$4 sm:$0xff]  }
0x15d1   :  { %15061 = vmatpush1.bf16.msra.mxu1 %v22190_v4  ;;  %v22236_v4 = vld [vmem:[#allocation29 + $0x1f4] ss:$60 sps:$4 sm:$0xff]  }
0x15d2   :  { %15749 = vmatpush1.bf16.msra.mxu0 %v22193_v9  ;;  %15062 = vmatprep.subr.bf16.mxu1 %v22198_v59  ;;  %v22237_v9 = vld [vmem:[#allocation29 + $0x5d8] ss:$60 sps:$4 sm:$0xff]   ;;  %v22234_v59 = vld [vmem:[#allocation29 + $0x1f0] ss:$60 sps:$4 sm:$0xff]  }
0x15d3   :  { %v24634_v35 = vpop.f32.mrb[48].mxu1  ;;  %v24636_v13 = vpop.f32.mrb[52].mxu0  ;;  %15750 = vmatprep.subr.bf16.mxu0 %v22201_v23  ;;  %v22238_v23 = vld [vmem:[#allocation29 + $0x218] ss:$60 sps:$4 sm:$0xff]  }
0x15d4   :  { %v24646_v12 = vpop.f32.mrb[49].mxu1  ;;  %v24648_v58 = vpop.f32.mrb[53].mxu0 }
0x15d5   :  { %15063 = vmatpush1.bf16.msra.mxu1 %v22196_v52  ;;  %v14918_v30 = vpop.f32.mrb[50].mxu1  ;;  %v15434_v7 = vpop.f32.mrb[54].mxu0  ;;  %v22241_v52 = vld [vmem:[#allocation29 + $0x26c] ss:$60 sps:$4 sm:$0xff]  }
0x15d6   :  { %15751 = vmatpush1.bf16.msra.mxu0 %v22199_v45  ;;  %v24660_v54 = vadd.f32 %v14918_v30, %v24640_v37  ;;  %v24663_v29 = vadd.f32 %v15434_v7, %v24644_v62  ;;  %v14920_v19 = vpop.f32.mrb[51].mxu1  ;;  %v15436_v6 = vpop.f32.mrb[55].mxu0  ;;  %15064 = vmatprep.subr.bf16.mxu1 %v22204_v2  ;;  %v22242_v45 = vld [vmem:[#allocation29 + $0x650] ss:$60 sps:$4 sm:$0xff]   ;;  %v22239_v2 = vld [vmem:[#allocation29 + $0x268] ss:$60 sps:$4 sm:$0xff]  }
0x15d7   :  { %v24666_v38 = vadd.f32 %v14920_v19, %v24652_v3  ;;  %v24669_v28 = vadd.f32 %v15436_v6, %v24657_v27  ;;  %15752 = vmatprep.subr.bf16.mxu0 %v22207_v48  ;;  %v22243_v48 = vld [vmem:[#allocation29 + $0x290] ss:$60 sps:$4 sm:$0xff]   ;;  %v22244_v30 = vld [vmem:[#allocation29 + $0x2e0] ss:$60 sps:$4 sm:$0xff]   ;;  %v22248_v7 = vld [vmem:[#allocation29 + $0x308] ss:$60 sps:$4 sm:$0xff]  }
0x15d8   :  { %v22252_v19 = vld [vmem:[#allocation29 + $0x740] ss:$60 sps:$4 sm:$0xff]   ;;  %v22249_v6 = vld [vmem:[#allocation29 + $0x358] ss:$60 sps:$4 sm:$0xff]  }
0x15d9   :  { %15065 = vmatpush1.bf16.msra.mxu1 %v22202_v1  ;;  %v22251_v1 = vld [vmem:[#allocation29 + $0x35c] ss:$60 sps:$4 sm:$0xff]  }
0x15da   :  { %15753 = vmatpush1.bf16.msra.mxu0 %v22205_v53  ;;  %15066 = vmatprep.subr.bf16.mxu1 %v22210_v14  ;;  %v22253_v53 = vld [vmem:[#allocation29 + $0x380] ss:$60 sps:$4 sm:$0xff]   ;;  %v22256_v14 = vld [vmem:[#allocation29 + $0x3d4] ss:$60 sps:$4 sm:$0xff]  }
0x15db   :  { %15754 = vmatprep.subr.bf16.mxu0 %v22213_v61  ;;  %v22257_v61 = vld [vmem:[#allocation29 + $0xb78] ss:$60 sps:$4 sm:$0xff]  }
0x15dd   :  { %15067 = vmatpush1.bf16.msra.mxu1 %v22208_v49  ;;  %v22254_v49 = vld [vmem:[#allocation29 + $0x3d0] ss:$60 sps:$4 sm:$0xff]  }
0x15de   :  { %15755 = vmatpush1.bf16.msra.mxu0 %v22211_v47  ;;  %15095 = vmatprep.subr.bf16.mxu1 %v22216_v31  ;;  %v22258_v47 = vld [vmem:[#allocation29 + $0x7b8] ss:$60 sps:$4 sm:$0xff]   ;;  %v22261_v31 = vld [vmem:[#allocation29 + $0x44c] ss:$60 sps:$4 sm:$0xff]  }
0x15df   :  { %19755 = vmatprep.subr.bf16.mxu0 %v22217_v21  ;;  %v22262_v21 = vld [vmem:[#allocation29 + $0xbf0] ss:$60 sps:$4 sm:$0xff]  }
0x15e0   :  { %15085 = vmatmul.mubr.bf16.vlgmr.msra.gmra.mrb[52].mxu1 %v24614_v33 }
0x15e1   :  { %15773 = vmatmul.mubr.bf16.vlgmr.msra.gmra.mrb[56].mxu0 %v24614_v33  ;;  %15096 = vmatpush1.bf16.msra.mxu1 %v22214_v25  ;;  %v22259_v25 = vld [vmem:[#allocation29 + $0x448] ss:$60 sps:$4 sm:$0xff]  }
0x15e2   :  { %15127 = vmatprep.mubr.bf16.mxu1 %v24170_v24  ;;  %19756 = vmatpush3.bf16.msra.mxu0 %v22218_v36  ;;  %v22263_v36 = vld [vmem:[#allocation29 + $0x830] ss:$60 sps:$4 sm:$0xff]  }
0x15e3   :  { %15987 = vmatprep.mubr.bf16.mxu0 %v24170_v24  ;;  %15097 = vmatprep.subr.bf16.mxu1 %v22221_v34  ;;  %v22266_v34 = vld [vmem:[#allocation29 + $0x4c4] ss:$60 sps:$4 sm:$0xff]  }
0x15e4   :  { %19757 = vmatprep.subr.bf16.mxu0 %v22222_v22  ;;  %v22267_v22 = vld [vmem:[#allocation29 + $0xc68] ss:$60 sps:$4 sm:$0xff]  }
0x15e5   :  { %15098 = vmatpush1.bf16.msra.mxu1 %v22219_v50  ;;  %v22264_v50 = vld [vmem:[#allocation29 + $0x4c0] ss:$60 sps:$4 sm:$0xff]  }
0x15e6   :  { %19758 = vmatpush3.bf16.msra.mxu0 %v22223_v5  ;;  %15099 = vmatprep.subr.bf16.mxu1 %v22226_v20  ;;  %v22268_v5 = vld [vmem:[#allocation29 + $0x8a8] ss:$60 sps:$4 sm:$0xff]   ;;  %v22271_v20 = vld [vmem:[#allocation29 + $0x53c] ss:$60 sps:$4 sm:$0xff]  }
0x15e7   :  { %19759 = vmatprep.subr.bf16.mxu0 %v22227_v0  ;;  %v22272_v0 = vld [vmem:[#allocation29 + $0xce0] ss:$60 sps:$4 sm:$0xff]  }
0x15e9   :  { %15100 = vmatpush1.bf16.msra.mxu1 %v22224_v10  ;;  %v22269_v10 = vld [vmem:[#allocation29 + $0x538] ss:$60 sps:$4 sm:$0xff]  }
0x15ea   :  { %19760 = vmatpush3.bf16.msra.mxu0 %v22228_v60  ;;  %15101 = vmatprep.subr.bf16.mxu1 %v22231_v8  ;;  %v22273_v60 = vld [vmem:[#allocation29 + $0x920] ss:$60 sps:$4 sm:$0xff]   ;;  %v22276_v8 = vld [vmem:[#allocation29 + $0x5b4] ss:$60 sps:$4 sm:$0xff]  }
0x15eb   :  { %19761 = vmatprep.subr.bf16.mxu0 %v22232_v56  ;;  %v22277_v56 = vld [vmem:[#allocation29 + $0xd58] ss:$60 sps:$4 sm:$0xff]  }
0x15ed   :  { %15102 = vmatpush1.bf16.msra.mxu1 %v22229_v51  ;;  %v22274_v51 = vld [vmem:[#allocation29 + $0x5b0] ss:$60 sps:$4 sm:$0xff]  }
0x15ee   :  { %19762 = vmatpush3.bf16.msra.mxu0 %v22233_v32  ;;  %15103 = vmatprep.subr.bf16.mxu1 %v22236_v4  ;;  %v22278_v32 = vld [vmem:[#allocation29 + $0x998] ss:$60 sps:$4 sm:$0xff]   ;;  %v22281_v4 = vld [vmem:[#allocation29 + $0x62c] ss:$60 sps:$4 sm:$0xff]  }
0x15ef   :  { %19763 = vmatprep.subr.bf16.mxu0 %v22237_v9  ;;  %v22282_v9 = vld [vmem:[#allocation29 + $0xdd0] ss:$60 sps:$4 sm:$0xff]  }
0x15f1   :  { %15104 = vmatpush1.bf16.msra.mxu1 %v22234_v59  ;;  %v22279_v59 = vld [vmem:[#allocation29 + $0x628] ss:$60 sps:$4 sm:$0xff]  }
0x15f2   :  { %19764 = vmatpush3.bf16.msra.mxu0 %v22238_v23  ;;  %15105 = vmatprep.subr.bf16.mxu1 %v22241_v52  ;;  %v22283_v23 = vld [vmem:[#allocation29 + $0xa10] ss:$60 sps:$4 sm:$0xff]   ;;  %v22286_v52 = vld [vmem:[#allocation29 + $0x6a4] ss:$60 sps:$4 sm:$0xff]  }
0x15f3   :  { %19765 = vmatprep.subr.bf16.mxu0 %v22242_v45  ;;  %v22287_v45 = vld [vmem:[#allocation29 + $0xe48] ss:$60 sps:$4 sm:$0xff]  }
0x15f5   :  { %15106 = vmatpush1.bf16.msra.mxu1 %v22239_v2  ;;  %v22284_v2 = vld [vmem:[#allocation29 + $0x6a0] ss:$60 sps:$4 sm:$0xff]  }
0x15f6   :  { %19766 = vmatpush3.bf16.msra.mxu0 %v22243_v48  ;;  %15107 = vmatprep.subr.bf16.mxu1 %v22246_v39  ;;  %v22288_v48 = vld [vmem:[#allocation29 + $0xa88] ss:$60 sps:$4 sm:$0xff]   ;;  %v22291_v39 = vld [vmem:[#allocation29 + $0x71c] ss:$60 sps:$4 sm:$0xff]  }
0x15f7   :  { %19767 = vmatprep.subr.bf16.mxu0 %v22247_v26  ;;  %v22292_v26 = vld [vmem:[#allocation29 + $0xec0] ss:$60 sps:$4 sm:$0xff]  }
0x15f9   :  { %15108 = vmatpush1.bf16.msra.mxu1 %v22244_v30  ;;  %v22289_v30 = vld [vmem:[#allocation29 + $0x718] ss:$60 sps:$4 sm:$0xff]  }
0x15fa   :  { %19768 = vmatpush3.bf16.msra.mxu0 %v22248_v7  ;;  %15109 = vmatprep.subr.bf16.mxu1 %v22251_v1  ;;  %v22293_v7 = vld [vmem:[#allocation29 + $0xb00] ss:$60 sps:$4 sm:$0xff]   ;;  %v22296_v1 = vld [vmem:[#allocation29 + $0x794] ss:$60 sps:$4 sm:$0xff]  }
0x15fb   :  { %19769 = vmatprep.subr.bf16.mxu0 %v22252_v19  ;;  %v22297_v19 = vld [vmem:[#allocation29 + $0x12f8] ss:$60 sps:$4 sm:$0xff]  }
0x15fd   :  { %15110 = vmatpush1.bf16.msra.mxu1 %v22249_v6  ;;  %v22294_v6 = vld [vmem:[#allocation29 + $0x790] ss:$60 sps:$4 sm:$0xff]  }
0x15fe   :  { %19770 = vmatpush3.bf16.msra.mxu0 %v22253_v53  ;;  %15111 = vmatprep.subr.bf16.mxu1 %v22256_v14  ;;  %v22298_v53 = vld [vmem:[#allocation29 + $0xf38] ss:$60 sps:$4 sm:$0xff]   ;;  %v22301_v14 = vld [vmem:[#allocation29 + $0x80c] ss:$60 sps:$4 sm:$0xff]  }
0x15ff   :  { %19777 = vmatprep.subr.bf16.mxu0 %v22257_v61  ;;  %v22302_v61 = vld [vmem:[#allocation29 + $0x1370] ss:$60 sps:$4 sm:$0xff]  }
0x1601   :  { %15988 = vmatmul.mubr.bf16.vlgmr.msra.gmra.mrb[60].mxu0 %v24016_v44  ;;  %15112 = vmatpush1.bf16.msra.mxu1 %v22254_v49  ;;  %v22299_v49 = vld [vmem:[#allocation29 + $0x808] ss:$60 sps:$4 sm:$0xff]  }
0x1602   :  { %19778 = vmatpush3.bf16.msra.mxu0 %v22258_v47  ;;  %16028 = vmatprep.mubr.bf16.mxu0 %v24383_v11  ;;  %v22303_v47 = vld [vmem:[#allocation29 + $0xfb0] ss:$60 sps:$4 sm:$0xff]  }
0x1603   :  { %15113 = vmatprep.subr.bf16.mxu1 %v22261_v31  ;;  %19779 = vmatprep.subr.bf16.mxu0 %v22262_v21  ;;  %v22306_v31 = vld [vmem:[#allocation29 + $0x884] ss:$60 sps:$4 sm:$0xff]  }
0x1604   :  { %v22307_v21 = vld [vmem:[#allocation29 + $0x13e8] ss:$60 sps:$4 sm:$0xff]  }
0x1605   :  { %15114 = vmatpush1.bf16.msra.mxu1 %v22259_v25  ;;  %v22304_v25 = vld [vmem:[#allocation29 + $0x880] ss:$60 sps:$4 sm:$0xff]  }
0x1606   :  { %19780 = vmatpush3.bf16.msra.mxu0 %v22263_v36  ;;  %15115 = vmatprep.subr.bf16.mxu1 %v22266_v34  ;;  %v22308_v36 = vld [vmem:[#allocation29 + $0x1028] ss:$60 sps:$4 sm:$0xff]   ;;  %v22311_v34 = vld [vmem:[#allocation29 + $0x8fc] ss:$60 sps:$4 sm:$0xff]  }
0x1607   :  { %19781 = vmatprep.subr.bf16.mxu0 %v22267_v22  ;;  %v22312_v22 = vld [vmem:[#allocation29 + $0x1460] ss:$60 sps:$4 sm:$0xff]  }
0x1609   :  { %15116 = vmatpush1.bf16.msra.mxu1 %v22264_v50  ;;  %v22309_v50 = vld [vmem:[#allocation29 + $0x8f8] ss:$60 sps:$4 sm:$0xff]  }
0x160a   :  { %19782 = vmatpush3.bf16.msra.mxu0 %v22268_v5  ;;  %15117 = vmatprep.subr.bf16.mxu1 %v22271_v20  ;;  %v22313_v5 = vld [vmem:[#allocation29 + $0x10a0] ss:$60 sps:$4 sm:$0xff]   ;;  %v22316_v20 = vld [vmem:[#allocation29 + $0x974] ss:$60 sps:$4 sm:$0xff]  }
0x160b   :  { %19783 = vmatprep.subr.bf16.mxu0 %v22272_v0  ;;  %v22317_v0 = vld [vmem:[#allocation29 + $0x14d8] ss:$60 sps:$4 sm:$0xff]  }
0x160d   :  { %15118 = vmatpush1.bf16.msra.mxu1 %v22269_v10  ;;  %v22314_v10 = vld [vmem:[#allocation29 + $0x970] ss:$60 sps:$4 sm:$0xff]  }
0x160e   :  { %19784 = vmatpush3.bf16.msra.mxu0 %v22273_v60  ;;  %15119 = vmatprep.subr.bf16.mxu1 %v22276_v8  ;;  %v22318_v60 = vld [vmem:[#allocation29 + $0x1118] ss:$60 sps:$4 sm:$0xff]   ;;  %v22321_v8 = vld [vmem:[#allocation29 + $0x9ec] ss:$60 sps:$4 sm:$0xff]  }
0x160f   :  { %19785 = vmatprep.subr.bf16.mxu0 %v22277_v56  ;;  %v22322_v56 = vld [vmem:[#allocation29 + $0x1550] ss:$60 sps:$4 sm:$0xff]  }
0x1611   :  { %15120 = vmatpush1.bf16.msra.mxu1 %v22274_v51  ;;  %v22319_v51 = vld [vmem:[#allocation29 + $0x9e8] ss:$60 sps:$4 sm:$0xff]  }
0x1612   :  { %19786 = vmatpush3.bf16.msra.mxu0 %v22278_v32  ;;  %15121 = vmatprep.subr.bf16.mxu1 %v22281_v4  ;;  %v22323_v32 = vld [vmem:[#allocation29 + $0x1190] ss:$60 sps:$4 sm:$0xff]   ;;  %v22326_v4 = vld [vmem:[#allocation29 + $0xa64] ss:$60 sps:$4 sm:$0xff]  }
0x1613   :  { %19787 = vmatprep.subr.bf16.mxu0 %v22282_v9  ;;  %v22327_v9 = vld [vmem:[#allocation29 + $0x15c8] ss:$60 sps:$4 sm:$0xff]  }
0x1615   :  { %15122 = vmatpush1.bf16.msra.mxu1 %v22279_v59  ;;  %v22324_v59 = vld [vmem:[#allocation29 + $0xa60] ss:$60 sps:$4 sm:$0xff]  }
0x1616   :  { %19788 = vmatpush3.bf16.msra.mxu0 %v22283_v23  ;;  %15123 = vmatprep.subr.bf16.mxu1 %v22286_v52  ;;  %v22328_v23 = vld [vmem:[#allocation29 + $0x1208] ss:$60 sps:$4 sm:$0xff]   ;;  %v22331_v52 = vld [vmem:[#allocation29 + $0xadc] ss:$60 sps:$4 sm:$0xff]  }
0x1617   :  { %19789 = vmatprep.subr.bf16.mxu0 %v22287_v45  ;;  %v22332_v45 = vld [vmem:[#allocation29 + $0x1640] ss:$60 sps:$4 sm:$0xff]  }
0x1619   :  { %15124 = vmatpush1.bf16.msra.mxu1 %v22284_v2  ;;  %v22329_v2 = vld [vmem:[#allocation29 + $0xad8] ss:$60 sps:$4 sm:$0xff]  }
0x161a   :  { %19790 = vmatpush3.bf16.msra.mxu0 %v22288_v48  ;;  %15125 = vmatprep.subr.bf16.mxu1 %v22291_v39  ;;  %v22333_v48 = vld [vmem:[#allocation29 + $0x1280] ss:$60 sps:$4 sm:$0xff]   ;;  %v22336_v39 = vld [vmem:[#allocation29 + $0xb54] ss:$60 sps:$4 sm:$0xff]  }
0x161b   :  { %19791 = vmatprep.subr.bf16.mxu0 %v22292_v26  ;;  %v22334_v26 = vld [vmem:[#allocation29 + $0xb50] ss:$60 sps:$4 sm:$0xff]  }
0x161d   :  { %15126 = vmatpush1.bf16.msra.mxu1 %v22289_v30  ;;  %v22337_v30 = vld [vmem:[#allocation29 + $0x16b8] ss:$60 sps:$4 sm:$0xff]  }
0x161e   :  { %19792 = vmatpush3.bf16.msra.mxu0 %v22293_v7  ;;  %15138 = vmatprep.subr.bf16.mxu1 %v22296_v1  ;;  %v22340_v7 = vld [vmem:[#allocation29 + $0xbcc] ss:$60 sps:$4 sm:$0xff]  }
0x161f   :  { %19799 = vmatprep.subr.bf16.mxu0 %v22297_v19  ;;  %v22338_v1 = vld [vmem:[#allocation29 + $0xbc8] ss:$60 sps:$4 sm:$0xff]   ;;  %v22341_v19 = vld [vmem:[#allocation29 + $0x1730] ss:$60 sps:$4 sm:$0xff]  }
0x1620   :  { %15128 = vmatmul.mubr.bf16.vlgmr.msra.gmra.mrb[56].mxu1 %v24016_v44 }
0x1621   :  { %16029 = vmatmul.mubr.bf16.vlgmr.msra.gmra.mrb[64].mxu0 %v24376_v40  ;;  %15139 = vmatpush1.bf16.msra.mxu1 %v22294_v6  ;;  %v22344_v6 = vld [vmem:[#allocation29 + $0xc44] ss:$60 sps:$4 sm:$0xff]  }
0x1622   :  { %15170 = vmatprep.mubr.bf16.mxu1 %v24383_v11  ;;  %19800 = vmatpush3.bf16.msra.mxu0 %v22298_v53  ;;  %v22342_v53 = vld [vmem:[#allocation29 + $0xc40] ss:$60 sps:$4 sm:$0xff]  }
0x1623   :  { %16069 = vmatprep.mubr.bf16.mxu0 %v24551_v41  ;;  %15140 = vmatprep.subr.bf16.mxu1 %v22301_v14  ;;  %v22345_v14 = vld [vmem:[#allocation29 + $0x17a8] ss:$60 sps:$4 sm:$0xff]  }
0x1624   :  { %19801 = vmatprep.subr.bf16.mxu0 %v22302_v61  ;;  %v22348_v61 = vld [vmem:[#allocation29 + $0xcbc] ss:$60 sps:$4 sm:$0xff]  }
0x1625   :  { %15141 = vmatpush1.bf16.msra.mxu1 %v22299_v49  ;;  %v22346_v49 = vld [vmem:[#allocation29 + $0xcb8] ss:$60 sps:$4 sm:$0xff]  }
0x1626   :  { %19802 = vmatpush3.bf16.msra.mxu0 %v22303_v47  ;;  %15142 = vmatprep.subr.bf16.mxu1 %v22306_v31  ;;  %v22349_v47 = vld [vmem:[#allocation29 + $0x1820] ss:$60 sps:$4 sm:$0xff]   ;;  %v22352_v31 = vld [vmem:[#allocation29 + $0xd34] ss:$60 sps:$4 sm:$0xff]  }
0x1627   :  { %19803 = vmatprep.subr.bf16.mxu0 %v22307_v21  ;;  %v22350_v21 = vld [vmem:[#allocation29 + $0xd30] ss:$60 sps:$4 sm:$0xff]  }
0x1629   :  { %15143 = vmatpush1.bf16.msra.mxu1 %v22304_v25  ;;  %v22353_v25 = vld [vmem:[#allocation29 + $0x1898] ss:$60 sps:$4 sm:$0xff]  }
0x162a   :  { %19804 = vmatpush3.bf16.msra.mxu0 %v22308_v36  ;;  %15144 = vmatprep.subr.bf16.mxu1 %v22311_v34  ;;  %v22356_v36 = vld [vmem:[#allocation29 + $0xdac] ss:$60 sps:$4 sm:$0xff]  }
0x162b   :  { %19805 = vmatprep.subr.bf16.mxu0 %v22312_v22  ;;  %v22354_v34 = vld [vmem:[#allocation29 + $0xda8] ss:$60 sps:$4 sm:$0xff]   ;;  %v22357_v22 = vld [vmem:[#allocation29 + $0x1910] ss:$60 sps:$4 sm:$0xff]  }
0x162d   :  { %15145 = vmatpush1.bf16.msra.mxu1 %v22309_v50  ;;  %v22360_v50 = vld [vmem:[#allocation29 + $0xe24] ss:$60 sps:$4 sm:$0xff]  }
0x162e   :  { %19806 = vmatpush3.bf16.msra.mxu0 %v22313_v5  ;;  %15146 = vmatprep.subr.bf16.mxu1 %v22316_v20  ;;  %v22358_v5 = vld [vmem:[#allocation29 + $0xe20] ss:$60 sps:$4 sm:$0xff]   ;;  %v22361_v20 = vld [vmem:[#allocation29 + $0x1988] ss:$60 sps:$4 sm:$0xff]  }
0x162f   :  { %19807 = vmatprep.subr.bf16.mxu0 %v22317_v0  ;;  %v22364_v0 = vld [vmem:[#allocation29 + $0xe9c] ss:$60 sps:$4 sm:$0xff]  }
0x1631   :  { %15147 = vmatpush1.bf16.msra.mxu1 %v22314_v10  ;;  %v20075_v10 = vadd.f32 %v24648_v58, %v24657_v27  ;;  %v20074_v58 = vadd.f32 %v24636_v13, %v24644_v62  ;;  %v22369_v27 = vld [vmem:[#allocation29 + $0xf88] ss:$60 sps:$4 sm:$0xff]   ;;  %v22375_v13 = vld [vmem:[#allocation29 + $0x1078] ss:$60 sps:$4 sm:$0xff]  }
0x1632   :  { %19808 = vmatpush3.bf16.msra.mxu0 %v22318_v60  ;;  %15148 = vmatprep.subr.bf16.mxu1 %v22321_v8  ;;  %v22362_v60 = vld [vmem:[#allocation29 + $0xe98] ss:$60 sps:$4 sm:$0xff]   ;;  %v22365_v8 = vld [vmem:[#allocation29 + $0x1a00] ss:$60 sps:$4 sm:$0xff]  }
0x1633   :  { %19809 = vmatprep.subr.bf16.mxu0 %v22322_v56  ;;  %v22368_v56 = vld [vmem:[#allocation29 + $0xf14] ss:$60 sps:$4 sm:$0xff]  }
0x1634   :  { %v22380_v62 = vld [vmem:[#allocation29 + $0x10f4] ss:$60 sps:$4 sm:$0xff]  }
0x1635   :  { %15149 = vmatpush1.bf16.msra.mxu1 %v22319_v51  ;;  %v20063_v51 = vadd.f32 %v24646_v12, %v24652_v3  ;;  %v22374_v12 = vld [vmem:[#allocation29 + $0x1004] ss:$60 sps:$4 sm:$0xff]   ;;  %v16125_v3 = vpack.c.bf16 %v20074_v58, %v20074_v58 }
0x1636   :  { %19810 = vmatpush3.bf16.msra.mxu0 %v22323_v32  ;;  %15150 = vmatprep.subr.bf16.mxu1 %v22326_v4  ;;  %v16126_v32 = vpack.c.bf16 %v20075_v10, %v20075_v10  ;;  %v22366_v4 = vld [vmem:[#allocation29 + $0xf10] ss:$60 sps:$4 sm:$0xff]   ;;  %v25253_v58 = vld [vmem:[#allocation52_spill] sm:$0xff] }
0x1637   :  { %19811 = vmatprep.subr.bf16.mxu0 %v22327_v9  ;;  %v22371_v9 = vld [vmem:[#allocation29 + $0xf8c] ss:$60 sps:$4 sm:$0xff]  }
0x1638   :  { %v22419_v10 = vld [vmem:[#allocation29 + $0x170c] ss:$60 sps:$4 sm:$0xff]  }
0x1639   :  { %15151 = vmatpush1.bf16.msra.mxu1 %v22324_v59  ;;  %v16120_v59 = vpack.c.bf16 %v20063_v51, %v20063_v51  ;;  %v22425_v51 = vld [vmem:[#allocation29 + $0x17fc] ss:$60 sps:$4 sm:$0xff]  }
0x163a   :  { %19812 = vmatpush3.bf16.msra.mxu0 %v22328_v23  ;;  %15152 = vmatprep.subr.bf16.mxu1 %v22331_v52  ;;  %v22372_v23 = vld [vmem:[#allocation29 + $0x1000] ss:$60 sps:$4 sm:$0xff]  }
0x163b   :  { %19813 = vmatprep.subr.bf16.mxu0 %v22332_v45  ;;  %v22377_v52 = vld [vmem:[#allocation29 + $0x107c] ss:$60 sps:$4 sm:$0xff]   ;;  %v20062_v45 = vadd.f32 %v24634_v35, %v24640_v37  ;;  %v22392_v37 = vld [vmem:[#allocation29 + $0x12d4] ss:$60 sps:$4 sm:$0xff]  }
0x163c   :  { %v22387_v35 = vld [vmem:[#allocation29 + $0x1258] ss:$60 sps:$4 sm:$0xff]  }
0x163d   :  { %15153 = vmatpush1.bf16.msra.mxu1 %v22329_v2  ;;  %v16119_v2 = vpack.c.bf16 %v20062_v45, %v20062_v45  ;;  %v24711_v45 = vrot.slane %v24632_v57, %v23929_v17 }
0x163e   :  { %19814 = vmatpush3.bf16.msra.mxu0 %v22333_v48  ;;  %15154 = vmatprep.subr.bf16.mxu1 %v22336_v39  ;;  %v22378_v48 = vld [vmem:[#allocation29 + $0x10f0] ss:$60 sps:$4 sm:$0xff]  }
0x163f   :  { %20000 = vmatprep.subr.bf16.mxu0 %v25240_v15  ;;  %v22383_v39 = vld [vmem:[#allocation29 + $0x116c] ss:$60 sps:$4 sm:$0xff]  }
0x1641   :  { %16070 = vmatmul.mubr.bf16.vlgmr.msra.gmra.mrb[68].mxu0 %v24490_v43  ;;  %15155 = vmatpush1.bf16.msra.mxu1 %v22334_v26  ;;  %v22381_v26 = vld [vmem:[#allocation29 + $0x1168] ss:$60 sps:$4 sm:$0xff]  }
0x1642   :  { %20001 = vmatpush3.bf16.msra.mxu0 %v22337_v30  ;;  %15156 = vmatprep.subr.bf16.mxu1 %v22340_v7  ;;  %v22386_v30 = vld [vmem:[#allocation29 + $0x11e4] ss:$60 sps:$4 sm:$0xff]  }
0x1643   :  { %20002 = vmatprep.subr.bf16.mxu0 %v25240_v15  ;;  %20016 = vmatprep.mubr.msk.bf16.mxu0 %vm23518_vm3, %v25240_v15  ;;  %v22384_v7 = vld [vmem:[#allocation29 + $0x11e0] ss:$60 sps:$4 sm:$0xff]  }
0x1645   :  { %15157 = vmatpush1.bf16.msra.mxu1 %v22338_v1  ;;  %v22389_v1 = vld [vmem:[#allocation29 + $0x125c] ss:$60 sps:$4 sm:$0xff]  }
0x1646   :  { %20003 = vmatpush3.bf16.msra.mxu0 %v22341_v19  ;;  %15158 = vmatprep.subr.bf16.mxu1 %v22344_v6  ;;  %v22390_v19 = vld [vmem:[#allocation29 + $0x12d0] ss:$60 sps:$4 sm:$0xff]  }
0x1647   :  { %20004 = vmatprep.subr.bf16.mxu0 %v25240_v15  ;;  %v22395_v6 = vld [vmem:[#allocation29 + $0x134c] ss:$60 sps:$4 sm:$0xff]  }
0x1649   :  { %15159 = vmatpush1.bf16.msra.mxu1 %v22342_v53  ;;  %v22393_v53 = vld [vmem:[#allocation29 + $0x1348] ss:$60 sps:$4 sm:$0xff]  }
0x164a   :  { %20005 = vmatpush3.bf16.msra.mxu0 %v22345_v14  ;;  %15160 = vmatprep.subr.bf16.mxu1 %v22348_v61  ;;  %v22398_v14 = vld [vmem:[#allocation29 + $0x13c4] ss:$60 sps:$4 sm:$0xff]  }
0x164b   :  { %20006 = vmatprep.subr.bf16.mxu0 %v25240_v15  ;;  %v22396_v61 = vld [vmem:[#allocation29 + $0x13c0] ss:$60 sps:$4 sm:$0xff]  }
0x164d   :  { %15161 = vmatpush1.bf16.msra.mxu1 %v22346_v49  ;;  %v22401_v49 = vld [vmem:[#allocation29 + $0x143c] ss:$60 sps:$4 sm:$0xff]  }
0x164e   :  { %20007 = vmatpush3.bf16.msra.mxu0 %v22349_v47  ;;  %15162 = vmatprep.subr.bf16.mxu1 %v22352_v31  ;;  %v22399_v47 = vld [vmem:[#allocation29 + $0x1438] ss:$60 sps:$4 sm:$0xff]  }
0x164f   :  { %20008 = vmatprep.subr.bf16.mxu0 %v25240_v15  ;;  %v22404_v31 = vld [vmem:[#allocation29 + $0x14b4] ss:$60 sps:$4 sm:$0xff]  }
0x1651   :  { %15163 = vmatpush1.bf16.msra.mxu1 %v22350_v21  ;;  %v22402_v21 = vld [vmem:[#allocation29 + $0x14b0] ss:$60 sps:$4 sm:$0xff]  }
0x1652   :  { %20009 = vmatpush3.bf16.msra.mxu0 %v22353_v25  ;;  %15164 = vmatprep.subr.bf16.mxu1 %v22356_v36  ;;  %v22407_v25 = vld [vmem:[#allocation29 + $0x152c] ss:$60 sps:$4 sm:$0xff]  }
0x1653   :  { %20010 = vmatprep.subr.bf16.mxu0 %v25240_v15  ;;  %v22405_v36 = vld [vmem:[#allocation29 + $0x1528] ss:$60 sps:$4 sm:$0xff]  }
0x1655   :  { %15165 = vmatpush1.bf16.msra.mxu1 %v22354_v34  ;;  %v22410_v34 = vld [vmem:[#allocation29 + $0x15a4] ss:$60 sps:$4 sm:$0xff]  }
0x1656   :  { %20011 = vmatpush3.bf16.msra.mxu0 %v22357_v22  ;;  %15166 = vmatprep.subr.bf16.mxu1 %v22360_v50  ;;  %v22408_v22 = vld [vmem:[#allocation29 + $0x15a0] ss:$60 sps:$4 sm:$0xff]  }
0x1657   :  { %20012 = vmatprep.subr.bf16.mxu0 %v25240_v15  ;;  %v22413_v50 = vld [vmem:[#allocation29 + $0x161c] ss:$60 sps:$4 sm:$0xff]  }
0x1659   :  { %15167 = vmatpush1.bf16.msra.mxu1 %v22358_v5  ;;  %v22411_v5 = vld [vmem:[#allocation29 + $0x1618] ss:$60 sps:$4 sm:$0xff]  }
0x165a   :  { %20013 = vmatpush3.bf16.msra.mxu0 %v22361_v20  ;;  %15168 = vmatprep.subr.bf16.mxu1 %v22364_v0  ;;  %v22416_v20 = vld [vmem:[#allocation29 + $0x1694] ss:$60 sps:$4 sm:$0xff]  }
0x165b   :  { %20014 = vmatprep.subr.bf16.mxu0 %v25240_v15  ;;  %v22414_v0 = vld [vmem:[#allocation29 + $0x1690] ss:$60 sps:$4 sm:$0xff]  }
0x165d   :  { %15169 = vmatpush1.bf16.msra.mxu1 %v22362_v60  ;;  %v22417_v60 = vld [vmem:[#allocation29 + $0x1708] ss:$60 sps:$4 sm:$0xff]  }
0x165e   :  { %20015 = vmatpush3.bf16.msra.mxu0 %v22365_v8  ;;  %15181 = vmatprep.subr.bf16.mxu1 %v22368_v56  ;;  %v22422_v8 = vld [vmem:[#allocation29 + $0x1784] ss:$60 sps:$4 sm:$0xff]  }
0x165f   :  { %16134 = vmatprep.subr.bf16.mxu0 %v16126_v32  ;;  %v22420_v56 = vld [vmem:[#allocation29 + $0x1780] ss:$60 sps:$4 sm:$0xff]   ;;  %v22423_v32 = vld [vmem:[#allocation29 + $0x17f8] ss:$60 sps:$4 sm:$0xff]  }
0x1660   :  { %15171 = vmatmul.mubr.bf16.vlgmr.msra.gmra.mrb[56].mxu1 %v24376_v40 }
0x1661   :  { %20017 = vmatmul.mubr.bf16.vlgmr.msra.gmra.mrb[72].mxu0 %v24614_v33  ;;  %15182 = vmatpush1.bf16.msra.mxu1 %v22366_v4  ;;  %v22428_v4 = vld [vmem:[#allocation29 + $0x1874] ss:$60 sps:$4 sm:$0xff]  }
0x1662   :  { %15213 = vmatprep.mubr.bf16.mxu1 %v24551_v41  ;;  %16166 = vmatprep.mubr.bf16.mxu0 %v16120_v59  ;;  %v22431_v59 = vld [vmem:[#allocation29 + $0x18ec] ss:$60 sps:$4 sm:$0xff]  }
0x1663   :  { %15183 = vmatprep.subr.bf16.mxu1 %v22371_v9  ;;  %v22426_v9 = vld [vmem:[#allocation29 + $0x1870] ss:$60 sps:$4 sm:$0xff]  }
0x1665   :  { %15184 = vmatpush1.bf16.msra.mxu1 %v22369_v27  ;;  %v10435_v27 = vrot.slane %v24632_v57, %v25253_v58 }
0x1666   :  { %15185 = vmatprep.subr.bf16.mxu1 %v22374_v12  ;;  %v22429_v12 = vld [vmem:[#allocation29 + $0x18e8] ss:$60 sps:$4 sm:$0xff]  }
0x1667   :  { %16135 = vmatpush1.bf16.xpose.msra.mxu0 %v16125_v3  ;;  %v10417_v3 = vld [vmem:[#allocation31 + $0x8] sm:$0xff] }
0x1669   :  { %15186 = vmatpush1.bf16.msra.mxu1 %v22372_v23  ;;  %v22434_v23 = vld [vmem:[#allocation29 + $0x1964] ss:$60 sps:$4 sm:$0xff]  }
0x166a   :  { %15187 = vmatprep.subr.bf16.mxu1 %v22377_v52 }
0x166d   :  { %15188 = vmatpush1.bf16.msra.mxu1 %v22375_v13 }
0x166e   :  { %16167 = vmatmul.mubr.bf16.vlgmr.msra.gmra.mrb[76].mxu0 %v16119_v2  ;;  %15189 = vmatprep.subr.bf16.mxu1 %v22380_v62  ;;  %v24716_v2 = vrot.slane %v10417_v3, %v23929_v17 }
0x1671   :  { %15190 = vmatpush1.bf16.msra.mxu1 %v22378_v48 }
0x1672   :  { %15191 = vmatprep.subr.bf16.mxu1 %v22383_v39 }
0x1675   :  { %15192 = vmatpush1.bf16.msra.mxu1 %v22381_v26 }
0x1676   :  { %15193 = vmatprep.subr.bf16.mxu1 %v22386_v30  ;;  %v22432_v30 = vld [vmem:[#allocation29 + $0x1960] ss:$60 sps:$4 sm:$0xff]  }
0x1679   :  { %15194 = vmatpush1.bf16.msra.mxu1 %v22384_v7  ;;  %v24721_v7 = vrot.slane %v10417_v3, %v25253_v58 }
0x167a   :  { %15195 = vmatprep.subr.bf16.mxu1 %v22389_v1 }
0x167d   :  { %15196 = vmatpush1.bf16.msra.mxu1 %v22387_v35 }
0x167e   :  { %15197 = vmatprep.subr.bf16.mxu1 %v22392_v37  ;;  %v22437_v37 = vld [vmem:[#allocation29 + $0x19dc] ss:$60 sps:$4 sm:$0xff]  }
0x1681   :  { %15198 = vmatpush1.bf16.msra.mxu1 %v22390_v19 }
0x1682   :  { %15199 = vmatprep.subr.bf16.mxu1 %v22395_v6 }
0x1685   :  { %15200 = vmatpush1.bf16.msra.mxu1 %v22393_v53 }
0x1686   :  { %15201 = vmatprep.subr.bf16.mxu1 %v22398_v14 }
0x1689   :  { %15202 = vmatpush1.bf16.msra.mxu1 %v22396_v61  ;;  %v22435_v61 = vld [vmem:[#allocation29 + $0x19d8] ss:$60 sps:$4 sm:$0xff]  }
0x168a   :  { %15203 = vmatprep.subr.bf16.mxu1 %v22401_v49  ;;  %v22440_v49 = vld [vmem:[#allocation29 + $0x24] ss:$60 sps:$4 sm:$0xff]  }
0x168d   :  { %15204 = vmatpush1.bf16.msra.mxu1 %v22399_v47  ;;  %v22438_v47 = vld [vmem:[#allocation29 + $0x20] ss:$60 sps:$4 sm:$0xff]  }
0x168e   :  { %15205 = vmatprep.subr.bf16.mxu1 %v22404_v31  ;;  %v22443_v31 = vld [vmem:[#allocation29 + $0x9c] ss:$60 sps:$4 sm:$0xff]  }
0x1691   :  { %15206 = vmatpush1.bf16.msra.mxu1 %v22402_v21  ;;  %v22441_v21 = vld [vmem:[#allocation29 + $0x98] ss:$60 sps:$4 sm:$0xff]  }
0x1692   :  { %15207 = vmatprep.subr.bf16.mxu1 %v22407_v25  ;;  %v22446_v25 = vld [vmem:[#allocation29 + $0x114] ss:$60 sps:$4 sm:$0xff]  }
0x1695   :  { %15208 = vmatpush1.bf16.msra.mxu1 %v22405_v36  ;;  %v22444_v36 = vld [vmem:[#allocation29 + $0x110] ss:$60 sps:$4 sm:$0xff]  }
0x1696   :  { %15209 = vmatprep.subr.bf16.mxu1 %v22410_v34  ;;  %v22449_v34 = vld [vmem:[#allocation29 + $0x18c] ss:$60 sps:$4 sm:$0xff]  }
0x1699   :  { %15210 = vmatpush1.bf16.msra.mxu1 %v22408_v22  ;;  %v22447_v22 = vld [vmem:[#allocation29 + $0x188] ss:$60 sps:$4 sm:$0xff]  }
0x169a   :  { %15211 = vmatprep.subr.bf16.mxu1 %v22413_v50  ;;  %v22452_v50 = vld [vmem:[#allocation29 + $0x204] ss:$60 sps:$4 sm:$0xff]  }
0x169d   :  { %15212 = vmatpush1.bf16.msra.mxu1 %v22411_v5  ;;  %v22450_v5 = vld [vmem:[#allocation29 + $0x200] ss:$60 sps:$4 sm:$0xff]  }
0x169e   :  { %15224 = vmatprep.subr.bf16.mxu1 %v22416_v20  ;;  %v22455_v20 = vld [vmem:[#allocation29 + $0x27c] ss:$60 sps:$4 sm:$0xff]  }
0x16a0   :  { %15214 = vmatmul.mubr.bf16.vlgmr.msra.gmra.mrb[56].mxu1 %v24490_v43 }
0x16a1   :  { %15225 = vmatpush1.bf16.msra.mxu1 %v22414_v0  ;;  %15256 = vmatprep.mubr.bf16.mxu1 %v25241_v18  ;;  %v22453_v0 = vld [vmem:[#allocation29 + $0x278] ss:$60 sps:$4 sm:$0xff]  }
0x16a2   :  { %15226 = vmatprep.subr.bf16.mxu1 %v22419_v10  ;;  %v22458_v10 = vld [vmem:[#allocation29 + $0x2f4] ss:$60 sps:$4 sm:$0xff]  }
0x16a5   :  { %15227 = vmatpush1.bf16.msra.mxu1 %v22417_v60 }
0x16a6   :  { %15228 = vmatprep.subr.bf16.mxu1 %v22422_v8  ;;  %v10479_v8 = vrot.slane %v10417_v3, %v24293_v46  ;;  %v22465_v46 = vld [vmem:[#allocation29 + $0x458] ss:$60 sps:$4 sm:$0xff]  }
0x16a7   :  { %v22470_v3 = vld [vmem:[#allocation29 + $0x4d4] ss:$60 sps:$4 sm:$0xff]  }
0x16a9   :  { %15229 = vmatpush1.bf16.msra.mxu1 %v22420_v56 }
0x16aa   :  { %15230 = vmatprep.subr.bf16.mxu1 %v22425_v51  ;;  %v22456_v51 = vld [vmem:[#allocation29 + $0x2f0] ss:$60 sps:$4 sm:$0xff]  }
0x16ad   :  { %15231 = vmatpush1.bf16.msra.mxu1 %v22423_v32 }
0x16ae   :  { %15232 = vmatprep.subr.bf16.mxu1 %v22428_v4 }
0x16b1   :  { %15233 = vmatpush1.bf16.msra.mxu1 %v22426_v9  ;;  %v22461_v9 = vld [vmem:[#allocation29 + $0x36c] ss:$60 sps:$4 sm:$0xff]  }
0x16b2   :  { %15234 = vmatprep.subr.bf16.mxu1 %v22431_v59 }
0x16b3   :  { %v24707_v52 = vpop.f32.mrb[52].mxu1 }
0x16b4   :  { %v24713_v13 = vpop.f32.mrb[56].mxu0  ;;  %v15088_v62 = vpop.f32.mrb[53].mxu1 }
0x16b5   :  { %v20067_v48 = vadd.f32 %v15088_v62, %v10435_v27  ;;  %v24718_v39 = vpop.f32.mrb[57].mxu0  ;;  %v15090_v26 = vpop.f32.mrb[54].mxu1  ;;  %15235 = vmatpush1.bf16.msra.mxu1 %v22429_v12  ;;  %v22459_v12 = vld [vmem:[#allocation29 + $0x368] ss:$60 sps:$4 sm:$0xff]   ;;  %v22462_v62 = vld [vmem:[#allocation29 + $0x3e0] ss:$60 sps:$4 sm:$0xff]  }
0x16b6   :  { %v24724_v1 = vadd.f32 %v15090_v26, %v24711_v45  ;;  %v15778_v57 = vpop.f32.mrb[58].mxu0  ;;  %v15092_v35 = vpop.f32.mrb[55].mxu1  ;;  %15236 = vmatprep.subr.bf16.mxu1 %v22434_v23  ;;  %v22464_v23 = vld [vmem:[#allocation29 + $0x3e4] ss:$60 sps:$4 sm:$0xff]   ;;  %v22468_v26 = vld [vmem:[#allocation29 + $0x4d0] ss:$60 sps:$4 sm:$0xff]  }
0x16b7   :  { %v16122_v19 = vpack.c.bf16 %v20067_v48, %v20067_v48  ;;  %v24727_v17 = vadd.f32 %v15778_v57, %v24716_v2  ;;  %v24729_v6 = vadd.f32 %v15092_v35, %v10435_v27  ;;  %v15780_v53 = vpop.f32.mrb[59].mxu0  ;;  %v22467_v48 = vld [vmem:[#allocation29 + $0x45c] ss:$60 sps:$4 sm:$0xff]   ;;  %v22471_v57 = vld [vmem:[#allocation29 + $0x548] ss:$60 sps:$4 sm:$0xff]  }
0x16b8   :  { %v24732_v14 = vadd.f32 %v15780_v53, %v24721_v7  ;;  %v22476_v35 = vld [vmem:[#allocation29 + $0x5c4] ss:$60 sps:$4 sm:$0xff]   ;;  %v22477_v53 = vld [vmem:[#allocation29 + $0x638] ss:$60 sps:$4 sm:$0xff]  }
0x16b9   :  { %15237 = vmatpush1.bf16.msra.mxu1 %v22432_v30  ;;  %16206 = vmatprep.mubr.bf16.mxu0 %v16122_v19  ;;  %v22473_v30 = vld [vmem:[#allocation29 + $0x54c] ss:$60 sps:$4 sm:$0xff]   ;;  %v22479_v19 = vld [vmem:[#allocation29 + $0x63c] ss:$60 sps:$4 sm:$0xff]  }
0x16ba   :  { %15238 = vmatprep.subr.bf16.mxu1 %v22437_v37  ;;  %v22474_v37 = vld [vmem:[#allocation29 + $0x5c0] ss:$60 sps:$4 sm:$0xff]  }
0x16bd   :  { %15239 = vmatpush1.bf16.msra.mxu1 %v22435_v61  ;;  %v22482_v61 = vld [vmem:[#allocation29 + $0x6b4] ss:$60 sps:$4 sm:$0xff]  }
0x16be   :  { %15439 = vmatprep.subr.bf16.mxu1 %v22440_v49 }
0x16c0   :  { %15257 = vmatmul.mubr.bf16.vlgmr.msra.gmra.mrb[56].mxu1 %v24614_v33 }
0x16c1   :  { %15440 = vmatpush1.bf16.msra.mxu1 %v22438_v47  ;;  %15471 = vmatprep.mubr.bf16.mxu1 %v24170_v24 }
0x16c2   :  { %15441 = vmatprep.subr.bf16.mxu1 %v22443_v31  ;;  %v22480_v31 = vld [vmem:[#allocation29 + $0x6b0] ss:$60 sps:$4 sm:$0xff]  }
0x16c5   :  { %15442 = vmatpush1.bf16.msra.mxu1 %v22441_v21 }
0x16c6   :  { %15443 = vmatprep.subr.bf16.mxu1 %v22446_v25 }
0x16c9   :  { %15444 = vmatpush1.bf16.msra.mxu1 %v22444_v36  ;;  %v22485_v36 = vld [vmem:[#allocation29 + $0x72c] ss:$60 sps:$4 sm:$0xff]  }
0x16ca   :  { %15445 = vmatprep.subr.bf16.mxu1 %v22449_v34 }
0x16cd   :  { %15446 = vmatpush1.bf16.msra.mxu1 %v22447_v22 }
0x16ce   :  { %15447 = vmatprep.subr.bf16.mxu1 %v22452_v50 }
0x16d1   :  { %15448 = vmatpush1.bf16.msra.mxu1 %v22450_v5 }
0x16d2   :  { %15449 = vmatprep.subr.bf16.mxu1 %v22455_v20  ;;  %v22483_v20 = vld [vmem:[#allocation29 + $0x728] ss:$60 sps:$4 sm:$0xff]  }
0x16d4   :  { %v19771_v60 = vpop.f32.mrb[60].mxu0 }
0x16d5   :  { %v19772_v56 = vpop.f32.mrb[61].mxu0  ;;  %15450 = vmatpush1.bf16.msra.mxu1 %v22453_v0 }
0x16d6   :  { %v19773_v32 = vadd.f32 %v19772_v56, %v19771_v60  ;;  %v19774_v4 = vpop.f32.mrb[62].mxu0  ;;  %15451 = vmatprep.subr.bf16.mxu1 %v22458_v10  ;;  %v22488_v10 = vld [vmem:[#allocation29 + $0x7a4] ss:$60 sps:$4 sm:$0xff]   ;;  %v22491_v56 = vld [vmem:[#allocation29 + $0x81c] ss:$60 sps:$4 sm:$0xff]  }
0x16d7   :  { %v19775_v59 = vpop.f32.mrb[63].mxu0  ;;  %v22486_v60 = vld [vmem:[#allocation29 + $0x7a0] ss:$60 sps:$4 sm:$0xff]  }
0x16d8   :  { %v15990_v58 = vadd.f32 %v19773_v32, %v10479_v8  ;;  %v19776_v27 = vadd.f32 %v19775_v59, %v19774_v4  ;;  %v22494_v32 = vld [vmem:[#allocation29 + $0x894] ss:$60 sps:$4 sm:$0xff]   ;;  %v22497_v4 = vld [vmem:[#allocation29 + $0x90c] ss:$60 sps:$4 sm:$0xff]   ;;  %v22500_v59 = vld [vmem:[#allocation29 + $0x984] ss:$60 sps:$4 sm:$0xff]  }
0x16d9   :  { %15452 = vmatpush1.bf16.msra.mxu1 %v22456_v51  ;;  %v22489_v51 = vld [vmem:[#allocation29 + $0x818] ss:$60 sps:$4 sm:$0xff]  }
0x16da   :  { %15453 = vmatprep.subr.bf16.mxu1 %v22461_v9  ;;  %v15993_v22 = vadd.f32 %v19776_v27, %v10479_v8  ;;  %v22492_v8 = vld [vmem:[#allocation29 + $0x890] ss:$60 sps:$4 sm:$0xff]   ;;  %v22495_v9 = vld [vmem:[#allocation29 + $0x908] ss:$60 sps:$4 sm:$0xff]   ;;  %v22503_v27 = vld [vmem:[#allocation29 + $0x9fc] ss:$60 sps:$4 sm:$0xff]  }
0x16dd   :  { %15454 = vmatpush1.bf16.msra.mxu1 %v22459_v12  ;;  %v22501_v12 = vld [vmem:[#allocation29 + $0x9f8] ss:$60 sps:$4 sm:$0xff]  }
0x16de   :  { %15455 = vmatprep.subr.bf16.mxu1 %v22464_v23  ;;  %v22506_v23 = vld [vmem:[#allocation29 + $0xa74] ss:$60 sps:$4 sm:$0xff]  }
0x16e1   :  { %15456 = vmatpush1.bf16.msra.mxu1 %v22462_v62 }
0x16e2   :  { %15457 = vmatprep.subr.bf16.mxu1 %v22467_v48 }
0x16e5   :  { %15458 = vmatpush1.bf16.msra.mxu1 %v22465_v46  ;;  %v22504_v46 = vld [vmem:[#allocation29 + $0xa70] ss:$60 sps:$4 sm:$0xff]  }
0x16e6   :  { %15459 = vmatprep.subr.bf16.mxu1 %v22470_v3 }
0x16e9   :  { %15460 = vmatpush1.bf16.msra.mxu1 %v22468_v26 }
0x16ea   :  { %15461 = vmatprep.subr.bf16.mxu1 %v22473_v30  ;;  %v22509_v30 = vld [vmem:[#allocation29 + $0xaec] ss:$60 sps:$4 sm:$0xff]  }
0x16ed   :  { %15462 = vmatpush1.bf16.msra.mxu1 %v22471_v57 }
0x16ee   :  { %15463 = vmatprep.subr.bf16.mxu1 %v22476_v35 }
0x16f1   :  { %15464 = vmatpush1.bf16.msra.mxu1 %v22474_v37 }
0x16f2   :  { %15465 = vmatprep.subr.bf16.mxu1 %v22479_v19  ;;  %v22507_v19 = vld [vmem:[#allocation29 + $0xae8] ss:$60 sps:$4 sm:$0xff]  }
0x16f4   :  { %v19793_v49 = vpop.f32.mrb[64].mxu0 }
0x16f5   :  { %v19794_v47 = vpop.f32.mrb[65].mxu0  ;;  %15466 = vmatpush1.bf16.msra.mxu1 %v22477_v53  ;;  %v22512_v53 = vld [vmem:[#allocation29 + $0xb64] ss:$60 sps:$4 sm:$0xff]  }
0x16f6   :  { %v19795_v21 = vadd.f32 %v19794_v47, %v19793_v49  ;;  %v19796_v25 = vpop.f32.mrb[66].mxu0  ;;  %15467 = vmatprep.subr.bf16.mxu1 %v22482_v61  ;;  %v22510_v49 = vld [vmem:[#allocation29 + $0xb60] ss:$60 sps:$4 sm:$0xff]  }
0x16f7   :  { %v19797_v34 = vpop.f32.mrb[67].mxu0  ;;  %v22515_v47 = vld [vmem:[#allocation29 + $0xbdc] ss:$60 sps:$4 sm:$0xff]  }
0x16f8   :  { %v16031_v50 = vadd.f32 %v19795_v21, %v15990_v58  ;;  %v19798_v5 = vadd.f32 %v19797_v34, %v19796_v25  ;;  %v22498_v58 = vld [vmem:[#allocation29 + $0x980] ss:$60 sps:$4 sm:$0xff]   ;;  %v22518_v21 = vld [vmem:[#allocation29 + $0xc54] ss:$60 sps:$4 sm:$0xff]   ;;  %v22519_v34 = vld [vmem:[#allocation29 + $0xcc8] ss:$60 sps:$4 sm:$0xff]  }
0x16f9   :  { %15468 = vmatpush1.bf16.msra.mxu1 %v22480_v31  ;;  %v22513_v31 = vld [vmem:[#allocation29 + $0xbd8] ss:$60 sps:$4 sm:$0xff]   ;;  %v22516_v25 = vld [vmem:[#allocation29 + $0xc50] ss:$60 sps:$4 sm:$0xff]  }
0x16fa   :  { %v16034_v0 = vadd.f32 %v19798_v5, %v15993_v22  ;;  %15469 = vmatprep.subr.bf16.mxu1 %v22485_v36  ;;  %v22521_v36 = vld [vmem:[#allocation29 + $0xccc] ss:$60 sps:$4 sm:$0xff]   ;;  %v22524_v22 = vld [vmem:[#allocation29 + $0xd44] ss:$60 sps:$4 sm:$0xff]   ;;  %v22527_v5 = vld [vmem:[#allocation29 + $0xdbc] ss:$60 sps:$4 sm:$0xff]  }
0x16fd   :  { %15470 = vmatpush1.bf16.msra.mxu1 %v22483_v20  ;;  %v22525_v20 = vld [vmem:[#allocation29 + $0xdb8] ss:$60 sps:$4 sm:$0xff]  }
0x16fe   :  { %15482 = vmatprep.subr.bf16.mxu1 %v22488_v10 }
0x1700   :  { %15472 = vmatmul.mubr.bf16.vlgmr.msra.gmra.mrb[60].mxu1 %v24016_v44 }
0x1701   :  { %15483 = vmatpush1.bf16.msra.mxu1 %v22486_v60  ;;  %15514 = vmatprep.mubr.bf16.mxu1 %v24383_v11 }
0x1702   :  { %15484 = vmatprep.subr.bf16.mxu1 %v22491_v56 }
0x1705   :  { %15485 = vmatpush1.bf16.msra.mxu1 %v22489_v51  ;;  %v22528_v51 = vld [vmem:[#allocation29 + $0xe30] ss:$60 sps:$4 sm:$0xff]  }
0x1706   :  { %15486 = vmatprep.subr.bf16.mxu1 %v22494_v32 }
0x1709   :  { %15487 = vmatpush1.bf16.msra.mxu1 %v22492_v8  ;;  %v22533_v8 = vld [vmem:[#allocation29 + $0xeac] ss:$60 sps:$4 sm:$0xff]  }
0x170a   :  { %15488 = vmatprep.subr.bf16.mxu1 %v22497_v4 }
0x170d   :  { %15489 = vmatpush1.bf16.msra.mxu1 %v22495_v9 }
0x170e   :  { %15490 = vmatprep.subr.bf16.mxu1 %v22500_v59  ;;  %v22531_v59 = vld [vmem:[#allocation29 + $0xea8] ss:$60 sps:$4 sm:$0xff]  }
0x1711   :  { %15491 = vmatpush1.bf16.msra.mxu1 %v22498_v58  ;;  %v22536_v58 = vld [vmem:[#allocation29 + $0xf24] ss:$60 sps:$4 sm:$0xff]  }
0x1712   :  { %15492 = vmatprep.subr.bf16.mxu1 %v22503_v27  ;;  %v22534_v27 = vld [vmem:[#allocation29 + $0xf20] ss:$60 sps:$4 sm:$0xff]  }
0x1714   :  { %v19815_v62 = vpop.f32.mrb[68].mxu0 }
0x1715   :  { %v19816_v48 = vpop.f32.mrb[69].mxu0  ;;  %15493 = vmatpush1.bf16.msra.mxu1 %v22501_v12  ;;  %v22539_v12 = vld [vmem:[#allocation29 + $0xf9c] ss:$60 sps:$4 sm:$0xff]  }
0x1716   :  { %v19817_v3 = vadd.f32 %v19816_v48, %v19815_v62  ;;  %v19818_v26 = vpop.f32.mrb[70].mxu0  ;;  %15494 = vmatprep.subr.bf16.mxu1 %v22506_v23  ;;  %v22537_v23 = vld [vmem:[#allocation29 + $0xf98] ss:$60 sps:$4 sm:$0xff]   ;;  %v22540_v48 = vld [vmem:[#allocation29 + $0x1010] ss:$60 sps:$4 sm:$0xff]  }
0x1717   :  { %v19819_v57 = vpop.f32.mrb[71].mxu0  ;;  %v22542_v62 = vld [vmem:[#allocation29 + $0x1014] ss:$60 sps:$4 sm:$0xff]  }
0x1718   :  { %v19820_v35 = vadd.f32 %v19819_v57, %v19818_v26  ;;  %v16072_v37 = vadd.f32 %v19817_v3, %v16031_v50  ;;  %v22522_v50 = vld [vmem:[#allocation29 + $0xd40] ss:$60 sps:$4 sm:$0xff]   ;;  %v22543_v3 = vld [vmem:[#allocation29 + $0x1088] ss:$60 sps:$4 sm:$0xff]  }
0x1719   :  { %15495 = vmatpush1.bf16.msra.mxu1 %v22504_v46  ;;  %v22545_v46 = vld [vmem:[#allocation29 + $0x108c] ss:$60 sps:$4 sm:$0xff]   ;;  %v22548_v26 = vld [vmem:[#allocation29 + $0x1104] ss:$60 sps:$4 sm:$0xff]   ;;  %v22551_v57 = vld [vmem:[#allocation29 + $0x117c] ss:$60 sps:$4 sm:$0xff]  }
0x171a   :  { %15496 = vmatprep.subr.bf16.mxu1 %v22509_v30  ;;  %v16075_v61 = vadd.f32 %v19820_v35, %v16034_v0  ;;  %v22530_v0 = vld [vmem:[#allocation29 + $0xe34] ss:$60 sps:$4 sm:$0xff]   ;;  %v22546_v30 = vld [vmem:[#allocation29 + $0x1100] ss:$60 sps:$4 sm:$0xff]  }
0x171b   :  { %v22549_v35 = vld [vmem:[#allocation29 + $0x1178] ss:$60 sps:$4 sm:$0xff]  }
0x171d   :  { %15497 = vmatpush1.bf16.msra.mxu1 %v22507_v19  ;;  %v22552_v19 = vld [vmem:[#allocation29 + $0x11f0] ss:$60 sps:$4 sm:$0xff]  }
0x171e   :  { %15498 = vmatprep.subr.bf16.mxu1 %v22512_v53  ;;  %v22557_v53 = vld [vmem:[#allocation29 + $0x126c] ss:$60 sps:$4 sm:$0xff]  }
0x1721   :  { %15499 = vmatpush1.bf16.msra.mxu1 %v22510_v49  ;;  %v22560_v49 = vld [vmem:[#allocation29 + $0x12e4] ss:$60 sps:$4 sm:$0xff]  }
0x1722   :  { %15500 = vmatprep.subr.bf16.mxu1 %v22515_v47  ;;  %v22558_v47 = vld [vmem:[#allocation29 + $0x12e0] ss:$60 sps:$4 sm:$0xff]  }
0x1725   :  { %15501 = vmatpush1.bf16.msra.mxu1 %v22513_v31  ;;  %v22563_v31 = vld [vmem:[#allocation29 + $0x135c] ss:$60 sps:$4 sm:$0xff]  }
0x1726   :  { %15502 = vmatprep.subr.bf16.mxu1 %v22518_v21  ;;  %v22561_v21 = vld [vmem:[#allocation29 + $0x1358] ss:$60 sps:$4 sm:$0xff]  }
0x1729   :  { %15503 = vmatpush1.bf16.msra.mxu1 %v22516_v25  ;;  %v22566_v25 = vld [vmem:[#allocation29 + $0x13d4] ss:$60 sps:$4 sm:$0xff]  }
0x172a   :  { %15504 = vmatprep.subr.bf16.mxu1 %v22521_v36  ;;  %v22564_v36 = vld [vmem:[#allocation29 + $0x13d0] ss:$60 sps:$4 sm:$0xff]  }
0x172d   :  { %15505 = vmatpush1.bf16.msra.mxu1 %v22519_v34  ;;  %v22569_v34 = vld [vmem:[#allocation29 + $0x144c] ss:$60 sps:$4 sm:$0xff]  }
0x172e   :  { %15506 = vmatprep.subr.bf16.mxu1 %v22524_v22  ;;  %v22567_v22 = vld [vmem:[#allocation29 + $0x1448] ss:$60 sps:$4 sm:$0xff]  }
0x1731   :  { %15507 = vmatpush1.bf16.msra.mxu1 %v22522_v50  ;;  %v22572_v50 = vld [vmem:[#allocation29 + $0x14c4] ss:$60 sps:$4 sm:$0xff]  }
0x1732   :  { %15508 = vmatprep.subr.bf16.mxu1 %v22527_v5  ;;  %v22570_v5 = vld [vmem:[#allocation29 + $0x14c0] ss:$60 sps:$4 sm:$0xff]  }
0x1734   :  { %v16112_v10 = vpop.f32.mrb[72].mxu0 }
0x1735   :  { %v24739_v60 = vadd.f32 %v16112_v10, %v16072_v37  ;;  %v20018_v56 = vpop.f32.mrb[73].mxu0  ;;  %15509 = vmatpush1.bf16.msra.mxu1 %v22525_v20  ;;  %v22554_v37 = vld [vmem:[#allocation29 + $0x11f4] ss:$60 sps:$4 sm:$0xff]   ;;  %v22575_v20 = vld [vmem:[#allocation29 + $0x153c] ss:$60 sps:$4 sm:$0xff]  }
0x1736   :  { %v16115_v32 = vpop.f32.mrb[74].mxu0  ;;  %15510 = vmatprep.subr.bf16.mxu1 %v22530_v0  ;;  %v22573_v0 = vld [vmem:[#allocation29 + $0x1538] ss:$60 sps:$4 sm:$0xff]   ;;  %v22576_v56 = vld [vmem:[#allocation29 + $0x15b0] ss:$60 sps:$4 sm:$0xff]  }
0x1737   :  { %v24741_v4 = vadd.f32 %v16115_v32, %v16075_v61  ;;  %v20019_v9 = vpop.f32.mrb[75].mxu0  ;;  %v22555_v61 = vld [vmem:[#allocation29 + $0x1268] ss:$60 sps:$4 sm:$0xff]   ;;  %v22578_v10 = vld [vmem:[#allocation29 + $0x15b4] ss:$60 sps:$4 sm:$0xff]  }
0x1738   :  { %v22579_v32 = vld [vmem:[#allocation29 + $0x1628] ss:$60 sps:$4 sm:$0xff]   ;;  %v22582_v9 = vld [vmem:[#allocation29 + $0x16a0] ss:$60 sps:$4 sm:$0xff]  }
0x1739   :  { %15511 = vmatpush1.bf16.msra.mxu1 %v22528_v51  ;;  %v22581_v51 = vld [vmem:[#allocation29 + $0x162c] ss:$60 sps:$4 sm:$0xff]  }
0x173a   :  { %15512 = vmatprep.subr.bf16.mxu1 %v22533_v8  ;;  %v22584_v8 = vld [vmem:[#allocation29 + $0x16a4] ss:$60 sps:$4 sm:$0xff]  }
0x173d   :  { %15513 = vmatpush1.bf16.msra.mxu1 %v22531_v59  ;;  %v22587_v59 = vld [vmem:[#allocation29 + $0x171c] ss:$60 sps:$4 sm:$0xff]  }
0x173e   :  { %15525 = vmatprep.subr.bf16.mxu1 %v22536_v58  ;;  %v22585_v58 = vld [vmem:[#allocation29 + $0x1718] ss:$60 sps:$4 sm:$0xff]  }
0x1740   :  { %15515 = vmatmul.mubr.bf16.vlgmr.msra.gmra.mrb[60].mxu1 %v24376_v40 }
0x1741   :  { %15526 = vmatpush1.bf16.msra.mxu1 %v22534_v27  ;;  %15557 = vmatprep.mubr.bf16.mxu1 %v24551_v41  ;;  %v22590_v27 = vld [vmem:[#allocation29 + $0x1794] ss:$60 sps:$4 sm:$0xff]  }
0x1742   :  { %15527 = vmatprep.subr.bf16.mxu1 %v22539_v12  ;;  %v22588_v12 = vld [vmem:[#allocation29 + $0x1790] ss:$60 sps:$4 sm:$0xff]  }
0x1745   :  { %15528 = vmatpush1.bf16.msra.mxu1 %v22537_v23  ;;  %v22593_v23 = vld [vmem:[#allocation29 + $0x180c] ss:$60 sps:$4 sm:$0xff]  }
0x1746   :  { %15529 = vmatprep.subr.bf16.mxu1 %v22542_v62  ;;  %v22591_v62 = vld [vmem:[#allocation29 + $0x1808] ss:$60 sps:$4 sm:$0xff]  }
0x1749   :  { %15530 = vmatpush1.bf16.msra.mxu1 %v22540_v48  ;;  %v22596_v48 = vld [vmem:[#allocation29 + $0x1884] ss:$60 sps:$4 sm:$0xff]  }
0x174a   :  { %15531 = vmatprep.subr.bf16.mxu1 %v22545_v46  ;;  %v22594_v46 = vld [vmem:[#allocation29 + $0x1880] ss:$60 sps:$4 sm:$0xff]  }
0x174d   :  { %15532 = vmatpush1.bf16.msra.mxu1 %v22543_v3  ;;  %v22599_v3 = vld [vmem:[#allocation29 + $0x18fc] ss:$60 sps:$4 sm:$0xff]  }
0x174e   :  { %15533 = vmatprep.subr.bf16.mxu1 %v22548_v26  ;;  %v22597_v26 = vld [vmem:[#allocation29 + $0x18f8] ss:$60 sps:$4 sm:$0xff]  }
0x1751   :  { %15534 = vmatpush1.bf16.msra.mxu1 %v22546_v30  ;;  %v22602_v30 = vld [vmem:[#allocation29 + $0x1974] ss:$60 sps:$4 sm:$0xff]  }
0x1752   :  { %15535 = vmatprep.subr.bf16.mxu1 %v22551_v57 }
0x1755   :  { %15536 = vmatpush1.bf16.msra.mxu1 %v22549_v35  ;;  %v22952_v35 = vld [vmem:[#allocation31] sm:$0xff] }
0x1756   :  { %15537 = vmatprep.subr.bf16.mxu1 %v22554_v37  ;;  %v25254_v37 = vld [vmem:[#allocation53_spill] sm:$0xff] }
0x1759   :  { %15538 = vmatpush1.bf16.msra.mxu1 %v22552_v19  ;;  %v24750_v19 = vrot.slane %v22952_v35, %v25254_v37 }
0x175a   :  { %15539 = vmatprep.subr.bf16.mxu1 %v22557_v53 }
0x175d   :  { %15540 = vmatpush1.bf16.msra.mxu1 %v22555_v61  ;;  %v25255_v61 = vld [vmem:[#allocation54_spill] sm:$0xff] }
0x175e   :  { %15541 = vmatprep.subr.bf16.mxu1 %v22560_v49  ;;  %v24755_v49 = vrot.slane %v22952_v35, %v25255_v61  ;;  %v22636_v35 = vld [vmem:[#allocation29 + $0x4e0] ss:$60 sps:$4 sm:$0xff]  }
0x1761   :  { %15542 = vmatpush1.bf16.msra.mxu1 %v22558_v47 }
0x1762   :  { %15543 = vmatprep.subr.bf16.mxu1 %v22563_v31  ;;  %v22600_v31 = vld [vmem:[#allocation29 + $0x1970] ss:$60 sps:$4 sm:$0xff]  }
0x1765   :  { %15544 = vmatpush1.bf16.msra.mxu1 %v22561_v21 }
0x1766   :  { %15545 = vmatprep.subr.bf16.mxu1 %v22566_v25 }
0x1769   :  { %15546 = vmatpush1.bf16.msra.mxu1 %v22564_v36  ;;  %v22605_v36 = vld [vmem:[#allocation29 + $0x19ec] ss:$60 sps:$4 sm:$0xff]  }
0x176a   :  { %15547 = vmatprep.subr.bf16.mxu1 %v22569_v34 }
0x176d   :  { %15548 = vmatpush1.bf16.msra.mxu1 %v22567_v22  ;;  %v22603_v22 = vld [vmem:[#allocation29 + $0x19e8] ss:$60 sps:$4 sm:$0xff]  }
0x176e   :  { %15549 = vmatprep.subr.bf16.mxu1 %v22572_v50  ;;  %v22608_v50 = vld [vmem:[#allocation29 + $0x34] ss:$60 sps:$4 sm:$0xff]  }
0x1771   :  { %15550 = vmatpush1.bf16.msra.mxu1 %v22570_v5  ;;  %v22606_v5 = vld [vmem:[#allocation29 + $0x30] ss:$60 sps:$4 sm:$0xff]  }
0x1772   :  { %15551 = vmatprep.subr.bf16.mxu1 %v22575_v20  ;;  %v22611_v20 = vld [vmem:[#allocation29 + $0xac] ss:$60 sps:$4 sm:$0xff]  }
0x1775   :  { %15552 = vmatpush1.bf16.msra.mxu1 %v22573_v0  ;;  %v22609_v0 = vld [vmem:[#allocation29 + $0xa8] ss:$60 sps:$4 sm:$0xff]  }
0x1776   :  { %15553 = vmatprep.subr.bf16.mxu1 %v22578_v10  ;;  %v22614_v10 = vld [vmem:[#allocation29 + $0x124] ss:$60 sps:$4 sm:$0xff]  }
0x1779   :  { %15554 = vmatpush1.bf16.msra.mxu1 %v22576_v56  ;;  %v22612_v56 = vld [vmem:[#allocation29 + $0x120] ss:$60 sps:$4 sm:$0xff]  }
0x177a   :  { %15555 = vmatprep.subr.bf16.mxu1 %v22581_v51  ;;  %v22617_v51 = vld [vmem:[#allocation29 + $0x19c] ss:$60 sps:$4 sm:$0xff]  }
0x177d   :  { %15556 = vmatpush1.bf16.msra.mxu1 %v22579_v32  ;;  %v22615_v32 = vld [vmem:[#allocation29 + $0x198] ss:$60 sps:$4 sm:$0xff]  }
0x177e   :  { %15568 = vmatprep.subr.bf16.mxu1 %v22584_v8  ;;  %v22620_v8 = vld [vmem:[#allocation29 + $0x214] ss:$60 sps:$4 sm:$0xff]  }
0x1780   :  { %15558 = vmatmul.mubr.bf16.vlgmr.msra.gmra.mrb[60].mxu1 %v24490_v43 }
0x1781   :  { %15569 = vmatpush1.bf16.msra.mxu1 %v22582_v9  ;;  %15600 = vmatprep.mubr.bf16.mxu1 %v25241_v18  ;;  %v22618_v9 = vld [vmem:[#allocation29 + $0x210] ss:$60 sps:$4 sm:$0xff]  }
0x1782   :  { %15570 = vmatprep.subr.bf16.mxu1 %v22587_v59  ;;  %v22623_v59 = vld [vmem:[#allocation29 + $0x28c] ss:$60 sps:$4 sm:$0xff]  }
0x1785   :  { %15571 = vmatpush1.bf16.msra.mxu1 %v22585_v58  ;;  %v22621_v58 = vld [vmem:[#allocation29 + $0x288] ss:$60 sps:$4 sm:$0xff]  }
0x1786   :  { %15572 = vmatprep.subr.bf16.mxu1 %v22590_v27  ;;  %v22626_v27 = vld [vmem:[#allocation29 + $0x304] ss:$60 sps:$4 sm:$0xff]  }
0x1789   :  { %15573 = vmatpush1.bf16.msra.mxu1 %v22588_v12  ;;  %v22624_v12 = vld [vmem:[#allocation29 + $0x300] ss:$60 sps:$4 sm:$0xff]  }
0x178a   :  { %15574 = vmatprep.subr.bf16.mxu1 %v22593_v23  ;;  %v22629_v23 = vld [vmem:[#allocation29 + $0x37c] ss:$60 sps:$4 sm:$0xff]  }
0x178d   :  { %15575 = vmatpush1.bf16.msra.mxu1 %v22591_v62  ;;  %v22627_v62 = vld [vmem:[#allocation29 + $0x378] ss:$60 sps:$4 sm:$0xff]  }
0x178e   :  { %15576 = vmatprep.subr.bf16.mxu1 %v22596_v48  ;;  %v22632_v48 = vld [vmem:[#allocation29 + $0x3f4] ss:$60 sps:$4 sm:$0xff]  }
0x1791   :  { %15577 = vmatpush1.bf16.msra.mxu1 %v22594_v46  ;;  %v22630_v46 = vld [vmem:[#allocation29 + $0x3f0] ss:$60 sps:$4 sm:$0xff]  }
0x1792   :  { %15578 = vmatprep.subr.bf16.mxu1 %v22599_v3  ;;  %v22635_v3 = vld [vmem:[#allocation29 + $0x46c] ss:$60 sps:$4 sm:$0xff]  }
0x1793   :  { %v24747_v57 = vpop.f32.mrb[56].mxu1 }
0x1794   :  { %v24752_v53 = vpop.f32.mrb[57].mxu1 }
0x1795   :  { %v15262_v47 = vpop.f32.mrb[58].mxu1  ;;  %15579 = vmatpush1.bf16.msra.mxu1 %v22597_v26  ;;  %v22633_v26 = vld [vmem:[#allocation29 + $0x468] ss:$60 sps:$4 sm:$0xff]  }
0x1796   :  { %v24758_v21 = vadd.f32 %v15262_v47, %v24750_v19  ;;  %v15264_v25 = vpop.f32.mrb[59].mxu1  ;;  %15580 = vmatprep.subr.bf16.mxu1 %v22602_v30  ;;  %v22638_v30 = vld [vmem:[#allocation29 + $0x4e4] ss:$60 sps:$4 sm:$0xff]   ;;  %v22641_v47 = vld [vmem:[#allocation29 + $0x55c] ss:$60 sps:$4 sm:$0xff]  }
0x1797   :  { %v24761_v34 = vadd.f32 %v15264_v25, %v24755_v49  ;;  %v22644_v25 = vld [vmem:[#allocation29 + $0x5d4] ss:$60 sps:$4 sm:$0xff]  }
0x1799   :  { %15581 = vmatpush1.bf16.msra.mxu1 %v22600_v31  ;;  %v22639_v31 = vld [vmem:[#allocation29 + $0x558] ss:$60 sps:$4 sm:$0xff]  }
0x179a   :  { %15582 = vmatprep.subr.bf16.mxu1 %v22605_v36  ;;  %v22642_v36 = vld [vmem:[#allocation29 + $0x5d0] ss:$60 sps:$4 sm:$0xff]  }
0x179d   :  { %15583 = vmatpush1.bf16.msra.mxu1 %v22603_v22  ;;  %v22647_v22 = vld [vmem:[#allocation29 + $0x64c] ss:$60 sps:$4 sm:$0xff]  }
0x179e   :  { %15783 = vmatprep.subr.bf16.mxu1 %v22608_v50  ;;  %v22645_v50 = vld [vmem:[#allocation29 + $0x648] ss:$60 sps:$4 sm:$0xff]  }
0x17a0   :  { %15601 = vmatmul.mubr.bf16.vlgmr.msra.gmra.mrb[60].mxu1 %v24614_v33 }
0x17a1   :  { %15784 = vmatpush1.bf16.msra.mxu1 %v22606_v5  ;;  %15815 = vmatprep.mubr.bf16.mxu1 %v24170_v24  ;;  %v22650_v5 = vld [vmem:[#allocation29 + $0x6c4] ss:$60 sps:$4 sm:$0xff]  }
0x17a2   :  { %15785 = vmatprep.subr.bf16.mxu1 %v22611_v20  ;;  %v22648_v20 = vld [vmem:[#allocation29 + $0x6c0] ss:$60 sps:$4 sm:$0xff]  }
0x17a5   :  { %15786 = vmatpush1.bf16.msra.mxu1 %v22609_v0  ;;  %v22653_v0 = vld [vmem:[#allocation29 + $0x73c] ss:$60 sps:$4 sm:$0xff]  }
0x17a6   :  { %15787 = vmatprep.subr.bf16.mxu1 %v22614_v10  ;;  %v22651_v10 = vld [vmem:[#allocation29 + $0x738] ss:$60 sps:$4 sm:$0xff]  }
0x17a9   :  { %15788 = vmatpush1.bf16.msra.mxu1 %v22612_v56  ;;  %v22656_v56 = vld [vmem:[#allocation29 + $0x7b4] ss:$60 sps:$4 sm:$0xff]  }
0x17aa   :  { %15789 = vmatprep.subr.bf16.mxu1 %v22617_v51  ;;  %v22654_v51 = vld [vmem:[#allocation29 + $0x7b0] ss:$60 sps:$4 sm:$0xff]  }
0x17ad   :  { %15790 = vmatpush1.bf16.msra.mxu1 %v22615_v32  ;;  %v22659_v32 = vld [vmem:[#allocation29 + $0x82c] ss:$60 sps:$4 sm:$0xff]  }
0x17ae   :  { %15791 = vmatprep.subr.bf16.mxu1 %v22620_v8  ;;  %v22657_v8 = vld [vmem:[#allocation29 + $0x828] ss:$60 sps:$4 sm:$0xff]  }
0x17b1   :  { %15792 = vmatpush1.bf16.msra.mxu1 %v22618_v9  ;;  %v22662_v9 = vld [vmem:[#allocation29 + $0x8a4] ss:$60 sps:$4 sm:$0xff]  }
0x17b2   :  { %15793 = vmatprep.subr.bf16.mxu1 %v22623_v59  ;;  %v22660_v59 = vld [vmem:[#allocation29 + $0x8a0] ss:$60 sps:$4 sm:$0xff]  }
0x17b5   :  { %15794 = vmatpush1.bf16.msra.mxu1 %v22621_v58  ;;  %v22665_v58 = vld [vmem:[#allocation29 + $0x91c] ss:$60 sps:$4 sm:$0xff]  }
0x17b6   :  { %15795 = vmatprep.subr.bf16.mxu1 %v22626_v27  ;;  %v22663_v27 = vld [vmem:[#allocation29 + $0x918] ss:$60 sps:$4 sm:$0xff]  }
0x17b9   :  { %15796 = vmatpush1.bf16.msra.mxu1 %v22624_v12  ;;  %v22668_v12 = vld [vmem:[#allocation29 + $0x994] ss:$60 sps:$4 sm:$0xff]  }
0x17ba   :  { %15797 = vmatprep.subr.bf16.mxu1 %v22629_v23  ;;  %v22666_v23 = vld [vmem:[#allocation29 + $0x990] ss:$60 sps:$4 sm:$0xff]  }
0x17bd   :  { %15798 = vmatpush1.bf16.msra.mxu1 %v22627_v62  ;;  %v22671_v62 = vld [vmem:[#allocation29 + $0xa0c] ss:$60 sps:$4 sm:$0xff]  }
0x17be   :  { %15799 = vmatprep.subr.bf16.mxu1 %v22632_v48  ;;  %v22669_v48 = vld [vmem:[#allocation29 + $0xa08] ss:$60 sps:$4 sm:$0xff]  }
0x17c1   :  { %15800 = vmatpush1.bf16.msra.mxu1 %v22630_v46  ;;  %v22674_v46 = vld [vmem:[#allocation29 + $0xa84] ss:$60 sps:$4 sm:$0xff]  }
0x17c2   :  { %15801 = vmatprep.subr.bf16.mxu1 %v22635_v3  ;;  %v22672_v3 = vld [vmem:[#allocation29 + $0xa80] ss:$60 sps:$4 sm:$0xff]  }
0x17c5   :  { %15802 = vmatpush1.bf16.msra.mxu1 %v22633_v26  ;;  %v22677_v26 = vld [vmem:[#allocation29 + $0xafc] ss:$60 sps:$4 sm:$0xff]  }
0x17c6   :  { %15803 = vmatprep.subr.bf16.mxu1 %v22638_v30  ;;  %v22675_v30 = vld [vmem:[#allocation29 + $0xaf8] ss:$60 sps:$4 sm:$0xff]  }
0x17c9   :  { %15804 = vmatpush1.bf16.msra.mxu1 %v22636_v35  ;;  %v22680_v35 = vld [vmem:[#allocation29 + $0xb74] ss:$60 sps:$4 sm:$0xff]  }
0x17ca   :  { %15805 = vmatprep.subr.bf16.mxu1 %v22641_v47  ;;  %v22678_v47 = vld [vmem:[#allocation29 + $0xb70] ss:$60 sps:$4 sm:$0xff]  }
0x17cd   :  { %15806 = vmatpush1.bf16.msra.mxu1 %v22639_v31  ;;  %v22683_v31 = vld [vmem:[#allocation29 + $0xbec] ss:$60 sps:$4 sm:$0xff]  }
0x17ce   :  { %15807 = vmatprep.subr.bf16.mxu1 %v22644_v25  ;;  %v22681_v25 = vld [vmem:[#allocation29 + $0xbe8] ss:$60 sps:$4 sm:$0xff]  }
0x17d1   :  { %15808 = vmatpush1.bf16.msra.mxu1 %v22642_v36  ;;  %v22686_v36 = vld [vmem:[#allocation29 + $0xc64] ss:$60 sps:$4 sm:$0xff]  }
0x17d2   :  { %15809 = vmatprep.subr.bf16.mxu1 %v22647_v22  ;;  %v22684_v22 = vld [vmem:[#allocation29 + $0xc60] ss:$60 sps:$4 sm:$0xff]  }
0x17d5   :  { %15810 = vmatpush1.bf16.msra.mxu1 %v22645_v50  ;;  %v22689_v50 = vld [vmem:[#allocation29 + $0xcdc] ss:$60 sps:$4 sm:$0xff]  }
0x17d6   :  { %15811 = vmatprep.subr.bf16.mxu1 %v22650_v5  ;;  %v22687_v5 = vld [vmem:[#allocation29 + $0xcd8] ss:$60 sps:$4 sm:$0xff]  }
0x17d9   :  { %15812 = vmatpush1.bf16.msra.mxu1 %v22648_v20  ;;  %v22692_v20 = vld [vmem:[#allocation29 + $0xd54] ss:$60 sps:$4 sm:$0xff]  }
0x17da   :  { %15813 = vmatprep.subr.bf16.mxu1 %v22653_v0  ;;  %v22690_v0 = vld [vmem:[#allocation29 + $0xd50] ss:$60 sps:$4 sm:$0xff]  }
0x17dd   :  { %15814 = vmatpush1.bf16.msra.mxu1 %v22651_v10  ;;  %v22695_v10 = vld [vmem:[#allocation29 + $0xdcc] ss:$60 sps:$4 sm:$0xff]  }
0x17de   :  { %15826 = vmatprep.subr.bf16.mxu1 %v22656_v56  ;;  %v22693_v56 = vld [vmem:[#allocation29 + $0xdc8] ss:$60 sps:$4 sm:$0xff]  }
0x17e0   :  { %15816 = vmatmul.mubr.bf16.vlgmr.msra.gmra.mrb[64].mxu1 %v24016_v44 }
0x17e1   :  { %15827 = vmatpush1.bf16.msra.mxu1 %v22654_v51  ;;  %15858 = vmatprep.mubr.bf16.mxu1 %v24383_v11  ;;  %v22698_v51 = vld [vmem:[#allocation29 + $0xe44] ss:$60 sps:$4 sm:$0xff]  }
0x17e2   :  { %15828 = vmatprep.subr.bf16.mxu1 %v22659_v32  ;;  %v22696_v32 = vld [vmem:[#allocation29 + $0xe40] ss:$60 sps:$4 sm:$0xff]  }
0x17e5   :  { %15829 = vmatpush1.bf16.msra.mxu1 %v22657_v8  ;;  %v22701_v8 = vld [vmem:[#allocation29 + $0xebc] ss:$60 sps:$4 sm:$0xff]  }
0x17e6   :  { %15830 = vmatprep.subr.bf16.mxu1 %v22662_v9  ;;  %v22699_v9 = vld [vmem:[#allocation29 + $0xeb8] ss:$60 sps:$4 sm:$0xff]  }
0x17e9   :  { %15831 = vmatpush1.bf16.msra.mxu1 %v22660_v59  ;;  %v22704_v59 = vld [vmem:[#allocation29 + $0xf34] ss:$60 sps:$4 sm:$0xff]  }
0x17ea   :  { %15832 = vmatprep.subr.bf16.mxu1 %v22665_v58  ;;  %v22702_v58 = vld [vmem:[#allocation29 + $0xf30] ss:$60 sps:$4 sm:$0xff]  }
0x17ed   :  { %15833 = vmatpush1.bf16.msra.mxu1 %v22663_v27  ;;  %v22707_v27 = vld [vmem:[#allocation29 + $0xfac] ss:$60 sps:$4 sm:$0xff]  }
0x17ee   :  { %15834 = vmatprep.subr.bf16.mxu1 %v22668_v12  ;;  %v22705_v12 = vld [vmem:[#allocation29 + $0xfa8] ss:$60 sps:$4 sm:$0xff]  }
0x17f1   :  { %15835 = vmatpush1.bf16.msra.mxu1 %v22666_v23  ;;  %v22710_v23 = vld [vmem:[#allocation29 + $0x1024] ss:$60 sps:$4 sm:$0xff]  }
0x17f2   :  { %15836 = vmatprep.subr.bf16.mxu1 %v22671_v62  ;;  %v22708_v62 = vld [vmem:[#allocation29 + $0x1020] ss:$60 sps:$4 sm:$0xff]  }
0x17f5   :  { %15837 = vmatpush1.bf16.msra.mxu1 %v22669_v48  ;;  %v22713_v48 = vld [vmem:[#allocation29 + $0x109c] ss:$60 sps:$4 sm:$0xff]  }
0x17f6   :  { %15838 = vmatprep.subr.bf16.mxu1 %v22674_v46  ;;  %v22711_v46 = vld [vmem:[#allocation29 + $0x1098] ss:$60 sps:$4 sm:$0xff]  }
0x17f9   :  { %15839 = vmatpush1.bf16.msra.mxu1 %v22672_v3  ;;  %v22716_v3 = vld [vmem:[#allocation29 + $0x1114] ss:$60 sps:$4 sm:$0xff]  }
0x17fa   :  { %15840 = vmatprep.subr.bf16.mxu1 %v22677_v26  ;;  %v22714_v26 = vld [vmem:[#allocation29 + $0x1110] ss:$60 sps:$4 sm:$0xff]  }
0x17fd   :  { %15841 = vmatpush1.bf16.msra.mxu1 %v22675_v30  ;;  %v22719_v30 = vld [vmem:[#allocation29 + $0x118c] ss:$60 sps:$4 sm:$0xff]  }
0x17fe   :  { %15842 = vmatprep.subr.bf16.mxu1 %v22680_v35  ;;  %v22717_v35 = vld [vmem:[#allocation29 + $0x1188] ss:$60 sps:$4 sm:$0xff]  }
0x1801   :  { %15843 = vmatpush1.bf16.msra.mxu1 %v22678_v47  ;;  %v22722_v47 = vld [vmem:[#allocation29 + $0x1204] ss:$60 sps:$4 sm:$0xff]  }
0x1802   :  { %15844 = vmatprep.subr.bf16.mxu1 %v22683_v31  ;;  %v22720_v31 = vld [vmem:[#allocation29 + $0x1200] ss:$60 sps:$4 sm:$0xff]  }
0x1805   :  { %15845 = vmatpush1.bf16.msra.mxu1 %v22681_v25  ;;  %v22725_v25 = vld [vmem:[#allocation29 + $0x127c] ss:$60 sps:$4 sm:$0xff]  }
0x1806   :  { %15846 = vmatprep.subr.bf16.mxu1 %v22686_v36  ;;  %v22723_v36 = vld [vmem:[#allocation29 + $0x1278] ss:$60 sps:$4 sm:$0xff]  }
0x1809   :  { %15847 = vmatpush1.bf16.msra.mxu1 %v22684_v22  ;;  %v22728_v22 = vld [vmem:[#allocation29 + $0x12f4] ss:$60 sps:$4 sm:$0xff]  }
0x180a   :  { %15848 = vmatprep.subr.bf16.mxu1 %v22689_v50  ;;  %v22726_v50 = vld [vmem:[#allocation29 + $0x12f0] ss:$60 sps:$4 sm:$0xff]  }
0x180d   :  { %15849 = vmatpush1.bf16.msra.mxu1 %v22687_v5  ;;  %v22731_v5 = vld [vmem:[#allocation29 + $0x136c] ss:$60 sps:$4 sm:$0xff]  }
0x180e   :  { %15850 = vmatprep.subr.bf16.mxu1 %v22692_v20  ;;  %v22729_v20 = vld [vmem:[#allocation29 + $0x1368] ss:$60 sps:$4 sm:$0xff]  }
0x1811   :  { %15851 = vmatpush1.bf16.msra.mxu1 %v22690_v0  ;;  %v22734_v0 = vld [vmem:[#allocation29 + $0x13e4] ss:$60 sps:$4 sm:$0xff]  }
0x1812   :  { %15852 = vmatprep.subr.bf16.mxu1 %v22695_v10  ;;  %v22732_v10 = vld [vmem:[#allocation29 + $0x13e0] ss:$60 sps:$4 sm:$0xff]  }
0x1815   :  { %15853 = vmatpush1.bf16.msra.mxu1 %v22693_v56  ;;  %v22737_v56 = vld [vmem:[#allocation29 + $0x145c] ss:$60 sps:$4 sm:$0xff]  }
0x1816   :  { %15854 = vmatprep.subr.bf16.mxu1 %v22698_v51  ;;  %v22735_v51 = vld [vmem:[#allocation29 + $0x1458] ss:$60 sps:$4 sm:$0xff]  }
0x1819   :  { %15855 = vmatpush1.bf16.msra.mxu1 %v22696_v32  ;;  %v22740_v32 = vld [vmem:[#allocation29 + $0x14d4] ss:$60 sps:$4 sm:$0xff]  }
0x181a   :  { %15856 = vmatprep.subr.bf16.mxu1 %v22701_v8  ;;  %v22738_v8 = vld [vmem:[#allocation29 + $0x14d0] ss:$60 sps:$4 sm:$0xff]  }
0x181d   :  { %15857 = vmatpush1.bf16.msra.mxu1 %v22699_v9  ;;  %v22743_v9 = vld [vmem:[#allocation29 + $0x154c] ss:$60 sps:$4 sm:$0xff]  }
0x181e   :  { %15869 = vmatprep.subr.bf16.mxu1 %v22704_v59  ;;  %v22741_v59 = vld [vmem:[#allocation29 + $0x1548] ss:$60 sps:$4 sm:$0xff]  }
0x1820   :  { %15859 = vmatmul.mubr.bf16.vlgmr.msra.gmra.mrb[64].mxu1 %v24376_v40 }
0x1821   :  { %15870 = vmatpush1.bf16.msra.mxu1 %v22702_v58  ;;  %15901 = vmatprep.mubr.bf16.mxu1 %v24551_v41  ;;  %v22746_v58 = vld [vmem:[#allocation29 + $0x15c4] ss:$60 sps:$4 sm:$0xff]  }
0x1822   :  { %15871 = vmatprep.subr.bf16.mxu1 %v22707_v27  ;;  %v22744_v27 = vld [vmem:[#allocation29 + $0x15c0] ss:$60 sps:$4 sm:$0xff]  }
0x1825   :  { %15872 = vmatpush1.bf16.msra.mxu1 %v22705_v12  ;;  %v22749_v12 = vld [vmem:[#allocation29 + $0x163c] ss:$60 sps:$4 sm:$0xff]  }
0x1826   :  { %15873 = vmatprep.subr.bf16.mxu1 %v22710_v23  ;;  %v22747_v23 = vld [vmem:[#allocation29 + $0x1638] ss:$60 sps:$4 sm:$0xff]  }
0x1829   :  { %15874 = vmatpush1.bf16.msra.mxu1 %v22708_v62  ;;  %v22752_v62 = vld [vmem:[#allocation29 + $0x16b4] ss:$60 sps:$4 sm:$0xff]  }
0x182a   :  { %15875 = vmatprep.subr.bf16.mxu1 %v22713_v48  ;;  %v22750_v48 = vld [vmem:[#allocation29 + $0x16b0] ss:$60 sps:$4 sm:$0xff]  }
0x182d   :  { %15876 = vmatpush1.bf16.msra.mxu1 %v22711_v46  ;;  %v22755_v46 = vld [vmem:[#allocation29 + $0x172c] ss:$60 sps:$4 sm:$0xff]  }
0x182e   :  { %15877 = vmatprep.subr.bf16.mxu1 %v22716_v3  ;;  %v22753_v3 = vld [vmem:[#allocation29 + $0x1728] ss:$60 sps:$4 sm:$0xff]  }
0x1831   :  { %15878 = vmatpush1.bf16.msra.mxu1 %v22714_v26  ;;  %v22758_v26 = vld [vmem:[#allocation29 + $0x17a4] ss:$60 sps:$4 sm:$0xff]  }
0x1832   :  { %15879 = vmatprep.subr.bf16.mxu1 %v22719_v30  ;;  %v22756_v30 = vld [vmem:[#allocation29 + $0x17a0] ss:$60 sps:$4 sm:$0xff]  }
0x1835   :  { %15880 = vmatpush1.bf16.msra.mxu1 %v22717_v35  ;;  %v22761_v35 = vld [vmem:[#allocation29 + $0x181c] ss:$60 sps:$4 sm:$0xff]  }
0x1836   :  { %15881 = vmatprep.subr.bf16.mxu1 %v22722_v47  ;;  %v22759_v47 = vld [vmem:[#allocation29 + $0x1818] ss:$60 sps:$4 sm:$0xff]  }
0x1839   :  { %15882 = vmatpush1.bf16.msra.mxu1 %v22720_v31  ;;  %v22764_v31 = vld [vmem:[#allocation29 + $0x1894] ss:$60 sps:$4 sm:$0xff]  }
0x183a   :  { %15883 = vmatprep.subr.bf16.mxu1 %v22725_v25  ;;  %v22762_v25 = vld [vmem:[#allocation29 + $0x1890] ss:$60 sps:$4 sm:$0xff]  }
0x183d   :  { %15884 = vmatpush1.bf16.msra.mxu1 %v22723_v36  ;;  %v22767_v36 = vld [vmem:[#allocation29 + $0x190c] ss:$60 sps:$4 sm:$0xff]  }
0x183e   :  { %15885 = vmatprep.subr.bf16.mxu1 %v22728_v22  ;;  %v22953_v22 = vld [vmem:[#allocation31 + $0x8] sm:$0xff] }
0x1841   :  { %15886 = vmatpush1.bf16.msra.mxu1 %v22726_v50  ;;  %v10455_v50 = vrot.slane %v22953_v22, %v23947_v42  ;;  %v22773_v42 = vld [vmem:[#allocation29 + $0x19fc] ss:$60 sps:$4 sm:$0xff]  }
0x1842   :  { %15887 = vmatprep.subr.bf16.mxu1 %v22731_v5  ;;  %v10459_v5 = vrot.slane %v22953_v22, %v23926_v16 }
0x1845   :  { %15888 = vmatpush1.bf16.msra.mxu1 %v22729_v20  ;;  %v22765_v20 = vld [vmem:[#allocation29 + $0x1908] ss:$60 sps:$4 sm:$0xff]  }
0x1846   :  { %15889 = vmatprep.subr.bf16.mxu1 %v22734_v0  ;;  %v22770_v0 = vld [vmem:[#allocation29 + $0x1984] ss:$60 sps:$4 sm:$0xff]  }
0x1849   :  { %15890 = vmatpush1.bf16.msra.mxu1 %v22732_v10 }
0x184a   :  { %15891 = vmatprep.subr.bf16.mxu1 %v22737_v56 }
0x184d   :  { %15892 = vmatpush1.bf16.msra.mxu1 %v22735_v51 }
0x184e   :  { %15893 = vmatprep.subr.bf16.mxu1 %v22740_v32  ;;  %v20083_v32 = vadd.f32 %v24718_v39, %v24721_v7  ;;  %v20066_v39 = vadd.f32 %v24707_v52, %v24711_v45  ;;  %v20082_v7 = vadd.f32 %v24713_v13, %v24716_v2  ;;  %v20070_v52 = vadd.f32 %v24747_v57, %v24750_v19 }
0x184f   :  { %v10471_v13 = vrot.slane %v22953_v22, %v25254_v37  ;;  %v10475_v2 = vrot.slane %v22953_v22, %v25255_v61 }
0x1850   :  { %v16123_v45 = vpack.c.bf16 %v20070_v52, %v20070_v52 }
0x1851   :  { %15894 = vmatpush1.bf16.msra.mxu1 %v22738_v8 }
0x1852   :  { %15895 = vmatprep.subr.bf16.mxu1 %v22743_v9 }
0x1855   :  { %15896 = vmatpush1.bf16.msra.mxu1 %v22741_v59  ;;  %v22768_v59 = vld [vmem:[#allocation29 + $0x1980] ss:$60 sps:$4 sm:$0xff]  }
0x1856   :  { %15897 = vmatprep.subr.bf16.mxu1 %v22746_v58 }
0x1859   :  { %15898 = vmatpush1.bf16.msra.mxu1 %v22744_v27 }
0x185a   :  { %15899 = vmatprep.subr.bf16.mxu1 %v22749_v12 }
0x185d   :  { %15900 = vmatpush1.bf16.msra.mxu1 %v22747_v23 }
0x185e   :  { %15912 = vmatprep.subr.bf16.mxu1 %v22752_v62  ;;  %v16130_v62 = vpack.c.bf16 %v20083_v32, %v20083_v32 }
0x1860   :  { %15902 = vmatmul.mubr.bf16.vlgmr.msra.gmra.mrb[64].mxu1 %v24490_v43 }
0x1861   :  { %15913 = vmatpush1.bf16.msra.mxu1 %v22750_v48  ;;  %15944 = vmatprep.mubr.bf16.mxu1 %v25241_v18  ;;  %v22771_v48 = vld [vmem:[#allocation29 + $0x19f8] ss:$60 sps:$4 sm:$0xff]  }
0x1862   :  { %15914 = vmatprep.subr.bf16.mxu1 %v22755_v46  ;;  %v16382_v46 = vpack.c.bf16 %v24741_v4, %v24741_v4 }
0x1865   :  { %15915 = vmatpush1.bf16.msra.mxu1 %v22753_v3  ;;  %v20071_v3 = vadd.f32 %v24752_v53, %v24755_v49 }
0x1866   :  { %15916 = vmatprep.subr.bf16.mxu1 %v22758_v26  ;;  %v16121_v26 = vpack.c.bf16 %v20066_v39, %v20066_v39 }
0x1869   :  { %15917 = vmatpush1.bf16.msra.mxu1 %v22756_v30  ;;  %v16129_v30 = vpack.c.bf16 %v20082_v7, %v20082_v7 }
0x186a   :  { %15918 = vmatprep.subr.bf16.mxu1 %v22761_v35  ;;  %v16534_v35 = vsel %vm608_vm2, %v16382_v46, 0 }
0x186d   :  { %15919 = vmatpush1.bf16.msra.mxu1 %v22759_v47  ;;  %v16124_v47 = vpack.c.bf16 %v20071_v3, %v20071_v3 }
0x186e   :  { %15920 = vmatprep.subr.bf16.mxu1 %v22764_v31 }
0x1871   :  { %15921 = vmatpush1.bf16.msra.mxu1 %v22762_v25 }
0x1872   :  { %15922 = vmatprep.subr.bf16.mxu1 %v22767_v36 }
0x1873   :  { %v15602_v10 = vpop.f32.mrb[60].mxu1 }
0x1874   :  { %v20078_v56 = vadd.f32 %v15602_v10, %v10455_v50  ;;  %v15604_v51 = vpop.f32.mrb[61].mxu1 }
0x1875   :  { %v20079_v8 = vadd.f32 %v15604_v51, %v10459_v5  ;;  %v15606_v9 = vpop.f32.mrb[62].mxu1  ;;  %15923 = vmatpush1.bf16.msra.mxu1 %v22765_v20 }
0x1876   :  { %v24775_v58 = vadd.f32 %v15606_v9, %v10455_v50  ;;  %v15608_v27 = vpop.f32.mrb[63].mxu1  ;;  %15924 = vmatprep.subr.bf16.mxu1 %v22770_v0  ;;  %v16127_v23 = vpack.c.bf16 %v20078_v56, %v20078_v56 }
0x1877   :  { %v16128_v12 = vpack.c.bf16 %v20079_v8, %v20079_v8  ;;  %v24777_v16 = vadd.f32 %v15608_v27, %v10459_v5 }
0x1879   :  { %15925 = vmatpush1.bf16.msra.mxu1 %v22768_v59  ;;  %16174 = vmatprep.subr.bf16.mxu0 %v16128_v12 }
0x187a   :  { %16175 = vmatpush1.bf16.xpose.msra.mxu0 %v16127_v23  ;;  %15926 = vmatprep.subr.bf16.mxu1 %v22773_v42 }
0x187b   :  { %16214 = vmatprep.subr.bf16.mxu0 %v16130_v62 }
0x187d   :  { %15927 = vmatpush1.bf16.msra.mxu1 %v22771_v48 }
0x187e   :  { %20026 = vmatprep.subr.bf16.mxu1 %v25240_v15 }
0x1880   :  { %15945 = vmatmul.mubr.bf16.vlgmr.msra.gmra.mrb[64].mxu1 %v24614_v33 }
0x1881   :  { %16207 = vmatmul.mubr.bf16.vlgmr.msra.gmra.mrb[76].mxu0 %v16121_v26  ;;  %20027 = vmatpush3.bf16.msra.mxu1 %v16534_v35  ;;  %v16133_v35 = vpack.c.bf16 %v24739_v60, %v24739_v60  ;;  %v16374_v60 = vpack.c.bf16 %v24663_v29, %v24663_v29  ;;  %v16379_v29 = vpack.c.bf16 %v24732_v14, %v24732_v14 }
0x1882   :  { %16215 = vmatpush1.bf16.xpose.msra.mxu0 %v16129_v30  ;;  %16246 = vmatprep.mubr.bf16.mxu0 %v16124_v47 }
0x1883   :  { %20028 = vmatprep.mubr.msk.bf16.mxu1 %vm23518_vm3, %v25240_v15 }
0x188d   :  { %16247 = vmatmul.mubr.bf16.vlgmr.msra.gmra.mrb[76].mxu0 %v16123_v45  ;;  %v16375_v45 = vpack.c.bf16 %v24669_v28, %v24669_v28  ;;  %v16377_v28 = vpack.c.bf16 %v24777_v16, %v24777_v16  ;;  %v16370_v16 = vpack.c.bf16 %v24724_v1, %v24724_v1  ;;  %v16372_v1 = vpack.c.bf16 %v24758_v21, %v24758_v21 }
0x188e   :  { %16319 = vmatprep.mubr.bf16.mxu0 %v25241_v18 }
0x1953   :  { %v15946_v4 = vpop.f32.mrb[64].mxu1 }
0x1954   :  { %v20086_v53 = vadd.f32 %v15946_v4, %v10471_v13  ;;  %v15948_v49 = vpop.f32.mrb[65].mxu1  ;;  %v16368_v4 = vpack.c.bf16 %v24660_v54, %v24660_v54  ;;  %v16373_v54 = vpack.c.bf16 %v24761_v34, %v24761_v34  ;;  %v22775_v34 = vld [vmem:[%s25173_s20 + $0xc0] sm:$0xff]  }
0x1955   :  { %v20087_v31 = vadd.f32 %v15948_v49, %v10475_v2  ;;  %v15950_v25 = vpop.f32.mrb[66].mxu1  ;;  %19856 = vmatprep.subr.bf16.mxu1 %v22775_v34  ;;  %v22800_v34 = vld [vmem:[%s25173_s20 + $0x30] sm:$0xff]  }
0x1956   :  { %v16131_v36 = vpack.c.bf16 %v20086_v53, %v20086_v53  ;;  %v24797_v50 = vadd.f32 %v15950_v25, %v10471_v13  ;;  %v15952_v5 = vpop.f32.mrb[67].mxu1  ;;  %v16285_v13 = vsel %vm608_vm2, %v16133_v35, 0  ;;  %v16378_v53 = vpack.c.bf16 %v24727_v17, %v24727_v17  ;;  %v22774_v17 = vld [vmem:[%s25173_s20 + $0x40] sm:$0xff]   ;;  %v22778_v35 = vld [vmem:[%s25173_s20 + $0x48] sm:$0xff]  }
0x1957   :  { %v16132_v20 = vpack.c.bf16 %v20087_v31, %v20087_v31  ;;  %v24799_v0 = vadd.f32 %v15952_v5, %v10475_v2  ;;  %v16369_v2 = vpack.c.bf16 %v24666_v38, %v24666_v38  ;;  %v16376_v38 = vpack.c.bf16 %v24775_v58, %v24775_v58 }
0x1958   :  { %v16279_v57 = vsel %vm608_vm2, %v16131_v36, 0  ;;  %v16380_v14 = vpack.c.bf16 %v24797_v50, %v24797_v50 }
0x1959   :  { %19514 = vmatprep.subr.msk.bf16.mxu0 %vm608_vm2, %v16132_v20 }
0x195a   :  { %16288 = vmatpush1.bf16.msra.mxu0 %v16279_v57  ;;  %v16528_v58 = vsel %vm608_vm2, %v16380_v14, 0  ;;  %v22796_v14 = vld [vmem:[%s25173_s20 + $0x28] sm:$0xff]  }
0x195b   :  { %20020 = vmatprep.subr.bf16.mxu0 %v25240_v15 }
0x1960   :  { %v16248_v37 = vpop.f32.mrb[76].mxu0 }
0x1961   :  { %v20090_v19 = vadd.f32 %v16248_v37, %v23961_v55  ;;  %v16250_v61 = vpop.f32.mrb[77].mxu0 }
0x1962   :  { %v16251_v22 = vpop.f32.mrb[78].mxu0 }
0x1963   :  { %v16254_v10 = vmul.f32 0.03608439, %v20090_v19  ;;  %v16252_v56 = vpop.f32.mrb[79].mxu0 }
0x1965   :  { %v16255_v51 = vsel %vm25256_vm0, %v16254_v10, -inf }
0x1966   :  { %v16256_v32 = vrot.slane %v16255_v51, 4 }
0x1968   :  { %v16257_v8 = vmax.f32 %v16255_v51, %v16256_v32 }
0x196a   :  { %v16258_v9 = vrot.slane %v16257_v8, 2 }
0x196c   :  { %v16259_v59 = vmax.f32 %v16257_v8, %v16258_v9 }
0x196e   :  { %v16260_v27 = vrot.slane %v16259_v59, 1 }
0x1970   :  { %v16261_v42 = vmax.f32 %v16259_v59, %v16260_v27 }
0x1972   :  { %v16262_v12 = vsub.f32 %v16254_v10, %v16261_v42 }
0x1974   :  { %v16263_v23 = vmul.f32 1.442695, %v16262_v12 }
0x1976   :  { %22942 = vpow2.f32 %v16263_v23 }
0x1980   :  { %v22943_v62 = vpop.eup %22942 }
0x1981   :  { %v16265_v48 = vsel %vm25257_vm1, %v22943_v62, 0.0 }
0x1982   :  { %v16266_v39 = vrot.slane %v16265_v48, 4 }
0x1984   :  { %v16267_v55 = vadd.f32 %v16266_v39, %v16265_v48 }
0x1986   :  { %v16268_v7 = vrot.slane %v16267_v55, 2 }
0x1988   :  { %v16269_v46 = vadd.f32 %v16268_v7, %v16267_v55 }
0x198a   :  { %v16270_v3 = vrot.slane %v16269_v46, 1 }
0x198c   :  { %v16271_v26 = vadd.f32 %v16270_v3, %v16269_v46  ;;  %v22776_v3 = vld [vmem:[%s25173_s20] sm:$0xff]  }
0x198e   :  { %22944 = vrcp.f32 %v16271_v26  ;;  %v22777_v26 = vld [vmem:[%s25173_s20 + $0x80] sm:$0xff]  }
0x1998   :  { %v22945_v30 = vpop.eup %22944 }
0x1999   :  { %v16273_v47 = vmul.f32 %v22945_v30, %v22943_v62 }
0x199b   :  { %v16274_v52 = vpack.c.bf16 %v16273_v47, %v16273_v47  ;;  %v22779_v47 = vld [vmem:[%s25173_s20 + $0xc8] sm:$0xff]  }
0x199d   :  { %19515 = vmatmul.mubr.msk.bf16.vlgmr.msra.gmra.mrb[80].mxu0 %vm25258_vm4, %v16274_v52 }
0x199e   :  { %20021 = vmatpush3.bf16.msra.mxu0 %v16285_v13  ;;  %20022 = vmatprep.mubr.msk.bf16.mxu0 %vm23518_vm3, %v25240_v15  ;;  %v16371_v15 = vpack.c.bf16 %v24729_v6, %v24729_v6  ;;  %v16381_v6 = vpack.c.bf16 %v24799_v0, %v24799_v0  ;;  %vm25261_vm3 = vmmov %vm25256_vm0  ;;  %v22782_v13 = vld [vmem:[%s25173_s20 + $0x50] sm:$0xff]  }
0x199f   :  { %16383 = vmatprep.subr.bf16.mxu0 %v16375_v45  ;;  %v22781_v45 = vld [vmem:[%s25173_s20 + $0x88] sm:$0xff]  }
0x19a5   :  { %20023 = vmatmul.mubr.msk.bf16.vlgmr.msra.gmra.mrb[84].mxu0 %vm25259_vm5, %v16274_v52  ;;  %v22780_v52 = vld [vmem:[%s25173_s20 + $0x8] sm:$0xff]  }
0x19a6   :  { %16415 = vmatprep.mubr.bf16.mxu0 %v16369_v2  ;;  %v22783_v2 = vld [vmem:[%s25173_s20 + $0xd0] sm:$0xff]  }
0x19a7   :  { %16384 = vmatpush1.bf16.xpose.msra.mxu0 %v16374_v60  ;;  %v22784_v60 = vld [vmem:[%s25173_s20 + $0x10] sm:$0xff]  }
0x19a8   :  { %16423 = vmatprep.subr.bf16.mxu0 %v16377_v28  ;;  %v22787_v28 = vld [vmem:[%s25173_s20 + $0xd8] sm:$0xff]  }
0x19ae   :  { %16416 = vmatmul.mubr.bf16.vlgmr.msra.gmra.mrb[88].mxu0 %v16368_v4  ;;  %v22788_v4 = vld [vmem:[%s25173_s20 + $0x18] sm:$0xff]  }
0x19af   :  { %16424 = vmatpush1.bf16.xpose.msra.mxu0 %v16376_v38  ;;  %16455 = vmatprep.mubr.bf16.mxu0 %v16371_v15  ;;  %v22789_v15 = vld [vmem:[%s25173_s20 + $0x98] sm:$0xff]   ;;  %v22790_v38 = vld [vmem:[%s25173_s20 + $0x60] sm:$0xff]  }
0x19b0   :  { %16463 = vmatprep.subr.bf16.mxu0 %v16379_v29  ;;  %v22791_v29 = vld [vmem:[%s25173_s20 + $0xe0] sm:$0xff]  }
0x19ba   :  { %16456 = vmatmul.mubr.bf16.vlgmr.msra.gmra.mrb[88].mxu0 %v16370_v16  ;;  %v22792_v16 = vld [vmem:[%s25173_s20 + $0x20] sm:$0xff]  }
0x19bb   :  { %16464 = vmatpush1.bf16.xpose.msra.mxu0 %v16378_v53  ;;  %16495 = vmatprep.mubr.bf16.mxu0 %v16373_v54  ;;  %v22793_v53 = vld [vmem:[%s25173_s20 + $0xa0] sm:$0xff]   ;;  %v22794_v54 = vld [vmem:[%s25173_s20 + $0x68] sm:$0xff]  }
0x19bc   :  { %19517 = vmatprep.subr.msk.bf16.mxu0 %vm608_vm2, %v16381_v6  ;;  %vm25260_vm2 = vmmov %vm25256_vm0  ;;  %v22795_v6 = vld [vmem:[%s25173_s20 + $0xe8] sm:$0xff]  }
0x19c6   :  { %16496 = vmatmul.mubr.bf16.vlgmr.msra.gmra.mrb[88].mxu0 %v16372_v1  ;;  %v22797_v1 = vld [vmem:[%s25173_s20 + $0xa8] sm:$0xff]  }
0x19c7   :  { %16537 = vmatpush1.bf16.msra.mxu0 %v16528_v58  ;;  %16568 = vmatprep.mubr.bf16.mxu0 %v25241_v18  ;;  %v22798_v58 = vld [vmem:[%s25173_s20 + $0x70] sm:$0xff]  }
0x19c8   :  { %19834 = vmatprep.subr.bf16.mxu0 %v22774_v17  ;;  %v22799_v17 = vld [vmem:[%s25173_s20 + $0xf0] sm:$0xff]  }
0x1a70   :  { %v24851_v49 = vpop.f32.mrb[80].mxu0 }
0x1a71   :  { %v24853_v31 = vpop.f32.mrb[81].mxu0 }
0x1a72   :  { %v16325_v21 = vpop.f32.mrb[82].mxu0 }
0x1a73   :  { %v16326_v25 = vpop.f32.mrb[83].mxu0  ;;  %v22801_v21 = vld [vmem:[%s25173_s20 + $0xb0] sm:$0xff]  }
0x1a74   :  { %v22802_v25 = vld [vmem:[%s25173_s20 + $0x78] sm:$0xff]  }
0x1a78   :  { %v24855_v36 = vpop.f32.mrb[84].mxu0 }
0x1a79   :  { %v20024_v50 = vpop.f32.mrb[85].mxu0 }
0x1a7a   :  { %v16365_v18 = vpop.f32.mrb[86].mxu0  ;;  %v22803_v50 = vld [vmem:[%s25173_s20 + $0xf8] sm:$0xff]  }
0x1a7b   :  { %v20025_v5 = vpop.f32.mrb[87].mxu0  ;;  %v22804_v18 = vld [vmem:[%s25173_s20 + $0x38] sm:$0xff]  }
0x1a7c   :  { %v22805_v5 = vld [vmem:[%s25173_s20 + $0xb8] sm:$0xff]  }
0x1a99   :  { %v16497_v20 = vpop.f32.mrb[88].mxu0 }
0x1a9a   :  { %v20091_v0 = vadd.f32 %v16497_v20, %v23966_v63  ;;  %v16499_v57 = vpop.f32.mrb[89].mxu0  ;;  %v22806_v20 = vld [vmem:[%s25173_s20 + $0x140] sm:$0xff]  }
0x1a9b   :  { %v16500_v37 = vpop.f32.mrb[90].mxu0  ;;  %v22807_v57 = vld [vmem:[%s25173_s20 + $0x100] sm:$0xff]  }
0x1a9c   :  { %v16503_v19 = vmul.f32 0.03608439, %v20091_v0  ;;  %v16501_v61 = vpop.f32.mrb[91].mxu0  ;;  %v22822_v0 = vld [vmem:[%s25173_s20 + $0x1c0] sm:$0xff]   ;;  %v22808_v37 = vld [vmem:[%s25173_s20 + $0x148] sm:$0xff]  }
0x1a9d   :  { %v22826_v61 = vld [vmem:[%s25173_s20 + $0x1c8] sm:$0xff]  }
0x1a9e   :  { %v16504_v22 = vsel %vm25260_vm2, %v16503_v19, -inf }
0x1a9f   :  { %v16505_v10 = vrot.slane %v16504_v22, 4 }
0x1aa1   :  { %v16506_v56 = vmax.f32 %v16504_v22, %v16505_v10  ;;  %v22809_v22 = vld [vmem:[%s25173_s20 + $0x108] sm:$0xff]   ;;  %v22810_v10 = vld [vmem:[%s25173_s20 + $0x150] sm:$0xff]  }
0x1aa3   :  { %v16507_v51 = vrot.slane %v16506_v56, 2 }
0x1aa5   :  { %v16508_v32 = vmax.f32 %v16506_v56, %v16507_v51  ;;  %v22828_v56 = vld [vmem:[%s25173_s20 + $0x188] sm:$0xff]   ;;  %v22832_v51 = vld [vmem:[%s25173_s20 + $0x190] sm:$0xff]  }
0x1aa7   :  { %v16509_v8 = vrot.slane %v16508_v32, 1 }
0x1aa9   :  { %v16510_v9 = vmax.f32 %v16508_v32, %v16509_v8  ;;  %v22834_v32 = vld [vmem:[%s25173_s20 + $0x1d8] sm:$0xff]  }
0x1aaa   :  { %v22813_v8 = vld [vmem:[%s25173_s20 + $0x118] sm:$0xff]  }
0x1aab   :  { %v16511_v59 = vsub.f32 %v16503_v19, %v16510_v9  ;;  %v22824_v19 = vld [vmem:[%s25173_s20 + $0x180] sm:$0xff]  }
0x1aac   :  { %v22814_v9 = vld [vmem:[%s25173_s20 + $0x160] sm:$0xff]  }
0x1aad   :  { %v16512_v27 = vmul.f32 1.442695, %v16511_v59  ;;  %v22836_v59 = vld [vmem:[%s25173_s20 + $0x198] sm:$0xff]  }
0x1aaf   :  { %22946 = vpow2.f32 %v16512_v27  ;;  %v22838_v27 = vld [vmem:[%s25173_s20 + $0x1e0] sm:$0xff]  }
0x1ab9   :  { %v22947_v42 = vpop.eup %22946 }
0x1aba   :  { %v16514_v12 = vsel %vm25261_vm3, %v22947_v42, 0.0 }
0x1abb   :  { %v16515_v23 = vrot.slane %v16514_v12, 4 }
0x1abd   :  { %v16516_v63 = vadd.f32 %v16515_v23, %v16514_v12  ;;  %v22816_v12 = vld [vmem:[%s25173_s20 + $0x168] sm:$0xff]   ;;  %v22840_v23 = vld [vmem:[%s25173_s20 + $0x1a0] sm:$0xff]  }
0x1abf   :  { %v16517_v62 = vrot.slane %v16516_v63, 2 }
0x1ac1   :  { %v16518_v48 = vadd.f32 %v16517_v62, %v16516_v63  ;;  %v22842_v63 = vld [vmem:[%s25173_s20 + $0x1e8] sm:$0xff]  }
0x1ac2   :  { %v22817_v62 = vld [vmem:[%s25173_s20 + $0x128] sm:$0xff]  }
0x1ac3   :  { %v16519_v39 = vrot.slane %v16518_v48, 1 }
0x1ac5   :  { %v16520_v55 = vadd.f32 %v16519_v39, %v16518_v48  ;;  %v22818_v48 = vld [vmem:[%s25173_s20 + $0x170] sm:$0xff]   ;;  %v22844_v39 = vld [vmem:[%s25173_s20 + $0x1a8] sm:$0xff]  }
0x1ac7   :  { %22948 = vrcp.f32 %v16520_v55  ;;  %v22846_v55 = vld [vmem:[%s25173_s20 + $0x1f0] sm:$0xff]  }
0x1ad1   :  { %v22949_v7 = vpop.eup %22948 }
0x1ad2   :  { %v16522_v46 = vmul.f32 %v22949_v7, %v22947_v42  ;;  %v22815_v42 = vld [vmem:[%s25173_s20 + $0x120] sm:$0xff]   ;;  %v22819_v7 = vld [vmem:[%s25173_s20 + $0x130] sm:$0xff]  }
0x1ad4   :  { %v16523_v30 = vpack.c.bf16 %v16522_v46, %v16522_v46  ;;  %v22820_v46 = vld [vmem:[%s25173_s20 + $0x178] sm:$0xff]  }
0x1ad6   :  { %19518 = vmatmul.mubr.msk.bf16.vlgmr.msra.gmra.mrb[92].mxu0 %vm25262_vm7, %v16523_v30  ;;  %20029 = vmatmul.mubr.msk.bf16.vlgmr.msra.gmra.mrb[68].mxu1 %vm25263_vm8, %v16523_v30  ;;  %v22823_v30 = vld [vmem:[%s25173_s20 + $0x240] sm:$0xff]  }
0x1ad7   :  { %19835 = vmatpush3.bf16.msra.mxu0 %v22776_v3  ;;  %19857 = vmatpush3.bf16.msra.mxu1 %v22777_v26  ;;  %v22848_v3 = vld [vmem:[%s25173_s20 + $0x1b0] sm:$0xff]   ;;  %v22821_v26 = vld [vmem:[%s25173_s20 + $0x138] sm:$0xff]  }
0x1ad8   :  { %17299 = vmatprep.mubr.bf16.mxu0 %v24170_v24  ;;  %17340 = vmatprep.mubr.bf16.mxu1 %v24383_v11  ;;  %v22785_v24 = vld [vmem:[%s25173_s20 + $0x90] sm:$0xff]   ;;  %v22786_v11 = vld [vmem:[%s25173_s20 + $0x58] sm:$0xff]  }
0x1ad9   :  { %19836 = vmatprep.subr.bf16.mxu0 %v22778_v35  ;;  %19858 = vmatprep.subr.bf16.mxu1 %v22779_v47  ;;  %v22825_v35 = vld [vmem:[%s25173_s20 + $0x200] sm:$0xff]   ;;  %v22827_v47 = vld [vmem:[%s25173_s20 + $0x248] sm:$0xff]  }
0x1adb   :  { %19837 = vmatpush3.bf16.msra.mxu0 %v22780_v52  ;;  %19859 = vmatpush3.bf16.msra.mxu1 %v22781_v45  ;;  %v22829_v52 = vld [vmem:[%s25173_s20 + $0x208] sm:$0xff]   ;;  %v22831_v45 = vld [vmem:[%s25173_s20 + $0x250] sm:$0xff]  }
0x1adc   :  { %19838 = vmatprep.subr.bf16.mxu0 %v22782_v13  ;;  %19860 = vmatprep.subr.bf16.mxu1 %v22783_v2  ;;  %v22833_v13 = vld [vmem:[%s25173_s20 + $0x210] sm:$0xff]   ;;  %v22837_v2 = vld [vmem:[%s25173_s20 + $0x218] sm:$0xff]  }
0x1adf   :  { %19839 = vmatpush3.bf16.msra.mxu0 %v22784_v60  ;;  %19861 = vmatpush3.bf16.msra.mxu1 %v22785_v24  ;;  %v22839_v60 = vld [vmem:[%s25173_s20 + $0x260] sm:$0xff]  }
0x1ae0   :  { %19840 = vmatprep.subr.bf16.mxu0 %v22786_v11  ;;  %19862 = vmatprep.subr.bf16.mxu1 %v22787_v28  ;;  %v22841_v24 = vld [vmem:[%s25173_s20 + $0x220] sm:$0xff]   ;;  %v22843_v11 = vld [vmem:[%s25173_s20 + $0x268] sm:$0xff]  }
0x1ae1   :  { %v22845_v28 = vld [vmem:[%s25173_s20 + $0x228] sm:$0xff]  }
0x1ae3   :  { %19841 = vmatpush3.bf16.msra.mxu0 %v22788_v4  ;;  %19863 = vmatpush3.bf16.msra.mxu1 %v22789_v15  ;;  %v22847_v4 = vld [vmem:[%s25173_s20 + $0x270] sm:$0xff]   ;;  %v22850_v15 = vld [vmem:[%s25173_s20 + $0x1f8] sm:$0xff]  }
0x1ae4   :  { %19842 = vmatprep.subr.bf16.mxu0 %v22790_v38  ;;  %19864 = vmatprep.subr.bf16.mxu1 %v22791_v29  ;;  %v22852_v38 = vld [vmem:[%s25173_s20 + $0x1b8] sm:$0xff]   ;;  %v22849_v29 = vld [vmem:[%s25173_s20 + $0x230] sm:$0xff]  }
0x1ae7   :  { %19843 = vmatpush3.bf16.msra.mxu0 %v22792_v16  ;;  %19865 = vmatpush3.bf16.msra.mxu1 %v22793_v53  ;;  %v22851_v16 = vld [vmem:[%s25173_s20 + $0x278] sm:$0xff]  }
0x1ae8   :  { %19844 = vmatprep.subr.bf16.mxu0 %v22794_v54  ;;  %19866 = vmatprep.subr.bf16.mxu1 %v22795_v6  ;;  %v22853_v53 = vld [vmem:[%s25173_s20 + $0x238] sm:$0xff]  }
0x1aeb   :  { %19845 = vmatpush3.bf16.msra.mxu0 %v22796_v14  ;;  %19867 = vmatpush3.bf16.msra.mxu1 %v22797_v1 }
0x1aec   :  { %19846 = vmatprep.subr.bf16.mxu0 %v22798_v58  ;;  %19868 = vmatprep.subr.bf16.mxu1 %v22799_v17 }
0x1aef   :  { %19847 = vmatpush3.bf16.msra.mxu0 %v22800_v34  ;;  %19869 = vmatpush3.bf16.msra.mxu1 %v22801_v21 }
0x1af0   :  { %19848 = vmatprep.subr.bf16.mxu0 %v22802_v25  ;;  %19870 = vmatprep.subr.bf16.mxu1 %v22803_v50 }
0x1af3   :  { %19849 = vmatpush3.bf16.msra.mxu0 %v22804_v18  ;;  %19871 = vmatpush3.bf16.msra.mxu1 %v22805_v5 }
0x1af4   :  { %19878 = vmatprep.subr.bf16.mxu0 %v22806_v20  ;;  %19900 = vmatprep.subr.bf16.mxu1 %v22822_v0  ;;  %v19520_v0 = vld [vmem:[#allocation32] ss:$0 sm:$0xff] }
0x1af6   :  { %17300 = vmatmul.mubr.bf16.vlgmr.msra.gmra.mrb[96].mxu0 %v24016_v44  ;;  %17341 = vmatmul.mubr.bf16.vlgmr.msra.gmra.mrb[72].mxu1 %v24376_v40  ;;  %v22830_v44 = vld [vmem:[%s25173_s20 + $0x1d0] sm:$0xff]  }
0x1af7   :  { %19879 = vmatpush3.bf16.msra.mxu0 %v22807_v57  ;;  %17381 = vmatprep.mubr.bf16.mxu0 %v24551_v41  ;;  %v22811_v40 = vld [vmem:[%s25173_s20 + $0x110] sm:$0xff]   ;;  %v22812_v41 = vld [vmem:[%s25173_s20 + $0x158] sm:$0xff]  }
0x1af8   :  { %19880 = vmatprep.subr.bf16.mxu0 %v22808_v37  ;;  %19901 = vmatpush3.bf16.msra.mxu1 %v22824_v19 }
0x1af9   :  { %19902 = vmatprep.subr.bf16.mxu1 %v22826_v61 }
0x1afb   :  { %19881 = vmatpush3.bf16.msra.mxu0 %v22809_v22 }
0x1afc   :  { %19882 = vmatprep.subr.bf16.mxu0 %v22810_v10  ;;  %19903 = vmatpush3.bf16.msra.mxu1 %v22828_v56 }
0x1afd   :  { %19904 = vmatprep.subr.bf16.mxu1 %v22830_v44 }
0x1aff   :  { %19883 = vmatpush3.bf16.msra.mxu0 %v22811_v40 }
0x1b00   :  { %19884 = vmatprep.subr.bf16.mxu0 %v22812_v41  ;;  %19905 = vmatpush3.bf16.msra.mxu1 %v22832_v51 }
0x1b01   :  { %19906 = vmatprep.subr.bf16.mxu1 %v22834_v32 }
0x1b03   :  { %19885 = vmatpush3.bf16.msra.mxu0 %v22813_v8 }
0x1b04   :  { %19886 = vmatprep.subr.bf16.mxu0 %v22814_v9  ;;  %19907 = vmatpush3.bf16.msra.mxu1 %v22836_v59 }
0x1b05   :  { %19908 = vmatprep.subr.bf16.mxu1 %v22838_v27 }
0x1b07   :  { %19887 = vmatpush3.bf16.msra.mxu0 %v22815_v42 }
0x1b08   :  { %19888 = vmatprep.subr.bf16.mxu0 %v22816_v12  ;;  %19909 = vmatpush3.bf16.msra.mxu1 %v22840_v23 }
0x1b09   :  { %19910 = vmatprep.subr.bf16.mxu1 %v22842_v63 }
0x1b0b   :  { %19889 = vmatpush3.bf16.msra.mxu0 %v22817_v62 }
0x1b0c   :  { %19890 = vmatprep.subr.bf16.mxu0 %v22818_v48  ;;  %19911 = vmatpush3.bf16.msra.mxu1 %v22844_v39 }
0x1b0d   :  { %19912 = vmatprep.subr.bf16.mxu1 %v22846_v55 }
0x1b0f   :  { %19891 = vmatpush3.bf16.msra.mxu0 %v22819_v7 }
0x1b10   :  { %19892 = vmatprep.subr.bf16.mxu0 %v22820_v46  ;;  %19913 = vmatpush3.bf16.msra.mxu1 %v22848_v3 }
0x1b11   :  { %19914 = vmatprep.subr.bf16.mxu1 %v22850_v15 }
0x1b13   :  { %19893 = vmatpush3.bf16.msra.mxu0 %v22821_v26 }
0x1b14   :  { %19922 = vmatprep.subr.bf16.mxu0 %v22823_v30  ;;  %19915 = vmatpush3.bf16.msra.mxu1 %v22852_v38 }
0x1b16   :  { %17382 = vmatmul.mubr.bf16.vlgmr.msra.gmra.mrb[100].mxu0 %v24490_v43  ;;  %v22835_v43 = vld [vmem:[%s25173_s20 + $0x258] sm:$0xff]   ;;  %s23519_s20 = smov [#allocation35]  }
0x1b17   :  { %19923 = vmatpush3.bf16.msra.mxu0 %v22825_v35  ;;  %s17491_s16 = sshll.u32 %s23519_s20, 4  ;;  %s17492_s16 = int_to_ptr.vmem [resolvable:$true] %s17491_s16 }
0x1b18   :  { %19924 = vmatprep.subr.bf16.mxu0 %v22827_v47  ;;  %s23394_s18 = scalar_lea.vmem %s17492_s16, 1024  ;;  %p23399_p7 = scmp.lt.s32.totalorder %s17492_s16, %s17492_s16 }
0x1b19   :  { %p23395_p6 = scmp.ne.s32.totalorder %s17492_s16, %s23394_s18  ;;  %p23400_p8 = scmp.lt.s32.totalorder %s23394_s18, %s23394_s18 }
0x1b1b   :  { %19925 = vmatpush3.bf16.msra.mxu0 %v22829_v52  ;;  %p23401_p9 = por %p23400_p8, %p23399_p7 }
0x1b1c   :  { %19926 = vmatprep.subr.bf16.mxu0 %v22831_v45 }
0x1b1d   :  { %p23402_p10 = pnand %p23401_p9, %p23395_p6 }
0x1b1f   :  { %19927 = vmatpush3.bf16.msra.mxu0 %v22833_v13 }
0x1b20   :  { %19928 = vmatprep.subr.bf16.mxu0 %v22835_v43 }
0x1b23   :  { %19929 = vmatpush3.bf16.msra.mxu0 %v22837_v2 }
0x1b24   :  { %19930 = vmatprep.subr.bf16.mxu0 %v22839_v60 }
0x1b27   :  { %19931 = vmatpush3.bf16.msra.mxu0 %v22841_v24 }
0x1b28   :  { %19932 = vmatprep.subr.bf16.mxu0 %v22843_v11 }
0x1b2b   :  { %19933 = vmatpush3.bf16.msra.mxu0 %v22845_v28 }
0x1b2c   :  { %19934 = vmatprep.subr.bf16.mxu0 %v22847_v4 }
0x1b2f   :  { %19935 = vmatpush3.bf16.msra.mxu0 %v22849_v29 }
0x1b30   :  { %19936 = vmatprep.subr.bf16.mxu0 %v22851_v16 }
0x1b33   :  { %19937 = vmatpush3.bf16.msra.mxu0 %v22853_v53 }
0x1ba9   :  { %v16570_v54 = vpop.f32.mrb[92].mxu0  ;;  %v16611_v6 = vpop.f32.mrb[68].mxu1 }
0x1baa   :  { %v16617_v14 = vpack.c.bf16 %v16570_v54, %v24851_v49  ;;  %v16619_v1 = vpack.c.bf16 %v16611_v6, %v24855_v36  ;;  %v16572_v58 = vpop.f32.mrb[93].mxu0  ;;  %v20030_v17 = vpop.f32.mrb[69].mxu1 }
0x1bab   :  { %v16618_v34 = vpack.c.bf16 %v16572_v58, %v24853_v31  ;;  %v16574_v21 = vpop.f32.mrb[94].mxu0  ;;  %v16614_v25 = vpop.f32.mrb[70].mxu1 }
0x1bac   :  { %v16575_v50 = vpop.f32.mrb[95].mxu0  ;;  %v20031_v18 = vpop.f32.mrb[71].mxu1  ;;  %17422 = vmatprep.mubr.bf16.mxu1 %v16617_v14  ;;  %17463 = vmatprep.mubr.bf16.mxu0 %v16619_v1 }
0x1bad   :  { %17423 = vmatmul.mubr.bf16.vlgmr.msra.gmra.mrb[76].mxu1 %v24614_v33  ;;  %17464 = vmatmul.mubr.bf16.vlgmr.msra.gmra.mrb[104].mxu0 %v16618_v34 }
0x1bc9   :  { %v19850_v5 = vpop.f32.mrb[96].mxu0  ;;  %v19872_v20 = vpop.f32.mrb[72].mxu1 }
0x1bca   :  { %v19851_v57 = vpop.f32.mrb[97].mxu0  ;;  %v19873_v49 = vpop.f32.mrb[73].mxu1 }
0x1bcb   :  { %v19852_v37 = vadd.f32 %v19851_v57, %v19850_v5  ;;  %v19874_v36 = vadd.f32 %v19873_v49, %v19872_v20  ;;  %v19853_v19 = vpop.f32.mrb[98].mxu0  ;;  %v19875_v61 = vpop.f32.mrb[74].mxu1 }
0x1bcc   :  { %v19854_v22 = vpop.f32.mrb[99].mxu0  ;;  %v19876_v31 = vpop.f32.mrb[75].mxu1 }
0x1bcd   :  { %v17302_v10 = vadd.f32 %v19852_v37, %v19520_v0  ;;  %v19855_v56 = vadd.f32 %v19854_v22, %v19853_v19  ;;  %v19877_v44 = vadd.f32 %v19876_v31, %v19875_v61 }
0x1bcf   :  { %v17343_v40 = vadd.f32 %v19874_v36, %v17302_v10  ;;  %v17305_v41 = vadd.f32 %v19855_v56, %v19520_v0 }
0x1bd1   :  { %v17346_v51 = vadd.f32 %v19877_v44, %v17305_v41 }
0x1be9   :  { %v19894_v32 = vpop.f32.mrb[100].mxu0 }
0x1bea   :  { %v19895_v33 = vpop.f32.mrb[101].mxu0 }
0x1beb   :  { %v19896_v8 = vadd.f32 %v19895_v33, %v19894_v32  ;;  %v19897_v9 = vpop.f32.mrb[102].mxu0 }
0x1bec   :  { %v19898_v59 = vpop.f32.mrb[103].mxu0 }
0x1bed   :  { %v17384_v27 = vadd.f32 %v19896_v8, %v17343_v40  ;;  %v19899_v42 = vadd.f32 %v19898_v59, %v19897_v9 }
0x1bef   :  { %v17387_v12 = vadd.f32 %v19899_v42, %v17346_v51 }
0x1bf0   :  { %23405 = shalt.err (!%p23402_p10)
}
0x1bf1   :  { %s25264_s1 = sld [smem:[#allocation65_spill]] }
0x1bf7   :  { %s23406_s12 = scalar_lea.hbm %s25264_s1, 1024 }
0x1bf8   :  { %p23407_p11 = scmp.ne.s32.totalorder %s25264_s1, %s23406_s12  ;;  %p23410_p12 = scmp.lt.u32.totalorder %s23406_s12, %s25264_s1 }
0x1bfa   :  { %p23412_p13 = pnand %p23410_p12, %p23407_p11 }
0x1bfc   :  { %23415 = shalt.err (!%p23412_p13)
}
0x1bfd   :  { %17497 = dma.vmem_to_hbm [thread:$0]  %s17492_s16, 1024, %s25264_s1, [#allocation36], %s23495_s6, %s23495_s6, %s23496_s5  }
0x1bfe   :  { %s23416_s15 = scalar_lea.vmem %s17480_s7, 256  ;;  %p23421_p1 = scmp.lt.s32.totalorder %s17480_s7, %s17480_s7 }
0x1bff   :  { %p23417_p0 = scmp.ne.s32.totalorder %s17480_s7, %s23416_s15  ;;  %p23422_p2 = scmp.lt.s32.totalorder %s23416_s15, %s23416_s15 }
0x1c01   :  { %p23423_p3 = por %p23422_p2, %p23421_p1 }
0x1c03   :  { %p23424_p4 = pnand %p23423_p3, %p23417_p0 }
0x1c05   :  { %23427 = shalt.err (!%p23424_p4)
}
0x1c06   :  { %s25265_s3 = sld [smem:[#allocation64_spill]] }
0x1c0c   :  { %s23428_s30 = scalar_lea.hbm %s25265_s3, 256 }
0x1c0d   :  { %p23429_p5 = scmp.ne.s32.totalorder %s25265_s3, %s23428_s30  ;;  %p23432_p6 = scmp.lt.u32.totalorder %s23428_s30, %s25265_s3 }
0x1c0f   :  { %p23434_p7 = pnand %p23432_p6, %p23429_p5 }
0x1c11   :  { %23437 = shalt.err (!%p23434_p7)
}
0x1c12   :  { %17485 = dma.vmem_to_hbm [thread:$0]  %s17480_s7, 256, %s25265_s3, [#allocation4], %s23499_s27, %s23499_s27, %s23500_s0   ;;  %vm25266_vm14 = vcmask 261120  }
0x1c13   :  { %s23521_s9 = smov [#allocation37]   ;;  %vm25267_vm15 = vmmov %vm25266_vm14 }
0x1c14   :  { %s17503_s22 = sshll.u32 %s23521_s9, 4  ;;  %s17504_s22 = int_to_ptr.vmem [resolvable:$true] %s17503_s22 }
0x1c15   :  { %s23438_s25 = scalar_lea.vmem %s17504_s22, 256  ;;  %p23443_p9 = scmp.lt.s32.totalorder %s17504_s22, %s17504_s22 }
0x1c16   :  { %p23439_p8 = scmp.ne.s32.totalorder %s17504_s22, %s23438_s25  ;;  %p23444_p10 = scmp.lt.s32.totalorder %s23438_s25, %s23438_s25 }
0x1c18   :  { %p23445_p11 = por %p23444_p10, %p23443_p9 }
0x1c1a   :  { %p23446_p12 = pnand %p23445_p11, %p23439_p8 }
0x1c80   :  { %v19916_v23 = vpop.f32.mrb[76].mxu1  ;;  %v19938_v63 = vpop.f32.mrb[104].mxu0 }
0x1c81   :  { %v19917_v62 = vpop.f32.mrb[77].mxu1  ;;  %v19939_v48 = vpop.f32.mrb[105].mxu0 }
0x1c82   :  { %v19918_v39 = vadd.f32 %v19917_v62, %v19916_v23  ;;  %v19940_v55 = vadd.f32 %v19939_v48, %v19938_v63  ;;  %v19919_v7 = vpop.f32.mrb[78].mxu1  ;;  %v19941_v46 = vpop.f32.mrb[106].mxu0 }
0x1c83   :  { %v19920_v3 = vpop.f32.mrb[79].mxu1  ;;  %v19942_v26 = vpop.f32.mrb[107].mxu0 }
0x1c84   :  { %v17425_v30 = vadd.f32 %v19918_v39, %v17384_v27  ;;  %v19921_v35 = vadd.f32 %v19920_v3, %v19919_v7  ;;  %v19943_v47 = vadd.f32 %v19942_v26, %v19941_v46 }
0x1c86   :  { %v17466_v52 = vadd.f32 %v19940_v55, %v17425_v30  ;;  %v17428_v45 = vadd.f32 %v19921_v35, %v17387_v12 }
0x1c88   :  { %17472 = vst.msk [vmem:[#allocation37] sm:$0xff] %vm25266_vm14, %v17466_v52  ;;  %v17469_v13 = vadd.f32 %v19943_v47, %v17428_v45 }
0x1c8a   :  { %17473 = vst.msk [vmem:[#allocation37 + $0x8] sm:$0xff] %vm25267_vm15, %v17469_v13 }
0x1c8b   :  { %23449 = shalt.err (!%p23446_p12)
}
0x1c8c   :  { %s25268_s13 = sld [smem:[#allocation66_spill]] }
0x1c92   :  { %s23450_s7 = scalar_lea.hbm %s25268_s13, 256 }
0x1c93   :  { %p23451_p13 = scmp.ne.s32.totalorder %s25268_s13, %s23450_s7  ;;  %p23454_p0 = scmp.lt.u32.totalorder %s23450_s7, %s25268_s13 }
0x1c95   :  { %p23456_p1 = pnand %p23454_p0, %p23451_p13 }
0x1c97   :  { %23459 = shalt.err (!%p23456_p1)
}
0x1c98   :  { %17509 = dma.vmem_to_hbm [thread:$0]  %s17504_s22, 256, %s25268_s13, [#allocation36], %s23499_s27, %s23499_s27, %s23500_s0  }
0x1c99   :  { %23482 = dma.done.wait [#allocation4], 256  }
0x1c9a   :  { %23483 = vsyncadd [#allocation4], 4294967040 }
0x1c9b   :  { %23484 = dma.done.wait [#allocation36], 1280  }
0x1c9c   :  { %23485 = vsyncadd [#allocation36], 4294966016 }
0x1c9d   :  { %17519 = vsyncpa [#allocation3], 1 }
0x1c9e   :  { %17520 = vsyncpa [#allocation6], 1 }
0x1c9f   :  { %17521 = vsyncpa [#allocation9], 1 }
0x1ca0   :  { %17522 = vsyncpa [#allocation12], 1 }
0x1ca1   :  { %17523 = vsyncpa [#allocation15], 1 }
0x1ca2   :  { %17524 = vsyncpa [#allocation18], 1 }
0x1ca3   :  { %17525 = vsyncpa [#allocation21], 1 }
0x1ca4   :  { %17526 = vsyncpa [#allocation24], 1 }
0x1ca5   :  { %17527 = vsyncpa [#allocation27], 1 }
0x1ca6   :  { %17528 = vsyncpa [#allocation30], 1 }
0x1ca7   :  { %17529 = vsyncpa [#allocation33], 1 }
0x1ca8   :  { %17530 = vsyncpa [#allocation4], 1 }
0x1ca9   :  { %17531 = vsyncpa [#allocation36], 1 }

</bundles_post_ra>
